<compile_context>
chip_gen: v7x
topology: tpu7x:2x2x1
jax: 0.10.0
libtpu: 0.0.40
codegen_flags: <defaults>
</compile_context>

<pallas_src>
import functools
import math
from collections import namedtuple

import jax
import jax.numpy as jnp
from jax.experimental import pallas as pl
from jax.experimental.pallas import tpu as pltpu


# ----------------------------------------------------------------------------
# Helpers
# ----------------------------------------------------------------------------
def _round_up(x, m):
    return (x + m - 1) // m * m


def _pick_tile(size, candidates):
    for c in candidates:
        if size % c == 0:
            return c
    return candidates[-1]


# ----------------------------------------------------------------------------
# Pallas kernel 1: tiled GEMM (bf16 in, f32 acc) + bias + [residual] + [ReLU]
# ----------------------------------------------------------------------------
def _gemm_bias_kernel(p_ref, w_ref, b_ref, o_ref, acc_ref, *, relu):
    k = pl.program_id(2)

    @pl.when(k == 0)
    def _():
        acc_ref[...] = jnp.zeros_like(acc_ref)

    acc_ref[...] += jnp.dot(p_ref[...], w_ref[...], preferred_element_type=jnp.float32)

    @pl.when(k == pl.num_programs(2) - 1)
    def _():
        y = acc_ref[...] + b_ref[...]
        if relu:
            y = jnp.maximum(y, 0.0)
        o_ref[...] = y.astype(o_ref.dtype)


def _gemm_bias_res_kernel(p_ref, w_ref, b_ref, r_ref, o_ref, acc_ref, *, relu):
    k = pl.program_id(2)

    @pl.when(k == 0)
    def _():
        acc_ref[...] = jnp.zeros_like(acc_ref)

    acc_ref[...] += jnp.dot(p_ref[...], w_ref[...], preferred_element_type=jnp.float32)

    @pl.when(k == pl.num_programs(2) - 1)
    def _():
        y = acc_ref[...] + b_ref[...] + r_ref[...]
        if relu:
            y = jnp.maximum(y, 0.0)
        o_ref[...] = y.astype(o_ref.dtype)


def fused_gemm_bias(patches, w_pad, bias_pad, cout, residual=None, relu=True):
    """patches: (M, K) bf16; w_pad: (Kp, Cp) bf16 (BN scale folded in);
    bias_pad: (1, Cp) f32; residual: (M, cout) f32 or None.  Returns (M, cout) f32."""
    M, K = patches.shape
    Kp, Cp = w_pad.shape

    # Tile sizes: M tile up to 256 rows, N tile 256 where possible (256x256 MXU on
    # v6e/v7x), K tile largest of {512,256,128} dividing Kp (which is a mult of 128).
    tm = min(256, _round_up(M, 8))
    Mp = _round_up(M, tm)
    tn = _pick_tile(Cp, (256, 128))
    tk = _pick_tile(Kp, (512, 256, 128))

    p = jnp.pad(patches, ((0, Mp - M), (0, Kp - K)))

    in_specs = [
        pl.BlockSpec((tm, tk), lambda i, j, k: (i, k)),
        pl.BlockSpec((tk, tn), lambda i, j, k: (k, j)),
        pl.BlockSpec((1, tn), lambda i, j, k: (0, j)),
    ]
    args = [p, w_pad, bias_pad]

    if residual is not None:
        r = jnp.pad(residual.astype(jnp.float32), ((0, Mp - M), (0, Cp - cout)))
        in_specs.append(pl.BlockSpec((tm, tn), lambda i, j, k: (i, j)))
        args.append(r)
        kernel = functools.partial(_gemm_bias_res_kernel, relu=relu)
    else:
        kernel = functools.partial(_gemm_bias_kernel, relu=relu)

    out = pl.pallas_call(
        kernel,
        out_shape=jax.ShapeDtypeStruct((Mp, Cp), jnp.float32),
        grid_spec=pltpu.PrefetchScalarGridSpec(
            num_scalar_prefetch=0,
            grid=(Mp // tm, Cp // tn, Kp // tk),
            in_specs=in_specs,
            out_specs=pl.BlockSpec((tm, tn), lambda i, j, k: (i, j)),
            scratch_shapes=[pltpu.VMEM((tm, tn), jnp.float32)],
        ),
        compiler_params=pltpu.CompilerParams(
            dimension_semantics=("parallel", "parallel", "arbitrary"),
            vmem_limit_bytes=32 << 20,
        ),
    )(*args)
    return out[:M, :cout]


# ----------------------------------------------------------------------------
# Pallas kernel 2: max-pool reduction over extracted windows (tiled over M)
# ----------------------------------------------------------------------------
def _max_kernel(x_ref, o_ref):
    o_ref[...] = jnp.max(x_ref[...], axis=0)


def maxpool_pallas(x, ksize=3, stride=2, pad=1):
    """x: (N, H, W, C) NHWC. Matches nn.MaxPool2d(kernel_size, stride, padding)."""
    N, H, W, C = x.shape
    Ho = (H + 2 * pad - ksize) // stride + 1
    Wo = (W + 2 * pad - ksize) // stride + 1
    neg = jnp.finfo(x.dtype).min
    xp = jnp.full((N, H + 2 * pad, W + 2 * pad, C), neg, x.dtype)
    xp = xp.at[:, pad:pad + H, pad:pad + W, :].set(x)

    wins = []
    for i in range(ksize):
        for j in range(ksize):
            wins.append(xp[:, i:i + (Ho - 1) * stride + 1:stride,
                           j:j + (Wo - 1) * stride + 1:stride, :])
    kk = ksize * ksize
    wins = jnp.stack(wins, axis=0).reshape(kk, N * Ho * Wo, C)

    M = N * Ho * Wo
    Cp = _round_up(C, 128)
    tm = min(512, _round_up(M, 8))
    Mp = _round_up(M, tm)
    wpad = jnp.pad(wins, ((0, 0), (0, Mp - M), (0, Cp - C)), constant_values=neg)

    out = pl.pallas_call(
        _max_kernel,
        out_shape=jax.ShapeDtypeStruct((Mp, Cp), x.dtype),
        grid=(Mp // tm,),
        in_specs=[pl.BlockSpec((kk, tm, Cp), lambda i: (0, i, 0))],
        out_specs=pl.BlockSpec((tm, Cp), lambda i: (i, 0)),
        compiler_params=pltpu.CompilerParams(
            dimension_semantics=("parallel",),
            vmem_limit_bytes=32 << 20,
        ),
    )(wpad)
    return out[:M, :C].reshape(N, Ho, Wo, C)


# ----------------------------------------------------------------------------
# Conv (im2col glue) + fused Pallas GEMM
# ----------------------------------------------------------------------------
def im2col(x, kh, kw, stride, pad, dilation=1):
    N, H, W, C = x.shape
    Ho = (H + 2 * pad - dilation * (kh - 1) - 1) // stride + 1
    Wo = (W + 2 * pad - dilation * (kw - 1) - 1) // stride + 1
    xp = jnp.pad(x, ((0, 0), (pad, pad), (pad, pad), (0, 0)))
    cols = []
    for i in range(kh):
        for j in range(kw):
            hs, ws = i * dilation, j * dilation
            cols.append(xp[:, hs:hs + (Ho - 1) * stride + 1:stride,
                           ws:ws + (Wo - 1) * stride + 1:stride, :])
    patches = jnp.stack(cols, axis=3)                    # (N, Ho, Wo, kh*kw, C)
    patches = patches.reshape(N * Ho * Wo, kh * kw * C)  # feature order (i, j, c)
    return patches, Ho, Wo


def conv_bn(x, cp, stride, pad, dilation=1, relu=True, residual=None):
    """Conv2d(bias=False) + BatchNorm2d [+ residual add] [+ ReLU] fused in one GEMM."""
    kh, kw, cout = cp["kh"], cp["kw"], cp["cout"]
    N = x.shape[0]
    patches, Ho, Wo = im2col(x.astype(jnp.bfloat16), kh, kw, stride, pad, dilation)
    res_flat = None if residual is None else residual.reshape(N * Ho * Wo, cout)
    out = fused_gemm_bias(patches, cp["w"], cp["bias"], cout,
                          residual=res_flat, relu=relu)
    return out.reshape(N, Ho, Wo, cout)


# ----------------------------------------------------------------------------
# Parameter initialization (matches ResNet._init_weight semantics) + prep
# ----------------------------------------------------------------------------
def init_conv(key, kh, kw, cin, cout):
    fan_out = kh * kw * cout                       # kaiming_normal_(mode='fan_out', relu)
    std = math.sqrt(2.0 / fan_out)
    return jax.random.normal(key, (kh, kw, cin, cout), jnp.float32) * std


def init_bn(cout, eps=1e-5):
    gamma = jnp.ones((cout,), jnp.float32)
    beta = jnp.zeros((cout,), jnp.float32)
    mean = jnp.zeros((cout,), jnp.float32)
    var = jnp.ones((cout,), jnp.float32)
    scale = gamma / jnp.sqrt(var + eps)
    bias = beta - mean * scale
    return scale, bias


def prepare_conv(w, scale, bias):
    """Fold BN scale into weight columns, pad to (Kp, Cp), cast to bf16 — ONCE."""
    kh, kw, cin, cout = w.shape
    K = kh * kw * cin
    Kp = _round_up(K, 128)
    Cp = _round_up(cout, 128)
    wf = (w * scale[None, None, None, :]).reshape(K, cout)
    w_pad = jnp.zeros((Kp, Cp), jnp.bfloat16).at[:K, :cout].set(wf.astype(jnp.bfloat16))
    b_pad = jnp.zeros((1, Cp), jnp.float32).at[:, :cout].set(bias[None, :])
    return {"w": w_pad, "bias": b_pad, "kh": kh, "kw": kw, "cin": cin, "cout": cout}


BLOCK_EXPANSION = 1  # BasicBlock


def init_basic_block(key, inplanes, planes, downsample):
    k1, k2, k3 = jax.random.split(key, 3)
    p = {}
    s1, b1 = init_bn(planes)
    p["conv1"] = prepare_conv(init_conv(k1, 3, 3, inplanes, planes), s1, b1)
    s2, b2 = init_bn(planes)
    p["conv2"] = prepare_conv(init_conv(k2, 3, 3, planes, planes), s2, b2)
    if downsample:
        sd, bd = init_bn(planes * BLOCK_EXPANSION)
        p["downsample"] = prepare_conv(
            init_conv(k3, 1, 1, inplanes, planes * BLOCK_EXPANSION), sd, bd)
    return p


def basic_block_forward(x, p, stride, dilation=1):
    identity = x
    out = conv_bn(x, p["conv1"], stride=stride, pad=dilation, dilation=dilation, relu=True)
    if "downsample" in p:
        identity = conv_bn(x, p["downsample"], stride=stride, pad=0, relu=False)
    # conv2 + bn2 + residual add + relu, fused in one Pallas call
    out = conv_bn(out, p["conv2"], stride=1, pad=1, relu=True, residual=identity)
    return out


ModelArch = namedtuple("ModelArch", ["block", "stage", "url"])


def init_resnet(key, layers, res5_stride=2, res5_dilation=1):
    keys = jax.random.split(key, 5)
    params = {}
    s0, b0 = init_bn(64)
    params["conv1"] = prepare_conv(init_conv(keys[0], 7, 7, 3, 64), s0, b0)

    inplanes = 64

    def make_layer(k, inplanes, planes, blocks, stride=1, dilation=1):
        bkeys = jax.random.split(k, blocks)
        downsample = (stride != 1) or (inplanes != planes * BLOCK_EXPANSION)
        layer = [{"p": init_basic_block(bkeys[0], inplanes, planes, downsample),
                  "stride": stride, "dilation": dilation}]
        inplanes = planes * BLOCK_EXPANSION
        for i in range(1, blocks):
            layer.append({"p": init_basic_block(bkeys[i], inplanes, planes, False),
                          "stride": 1, "dilation": 1})
        return layer, inplanes

    params["layer1"], inplanes = make_layer(keys[1], inplanes, 64, layers[0])
    params["layer2"], inplanes = make_layer(keys[2], inplanes, 128, layers[1], stride=2)
    params["layer3"], inplanes = make_layer(keys[3], inplanes, 256, layers[2], stride=2)
    params["layer4"], inplanes = make_layer(keys[4], inplanes, 512, layers[3],
                                            stride=res5_stride, dilation=res5_dilation)
    return params


def resnet_forward(params, x_nchw, use_c2=False, use_c4=False):
    """Matches ResNet.forward: returns [layer2_out, layer4_out] (NCHW) for defaults."""
    x = jnp.transpose(x_nchw, (0, 2, 3, 1))  # NCHW -> NHWC for kernels
    x = conv_bn(x, params["conv1"], stride=2, pad=3, relu=True)   # conv1 + bn1 + relu
    x = maxpool_pallas(x, ksize=3, stride=2, pad=1)

    def run_layer(x, layer):
        for blk in layer:
            x = basic_block_forward(x, blk["p"], blk["stride"], blk["dilation"])
        return x

    output = []
    x = run_layer(x, params["layer1"])
    x = run_layer(x, params["layer2"])
    if not use_c2:
        output.append(jnp.transpose(x, (0, 3, 1, 2)))  # back to NCHW
    x = run_layer(x, params["layer3"])
    if not use_c4:
        x = run_layer(x, params["layer4"])
        output.append(jnp.transpose(x, (0, 3, 1, 2)))  # back to NCHW
    return output


if __name__ == "__main__":
    key = jax.random.PRNGKey(0)
    pkey, xkey = jax.random.split(key)

    # ResNet-18-style arch: BasicBlock, stages (2, 2, 2, 2), pretrained=False
    arch = ModelArch(block="BasicBlock", stage=(2, 2, 2, 2), url=None)
    params = init_resnet(pkey, layers=arch.stage, res5_stride=2, res5_dilation=1)

    # small NCHW input consistent with the module (3 input channels)
    x = jax.random.normal(xkey, (2, 3, 32, 32), jnp.float32)

    # jit the whole forward so im2col / pad / reshape glue fuses around the kernels
    forward = jax.jit(lambda inp: resnet_forward(params, inp, use_c2=False, use_c4=False))
    outs = forward(x)
    outs = jax.block_until_ready(outs)

    assert outs[0].shape == (2, 128, 4, 4)   # layer2 (C3) output
    assert outs[1].shape == (2, 512, 1, 1)   # layer4 (C5) output
    assert all(jnp.all(jnp.isfinite(o)) for o in outs)
    print("KERNEL_OK")
</pallas_src>

<mosaic_0001>
module attributes {stable_mosaic.version = 11 : i64} {
  func.func @_gemm_bias_kernel(%arg0: i32, %arg1: i32, %arg2: i32, %arg3: memref<256x256xbf16, #tpu.memory_space<vmem>>, %arg4: memref<256x128xbf16, #tpu.memory_space<vmem>>, %arg5: memref<1x128xf32, #tpu.memory_space<vmem>>, %arg6: memref<256x128xf32, #tpu.memory_space<vmem>>, %arg7: memref<256x128xf32, #tpu.memory_space<vmem>>) attributes {dimension_semantics = [#tpu.dimension_semantics<parallel>, #tpu.dimension_semantics<parallel>, #tpu.dimension_semantics<arbitrary>], iteration_bounds = array<i64: 2, 1, 1>, scalar_prefetch = 0 : i64, scratch_operands = 1 : i64, tpu.core_type = #tpu.core_type<tc>, window_params = [{transform_indices = @transform_0, window_bounds = array<i64: 256, 256>}, {transform_indices = @transform_1, window_bounds = array<i64: 256, 128>}, {transform_indices = @transform_2, window_bounds = array<i64: 1, 128>}, {transform_indices = @transform_3, window_bounds = array<i64: 256, 128>}]} {
    %c0_i32 = arith.constant 0 : i32
    %0 = arith.cmpi eq, %arg2, %c0_i32 : i32
    %1 = arith.extui %0 : i1 to i32
    %c0_i32_0 = arith.constant 0 : i32
    %2 = arith.cmpi ne, %1, %c0_i32_0 : i32
    scf.if %2 {
      %cst_10 = arith.constant 0.000000e+00 : f32
      %12 = vector.broadcast %cst_10 : f32 to vector<256x128xf32>
      %c0_11 = arith.constant 0 : index
      %c0_12 = arith.constant 0 : index
      %13 = vector.load %arg7[%c0_11, %c0_12] : memref<256x128xf32, #tpu.memory_space<vmem>>, vector<256x128xf32>
      tpu.vector_store %arg7[%c0_11, %c0_12], %12 {strides = array<i32>} : memref<256x128xf32, #tpu.memory_space<vmem>>, vector<256x128xf32>,
    } else {
    }
    %c0 = arith.constant 0 : index
    %c0_1 = arith.constant 0 : index
    %3 = vector.load %arg7[%c0, %c0_1] : memref<256x128xf32, #tpu.memory_space<vmem>>, vector<256x128xf32>
    %c0_2 = arith.constant 0 : index
    %c0_3 = arith.constant 0 : index
    %4 = vector.load %arg3[%c0_2, %c0_3] : memref<256x256xbf16, #tpu.memory_space<vmem>>, vector<256x256xbf16>
    %c0_4 = arith.constant 0 : index
    %c0_5 = arith.constant 0 : index
    %5 = vector.load %arg4[%c0_4, %c0_5] : memref<256x128xbf16, #tpu.memory_space<vmem>>, vector<256x128xbf16>
    %cst = arith.constant dense<0.000000e+00> : vector<256x128xf32>
    %6 = tpu.matmul %4, %5, %cst {dimension_numbers = #tpu.dot_dimension_numbers<[1], [0], [0], [1], [0, 0, 1, 1], [], []>} : vector<256x256xbf16>, vector<256x128xbf16>, vector<256x128xf32> -> vector<256x128xf32>
    %7 = arith.addf %3, %6 : vector<256x128xf32>
    %c0_6 = arith.constant 0 : index
    %c0_7 = arith.constant 0 : index
    %8 = vector.load %arg7[%c0_6, %c0_7] : memref<256x128xf32, #tpu.memory_space<vmem>>, vector<256x128xf32>
    tpu.vector_store %arg7[%c0_6, %c0_7], %7 {strides = array<i32>} : memref<256x128xf32, #tpu.memory_space<vmem>>, vector<256x128xf32>,
    %c0_i32_8 = arith.constant 0 : i32
    %9 = arith.cmpi eq, %arg2, %c0_i32_8 : i32
    %10 = arith.extui %9 : i1 to i32
    %c0_i32_9 = arith.constant 0 : i32
    %11 = arith.cmpi ne, %10, %c0_i32_9 : i32
    scf.if %11 {
      %c0_10 = arith.constant 0 : index
      %c0_11 = arith.constant 0 : index
      %12 = vector.load %arg7[%c0_10, %c0_11] : memref<256x128xf32, #tpu.memory_space<vmem>>, vector<256x128xf32>
      %c0_12 = arith.constant 0 : index
      %c0_13 = arith.constant 0 : index
      %13 = vector.load %arg5[%c0_12, %c0_13] : memref<1x128xf32, #tpu.memory_space<vmem>>, vector<1x128xf32>
      %14 = vector.broadcast %13 : vector<1x128xf32> to vector<256x128xf32>
      %15 = arith.addf %12, %14 : vector<256x128xf32>
      %cst_14 = arith.constant 0.000000e+00 : f32
      %16 = vector.broadcast %cst_14 : f32 to vector<256x128xf32>
      %17 = arith.maximumf %15, %16 : vector<256x128xf32>
      %c0_15 = arith.constant 0 : index
      %c0_16 = arith.constant 0 : index
      %18 = vector.load %arg6[%c0_15, %c0_16] : memref<256x128xf32, #tpu.memory_space<vmem>>, vector<256x128xf32>
      tpu.vector_store %arg6[%c0_15, %c0_16], %17 {strides = array<i32>} : memref<256x128xf32, #tpu.memory_space<vmem>>, vector<256x128xf32>,
    } else {
    }
    return
  }
  func.func @transform_0(%arg0: i32, %arg1: i32, %arg2: i32) -> (i32, i32) {
    %c0_i32 = arith.constant 0 : i32
    return %arg0, %arg2 : i32, i32
  }
  func.func @transform_1(%arg0: i32, %arg1: i32, %arg2: i32) -> (i32, i32) {
    %c0_i32 = arith.constant 0 : i32
    return %arg2, %arg1 : i32, i32
  }
  func.func @transform_2(%arg0: i32, %arg1: i32, %arg2: i32) -> (i32, i32) {
    %c0_i32 = arith.constant 0 : i32
    %c0_i32_0 = arith.constant 0 : i32
    return %c0_i32, %arg1 : i32, i32
  }
  func.func @transform_3(%arg0: i32, %arg1: i32, %arg2: i32) -> (i32, i32) {
    %c0_i32 = arith.constant 0 : i32
    return %arg0, %arg1 : i32, i32
  }
}

module attributes {stable_mosaic.version = 11 : i64} {
  func.func @_max_kernel(%arg0: i32, %arg1: memref<9x128x128xf32, #tpu.memory_space<vmem>>, %arg2: memref<128x128xf32, #tpu.memory_space<vmem>>) attributes {dimension_semantics = [#tpu.dimension_semantics<parallel>], iteration_bounds = array<i64: 1>, scalar_prefetch = 0 : i64, scratch_operands = 0 : i64, tpu.core_type = #tpu.core_type<tc>, window_params = [{transform_indices = @transform_0, window_bounds = array<i64: 9, 128, 128>}, {transform_indices = @transform_1, window_bounds = array<i64: 128, 128>}]} {
    %c0 = arith.constant 0 : index
    %c0_0 = arith.constant 0 : index
    %c0_1 = arith.constant 0 : index
    %0 = vector.load %arg1[%c0, %c0_0, %c0_1] : memref<9x128x128xf32, #tpu.memory_space<vmem>>, vector<9x128x128xf32>
    %cst = arith.constant dense<0xFF800000> : vector<128x128xf32>
    %1 = vector.multi_reduction <maximumf>, %0, %cst [0] : vector<9x128x128xf32> to vector<128x128xf32>
    %c0_2 = arith.constant 0 : index
    %c0_3 = arith.constant 0 : index
    %2 = vector.load %arg2[%c0_2, %c0_3] : memref<128x128xf32, #tpu.memory_space<vmem>>, vector<128x128xf32>
    tpu.vector_store %arg2[%c0_2, %c0_3], %1 {strides = array<i32>} : memref<128x128xf32, #tpu.memory_space<vmem>>, vector<128x128xf32>,
    return
  }
  func.func @transform_0(%arg0: i32) -> (i32, i32, i32) {
    %c0_i32 = arith.constant 0 : i32
    %c0_i32_0 = arith.constant 0 : i32
    %c0_i32_1 = arith.constant 0 : i32
    return %c0_i32, %arg0, %c0_i32_0 : i32, i32, i32
  }
  func.func @transform_1(%arg0: i32) -> (i32, i32) {
    %c0_i32 = arith.constant 0 : i32
    %c0_i32_0 = arith.constant 0 : i32
    return %arg0, %c0_i32 : i32, i32
  }
}

module attributes {stable_mosaic.version = 11 : i64} {
  func.func @_gemm_bias_kernel(%arg0: i32, %arg1: i32, %arg2: i32, %arg3: memref<128x128xbf16, #tpu.memory_space<vmem>>, %arg4: memref<128x128xbf16, #tpu.memory_space<vmem>>, %arg5: memref<1x128xf32, #tpu.memory_space<vmem>>, %arg6: memref<128x128xf32, #tpu.memory_space<vmem>>, %arg7: memref<128x128xf32, #tpu.memory_space<vmem>>) attributes {dimension_semantics = [#tpu.dimension_semantics<parallel>, #tpu.dimension_semantics<parallel>, #tpu.dimension_semantics<arbitrary>], iteration_bounds = array<i64: 1, 1, 5>, scalar_prefetch = 0 : i64, scratch_operands = 1 : i64, tpu.core_type = #tpu.core_type<tc>, window_params = [{transform_indices = @transform_0, window_bounds = array<i64: 128, 128>}, {transform_indices = @transform_1, window_bounds = array<i64: 128, 128>}, {transform_indices = @transform_2, window_bounds = array<i64: 1, 128>}, {transform_indices = @transform_3, window_bounds = array<i64: 128, 128>}]} {
    %c0_i32 = arith.constant 0 : i32
    %0 = arith.cmpi eq, %arg2, %c0_i32 : i32
    %1 = arith.extui %0 : i1 to i32
    %c0_i32_0 = arith.constant 0 : i32
    %2 = arith.cmpi ne, %1, %c0_i32_0 : i32
    scf.if %2 {
      %cst_9 = arith.constant 0.000000e+00 : f32
      %12 = vector.broadcast %cst_9 : f32 to vector<128x128xf32>
      %c0_10 = arith.constant 0 : index
      %c0_11 = arith.constant 0 : index
      %13 = vector.load %arg7[%c0_10, %c0_11] : memref<128x128xf32, #tpu.memory_space<vmem>>, vector<128x128xf32>
      tpu.vector_store %arg7[%c0_10, %c0_11], %12 {strides = array<i32>} : memref<128x128xf32, #tpu.memory_space<vmem>>, vector<128x128xf32>,
    } else {
    }
    %c0 = arith.constant 0 : index
    %c0_1 = arith.constant 0 : index
    %3 = vector.load %arg7[%c0, %c0_1] : memref<128x128xf32, #tpu.memory_space<vmem>>, vector<128x128xf32>
    %c0_2 = arith.constant 0 : index
    %c0_3 = arith.constant 0 : index
    %4 = vector.load %arg3[%c0_2, %c0_3] : memref<128x128xbf16, #tpu.memory_space<vmem>>, vector<128x128xbf16>
    %c0_4 = arith.constant 0 : index
    %c0_5 = arith.constant 0 : index
    %5 = vector.load %arg4[%c0_4, %c0_5] : memref<128x128xbf16, #tpu.memory_space<vmem>>, vector<128x128xbf16>
    %cst = arith.constant dense<0.000000e+00> : vector<128x128xf32>
    %6 = tpu.matmul %4, %5, %cst {dimension_numbers = #tpu.dot_dimension_numbers<[1], [0], [0], [1], [0, 0, 1, 1], [], []>} : vector<128x128xbf16>, vector<128x128xbf16>, vector<128x128xf32> -> vector<128x128xf32>
    %7 = arith.addf %3, %6 : vector<128x128xf32>
    %c0_6 = arith.constant 0 : index
    %c0_7 = arith.constant 0 : index
    %8 = vector.load %arg7[%c0_6, %c0_7] : memref<128x128xf32, #tpu.memory_space<vmem>>, vector<128x128xf32>
    tpu.vector_store %arg7[%c0_6, %c0_7], %7 {strides = array<i32>} : memref<128x128xf32, #tpu.memory_space<vmem>>, vector<128x128xf32>,
    %c4_i32 = arith.constant 4 : i32
    %9 = arith.cmpi eq, %arg2, %c4_i32 : i32
    %10 = arith.extui %9 : i1 to i32
    %c0_i32_8 = arith.constant 0 : i32
    %11 = arith.cmpi ne, %10, %c0_i32_8 : i32
    scf.if %11 {
      %c0_9 = arith.constant 0 : index
      %c0_10 = arith.constant 0 : index
      %12 = vector.load %arg7[%c0_9, %c0_10] : memref<128x128xf32, #tpu.memory_space<vmem>>, vector<128x128xf32>
      %c0_11 = arith.constant 0 : index
      %c0_12 = arith.constant 0 : index
      %13 = vector.load %arg5[%c0_11, %c0_12] : memref<1x128xf32, #tpu.memory_space<vmem>>, vector<1x128xf32>
      %14 = vector.broadcast %13 : vector<1x128xf32> to vector<128x128xf32>
      %15 = arith.addf %12, %14 : vector<128x128xf32>
      %cst_13 = arith.constant 0.000000e+00 : f32
      %16 = vector.broadcast %cst_13 : f32 to vector<128x128xf32>
      %17 = arith.maximumf %15, %16 : vector<128x128xf32>
      %c0_14 = arith.constant 0 : index
      %c0_15 = arith.constant 0 : index
      %18 = vector.load %arg6[%c0_14, %c0_15] : memref<128x128xf32, #tpu.memory_space<vmem>>, vector<128x128xf32>
      tpu.vector_store %arg6[%c0_14, %c0_15], %17 {strides = array<i32>} : memref<128x128xf32, #tpu.memory_space<vmem>>, vector<128x128xf32>,
    } else {
    }
    return
  }
  func.func @transform_0(%arg0: i32, %arg1: i32, %arg2: i32) -> (i32, i32) {
    %c0_i32 = arith.constant 0 : i32
    return %arg0, %arg2 : i32, i32
  }
  func.func @transform_1(%arg0: i32, %arg1: i32, %arg2: i32) -> (i32, i32) {
    %c0_i32 = arith.constant 0 : i32
    return %arg2, %arg1 : i32, i32
  }
  func.func @transform_2(%arg0: i32, %arg1: i32, %arg2: i32) -> (i32, i32) {
    %c0_i32 = arith.constant 0 : i32
    %c0_i32_0 = arith.constant 0 : i32
    return %c0_i32, %arg1 : i32, i32
  }
  func.func @transform_3(%arg0: i32, %arg1: i32, %arg2: i32) -> (i32, i32) {
    %c0_i32 = arith.constant 0 : i32
    return %arg0, %arg1 : i32, i32
  }
}

module attributes {stable_mosaic.version = 11 : i64} {
  func.func @_gemm_bias_res_kernel(%arg0: i32, %arg1: i32, %arg2: i32, %arg3: memref<128x128xbf16, #tpu.memory_space<vmem>>, %arg4: memref<128x128xbf16, #tpu.memory_space<vmem>>, %arg5: memref<1x128xf32, #tpu.memory_space<vmem>>, %arg6: memref<128x128xf32, #tpu.memory_space<vmem>>, %arg7: memref<128x128xf32, #tpu.memory_space<vmem>>, %arg8: memref<128x128xf32, #tpu.memory_space<vmem>>) attributes {dimension_semantics = [#tpu.dimension_semantics<parallel>, #tpu.dimension_semantics<parallel>, #tpu.dimension_semantics<arbitrary>], iteration_bounds = array<i64: 1, 1, 5>, scalar_prefetch = 0 : i64, scratch_operands = 1 : i64, tpu.core_type = #tpu.core_type<tc>, window_params = [{transform_indices = @transform_0, window_bounds = array<i64: 128, 128>}, {transform_indices = @transform_1, window_bounds = array<i64: 128, 128>}, {transform_indices = @transform_2, window_bounds = array<i64: 1, 128>}, {transform_indices = @transform_3, window_bounds = array<i64: 128, 128>}, {transform_indices = @transform_4, window_bounds = array<i64: 128, 128>}]} {
    %c0_i32 = arith.constant 0 : i32
    %0 = arith.cmpi eq, %arg2, %c0_i32 : i32
    %1 = arith.extui %0 : i1 to i32
    %c0_i32_0 = arith.constant 0 : i32
    %2 = arith.cmpi ne, %1, %c0_i32_0 : i32
    scf.if %2 {
      %cst_9 = arith.constant 0.000000e+00 : f32
      %12 = vector.broadcast %cst_9 : f32 to vector<128x128xf32>
      %c0_10 = arith.constant 0 : index
      %c0_11 = arith.constant 0 : index
      %13 = vector.load %arg8[%c0_10, %c0_11] : memref<128x128xf32, #tpu.memory_space<vmem>>, vector<128x128xf32>
      tpu.vector_store %arg8[%c0_10, %c0_11], %12 {strides = array<i32>} : memref<128x128xf32, #tpu.memory_space<vmem>>, vector<128x128xf32>,
    } else {
    }
    %c0 = arith.constant 0 : index
    %c0_1 = arith.constant 0 : index
    %3 = vector.load %arg8[%c0, %c0_1] : memref<128x128xf32, #tpu.memory_space<vmem>>, vector<128x128xf32>
    %c0_2 = arith.constant 0 : index
    %c0_3 = arith.constant 0 : index
    %4 = vector.load %arg3[%c0_2, %c0_3] : memref<128x128xbf16, #tpu.memory_space<vmem>>, vector<128x128xbf16>
    %c0_4 = arith.constant 0 : index
    %c0_5 = arith.constant 0 : index
    %5 = vector.load %arg4[%c0_4, %c0_5] : memref<128x128xbf16, #tpu.memory_space<vmem>>, vector<128x128xbf16>
    %cst = arith.constant dense<0.000000e+00> : vector<128x128xf32>
    %6 = tpu.matmul %4, %5, %cst {dimension_numbers = #tpu.dot_dimension_numbers<[1], [0], [0], [1], [0, 0, 1, 1], [], []>} : vector<128x128xbf16>, vector<128x128xbf16>, vector<128x128xf32> -> vector<128x128xf32>
    %7 = arith.addf %3, %6 : vector<128x128xf32>
    %c0_6 = arith.constant 0 : index
    %c0_7 = arith.constant 0 : index
    %8 = vector.load %arg8[%c0_6, %c0_7] : memref<128x128xf32, #tpu.memory_space<vmem>>, vector<128x128xf32>
    tpu.vector_store %arg8[%c0_6, %c0_7], %7 {strides = array<i32>} : memref<128x128xf32, #tpu.memory_space<vmem>>, vector<128x128xf32>,
    %c4_i32 = arith.constant 4 : i32
    %9 = arith.cmpi eq, %arg2, %c4_i32 : i32
    %10 = arith.extui %9 : i1 to i32
    %c0_i32_8 = arith.constant 0 : i32
    %11 = arith.cmpi ne, %10, %c0_i32_8 : i32
    scf.if %11 {
      %c0_9 = arith.constant 0 : index
      %c0_10 = arith.constant 0 : index
      %12 = vector.load %arg8[%c0_9, %c0_10] : memref<128x128xf32, #tpu.memory_space<vmem>>, vector<128x128xf32>
      %c0_11 = arith.constant 0 : index
      %c0_12 = arith.constant 0 : index
      %13 = vector.load %arg5[%c0_11, %c0_12] : memref<1x128xf32, #tpu.memory_space<vmem>>, vector<1x128xf32>
      %14 = vector.broadcast %13 : vector<1x128xf32> to vector<128x128xf32>
      %15 = arith.addf %12, %14 : vector<128x128xf32>
      %c0_13 = arith.constant 0 : index
      %c0_14 = arith.constant 0 : index
      %16 = vector.load %arg6[%c0_13, %c0_14] : memref<128x128xf32, #tpu.memory_space<vmem>>, vector<128x128xf32>
      %17 = arith.addf %15, %16 : vector<128x128xf32>
      %cst_15 = arith.constant 0.000000e+00 : f32
      %18 = vector.broadcast %cst_15 : f32 to vector<128x128xf32>
      %19 = arith.maximumf %17, %18 : vector<128x128xf32>
      %c0_16 = arith.constant 0 : index
      %c0_17 = arith.constant 0 : index
      %20 = vector.load %arg7[%c0_16, %c0_17] : memref<128x128xf32, #tpu.memory_space<vmem>>, vector<128x128xf32>
      tpu.vector_store %arg7[%c0_16, %c0_17], %19 {strides = array<i32>} : memref<128x128xf32, #tpu.memory_space<vmem>>, vector<128x128xf32>,
    } else {
    }
    return
  }
  func.func @transform_0(%arg0: i32, %arg1: i32, %arg2: i32) -> (i32, i32) {
    %c0_i32 = arith.constant 0 : i32
    return %arg0, %arg2 : i32, i32
  }
  func.func @transform_1(%arg0: i32, %arg1: i32, %arg2: i32) -> (i32, i32) {
    %c0_i32 = arith.constant 0 : i32
    return %arg2, %arg1 : i32, i32
  }
  func.func @transform_2(%arg0: i32, %arg1: i32, %arg2: i32) -> (i32, i32) {
    %c0_i32 = arith.constant 0 : i32
    %c0_i32_0 = arith.constant 0 : i32
    return %c0_i32, %arg1 : i32, i32
  }
  func.func @transform_3(%arg0: i32, %arg1: i32, %arg2: i32) -> (i32, i32) {
    %c0_i32 = arith.constant 0 : i32
    return %arg0, %arg1 : i32, i32
  }
  func.func @transform_4(%arg0: i32, %arg1: i32, %arg2: i32) -> (i32, i32) {
    %c0_i32 = arith.constant 0 : i32
    return %arg0, %arg1 : i32, i32
  }
}

module attributes {stable_mosaic.version = 11 : i64} {
  func.func @_gemm_bias_kernel(%arg0: i32, %arg1: i32, %arg2: i32, %arg3: memref<32x128xbf16, #tpu.memory_space<vmem>>, %arg4: memref<128x128xbf16, #tpu.memory_space<vmem>>, %arg5: memref<1x128xf32, #tpu.memory_space<vmem>>, %arg6: memref<32x128xf32, #tpu.memory_space<vmem>>, %arg7: memref<32x128xf32, #tpu.memory_space<vmem>>) attributes {dimension_semantics = [#tpu.dimension_semantics<parallel>, #tpu.dimension_semantics<parallel>, #tpu.dimension_semantics<arbitrary>], iteration_bounds = array<i64: 1, 1, 5>, scalar_prefetch = 0 : i64, scratch_operands = 1 : i64, tpu.core_type = #tpu.core_type<tc>, window_params = [{transform_indices = @transform_0, window_bounds = array<i64: 32, 128>}, {transform_indices = @transform_1, window_bounds = array<i64: 128, 128>}, {transform_indices = @transform_2, window_bounds = array<i64: 1, 128>}, {transform_indices = @transform_3, window_bounds = array<i64: 32, 128>}]} {
    %c0_i32 = arith.constant 0 : i32
    %0 = arith.cmpi eq, %arg2, %c0_i32 : i32
    %1 = arith.extui %0 : i1 to i32
    %c0_i32_0 = arith.constant 0 : i32
    %2 = arith.cmpi ne, %1, %c0_i32_0 : i32
    scf.if %2 {
      %cst_9 = arith.constant 0.000000e+00 : f32
      %12 = vector.broadcast %cst_9 : f32 to vector<32x128xf32>
      %c0_10 = arith.constant 0 : index
      %c0_11 = arith.constant 0 : index
      %13 = vector.load %arg7[%c0_10, %c0_11] : memref<32x128xf32, #tpu.memory_space<vmem>>, vector<32x128xf32>
      tpu.vector_store %arg7[%c0_10, %c0_11], %12 {strides = array<i32>} : memref<32x128xf32, #tpu.memory_space<vmem>>, vector<32x128xf32>,
    } else {
    }
    %c0 = arith.constant 0 : index
    %c0_1 = arith.constant 0 : index
    %3 = vector.load %arg7[%c0, %c0_1] : memref<32x128xf32, #tpu.memory_space<vmem>>, vector<32x128xf32>
    %c0_2 = arith.constant 0 : index
    %c0_3 = arith.constant 0 : index
    %4 = vector.load %arg3[%c0_2, %c0_3] : memref<32x128xbf16, #tpu.memory_space<vmem>>, vector<32x128xbf16>
    %c0_4 = arith.constant 0 : index
    %c0_5 = arith.constant 0 : index
    %5 = vector.load %arg4[%c0_4, %c0_5] : memref<128x128xbf16, #tpu.memory_space<vmem>>, vector<128x128xbf16>
    %cst = arith.constant dense<0.000000e+00> : vector<32x128xf32>
    %6 = tpu.matmul %4, %5, %cst {dimension_numbers = #tpu.dot_dimension_numbers<[1], [0], [0], [1], [0, 0, 1, 1], [], []>} : vector<32x128xbf16>, vector<128x128xbf16>, vector<32x128xf32> -> vector<32x128xf32>
    %7 = arith.addf %3, %6 : vector<32x128xf32>
    %c0_6 = arith.constant 0 : index
    %c0_7 = arith.constant 0 : index
    %8 = vector.load %arg7[%c0_6, %c0_7] : memref<32x128xf32, #tpu.memory_space<vmem>>, vector<32x128xf32>
    tpu.vector_store %arg7[%c0_6, %c0_7], %7 {strides = array<i32>} : memref<32x128xf32, #tpu.memory_space<vmem>>, vector<32x128xf32>,
    %c4_i32 = arith.constant 4 : i32
    %9 = arith.cmpi eq, %arg2, %c4_i32 : i32
    %10 = arith.extui %9 : i1 to i32
    %c0_i32_8 = arith.constant 0 : i32
    %11 = arith.cmpi ne, %10, %c0_i32_8 : i32
    scf.if %11 {
      %c0_9 = arith.constant 0 : index
      %c0_10 = arith.constant 0 : index
      %12 = vector.load %arg7[%c0_9, %c0_10] : memref<32x128xf32, #tpu.memory_space<vmem>>, vector<32x128xf32>
      %c0_11 = arith.constant 0 : index
      %c0_12 = arith.constant 0 : index
      %13 = vector.load %arg5[%c0_11, %c0_12] : memref<1x128xf32, #tpu.memory_space<vmem>>, vector<1x128xf32>
      %14 = vector.broadcast %13 : vector<1x128xf32> to vector<32x128xf32>
      %15 = arith.addf %12, %14 : vector<32x128xf32>
      %cst_13 = arith.constant 0.000000e+00 : f32
      %16 = vector.broadcast %cst_13 : f32 to vector<32x128xf32>
      %17 = arith.maximumf %15, %16 : vector<32x128xf32>
      %c0_14 = arith.constant 0 : index
      %c0_15 = arith.constant 0 : index
      %18 = vector.load %arg6[%c0_14, %c0_15] : memref<32x128xf32, #tpu.memory_space<vmem>>, vector<32x128xf32>
      tpu.vector_store %arg6[%c0_14, %c0_15], %17 {strides = array<i32>} : memref<32x128xf32, #tpu.memory_space<vmem>>, vector<32x128xf32>,
    } else {
    }
    return
  }
  func.func @transform_0(%arg0: i32, %arg1: i32, %arg2: i32) -> (i32, i32) {
    %c0_i32 = arith.constant 0 : i32
    return %arg0, %arg2 : i32, i32
  }
  func.func @transform_1(%arg0: i32, %arg1: i32, %arg2: i32) -> (i32, i32) {
    %c0_i32 = arith.constant 0 : i32
    return %arg2, %arg1 : i32, i32
  }
  func.func @transform_2(%arg0: i32, %arg1: i32, %arg2: i32) -> (i32, i32) {
    %c0_i32 = arith.constant 0 : i32
    %c0_i32_0 = arith.constant 0 : i32
    return %c0_i32, %arg1 : i32, i32
  }
  func.func @transform_3(%arg0: i32, %arg1: i32, %arg2: i32) -> (i32, i32) {
    %c0_i32 = arith.constant 0 : i32
    return %arg0, %arg1 : i32, i32
  }
}

module attributes {stable_mosaic.version = 11 : i64} {
  func.func @_gemm_bias_kernel(%arg0: i32, %arg1: i32, %arg2: i32, %arg3: memref<32x128xbf16, #tpu.memory_space<vmem>>, %arg4: memref<128x128xbf16, #tpu.memory_space<vmem>>, %arg5: memref<1x128xf32, #tpu.memory_space<vmem>>, %arg6: memref<32x128xf32, #tpu.memory_space<vmem>>, %arg7: memref<32x128xf32, #tpu.memory_space<vmem>>) attributes {dimension_semantics = [#tpu.dimension_semantics<parallel>, #tpu.dimension_semantics<parallel>, #tpu.dimension_semantics<arbitrary>], iteration_bounds = array<i64: 1, 1, 1>, scalar_prefetch = 0 : i64, scratch_operands = 1 : i64, tpu.core_type = #tpu.core_type<tc>, window_params = [{transform_indices = @transform_0, window_bounds = array<i64: 32, 128>}, {transform_indices = @transform_1, window_bounds = array<i64: 128, 128>}, {transform_indices = @transform_2, window_bounds = array<i64: 1, 128>}, {transform_indices = @transform_3, window_bounds = array<i64: 32, 128>}]} {
    %c0_i32 = arith.constant 0 : i32
    %0 = arith.cmpi eq, %arg2, %c0_i32 : i32
    %1 = arith.extui %0 : i1 to i32
    %c0_i32_0 = arith.constant 0 : i32
    %2 = arith.cmpi ne, %1, %c0_i32_0 : i32
    scf.if %2 {
      %cst_10 = arith.constant 0.000000e+00 : f32
      %12 = vector.broadcast %cst_10 : f32 to vector<32x128xf32>
      %c0_11 = arith.constant 0 : index
      %c0_12 = arith.constant 0 : index
      %13 = vector.load %arg7[%c0_11, %c0_12] : memref<32x128xf32, #tpu.memory_space<vmem>>, vector<32x128xf32>
      tpu.vector_store %arg7[%c0_11, %c0_12], %12 {strides = array<i32>} : memref<32x128xf32, #tpu.memory_space<vmem>>, vector<32x128xf32>,
    } else {
    }
    %c0 = arith.constant 0 : index
    %c0_1 = arith.constant 0 : index
    %3 = vector.load %arg7[%c0, %c0_1] : memref<32x128xf32, #tpu.memory_space<vmem>>, vector<32x128xf32>
    %c0_2 = arith.constant 0 : index
    %c0_3 = arith.constant 0 : index
    %4 = vector.load %arg3[%c0_2, %c0_3] : memref<32x128xbf16, #tpu.memory_space<vmem>>, vector<32x128xbf16>
    %c0_4 = arith.constant 0 : index
    %c0_5 = arith.constant 0 : index
    %5 = vector.load %arg4[%c0_4, %c0_5] : memref<128x128xbf16, #tpu.memory_space<vmem>>, vector<128x128xbf16>
    %cst = arith.constant dense<0.000000e+00> : vector<32x128xf32>
    %6 = tpu.matmul %4, %5, %cst {dimension_numbers = #tpu.dot_dimension_numbers<[1], [0], [0], [1], [0, 0, 1, 1], [], []>} : vector<32x128xbf16>, vector<128x128xbf16>, vector<32x128xf32> -> vector<32x128xf32>
    %7 = arith.addf %3, %6 : vector<32x128xf32>
    %c0_6 = arith.constant 0 : index
    %c0_7 = arith.constant 0 : index
    %8 = vector.load %arg7[%c0_6, %c0_7] : memref<32x128xf32, #tpu.memory_space<vmem>>, vector<32x128xf32>
    tpu.vector_store %arg7[%c0_6, %c0_7], %7 {strides = array<i32>} : memref<32x128xf32, #tpu.memory_space<vmem>>, vector<32x128xf32>,
    %c0_i32_8 = arith.constant 0 : i32
    %9 = arith.cmpi eq, %arg2, %c0_i32_8 : i32
    %10 = arith.extui %9 : i1 to i32
    %c0_i32_9 = arith.constant 0 : i32
    %11 = arith.cmpi ne, %10, %c0_i32_9 : i32
    scf.if %11 {
      %c0_10 = arith.constant 0 : index
      %c0_11 = arith.constant 0 : index
      %12 = vector.load %arg7[%c0_10, %c0_11] : memref<32x128xf32, #tpu.memory_space<vmem>>, vector<32x128xf32>
      %c0_12 = arith.constant 0 : index
      %c0_13 = arith.constant 0 : index
      %13 = vector.load %arg5[%c0_12, %c0_13] : memref<1x128xf32, #tpu.memory_space<vmem>>, vector<1x128xf32>
      %14 = vector.broadcast %13 : vector<1x128xf32> to vector<32x128xf32>
      %15 = arith.addf %12, %14 : vector<32x128xf32>
      %c0_14 = arith.constant 0 : index
      %c0_15 = arith.constant 0 : index
      %16 = vector.load %arg6[%c0_14, %c0_15] : memref<32x128xf32, #tpu.memory_space<vmem>>, vector<32x128xf32>
      tpu.vector_store %arg6[%c0_14, %c0_15], %15 {strides = array<i32>} : memref<32x128xf32, #tpu.memory_space<vmem>>, vector<32x128xf32>,
    } else {
    }
    return
  }
  func.func @transform_0(%arg0: i32, %arg1: i32, %arg2: i32) -> (i32, i32) {
    %c0_i32 = arith.constant 0 : i32
    return %arg0, %arg2 : i32, i32
  }
  func.func @transform_1(%arg0: i32, %arg1: i32, %arg2: i32) -> (i32, i32) {
    %c0_i32 = arith.constant 0 : i32
    return %arg2, %arg1 : i32, i32
  }
  func.func @transform_2(%arg0: i32, %arg1: i32, %arg2: i32) -> (i32, i32) {
    %c0_i32 = arith.constant 0 : i32
    %c0_i32_0 = arith.constant 0 : i32
    return %c0_i32, %arg1 : i32, i32
  }
  func.func @transform_3(%arg0: i32, %arg1: i32, %arg2: i32) -> (i32, i32) {
    %c0_i32 = arith.constant 0 : i32
    return %arg0, %arg1 : i32, i32
  }
}

module attributes {stable_mosaic.version = 11 : i64} {
  func.func @_gemm_bias_kernel(%arg0: i32, %arg1: i32, %arg2: i32, %arg3: memref<32x128xbf16, #tpu.memory_space<vmem>>, %arg4: memref<128x128xbf16, #tpu.memory_space<vmem>>, %arg5: memref<1x128xf32, #tpu.memory_space<vmem>>, %arg6: memref<32x128xf32, #tpu.memory_space<vmem>>, %arg7: memref<32x128xf32, #tpu.memory_space<vmem>>) attributes {dimension_semantics = [#tpu.dimension_semantics<parallel>, #tpu.dimension_semantics<parallel>, #tpu.dimension_semantics<arbitrary>], iteration_bounds = array<i64: 1, 1, 9>, scalar_prefetch = 0 : i64, scratch_operands = 1 : i64, tpu.core_type = #tpu.core_type<tc>, window_params = [{transform_indices = @transform_0, window_bounds = array<i64: 32, 128>}, {transform_indices = @transform_1, window_bounds = array<i64: 128, 128>}, {transform_indices = @transform_2, window_bounds = array<i64: 1, 128>}, {transform_indices = @transform_3, window_bounds = array<i64: 32, 128>}]} {
    %c0_i32 = arith.constant 0 : i32
    %0 = arith.cmpi eq, %arg2, %c0_i32 : i32
    %1 = arith.extui %0 : i1 to i32
    %c0_i32_0 = arith.constant 0 : i32
    %2 = arith.cmpi ne, %1, %c0_i32_0 : i32
    scf.if %2 {
      %cst_9 = arith.constant 0.000000e+00 : f32
      %12 = vector.broadcast %cst_9 : f32 to vector<32x128xf32>
      %c0_10 = arith.constant 0 : index
      %c0_11 = arith.constant 0 : index
      %13 = vector.load %arg7[%c0_10, %c0_11] : memref<32x128xf32, #tpu.memory_space<vmem>>, vector<32x128xf32>
      tpu.vector_store %arg7[%c0_10, %c0_11], %12 {strides = array<i32>} : memref<32x128xf32, #tpu.memory_space<vmem>>, vector<32x128xf32>,
    } else {
    }
    %c0 = arith.constant 0 : index
    %c0_1 = arith.constant 0 : index
    %3 = vector.load %arg7[%c0, %c0_1] : memref<32x128xf32, #tpu.memory_space<vmem>>, vector<32x128xf32>
    %c0_2 = arith.constant 0 : index
    %c0_3 = arith.constant 0 : index
    %4 = vector.load %arg3[%c0_2, %c0_3] : memref<32x128xbf16, #tpu.memory_space<vmem>>, vector<32x128xbf16>
    %c0_4 = arith.constant 0 : index
    %c0_5 = arith.constant 0 : index
    %5 = vector.load %arg4[%c0_4, %c0_5] : memref<128x128xbf16, #tpu.memory_space<vmem>>, vector<128x128xbf16>
    %cst = arith.constant dense<0.000000e+00> : vector<32x128xf32>
    %6 = tpu.matmul %4, %5, %cst {dimension_numbers = #tpu.dot_dimension_numbers<[1], [0], [0], [1], [0, 0, 1, 1], [], []>} : vector<32x128xbf16>, vector<128x128xbf16>, vector<32x128xf32> -> vector<32x128xf32>
    %7 = arith.addf %3, %6 : vector<32x128xf32>
    %c0_6 = arith.constant 0 : index
    %c0_7 = arith.constant 0 : index
    %8 = vector.load %arg7[%c0_6, %c0_7] : memref<32x128xf32, #tpu.memory_space<vmem>>, vector<32x128xf32>
    tpu.vector_store %arg7[%c0_6, %c0_7], %7 {strides = array<i32>} : memref<32x128xf32, #tpu.memory_space<vmem>>, vector<32x128xf32>,
    %c8_i32 = arith.constant 8 : i32
    %9 = arith.cmpi eq, %arg2, %c8_i32 : i32
    %10 = arith.extui %9 : i1 to i32
    %c0_i32_8 = arith.constant 0 : i32
    %11 = arith.cmpi ne, %10, %c0_i32_8 : i32
    scf.if %11 {
      %c0_9 = arith.constant 0 : index
      %c0_10 = arith.constant 0 : index
      %12 = vector.load %arg7[%c0_9, %c0_10] : memref<32x128xf32, #tpu.memory_space<vmem>>, vector<32x128xf32>
      %c0_11 = arith.constant 0 : index
      %c0_12 = arith.constant 0 : index
      %13 = vector.load %arg5[%c0_11, %c0_12] : memref<1x128xf32, #tpu.memory_space<vmem>>, vector<1x128xf32>
      %14 = vector.broadcast %13 : vector<1x128xf32> to vector<32x128xf32>
      %15 = arith.addf %12, %14 : vector<32x128xf32>
      %cst_13 = arith.constant 0.000000e+00 : f32
      %16 = vector.broadcast %cst_13 : f32 to vector<32x128xf32>
      %17 = arith.maximumf %15, %16 : vector<32x128xf32>
      %c0_14 = arith.constant 0 : index
      %c0_15 = arith.constant 0 : index
      %18 = vector.load %arg6[%c0_14, %c0_15] : memref<32x128xf32, #tpu.memory_space<vmem>>, vector<32x128xf32>
      tpu.vector_store %arg6[%c0_14, %c0_15], %17 {strides = array<i32>} : memref<32x128xf32, #tpu.memory_space<vmem>>, vector<32x128xf32>,
    } else {
    }
    return
  }
  func.func @transform_0(%arg0: i32, %arg1: i32, %arg2: i32) -> (i32, i32) {
    %c0_i32 = arith.constant 0 : i32
    return %arg0, %arg2 : i32, i32
  }
  func.func @transform_1(%arg0: i32, %arg1: i32, %arg2: i32) -> (i32, i32) {
    %c0_i32 = arith.constant 0 : i32
    return %arg2, %arg1 : i32, i32
  }
  func.func @transform_2(%arg0: i32, %arg1: i32, %arg2: i32) -> (i32, i32) {
    %c0_i32 = arith.constant 0 : i32
    %c0_i32_0 = arith.constant 0 : i32
    return %c0_i32, %arg1 : i32, i32
  }
  func.func @transform_3(%arg0: i32, %arg1: i32, %arg2: i32) -> (i32, i32) {
    %c0_i32 = arith.constant 0 : i32
    return %arg0, %arg1 : i32, i32
  }
}

module attributes {stable_mosaic.version = 11 : i64} {
  func.func @_gemm_bias_res_kernel(%arg0: i32, %arg1: i32, %arg2: i32, %arg3: memref<32x128xbf16, #tpu.memory_space<vmem>>, %arg4: memref<128x128xbf16, #tpu.memory_space<vmem>>, %arg5: memref<1x128xf32, #tpu.memory_space<vmem>>, %arg6: memref<32x128xf32, #tpu.memory_space<vmem>>, %arg7: memref<32x128xf32, #tpu.memory_space<vmem>>, %arg8: memref<32x128xf32, #tpu.memory_space<vmem>>) attributes {dimension_semantics = [#tpu.dimension_semantics<parallel>, #tpu.dimension_semantics<parallel>, #tpu.dimension_semantics<arbitrary>], iteration_bounds = array<i64: 1, 1, 9>, scalar_prefetch = 0 : i64, scratch_operands = 1 : i64, tpu.core_type = #tpu.core_type<tc>, window_params = [{transform_indices = @transform_0, window_bounds = array<i64: 32, 128>}, {transform_indices = @transform_1, window_bounds = array<i64: 128, 128>}, {transform_indices = @transform_2, window_bounds = array<i64: 1, 128>}, {transform_indices = @transform_3, window_bounds = array<i64: 32, 128>}, {transform_indices = @transform_4, window_bounds = array<i64: 32, 128>}]} {
    %c0_i32 = arith.constant 0 : i32
    %0 = arith.cmpi eq, %arg2, %c0_i32 : i32
    %1 = arith.extui %0 : i1 to i32
    %c0_i32_0 = arith.constant 0 : i32
    %2 = arith.cmpi ne, %1, %c0_i32_0 : i32
    scf.if %2 {
      %cst_9 = arith.constant 0.000000e+00 : f32
      %12 = vector.broadcast %cst_9 : f32 to vector<32x128xf32>
      %c0_10 = arith.constant 0 : index
      %c0_11 = arith.constant 0 : index
      %13 = vector.load %arg8[%c0_10, %c0_11] : memref<32x128xf32, #tpu.memory_space<vmem>>, vector<32x128xf32>
      tpu.vector_store %arg8[%c0_10, %c0_11], %12 {strides = array<i32>} : memref<32x128xf32, #tpu.memory_space<vmem>>, vector<32x128xf32>,
    } else {
    }
    %c0 = arith.constant 0 : index
    %c0_1 = arith.constant 0 : index
    %3 = vector.load %arg8[%c0, %c0_1] : memref<32x128xf32, #tpu.memory_space<vmem>>, vector<32x128xf32>
    %c0_2 = arith.constant 0 : index
    %c0_3 = arith.constant 0 : index
    %4 = vector.load %arg3[%c0_2, %c0_3] : memref<32x128xbf16, #tpu.memory_space<vmem>>, vector<32x128xbf16>
    %c0_4 = arith.constant 0 : index
    %c0_5 = arith.constant 0 : index
    %5 = vector.load %arg4[%c0_4, %c0_5] : memref<128x128xbf16, #tpu.memory_space<vmem>>, vector<128x128xbf16>
    %cst = arith.constant dense<0.000000e+00> : vector<32x128xf32>
    %6 = tpu.matmul %4, %5, %cst {dimension_numbers = #tpu.dot_dimension_numbers<[1], [0], [0], [1], [0, 0, 1, 1], [], []>} : vector<32x128xbf16>, vector<128x128xbf16>, vector<32x128xf32> -> vector<32x128xf32>
    %7 = arith.addf %3, %6 : vector<32x128xf32>
    %c0_6 = arith.constant 0 : index
    %c0_7 = arith.constant 0 : index
    %8 = vector.load %arg8[%c0_6, %c0_7] : memref<32x128xf32, #tpu.memory_space<vmem>>, vector<32x128xf32>
    tpu.vector_store %arg8[%c0_6, %c0_7], %7 {strides = array<i32>} : memref<32x128xf32, #tpu.memory_space<vmem>>, vector<32x128xf32>,
    %c8_i32 = arith.constant 8 : i32
    %9 = arith.cmpi eq, %arg2, %c8_i32 : i32
    %10 = arith.extui %9 : i1 to i32
    %c0_i32_8 = arith.constant 0 : i32
    %11 = arith.cmpi ne, %10, %c0_i32_8 : i32
    scf.if %11 {
      %c0_9 = arith.constant 0 : index
      %c0_10 = arith.constant 0 : index
      %12 = vector.load %arg8[%c0_9, %c0_10] : memref<32x128xf32, #tpu.memory_space<vmem>>, vector<32x128xf32>
      %c0_11 = arith.constant 0 : index
      %c0_12 = arith.constant 0 : index
      %13 = vector.load %arg5[%c0_11, %c0_12] : memref<1x128xf32, #tpu.memory_space<vmem>>, vector<1x128xf32>
      %14 = vector.broadcast %13 : vector<1x128xf32> to vector<32x128xf32>
      %15 = arith.addf %12, %14 : vector<32x128xf32>
      %c0_13 = arith.constant 0 : index
      %c0_14 = arith.constant 0 : index
      %16 = vector.load %arg6[%c0_13, %c0_14] : memref<32x128xf32, #tpu.memory_space<vmem>>, vector<32x128xf32>
      %17 = arith.addf %15, %16 : vector<32x128xf32>
      %cst_15 = arith.constant 0.000000e+00 : f32
      %18 = vector.broadcast %cst_15 : f32 to vector<32x128xf32>
      %19 = arith.maximumf %17, %18 : vector<32x128xf32>
      %c0_16 = arith.constant 0 : index
      %c0_17 = arith.constant 0 : index
      %20 = vector.load %arg7[%c0_16, %c0_17] : memref<32x128xf32, #tpu.memory_space<vmem>>, vector<32x128xf32>
      tpu.vector_store %arg7[%c0_16, %c0_17], %19 {strides = array<i32>} : memref<32x128xf32, #tpu.memory_space<vmem>>, vector<32x128xf32>,
    } else {
    }
    return
  }
  func.func @transform_0(%arg0: i32, %arg1: i32, %arg2: i32) -> (i32, i32) {
    %c0_i32 = arith.constant 0 : i32
    return %arg0, %arg2 : i32, i32
  }
  func.func @transform_1(%arg0: i32, %arg1: i32, %arg2: i32) -> (i32, i32) {
    %c0_i32 = arith.constant 0 : i32
    return %arg2, %arg1 : i32, i32
  }
  func.func @transform_2(%arg0: i32, %arg1: i32, %arg2: i32) -> (i32, i32) {
    %c0_i32 = arith.constant 0 : i32
    %c0_i32_0 = arith.constant 0 : i32
    return %c0_i32, %arg1 : i32, i32
  }
  func.func @transform_3(%arg0: i32, %arg1: i32, %arg2: i32) -> (i32, i32) {
    %c0_i32 = arith.constant 0 : i32
    return %arg0, %arg1 : i32, i32
  }
  func.func @transform_4(%arg0: i32, %arg1: i32, %arg2: i32) -> (i32, i32) {
    %c0_i32 = arith.constant 0 : i32
    return %arg0, %arg1 : i32, i32
  }
}

module attributes {stable_mosaic.version = 11 : i64} {
  func.func @_gemm_bias_kernel(%arg0: i32, %arg1: i32, %arg2: i32, %arg3: memref<8x128xbf16, #tpu.memory_space<vmem>>, %arg4: memref<128x256xbf16, #tpu.memory_space<vmem>>, %arg5: memref<1x256xf32, #tpu.memory_space<vmem>>, %arg6: memref<8x256xf32, #tpu.memory_space<vmem>>, %arg7: memref<8x256xf32, #tpu.memory_space<vmem>>) attributes {dimension_semantics = [#tpu.dimension_semantics<parallel>, #tpu.dimension_semantics<parallel>, #tpu.dimension_semantics<arbitrary>], iteration_bounds = array<i64: 1, 1, 9>, scalar_prefetch = 0 : i64, scratch_operands = 1 : i64, tpu.core_type = #tpu.core_type<tc>, window_params = [{transform_indices = @transform_0, window_bounds = array<i64: 8, 128>}, {transform_indices = @transform_1, window_bounds = array<i64: 128, 256>}, {transform_indices = @transform_2, window_bounds = array<i64: 1, 256>}, {transform_indices = @transform_3, window_bounds = array<i64: 8, 256>}]} {
    %c0_i32 = arith.constant 0 : i32
    %0 = arith.cmpi eq, %arg2, %c0_i32 : i32
    %1 = arith.extui %0 : i1 to i32
    %c0_i32_0 = arith.constant 0 : i32
    %2 = arith.cmpi ne, %1, %c0_i32_0 : i32
    scf.if %2 {
      %cst_9 = arith.constant 0.000000e+00 : f32
      %12 = vector.broadcast %cst_9 : f32 to vector<8x256xf32>
      %c0_10 = arith.constant 0 : index
      %c0_11 = arith.constant 0 : index
      %13 = vector.load %arg7[%c0_10, %c0_11] : memref<8x256xf32, #tpu.memory_space<vmem>>, vector<8x256xf32>
      tpu.vector_store %arg7[%c0_10, %c0_11], %12 {strides = array<i32>} : memref<8x256xf32, #tpu.memory_space<vmem>>, vector<8x256xf32>,
    } else {
    }
    %c0 = arith.constant 0 : index
    %c0_1 = arith.constant 0 : index
    %3 = vector.load %arg7[%c0, %c0_1] : memref<8x256xf32, #tpu.memory_space<vmem>>, vector<8x256xf32>
    %c0_2 = arith.constant 0 : index
    %c0_3 = arith.constant 0 : index
    %4 = vector.load %arg3[%c0_2, %c0_3] : memref<8x128xbf16, #tpu.memory_space<vmem>>, vector<8x128xbf16>
    %c0_4 = arith.constant 0 : index
    %c0_5 = arith.constant 0 : index
    %5 = vector.load %arg4[%c0_4, %c0_5] : memref<128x256xbf16, #tpu.memory_space<vmem>>, vector<128x256xbf16>
    %cst = arith.constant dense<0.000000e+00> : vector<8x256xf32>
    %6 = tpu.matmul %4, %5, %cst {dimension_numbers = #tpu.dot_dimension_numbers<[1], [0], [0], [1], [0, 0, 1, 1], [], []>} : vector<8x128xbf16>, vector<128x256xbf16>, vector<8x256xf32> -> vector<8x256xf32>
    %7 = arith.addf %3, %6 : vector<8x256xf32>
    %c0_6 = arith.constant 0 : index
    %c0_7 = arith.constant 0 : index
    %8 = vector.load %arg7[%c0_6, %c0_7] : memref<8x256xf32, #tpu.memory_space<vmem>>, vector<8x256xf32>
    tpu.vector_store %arg7[%c0_6, %c0_7], %7 {strides = array<i32>} : memref<8x256xf32, #tpu.memory_space<vmem>>, vector<8x256xf32>,
    %c8_i32 = arith.constant 8 : i32
    %9 = arith.cmpi eq, %arg2, %c8_i32 : i32
    %10 = arith.extui %9 : i1 to i32
    %c0_i32_8 = arith.constant 0 : i32
    %11 = arith.cmpi ne, %10, %c0_i32_8 : i32
    scf.if %11 {
      %c0_9 = arith.constant 0 : index
      %c0_10 = arith.constant 0 : index
      %12 = vector.load %arg7[%c0_9, %c0_10] : memref<8x256xf32, #tpu.memory_space<vmem>>, vector<8x256xf32>
      %c0_11 = arith.constant 0 : index
      %c0_12 = arith.constant 0 : index
      %13 = vector.load %arg5[%c0_11, %c0_12] : memref<1x256xf32, #tpu.memory_space<vmem>>, vector<1x256xf32>
      %14 = vector.broadcast %13 : vector<1x256xf32> to vector<8x256xf32>
      %15 = arith.addf %12, %14 : vector<8x256xf32>
      %cst_13 = arith.constant 0.000000e+00 : f32
      %16 = vector.broadcast %cst_13 : f32 to vector<8x256xf32>
      %17 = arith.maximumf %15, %16 : vector<8x256xf32>
      %c0_14 = arith.constant 0 : index
      %c0_15 = arith.constant 0 : index
      %18 = vector.load %arg6[%c0_14, %c0_15] : memref<8x256xf32, #tpu.memory_space<vmem>>, vector<8x256xf32>
      tpu.vector_store %arg6[%c0_14, %c0_15], %17 {strides = array<i32>} : memref<8x256xf32, #tpu.memory_space<vmem>>, vector<8x256xf32>,
    } else {
    }
    return
  }
  func.func @transform_0(%arg0: i32, %arg1: i32, %arg2: i32) -> (i32, i32) {
    %c0_i32 = arith.constant 0 : i32
    return %arg0, %arg2 : i32, i32
  }
  func.func @transform_1(%arg0: i32, %arg1: i32, %arg2: i32) -> (i32, i32) {
    %c0_i32 = arith.constant 0 : i32
    return %arg2, %arg1 : i32, i32
  }
  func.func @transform_2(%arg0: i32, %arg1: i32, %arg2: i32) -> (i32, i32) {
    %c0_i32 = arith.constant 0 : i32
    %c0_i32_0 = arith.constant 0 : i32
    return %c0_i32, %arg1 : i32, i32
  }
  func.func @transform_3(%arg0: i32, %arg1: i32, %arg2: i32) -> (i32, i32) {
    %c0_i32 = arith.constant 0 : i32
    return %arg0, %arg1 : i32, i32
  }
}

module attributes {stable_mosaic.version = 11 : i64} {
  func.func @_gemm_bias_kernel(%arg0: i32, %arg1: i32, %arg2: i32, %arg3: memref<8x128xbf16, #tpu.memory_space<vmem>>, %arg4: memref<128x256xbf16, #tpu.memory_space<vmem>>, %arg5: memref<1x256xf32, #tpu.memory_space<vmem>>, %arg6: memref<8x256xf32, #tpu.memory_space<vmem>>, %arg7: memref<8x256xf32, #tpu.memory_space<vmem>>) attributes {dimension_semantics = [#tpu.dimension_semantics<parallel>, #tpu.dimension_semantics<parallel>, #tpu.dimension_semantics<arbitrary>], iteration_bounds = array<i64: 1, 1, 1>, scalar_prefetch = 0 : i64, scratch_operands = 1 : i64, tpu.core_type = #tpu.core_type<tc>, window_params = [{transform_indices = @transform_0, window_bounds = array<i64: 8, 128>}, {transform_indices = @transform_1, window_bounds = array<i64: 128, 256>}, {transform_indices = @transform_2, window_bounds = array<i64: 1, 256>}, {transform_indices = @transform_3, window_bounds = array<i64: 8, 256>}]} {
    %c0_i32 = arith.constant 0 : i32
    %0 = arith.cmpi eq, %arg2, %c0_i32 : i32
    %1 = arith.extui %0 : i1 to i32
    %c0_i32_0 = arith.constant 0 : i32
    %2 = arith.cmpi ne, %1, %c0_i32_0 : i32
    scf.if %2 {
      %cst_10 = arith.constant 0.000000e+00 : f32
      %12 = vector.broadcast %cst_10 : f32 to vector<8x256xf32>
      %c0_11 = arith.constant 0 : index
      %c0_12 = arith.constant 0 : index
      %13 = vector.load %arg7[%c0_11, %c0_12] : memref<8x256xf32, #tpu.memory_space<vmem>>, vector<8x256xf32>
      tpu.vector_store %arg7[%c0_11, %c0_12], %12 {strides = array<i32>} : memref<8x256xf32, #tpu.memory_space<vmem>>, vector<8x256xf32>,
    } else {
    }
    %c0 = arith.constant 0 : index
    %c0_1 = arith.constant 0 : index
    %3 = vector.load %arg7[%c0, %c0_1] : memref<8x256xf32, #tpu.memory_space<vmem>>, vector<8x256xf32>
    %c0_2 = arith.constant 0 : index
    %c0_3 = arith.constant 0 : index
    %4 = vector.load %arg3[%c0_2, %c0_3] : memref<8x128xbf16, #tpu.memory_space<vmem>>, vector<8x128xbf16>
    %c0_4 = arith.constant 0 : index
    %c0_5 = arith.constant 0 : index
    %5 = vector.load %arg4[%c0_4, %c0_5] : memref<128x256xbf16, #tpu.memory_space<vmem>>, vector<128x256xbf16>
    %cst = arith.constant dense<0.000000e+00> : vector<8x256xf32>
    %6 = tpu.matmul %4, %5, %cst {dimension_numbers = #tpu.dot_dimension_numbers<[1], [0], [0], [1], [0, 0, 1, 1], [], []>} : vector<8x128xbf16>, vector<128x256xbf16>, vector<8x256xf32> -> vector<8x256xf32>
    %7 = arith.addf %3, %6 : vector<8x256xf32>
    %c0_6 = arith.constant 0 : index
    %c0_7 = arith.constant 0 : index
    %8 = vector.load %arg7[%c0_6, %c0_7] : memref<8x256xf32, #tpu.memory_space<vmem>>, vector<8x256xf32>
    tpu.vector_store %arg7[%c0_6, %c0_7], %7 {strides = array<i32>} : memref<8x256xf32, #tpu.memory_space<vmem>>, vector<8x256xf32>,
    %c0_i32_8 = arith.constant 0 : i32
    %9 = arith.cmpi eq, %arg2, %c0_i32_8 : i32
    %10 = arith.extui %9 : i1 to i32
    %c0_i32_9 = arith.constant 0 : i32
    %11 = arith.cmpi ne, %10, %c0_i32_9 : i32
    scf.if %11 {
      %c0_10 = arith.constant 0 : index
      %c0_11 = arith.constant 0 : index
      %12 = vector.load %arg7[%c0_10, %c0_11] : memref<8x256xf32, #tpu.memory_space<vmem>>, vector<8x256xf32>
      %c0_12 = arith.constant 0 : index
      %c0_13 = arith.constant 0 : index
      %13 = vector.load %arg5[%c0_12, %c0_13] : memref<1x256xf32, #tpu.memory_space<vmem>>, vector<1x256xf32>
      %14 = vector.broadcast %13 : vector<1x256xf32> to vector<8x256xf32>
      %15 = arith.addf %12, %14 : vector<8x256xf32>
      %c0_14 = arith.constant 0 : index
      %c0_15 = arith.constant 0 : index
      %16 = vector.load %arg6[%c0_14, %c0_15] : memref<8x256xf32, #tpu.memory_space<vmem>>, vector<8x256xf32>
      tpu.vector_store %arg6[%c0_14, %c0_15], %15 {strides = array<i32>} : memref<8x256xf32, #tpu.memory_space<vmem>>, vector<8x256xf32>,
    } else {
    }
    return
  }
  func.func @transform_0(%arg0: i32, %arg1: i32, %arg2: i32) -> (i32, i32) {
    %c0_i32 = arith.constant 0 : i32
    return %arg0, %arg2 : i32, i32
  }
  func.func @transform_1(%arg0: i32, %arg1: i32, %arg2: i32) -> (i32, i32) {
    %c0_i32 = arith.constant 0 : i32
    return %arg2, %arg1 : i32, i32
  }
  func.func @transform_2(%arg0: i32, %arg1: i32, %arg2: i32) -> (i32, i32) {
    %c0_i32 = arith.constant 0 : i32
    %c0_i32_0 = arith.constant 0 : i32
    return %c0_i32, %arg1 : i32, i32
  }
  func.func @transform_3(%arg0: i32, %arg1: i32, %arg2: i32) -> (i32, i32) {
    %c0_i32 = arith.constant 0 : i32
    return %arg0, %arg1 : i32, i32
  }
}

module attributes {stable_mosaic.version = 11 : i64} {
  func.func @_gemm_bias_res_kernel(%arg0: i32, %arg1: i32, %arg2: i32, %arg3: memref<8x256xbf16, #tpu.memory_space<vmem>>, %arg4: memref<256x256xbf16, #tpu.memory_space<vmem>>, %arg5: memref<1x256xf32, #tpu.memory_space<vmem>>, %arg6: memref<8x256xf32, #tpu.memory_space<vmem>>, %arg7: memref<8x256xf32, #tpu.memory_space<vmem>>, %arg8: memref<8x256xf32, #tpu.memory_space<vmem>>) attributes {dimension_semantics = [#tpu.dimension_semantics<parallel>, #tpu.dimension_semantics<parallel>, #tpu.dimension_semantics<arbitrary>], iteration_bounds = array<i64: 1, 1, 9>, scalar_prefetch = 0 : i64, scratch_operands = 1 : i64, tpu.core_type = #tpu.core_type<tc>, window_params = [{transform_indices = @transform_0, window_bounds = array<i64: 8, 256>}, {transform_indices = @transform_1, window_bounds = array<i64: 256, 256>}, {transform_indices = @transform_2, window_bounds = array<i64: 1, 256>}, {transform_indices = @transform_3, window_bounds = array<i64: 8, 256>}, {transform_indices = @transform_4, window_bounds = array<i64: 8, 256>}]} {
    %c0_i32 = arith.constant 0 : i32
    %0 = arith.cmpi eq, %arg2, %c0_i32 : i32
    %1 = arith.extui %0 : i1 to i32
    %c0_i32_0 = arith.constant 0 : i32
    %2 = arith.cmpi ne, %1, %c0_i32_0 : i32
    scf.if %2 {
      %cst_9 = arith.constant 0.000000e+00 : f32
      %12 = vector.broadcast %cst_9 : f32 to vector<8x256xf32>
      %c0_10 = arith.constant 0 : index
      %c0_11 = arith.constant 0 : index
      %13 = vector.load %arg8[%c0_10, %c0_11] : memref<8x256xf32, #tpu.memory_space<vmem>>, vector<8x256xf32>
      tpu.vector_store %arg8[%c0_10, %c0_11], %12 {strides = array<i32>} : memref<8x256xf32, #tpu.memory_space<vmem>>, vector<8x256xf32>,
    } else {
    }
    %c0 = arith.constant 0 : index
    %c0_1 = arith.constant 0 : index
    %3 = vector.load %arg8[%c0, %c0_1] : memref<8x256xf32, #tpu.memory_space<vmem>>, vector<8x256xf32>
    %c0_2 = arith.constant 0 : index
    %c0_3 = arith.constant 0 : index
    %4 = vector.load %arg3[%c0_2, %c0_3] : memref<8x256xbf16, #tpu.memory_space<vmem>>, vector<8x256xbf16>
    %c0_4 = arith.constant 0 : index
    %c0_5 = arith.constant 0 : index
    %5 = vector.load %arg4[%c0_4, %c0_5] : memref<256x256xbf16, #tpu.memory_space<vmem>>, vector<256x256xbf16>
    %cst = arith.constant dense<0.000000e+00> : vector<8x256xf32>
    %6 = tpu.matmul %4, %5, %cst {dimension_numbers = #tpu.dot_dimension_numbers<[1], [0], [0], [1], [0, 0, 1, 1], [], []>} : vector<8x256xbf16>, vector<256x256xbf16>, vector<8x256xf32> -> vector<8x256xf32>
    %7 = arith.addf %3, %6 : vector<8x256xf32>
    %c0_6 = arith.constant 0 : index
    %c0_7 = arith.constant 0 : index
    %8 = vector.load %arg8[%c0_6, %c0_7] : memref<8x256xf32, #tpu.memory_space<vmem>>, vector<8x256xf32>
    tpu.vector_store %arg8[%c0_6, %c0_7], %7 {strides = array<i32>} : memref<8x256xf32, #tpu.memory_space<vmem>>, vector<8x256xf32>,
    %c8_i32 = arith.constant 8 : i32
    %9 = arith.cmpi eq, %arg2, %c8_i32 : i32
    %10 = arith.extui %9 : i1 to i32
    %c0_i32_8 = arith.constant 0 : i32
    %11 = arith.cmpi ne, %10, %c0_i32_8 : i32
    scf.if %11 {
      %c0_9 = arith.constant 0 : index
      %c0_10 = arith.constant 0 : index
      %12 = vector.load %arg8[%c0_9, %c0_10] : memref<8x256xf32, #tpu.memory_space<vmem>>, vector<8x256xf32>
      %c0_11 = arith.constant 0 : index
      %c0_12 = arith.constant 0 : index
      %13 = vector.load %arg5[%c0_11, %c0_12] : memref<1x256xf32, #tpu.memory_space<vmem>>, vector<1x256xf32>
      %14 = vector.broadcast %13 : vector<1x256xf32> to vector<8x256xf32>
      %15 = arith.addf %12, %14 : vector<8x256xf32>
      %c0_13 = arith.constant 0 : index
      %c0_14 = arith.constant 0 : index
      %16 = vector.load %arg6[%c0_13, %c0_14] : memref<8x256xf32, #tpu.memory_space<vmem>>, vector<8x256xf32>
      %17 = arith.addf %15, %16 : vector<8x256xf32>
      %cst_15 = arith.constant 0.000000e+00 : f32
      %18 = vector.broadcast %cst_15 : f32 to vector<8x256xf32>
      %19 = arith.maximumf %17, %18 : vector<8x256xf32>
      %c0_16 = arith.constant 0 : index
      %c0_17 = arith.constant 0 : index
      %20 = vector.load %arg7[%c0_16, %c0_17] : memref<8x256xf32, #tpu.memory_space<vmem>>, vector<8x256xf32>
      tpu.vector_store %arg7[%c0_16, %c0_17], %19 {strides = array<i32>} : memref<8x256xf32, #tpu.memory_space<vmem>>, vector<8x256xf32>,
    } else {
    }
    return
  }
  func.func @transform_0(%arg0: i32, %arg1: i32, %arg2: i32) -> (i32, i32) {
    %c0_i32 = arith.constant 0 : i32
    return %arg0, %arg2 : i32, i32
  }
  func.func @transform_1(%arg0: i32, %arg1: i32, %arg2: i32) -> (i32, i32) {
    %c0_i32 = arith.constant 0 : i32
    return %arg2, %arg1 : i32, i32
  }
  func.func @transform_2(%arg0: i32, %arg1: i32, %arg2: i32) -> (i32, i32) {
    %c0_i32 = arith.constant 0 : i32
    %c0_i32_0 = arith.constant 0 : i32
    return %c0_i32, %arg1 : i32, i32
  }
  func.func @transform_3(%arg0: i32, %arg1: i32, %arg2: i32) -> (i32, i32) {
    %c0_i32 = arith.constant 0 : i32
    return %arg0, %arg1 : i32, i32
  }
  func.func @transform_4(%arg0: i32, %arg1: i32, %arg2: i32) -> (i32, i32) {
    %c0_i32 = arith.constant 0 : i32
    return %arg0, %arg1 : i32, i32
  }
}

module attributes {stable_mosaic.version = 11 : i64} {
  func.func @_gemm_bias_kernel(%arg0: i32, %arg1: i32, %arg2: i32, %arg3: memref<8x256xbf16, #tpu.memory_space<vmem>>, %arg4: memref<256x256xbf16, #tpu.memory_space<vmem>>, %arg5: memref<1x256xf32, #tpu.memory_space<vmem>>, %arg6: memref<8x256xf32, #tpu.memory_space<vmem>>, %arg7: memref<8x256xf32, #tpu.memory_space<vmem>>) attributes {dimension_semantics = [#tpu.dimension_semantics<parallel>, #tpu.dimension_semantics<parallel>, #tpu.dimension_semantics<arbitrary>], iteration_bounds = array<i64: 1, 1, 9>, scalar_prefetch = 0 : i64, scratch_operands = 1 : i64, tpu.core_type = #tpu.core_type<tc>, window_params = [{transform_indices = @transform_0, window_bounds = array<i64: 8, 256>}, {transform_indices = @transform_1, window_bounds = array<i64: 256, 256>}, {transform_indices = @transform_2, window_bounds = array<i64: 1, 256>}, {transform_indices = @transform_3, window_bounds = array<i64: 8, 256>}]} {
    %c0_i32 = arith.constant 0 : i32
    %0 = arith.cmpi eq, %arg2, %c0_i32 : i32
    %1 = arith.extui %0 : i1 to i32
    %c0_i32_0 = arith.constant 0 : i32
    %2 = arith.cmpi ne, %1, %c0_i32_0 : i32
    scf.if %2 {
      %cst_9 = arith.constant 0.000000e+00 : f32
      %12 = vector.broadcast %cst_9 : f32 to vector<8x256xf32>
      %c0_10 = arith.constant 0 : index
      %c0_11 = arith.constant 0 : index
      %13 = vector.load %arg7[%c0_10, %c0_11] : memref<8x256xf32, #tpu.memory_space<vmem>>, vector<8x256xf32>
      tpu.vector_store %arg7[%c0_10, %c0_11], %12 {strides = array<i32>} : memref<8x256xf32, #tpu.memory_space<vmem>>, vector<8x256xf32>,
    } else {
    }
    %c0 = arith.constant 0 : index
    %c0_1 = arith.constant 0 : index
    %3 = vector.load %arg7[%c0, %c0_1] : memref<8x256xf32, #tpu.memory_space<vmem>>, vector<8x256xf32>
    %c0_2 = arith.constant 0 : index
    %c0_3 = arith.constant 0 : index
    %4 = vector.load %arg3[%c0_2, %c0_3] : memref<8x256xbf16, #tpu.memory_space<vmem>>, vector<8x256xbf16>
    %c0_4 = arith.constant 0 : index
    %c0_5 = arith.constant 0 : index
    %5 = vector.load %arg4[%c0_4, %c0_5] : memref<256x256xbf16, #tpu.memory_space<vmem>>, vector<256x256xbf16>
    %cst = arith.constant dense<0.000000e+00> : vector<8x256xf32>
    %6 = tpu.matmul %4, %5, %cst {dimension_numbers = #tpu.dot_dimension_numbers<[1], [0], [0], [1], [0, 0, 1, 1], [], []>} : vector<8x256xbf16>, vector<256x256xbf16>, vector<8x256xf32> -> vector<8x256xf32>
    %7 = arith.addf %3, %6 : vector<8x256xf32>
    %c0_6 = arith.constant 0 : index
    %c0_7 = arith.constant 0 : index
    %8 = vector.load %arg7[%c0_6, %c0_7] : memref<8x256xf32, #tpu.memory_space<vmem>>, vector<8x256xf32>
    tpu.vector_store %arg7[%c0_6, %c0_7], %7 {strides = array<i32>} : memref<8x256xf32, #tpu.memory_space<vmem>>, vector<8x256xf32>,
    %c8_i32 = arith.constant 8 : i32
    %9 = arith.cmpi eq, %arg2, %c8_i32 : i32
    %10 = arith.extui %9 : i1 to i32
    %c0_i32_8 = arith.constant 0 : i32
    %11 = arith.cmpi ne, %10, %c0_i32_8 : i32
    scf.if %11 {
      %c0_9 = arith.constant 0 : index
      %c0_10 = arith.constant 0 : index
      %12 = vector.load %arg7[%c0_9, %c0_10] : memref<8x256xf32, #tpu.memory_space<vmem>>, vector<8x256xf32>
      %c0_11 = arith.constant 0 : index
      %c0_12 = arith.constant 0 : index
      %13 = vector.load %arg5[%c0_11, %c0_12] : memref<1x256xf32, #tpu.memory_space<vmem>>, vector<1x256xf32>
      %14 = vector.broadcast %13 : vector<1x256xf32> to vector<8x256xf32>
      %15 = arith.addf %12, %14 : vector<8x256xf32>
      %cst_13 = arith.constant 0.000000e+00 : f32
      %16 = vector.broadcast %cst_13 : f32 to vector<8x256xf32>
      %17 = arith.maximumf %15, %16 : vector<8x256xf32>
      %c0_14 = arith.constant 0 : index
      %c0_15 = arith.constant 0 : index
      %18 = vector.load %arg6[%c0_14, %c0_15] : memref<8x256xf32, #tpu.memory_space<vmem>>, vector<8x256xf32>
      tpu.vector_store %arg6[%c0_14, %c0_15], %17 {strides = array<i32>} : memref<8x256xf32, #tpu.memory_space<vmem>>, vector<8x256xf32>,
    } else {
    }
    return
  }
  func.func @transform_0(%arg0: i32, %arg1: i32, %arg2: i32) -> (i32, i32) {
    %c0_i32 = arith.constant 0 : i32
    return %arg0, %arg2 : i32, i32
  }
  func.func @transform_1(%arg0: i32, %arg1: i32, %arg2: i32) -> (i32, i32) {
    %c0_i32 = arith.constant 0 : i32
    return %arg2, %arg1 : i32, i32
  }
  func.func @transform_2(%arg0: i32, %arg1: i32, %arg2: i32) -> (i32, i32) {
    %c0_i32 = arith.constant 0 : i32
    %c0_i32_0 = arith.constant 0 : i32
    return %c0_i32, %arg1 : i32, i32
  }
  func.func @transform_3(%arg0: i32, %arg1: i32, %arg2: i32) -> (i32, i32) {
    %c0_i32 = arith.constant 0 : i32
    return %arg0, %arg1 : i32, i32
  }
}

module attributes {stable_mosaic.version = 11 : i64} {
  func.func @_gemm_bias_kernel(%arg0: i32, %arg1: i32, %arg2: i32, %arg3: memref<8x256xbf16, #tpu.memory_space<vmem>>, %arg4: memref<256x256xbf16, #tpu.memory_space<vmem>>, %arg5: memref<1x256xf32, #tpu.memory_space<vmem>>, %arg6: memref<8x256xf32, #tpu.memory_space<vmem>>, %arg7: memref<8x256xf32, #tpu.memory_space<vmem>>) attributes {dimension_semantics = [#tpu.dimension_semantics<parallel>, #tpu.dimension_semantics<parallel>, #tpu.dimension_semantics<arbitrary>], iteration_bounds = array<i64: 1, 2, 9>, scalar_prefetch = 0 : i64, scratch_operands = 1 : i64, tpu.core_type = #tpu.core_type<tc>, window_params = [{transform_indices = @transform_0, window_bounds = array<i64: 8, 256>}, {transform_indices = @transform_1, window_bounds = array<i64: 256, 256>}, {transform_indices = @transform_2, window_bounds = array<i64: 1, 256>}, {transform_indices = @transform_3, window_bounds = array<i64: 8, 256>}]} {
    %c0_i32 = arith.constant 0 : i32
    %0 = arith.cmpi eq, %arg2, %c0_i32 : i32
    %1 = arith.extui %0 : i1 to i32
    %c0_i32_0 = arith.constant 0 : i32
    %2 = arith.cmpi ne, %1, %c0_i32_0 : i32
    scf.if %2 {
      %cst_9 = arith.constant 0.000000e+00 : f32
      %12 = vector.broadcast %cst_9 : f32 to vector<8x256xf32>
      %c0_10 = arith.constant 0 : index
      %c0_11 = arith.constant 0 : index
      %13 = vector.load %arg7[%c0_10, %c0_11] : memref<8x256xf32, #tpu.memory_space<vmem>>, vector<8x256xf32>
      tpu.vector_store %arg7[%c0_10, %c0_11], %12 {strides = array<i32>} : memref<8x256xf32, #tpu.memory_space<vmem>>, vector<8x256xf32>,
    } else {
    }
    %c0 = arith.constant 0 : index
    %c0_1 = arith.constant 0 : index
    %3 = vector.load %arg7[%c0, %c0_1] : memref<8x256xf32, #tpu.memory_space<vmem>>, vector<8x256xf32>
    %c0_2 = arith.constant 0 : index
    %c0_3 = arith.constant 0 : index
    %4 = vector.load %arg3[%c0_2, %c0_3] : memref<8x256xbf16, #tpu.memory_space<vmem>>, vector<8x256xbf16>
    %c0_4 = arith.constant 0 : index
    %c0_5 = arith.constant 0 : index
    %5 = vector.load %arg4[%c0_4, %c0_5] : memref<256x256xbf16, #tpu.memory_space<vmem>>, vector<256x256xbf16>
    %cst = arith.constant dense<0.000000e+00> : vector<8x256xf32>
    %6 = tpu.matmul %4, %5, %cst {dimension_numbers = #tpu.dot_dimension_numbers<[1], [0], [0], [1], [0, 0, 1, 1], [], []>} : vector<8x256xbf16>, vector<256x256xbf16>, vector<8x256xf32> -> vector<8x256xf32>
    %7 = arith.addf %3, %6 : vector<8x256xf32>
    %c0_6 = arith.constant 0 : index
    %c0_7 = arith.constant 0 : index
    %8 = vector.load %arg7[%c0_6, %c0_7] : memref<8x256xf32, #tpu.memory_space<vmem>>, vector<8x256xf32>
    tpu.vector_store %arg7[%c0_6, %c0_7], %7 {strides = array<i32>} : memref<8x256xf32, #tpu.memory_space<vmem>>, vector<8x256xf32>,
    %c8_i32 = arith.constant 8 : i32
    %9 = arith.cmpi eq, %arg2, %c8_i32 : i32
    %10 = arith.extui %9 : i1 to i32
    %c0_i32_8 = arith.constant 0 : i32
    %11 = arith.cmpi ne, %10, %c0_i32_8 : i32
    scf.if %11 {
      %c0_9 = arith.constant 0 : index
      %c0_10 = arith.constant 0 : index
      %12 = vector.load %arg7[%c0_9, %c0_10] : memref<8x256xf32, #tpu.memory_space<vmem>>, vector<8x256xf32>
      %c0_11 = arith.constant 0 : index
      %c0_12 = arith.constant 0 : index
      %13 = vector.load %arg5[%c0_11, %c0_12] : memref<1x256xf32, #tpu.memory_space<vmem>>, vector<1x256xf32>
      %14 = vector.broadcast %13 : vector<1x256xf32> to vector<8x256xf32>
      %15 = arith.addf %12, %14 : vector<8x256xf32>
      %cst_13 = arith.constant 0.000000e+00 : f32
      %16 = vector.broadcast %cst_13 : f32 to vector<8x256xf32>
      %17 = arith.maximumf %15, %16 : vector<8x256xf32>
      %c0_14 = arith.constant 0 : index
      %c0_15 = arith.constant 0 : index
      %18 = vector.load %arg6[%c0_14, %c0_15] : memref<8x256xf32, #tpu.memory_space<vmem>>, vector<8x256xf32>
      tpu.vector_store %arg6[%c0_14, %c0_15], %17 {strides = array<i32>} : memref<8x256xf32, #tpu.memory_space<vmem>>, vector<8x256xf32>,
    } else {
    }
    return
  }
  func.func @transform_0(%arg0: i32, %arg1: i32, %arg2: i32) -> (i32, i32) {
    %c0_i32 = arith.constant 0 : i32
    return %arg0, %arg2 : i32, i32
  }
  func.func @transform_1(%arg0: i32, %arg1: i32, %arg2: i32) -> (i32, i32) {
    %c0_i32 = arith.constant 0 : i32
    return %arg2, %arg1 : i32, i32
  }
  func.func @transform_2(%arg0: i32, %arg1: i32, %arg2: i32) -> (i32, i32) {
    %c0_i32 = arith.constant 0 : i32
    %c0_i32_0 = arith.constant 0 : i32
    return %c0_i32, %arg1 : i32, i32
  }
  func.func @transform_3(%arg0: i32, %arg1: i32, %arg2: i32) -> (i32, i32) {
    %c0_i32 = arith.constant 0 : i32
    return %arg0, %arg1 : i32, i32
  }
}

module attributes {stable_mosaic.version = 11 : i64} {
  func.func @_gemm_bias_kernel(%arg0: i32, %arg1: i32, %arg2: i32, %arg3: memref<8x256xbf16, #tpu.memory_space<vmem>>, %arg4: memref<256x256xbf16, #tpu.memory_space<vmem>>, %arg5: memref<1x256xf32, #tpu.memory_space<vmem>>, %arg6: memref<8x256xf32, #tpu.memory_space<vmem>>, %arg7: memref<8x256xf32, #tpu.memory_space<vmem>>) attributes {dimension_semantics = [#tpu.dimension_semantics<parallel>, #tpu.dimension_semantics<parallel>, #tpu.dimension_semantics<arbitrary>], iteration_bounds = array<i64: 1, 2, 1>, scalar_prefetch = 0 : i64, scratch_operands = 1 : i64, tpu.core_type = #tpu.core_type<tc>, window_params = [{transform_indices = @transform_0, window_bounds = array<i64: 8, 256>}, {transform_indices = @transform_1, window_bounds = array<i64: 256, 256>}, {transform_indices = @transform_2, window_bounds = array<i64: 1, 256>}, {transform_indices = @transform_3, window_bounds = array<i64: 8, 256>}]} {
    %c0_i32 = arith.constant 0 : i32
    %0 = arith.cmpi eq, %arg2, %c0_i32 : i32
    %1 = arith.extui %0 : i1 to i32
    %c0_i32_0 = arith.constant 0 : i32
    %2 = arith.cmpi ne, %1, %c0_i32_0 : i32
    scf.if %2 {
      %cst_10 = arith.constant 0.000000e+00 : f32
      %12 = vector.broadcast %cst_10 : f32 to vector<8x256xf32>
      %c0_11 = arith.constant 0 : index
      %c0_12 = arith.constant 0 : index
      %13 = vector.load %arg7[%c0_11, %c0_12] : memref<8x256xf32, #tpu.memory_space<vmem>>, vector<8x256xf32>
      tpu.vector_store %arg7[%c0_11, %c0_12], %12 {strides = array<i32>} : memref<8x256xf32, #tpu.memory_space<vmem>>, vector<8x256xf32>,
    } else {
    }
    %c0 = arith.constant 0 : index
    %c0_1 = arith.constant 0 : index
    %3 = vector.load %arg7[%c0, %c0_1] : memref<8x256xf32, #tpu.memory_space<vmem>>, vector<8x256xf32>
    %c0_2 = arith.constant 0 : index
    %c0_3 = arith.constant 0 : index
    %4 = vector.load %arg3[%c0_2, %c0_3] : memref<8x256xbf16, #tpu.memory_space<vmem>>, vector<8x256xbf16>
    %c0_4 = arith.constant 0 : index
    %c0_5 = arith.constant 0 : index
    %5 = vector.load %arg4[%c0_4, %c0_5] : memref<256x256xbf16, #tpu.memory_space<vmem>>, vector<256x256xbf16>
    %cst = arith.constant dense<0.000000e+00> : vector<8x256xf32>
    %6 = tpu.matmul %4, %5, %cst {dimension_numbers = #tpu.dot_dimension_numbers<[1], [0], [0], [1], [0, 0, 1, 1], [], []>} : vector<8x256xbf16>, vector<256x256xbf16>, vector<8x256xf32> -> vector<8x256xf32>
    %7 = arith.addf %3, %6 : vector<8x256xf32>
    %c0_6 = arith.constant 0 : index
    %c0_7 = arith.constant 0 : index
    %8 = vector.load %arg7[%c0_6, %c0_7] : memref<8x256xf32, #tpu.memory_space<vmem>>, vector<8x256xf32>
    tpu.vector_store %arg7[%c0_6, %c0_7], %7 {strides = array<i32>} : memref<8x256xf32, #tpu.memory_space<vmem>>, vector<8x256xf32>,
    %c0_i32_8 = arith.constant 0 : i32
    %9 = arith.cmpi eq, %arg2, %c0_i32_8 : i32
    %10 = arith.extui %9 : i1 to i32
    %c0_i32_9 = arith.constant 0 : i32
    %11 = arith.cmpi ne, %10, %c0_i32_9 : i32
    scf.if %11 {
      %c0_10 = arith.constant 0 : index
      %c0_11 = arith.constant 0 : index
      %12 = vector.load %arg7[%c0_10, %c0_11] : memref<8x256xf32, #tpu.memory_space<vmem>>, vector<8x256xf32>
      %c0_12 = arith.constant 0 : index
      %c0_13 = arith.constant 0 : index
      %13 = vector.load %arg5[%c0_12, %c0_13] : memref<1x256xf32, #tpu.memory_space<vmem>>, vector<1x256xf32>
      %14 = vector.broadcast %13 : vector<1x256xf32> to vector<8x256xf32>
      %15 = arith.addf %12, %14 : vector<8x256xf32>
      %c0_14 = arith.constant 0 : index
      %c0_15 = arith.constant 0 : index
      %16 = vector.load %arg6[%c0_14, %c0_15] : memref<8x256xf32, #tpu.memory_space<vmem>>, vector<8x256xf32>
      tpu.vector_store %arg6[%c0_14, %c0_15], %15 {strides = array<i32>} : memref<8x256xf32, #tpu.memory_space<vmem>>, vector<8x256xf32>,
    } else {
    }
    return
  }
  func.func @transform_0(%arg0: i32, %arg1: i32, %arg2: i32) -> (i32, i32) {
    %c0_i32 = arith.constant 0 : i32
    return %arg0, %arg2 : i32, i32
  }
  func.func @transform_1(%arg0: i32, %arg1: i32, %arg2: i32) -> (i32, i32) {
    %c0_i32 = arith.constant 0 : i32
    return %arg2, %arg1 : i32, i32
  }
  func.func @transform_2(%arg0: i32, %arg1: i32, %arg2: i32) -> (i32, i32) {
    %c0_i32 = arith.constant 0 : i32
    %c0_i32_0 = arith.constant 0 : i32
    return %c0_i32, %arg1 : i32, i32
  }
  func.func @transform_3(%arg0: i32, %arg1: i32, %arg2: i32) -> (i32, i32) {
    %c0_i32 = arith.constant 0 : i32
    return %arg0, %arg1 : i32, i32
  }
}

module attributes {stable_mosaic.version = 11 : i64} {
  func.func @_gemm_bias_res_kernel(%arg0: i32, %arg1: i32, %arg2: i32, %arg3: memref<8x512xbf16, #tpu.memory_space<vmem>>, %arg4: memref<512x256xbf16, #tpu.memory_space<vmem>>, %arg5: memref<1x256xf32, #tpu.memory_space<vmem>>, %arg6: memref<8x256xf32, #tpu.memory_space<vmem>>, %arg7: memref<8x256xf32, #tpu.memory_space<vmem>>, %arg8: memref<8x256xf32, #tpu.memory_space<vmem>>) attributes {dimension_semantics = [#tpu.dimension_semantics<parallel>, #tpu.dimension_semantics<parallel>, #tpu.dimension_semantics<arbitrary>], iteration_bounds = array<i64: 1, 2, 9>, scalar_prefetch = 0 : i64, scratch_operands = 1 : i64, tpu.core_type = #tpu.core_type<tc>, window_params = [{transform_indices = @transform_0, window_bounds = array<i64: 8, 512>}, {transform_indices = @transform_1, window_bounds = array<i64: 512, 256>}, {transform_indices = @transform_2, window_bounds = array<i64: 1, 256>}, {transform_indices = @transform_3, window_bounds = array<i64: 8, 256>}, {transform_indices = @transform_4, window_bounds = array<i64: 8, 256>}]} {
    %c0_i32 = arith.constant 0 : i32
    %0 = arith.cmpi eq, %arg2, %c0_i32 : i32
    %1 = arith.extui %0 : i1 to i32
    %c0_i32_0 = arith.constant 0 : i32
    %2 = arith.cmpi ne, %1, %c0_i32_0 : i32
    scf.if %2 {
      %cst_9 = arith.constant 0.000000e+00 : f32
      %12 = vector.broadcast %cst_9 : f32 to vector<8x256xf32>
      %c0_10 = arith.constant 0 : index
      %c0_11 = arith.constant 0 : index
      %13 = vector.load %arg8[%c0_10, %c0_11] : memref<8x256xf32, #tpu.memory_space<vmem>>, vector<8x256xf32>
      tpu.vector_store %arg8[%c0_10, %c0_11], %12 {strides = array<i32>} : memref<8x256xf32, #tpu.memory_space<vmem>>, vector<8x256xf32>,
    } else {
    }
    %c0 = arith.constant 0 : index
    %c0_1 = arith.constant 0 : index
    %3 = vector.load %arg8[%c0, %c0_1] : memref<8x256xf32, #tpu.memory_space<vmem>>, vector<8x256xf32>
    %c0_2 = arith.constant 0 : index
    %c0_3 = arith.constant 0 : index
    %4 = vector.load %arg3[%c0_2, %c0_3] : memref<8x512xbf16, #tpu.memory_space<vmem>>, vector<8x512xbf16>
    %c0_4 = arith.constant 0 : index
    %c0_5 = arith.constant 0 : index
    %5 = vector.load %arg4[%c0_4, %c0_5] : memref<512x256xbf16, #tpu.memory_space<vmem>>, vector<512x256xbf16>
    %cst = arith.constant dense<0.000000e+00> : vector<8x256xf32>
    %6 = tpu.matmul %4, %5, %cst {dimension_numbers = #tpu.dot_dimension_numbers<[1], [0], [0], [1], [0, 0, 1, 1], [], []>} : vector<8x512xbf16>, vector<512x256xbf16>, vector<8x256xf32> -> vector<8x256xf32>
    %7 = arith.addf %3, %6 : vector<8x256xf32>
    %c0_6 = arith.constant 0 : index
    %c0_7 = arith.constant 0 : index
    %8 = vector.load %arg8[%c0_6, %c0_7] : memref<8x256xf32, #tpu.memory_space<vmem>>, vector<8x256xf32>
    tpu.vector_store %arg8[%c0_6, %c0_7], %7 {strides = array<i32>} : memref<8x256xf32, #tpu.memory_space<vmem>>, vector<8x256xf32>,
    %c8_i32 = arith.constant 8 : i32
    %9 = arith.cmpi eq, %arg2, %c8_i32 : i32
    %10 = arith.extui %9 : i1 to i32
    %c0_i32_8 = arith.constant 0 : i32
    %11 = arith.cmpi ne, %10, %c0_i32_8 : i32
    scf.if %11 {
      %c0_9 = arith.constant 0 : index
      %c0_10 = arith.constant 0 : index
      %12 = vector.load %arg8[%c0_9, %c0_10] : memref<8x256xf32, #tpu.memory_space<vmem>>, vector<8x256xf32>
      %c0_11 = arith.constant 0 : index
      %c0_12 = arith.constant 0 : index
      %13 = vector.load %arg5[%c0_11, %c0_12] : memref<1x256xf32, #tpu.memory_space<vmem>>, vector<1x256xf32>
      %14 = vector.broadcast %13 : vector<1x256xf32> to vector<8x256xf32>
      %15 = arith.addf %12, %14 : vector<8x256xf32>
      %c0_13 = arith.constant 0 : index
      %c0_14 = arith.constant 0 : index
      %16 = vector.load %arg6[%c0_13, %c0_14] : memref<8x256xf32, #tpu.memory_space<vmem>>, vector<8x256xf32>
      %17 = arith.addf %15, %16 : vector<8x256xf32>
      %cst_15 = arith.constant 0.000000e+00 : f32
      %18 = vector.broadcast %cst_15 : f32 to vector<8x256xf32>
      %19 = arith.maximumf %17, %18 : vector<8x256xf32>
      %c0_16 = arith.constant 0 : index
      %c0_17 = arith.constant 0 : index
      %20 = vector.load %arg7[%c0_16, %c0_17] : memref<8x256xf32, #tpu.memory_space<vmem>>, vector<8x256xf32>
      tpu.vector_store %arg7[%c0_16, %c0_17], %19 {strides = array<i32>} : memref<8x256xf32, #tpu.memory_space<vmem>>, vector<8x256xf32>,
    } else {
    }
    return
  }
  func.func @transform_0(%arg0: i32, %arg1: i32, %arg2: i32) -> (i32, i32) {
    %c0_i32 = arith.constant 0 : i32
    return %arg0, %arg2 : i32, i32
  }
  func.func @transform_1(%arg0: i32, %arg1: i32, %arg2: i32) -> (i32, i32) {
    %c0_i32 = arith.constant 0 : i32
    return %arg2, %arg1 : i32, i32
  }
  func.func @transform_2(%arg0: i32, %arg1: i32, %arg2: i32) -> (i32, i32) {
    %c0_i32 = arith.constant 0 : i32
    %c0_i32_0 = arith.constant 0 : i32
    return %c0_i32, %arg1 : i32, i32
  }
  func.func @transform_3(%arg0: i32, %arg1: i32, %arg2: i32) -> (i32, i32) {
    %c0_i32 = arith.constant 0 : i32
    return %arg0, %arg1 : i32, i32
  }
  func.func @transform_4(%arg0: i32, %arg1: i32, %arg2: i32) -> (i32, i32) {
    %c0_i32 = arith.constant 0 : i32
    return %arg0, %arg1 : i32, i32
  }
}

module attributes {stable_mosaic.version = 11 : i64} {
  func.func @_gemm_bias_kernel(%arg0: i32, %arg1: i32, %arg2: i32, %arg3: memref<8x512xbf16, #tpu.memory_space<vmem>>, %arg4: memref<512x256xbf16, #tpu.memory_space<vmem>>, %arg5: memref<1x256xf32, #tpu.memory_space<vmem>>, %arg6: memref<8x256xf32, #tpu.memory_space<vmem>>, %arg7: memref<8x256xf32, #tpu.memory_space<vmem>>) attributes {dimension_semantics = [#tpu.dimension_semantics<parallel>, #tpu.dimension_semantics<parallel>, #tpu.dimension_semantics<arbitrary>], iteration_bounds = array<i64: 1, 2, 9>, scalar_prefetch = 0 : i64, scratch_operands = 1 : i64, tpu.core_type = #tpu.core_type<tc>, window_params = [{transform_indices = @transform_0, window_bounds = array<i64: 8, 512>}, {transform_indices = @transform_1, window_bounds = array<i64: 512, 256>}, {transform_indices = @transform_2, window_bounds = array<i64: 1, 256>}, {transform_indices = @transform_3, window_bounds = array<i64: 8, 256>}]} {
    %c0_i32 = arith.constant 0 : i32
    %0 = arith.cmpi eq, %arg2, %c0_i32 : i32
    %1 = arith.extui %0 : i1 to i32
    %c0_i32_0 = arith.constant 0 : i32
    %2 = arith.cmpi ne, %1, %c0_i32_0 : i32
    scf.if %2 {
      %cst_9 = arith.constant 0.000000e+00 : f32
      %12 = vector.broadcast %cst_9 : f32 to vector<8x256xf32>
      %c0_10 = arith.constant 0 : index
      %c0_11 = arith.constant 0 : index
      %13 = vector.load %arg7[%c0_10, %c0_11] : memref<8x256xf32, #tpu.memory_space<vmem>>, vector<8x256xf32>
      tpu.vector_store %arg7[%c0_10, %c0_11], %12 {strides = array<i32>} : memref<8x256xf32, #tpu.memory_space<vmem>>, vector<8x256xf32>,
    } else {
    }
    %c0 = arith.constant 0 : index
    %c0_1 = arith.constant 0 : index
    %3 = vector.load %arg7[%c0, %c0_1] : memref<8x256xf32, #tpu.memory_space<vmem>>, vector<8x256xf32>
    %c0_2 = arith.constant 0 : index
    %c0_3 = arith.constant 0 : index
    %4 = vector.load %arg3[%c0_2, %c0_3] : memref<8x512xbf16, #tpu.memory_space<vmem>>, vector<8x512xbf16>
    %c0_4 = arith.constant 0 : index
    %c0_5 = arith.constant 0 : index
    %5 = vector.load %arg4[%c0_4, %c0_5] : memref<512x256xbf16, #tpu.memory_space<vmem>>, vector<512x256xbf16>
    %cst = arith.constant dense<0.000000e+00> : vector<8x256xf32>
    %6 = tpu.matmul %4, %5, %cst {dimension_numbers = #tpu.dot_dimension_numbers<[1], [0], [0], [1], [0, 0, 1, 1], [], []>} : vector<8x512xbf16>, vector<512x256xbf16>, vector<8x256xf32> -> vector<8x256xf32>
    %7 = arith.addf %3, %6 : vector<8x256xf32>
    %c0_6 = arith.constant 0 : index
    %c0_7 = arith.constant 0 : index
    %8 = vector.load %arg7[%c0_6, %c0_7] : memref<8x256xf32, #tpu.memory_space<vmem>>, vector<8x256xf32>
    tpu.vector_store %arg7[%c0_6, %c0_7], %7 {strides = array<i32>} : memref<8x256xf32, #tpu.memory_space<vmem>>, vector<8x256xf32>,
    %c8_i32 = arith.constant 8 : i32
    %9 = arith.cmpi eq, %arg2, %c8_i32 : i32
    %10 = arith.extui %9 : i1 to i32
    %c0_i32_8 = arith.constant 0 : i32
    %11 = arith.cmpi ne, %10, %c0_i32_8 : i32
    scf.if %11 {
      %c0_9 = arith.constant 0 : index
      %c0_10 = arith.constant 0 : index
      %12 = vector.load %arg7[%c0_9, %c0_10] : memref<8x256xf32, #tpu.memory_space<vmem>>, vector<8x256xf32>
      %c0_11 = arith.constant 0 : index
      %c0_12 = arith.constant 0 : index
      %13 = vector.load %arg5[%c0_11, %c0_12] : memref<1x256xf32, #tpu.memory_space<vmem>>, vector<1x256xf32>
      %14 = vector.broadcast %13 : vector<1x256xf32> to vector<8x256xf32>
      %15 = arith.addf %12, %14 : vector<8x256xf32>
      %cst_13 = arith.constant 0.000000e+00 : f32
      %16 = vector.broadcast %cst_13 : f32 to vector<8x256xf32>
      %17 = arith.maximumf %15, %16 : vector<8x256xf32>
      %c0_14 = arith.constant 0 : index
      %c0_15 = arith.constant 0 : index
      %18 = vector.load %arg6[%c0_14, %c0_15] : memref<8x256xf32, #tpu.memory_space<vmem>>, vector<8x256xf32>
      tpu.vector_store %arg6[%c0_14, %c0_15], %17 {strides = array<i32>} : memref<8x256xf32, #tpu.memory_space<vmem>>, vector<8x256xf32>,
    } else {
    }
    return
  }
  func.func @transform_0(%arg0: i32, %arg1: i32, %arg2: i32) -> (i32, i32) {
    %c0_i32 = arith.constant 0 : i32
    return %arg0, %arg2 : i32, i32
  }
  func.func @transform_1(%arg0: i32, %arg1: i32, %arg2: i32) -> (i32, i32) {
    %c0_i32 = arith.constant 0 : i32
    return %arg2, %arg1 : i32, i32
  }
  func.func @transform_2(%arg0: i32, %arg1: i32, %arg2: i32) -> (i32, i32) {
    %c0_i32 = arith.constant 0 : i32
    %c0_i32_0 = arith.constant 0 : i32
    return %c0_i32, %arg1 : i32, i32
  }
  func.func @transform_3(%arg0: i32, %arg1: i32, %arg2: i32) -> (i32, i32) {
    %c0_i32 = arith.constant 0 : i32
    return %arg0, %arg1 : i32, i32
  }
}

</mosaic_0001>

<bundles_post_ra>
// kernel: _lambda_.21
= control target key start
LH: loop header
LB: loop body
LE: loop exit
PB: predicated region body
PF: predicated region fallthrough
CT: control target
= control target key end

     0   :  { %s1457_s12 = smov 0   ;;  %s1459_s13 = smov 0   ;;  %s1650_s0 = inlined_call_operand.vmem [shape: bf16[512,256], index: 0, kind: input, shape index: {}]   ;;  %s1651_s1 = inlined_call_operand.vmem [shape: bf16[256,128], index: 1, kind: input, shape index: {}]   ;;  %s1652_s2 = inlined_call_operand.vmem [shape: f32[1,128], index: 2, kind: input, shape index: {}]   ;;  %s1653_s3 = inlined_call_operand.vmem [shape: f32[512,128], index: 3, kind: output, shape index: {}]  }
   0x1   :  { %s1461_s14 = smov 0  }
   0x2 LB: > { %s32_s15 = sadd.s32 1, %s1431_s13  ;;  %p1139_p0 = scmp.ge.s32.totalorder %s1435_s14, 1  ;;  %s1435_s14 = sphi %s1461_s14, %s13_s14   ;;  %s1431_s13 = sphi %s1459_s13, %s1655_s13   ;;  %s1427_s12 = sphi %s1457_s12, %s1654_s12  }
   0x3   : > { %p34_p1 = scmp.ge.s32.totalorder %s32_s15, 2  ;;  %p191_p2 = scmp.lt.s32.totalorder %s1435_s14, 3 }
   0x5   : > { %s1657_s15 = smov (%p34_p1, %s32_s15), 0  ;;  %p192_p3 = pnand %p1139_p0, %p191_p2 }
   0x6   : > { %v1349_v0 = vld [vmem:[%s1651_s1 + $0x40] sm:$0xff] (!%p192_p3)   ;;  %s1140_s18 = sshll.u32 (!%p192_p3), %s1427_s12, 5  ;;  %v1351_v2 = vld [vmem:[%s1651_s1 + $0x48] sm:$0xff] (!%p192_p3)   ;;  %v1353_v4 = vld [vmem:[%s1651_s1 + $0x50] sm:$0xff] (!%p192_p3)  }
   0x7   : > { %195 = sbr.rel (%p192_p3) target bundleno = 317 (0x13d), region = 32  ;;  %v1350_v1 = vld [vmem:[%s1651_s1] sm:$0xff] (!%p192_p3)   ;;  %1197 = vmatprep.subr.bf16.mxu0 (!%p192_p3), %v1349_v0  ;;  %1309 = vmatprep.subr.bf16.mxu1 (!%p192_p3), %v1349_v0  ;;  %v1352_v3 = vld [vmem:[%s1651_s1 + $0x8] sm:$0xff] (!%p192_p3)   ;;  %p236_p4 = scmp.lt.s32.totalorder (!%p192_p3), %s1140_s18, 63  ;;  %v1354_v5 = vld [vmem:[%s1651_s1 + $0x10] sm:$0xff] (!%p192_p3)  }
   0x8   : > { %1198 = vmatpush3.bf16.msra.mxu0 (!%p192_p3), %v1350_v1  ;;  %1317 = vmatpush3.bf16.msra.mxu1 (!%p192_p3), %v1350_v1  ;;  %v1355_v6 = vld [vmem:[%s1651_s1 + $0x58] sm:$0xff] (!%p192_p3)   ;;  %v1357_v8 = vld [vmem:[%s1651_s1 + $0x60] sm:$0xff] (!%p192_p3)   ;;  %v1359_v10 = vld [vmem:[%s1651_s1 + $0x68] sm:$0xff] (!%p192_p3)  }
   0x9   : > { %1199 = vmatprep.subr.bf16.mxu0 (!%p192_p3), %v1351_v2  ;;  %1310 = vmatprep.subr.bf16.mxu1 (!%p192_p3), %v1351_v2  ;;  %v1356_v7 = vld [vmem:[%s1651_s1 + $0x18] sm:$0xff] (!%p192_p3)   ;;  %v1358_v9 = vld [vmem:[%s1651_s1 + $0x20] sm:$0xff] (!%p192_p3)   ;;  %v1360_v13 = vld [vmem:[%s1651_s1 + $0x28] sm:$0xff] (!%p192_p3)  }
   0xa   : > { %v1361_v14 = vld [vmem:[%s1651_s1 + $0x70] sm:$0xff] (!%p192_p3)   ;;  %v1363_v16 = vld [vmem:[%s1651_s1 + $0x78] sm:$0xff] (!%p192_p3)   ;;  %v1568_v51 = vld [vmem:[%s1652_s2] ss:$0 sm:$0xff] (!%p192_p3) }
   0xb   : > { %v1362_v15 = vld [vmem:[%s1651_s1 + $0x30] sm:$0xff] (!%p192_p3)   ;;  %v1364_v17 = vld [vmem:[%s1651_s1 + $0x38] sm:$0xff] (!%p192_p3)  }
   0xc   : > { %1200 = vmatpush3.bf16.msra.mxu0 (!%p192_p3), %v1352_v3  ;;  %1318 = vmatpush3.bf16.msra.mxu1 (!%p192_p3), %v1352_v3 }
   0xd   : > { %1201 = vmatprep.subr.bf16.mxu0 (!%p192_p3), %v1353_v4  ;;  %1311 = vmatprep.subr.bf16.mxu1 (!%p192_p3), %v1353_v4 }
   0xe   : > { %s1659_s18 = smov (!%p236_p4, %s1140_s18), 63 }
   0xf   : > { %s1196_s6 = sshll.u32 %s1659_s18, 3 }
  0x10   : > { %1202 = vmatpush3.bf16.msra.mxu0 %v1354_v5  ;;  %1319 = vmatpush3.bf16.msra.mxu1 %v1354_v5  ;;  %s1510_s11 = scalar_lea.vmem %s1650_s0, %s1196_s6  ;;  %s1577_s8 = scalar_lea.vmem %s1653_s3, %s1196_s6 }
  0x11   : > { %1203 = vmatprep.subr.bf16.mxu0 %v1355_v6  ;;  %1312 = vmatprep.subr.bf16.mxu1 %v1355_v6  ;;  %v1367_v11 = vld [vmem:[%s1510_s11 + $0x4] ss:$8 sps:$4 sm:$0xff]   ;;  %v1365_v18 = vld [vmem:[%s1510_s11] ss:$8 sps:$4 sm:$0xff]   ;;  %v1371_v20 = vld [vmem:[%s1510_s11 + $0x14] ss:$8 sps:$4 sm:$0xff]  }
  0x12   : > { %v1370_v12 = vld [vmem:[%s1510_s11 + $0x84] ss:$8 sps:$4 sm:$0xff]   ;;  %688 = vmatprep.mubr.bf16.mxu0 %v1367_v11  ;;  %v1368_v19 = vld [vmem:[%s1510_s11 + $0x80] ss:$8 sps:$4 sm:$0xff]   ;;  %v1373_v21 = vld [vmem:[%s1510_s11 + $0x94] ss:$8 sps:$4 sm:$0xff]  }
  0x13   : > { %752 = vmatprep.mubr.bf16.mxu1 %v1370_v12  ;;  %v1375_v22 = vld [vmem:[%s1510_s11 + $0x10] ss:$8 sps:$4 sm:$0xff]   ;;  %v1377_v24 = vld [vmem:[%s1510_s11 + $0x24] ss:$8 sps:$4 sm:$0xff]   ;;  %v1381_v26 = vld [vmem:[%s1510_s11 + $0x20] ss:$8 sps:$4 sm:$0xff]  }
  0x14   : > { %1204 = vmatpush3.bf16.msra.mxu0 %v1356_v7  ;;  %1320 = vmatpush3.bf16.msra.mxu1 %v1356_v7  ;;  %v1376_v23 = vld [vmem:[%s1510_s11 + $0x90] ss:$8 sps:$4 sm:$0xff]   ;;  %v1379_v25 = vld [vmem:[%s1510_s11 + $0xa4] ss:$8 sps:$4 sm:$0xff]   ;;  %v1382_v27 = vld [vmem:[%s1510_s11 + $0xa0] ss:$8 sps:$4 sm:$0xff]  }
  0x15   : > { %1205 = vmatprep.subr.bf16.mxu0 %v1357_v8  ;;  %1313 = vmatprep.subr.bf16.mxu1 %v1357_v8  ;;  %v1383_v28 = vld [vmem:[%s1510_s11 + $0x34] ss:$8 sps:$4 sm:$0xff]   ;;  %v1387_v30 = vld [vmem:[%s1510_s11 + $0x30] ss:$8 sps:$4 sm:$0xff]   ;;  %v1389_v32 = vld [vmem:[%s1510_s11 + $0x44] ss:$8 sps:$4 sm:$0xff]  }
  0x16   : > { %v1385_v29 = vld [vmem:[%s1510_s11 + $0xb4] ss:$8 sps:$4 sm:$0xff]   ;;  %v1388_v31 = vld [vmem:[%s1510_s11 + $0xb0] ss:$8 sps:$4 sm:$0xff]   ;;  %v1391_v33 = vld [vmem:[%s1510_s11 + $0xc4] ss:$8 sps:$4 sm:$0xff]  }
  0x17   : > { %v1393_v34 = vld [vmem:[%s1510_s11 + $0x40] ss:$8 sps:$4 sm:$0xff]   ;;  %v1395_v36 = vld [vmem:[%s1510_s11 + $0x54] ss:$8 sps:$4 sm:$0xff]   ;;  %v1399_v38 = vld [vmem:[%s1510_s11 + $0x50] ss:$8 sps:$4 sm:$0xff]  }
  0x18   : > { %1206 = vmatpush3.bf16.msra.mxu0 %v1358_v9  ;;  %1321 = vmatpush3.bf16.msra.mxu1 %v1358_v9  ;;  %v1394_v35 = vld [vmem:[%s1510_s11 + $0xc0] ss:$8 sps:$4 sm:$0xff]   ;;  %v1397_v37 = vld [vmem:[%s1510_s11 + $0xd4] ss:$8 sps:$4 sm:$0xff]   ;;  %v1400_v39 = vld [vmem:[%s1510_s11 + $0xd0] ss:$8 sps:$4 sm:$0xff]  }
  0x19   : > { %1207 = vmatprep.subr.bf16.mxu0 %v1359_v10  ;;  %1314 = vmatprep.subr.bf16.mxu1 %v1359_v10  ;;  %v1401_v40 = vld [vmem:[%s1510_s11 + $0x64] ss:$8 sps:$4 sm:$0xff]   ;;  %v1405_v42 = vld [vmem:[%s1510_s11 + $0x60] ss:$8 sps:$4 sm:$0xff]   ;;  %v1407_v44 = vld [vmem:[%s1510_s11 + $0x74] ss:$8 sps:$4 sm:$0xff]  }
  0x1a   : > { %v1403_v41 = vld [vmem:[%s1510_s11 + $0xe4] ss:$8 sps:$4 sm:$0xff]   ;;  %v1406_v43 = vld [vmem:[%s1510_s11 + $0xe0] ss:$8 sps:$4 sm:$0xff]   ;;  %v1409_v45 = vld [vmem:[%s1510_s11 + $0xf4] ss:$8 sps:$4 sm:$0xff]  }
  0x1b   : > { %v1411_v46 = vld [vmem:[%s1510_s11 + $0x70] ss:$8 sps:$4 sm:$0xff]  }
  0x1c   : > { %1208 = vmatpush3.bf16.msra.mxu0 %v1360_v13  ;;  %1322 = vmatpush3.bf16.msra.mxu1 %v1360_v13  ;;  %v1412_v47 = vld [vmem:[%s1510_s11 + $0xf0] ss:$8 sps:$4 sm:$0xff]  }
  0x1d   : > { %1209 = vmatprep.subr.bf16.mxu0 %v1361_v14  ;;  %1315 = vmatprep.subr.bf16.mxu1 %v1361_v14 }
  0x20   : > { %1210 = vmatpush3.bf16.msra.mxu0 %v1362_v15  ;;  %1323 = vmatpush3.bf16.msra.mxu1 %v1362_v15 }
  0x21   : > { %1211 = vmatprep.subr.bf16.mxu0 %v1363_v16  ;;  %1316 = vmatprep.subr.bf16.mxu1 %v1363_v16 }
  0x24   : > { %1212 = vmatpush3.bf16.msra.mxu0 %v1364_v17  ;;  %1324 = vmatpush3.bf16.msra.mxu1 %v1364_v17 }
  0x27   : > { %689 = vmatmul.mubr.bf16.vlgmr.msra.gmra.mrb[0].mxu0 %v1365_v18  ;;  %753 = vmatmul.mubr.bf16.vlgmr.msra.gmra.mrb[0].mxu1 %v1368_v19 }
  0x28   : > { %696 = vmatprep.mubr.bf16.mxu0 %v1371_v20  ;;  %760 = vmatprep.mubr.bf16.mxu1 %v1373_v21 }
  0x2f   : > { %697 = vmatmul.mubr.bf16.gmra.mrb[4].mxu0 %v1375_v22  ;;  %761 = vmatmul.mubr.bf16.gmra.mrb[4].mxu1 %v1376_v23 }
  0x30   : > { %704 = vmatprep.mubr.bf16.mxu0 %v1377_v24  ;;  %768 = vmatprep.mubr.bf16.mxu1 %v1379_v25 }
  0x37   : > { %705 = vmatmul.mubr.bf16.gmra.mrb[8].mxu0 %v1381_v26  ;;  %769 = vmatmul.mubr.bf16.gmra.mrb[8].mxu1 %v1382_v27 }
  0x38   : > { %712 = vmatprep.mubr.bf16.mxu0 %v1383_v28  ;;  %776 = vmatprep.mubr.bf16.mxu1 %v1385_v29 }
  0x3f   : > { %713 = vmatmul.mubr.bf16.gmra.mrb[12].mxu0 %v1387_v30  ;;  %777 = vmatmul.mubr.bf16.gmra.mrb[12].mxu1 %v1388_v31 }
  0x40   : > { %720 = vmatprep.mubr.bf16.mxu0 %v1389_v32  ;;  %784 = vmatprep.mubr.bf16.mxu1 %v1391_v33 }
  0x47   : > { %721 = vmatmul.mubr.bf16.gmra.mrb[16].mxu0 %v1393_v34  ;;  %785 = vmatmul.mubr.bf16.gmra.mrb[16].mxu1 %v1394_v35 }
  0x48   : > { %728 = vmatprep.mubr.bf16.mxu0 %v1395_v36  ;;  %792 = vmatprep.mubr.bf16.mxu1 %v1397_v37 }
  0x4f   : > { %729 = vmatmul.mubr.bf16.gmra.mrb[20].mxu0 %v1399_v38  ;;  %793 = vmatmul.mubr.bf16.gmra.mrb[20].mxu1 %v1400_v39 }
  0x50   : > { %736 = vmatprep.mubr.bf16.mxu0 %v1401_v40  ;;  %800 = vmatprep.mubr.bf16.mxu1 %v1403_v41 }
  0x57   : > { %737 = vmatmul.mubr.bf16.gmra.mrb[24].mxu0 %v1405_v42  ;;  %801 = vmatmul.mubr.bf16.gmra.mrb[24].mxu1 %v1406_v43 }
  0x58   : > { %744 = vmatprep.mubr.bf16.mxu0 %v1407_v44  ;;  %808 = vmatprep.mubr.bf16.mxu1 %v1409_v45 }
  0x5f   : > { %745 = vmatmul.mubr.bf16.gmra.mrb[28].mxu0 %v1411_v46  ;;  %809 = vmatmul.mubr.bf16.gmra.mrb[28].mxu1 %v1412_v47 }
  0xfa   : > { %v1213_v48 = vpop.f32.mrb[0].mxu0  ;;  %v1261_v49 = vpop.f32.mrb[0].mxu1 }
  0xfb   : > { %v1214_v50 = vpop.f32.mrb[1].mxu0  ;;  %v1262_v52 = vpop.f32.mrb[1].mxu1 }
  0xfc   : > { %v1215_v53 = vadd.f32 %v1214_v50, %v1213_v48  ;;  %v1263_v54 = vadd.f32 %v1262_v52, %v1261_v49  ;;  %v1216_v55 = vpop.f32.mrb[2].mxu0  ;;  %v1264_v56 = vpop.f32.mrb[2].mxu1 }
  0xfd   : > { %v1217_v57 = vpop.f32.mrb[3].mxu0  ;;  %v1265_v58 = vpop.f32.mrb[3].mxu1 }
  0xfe   : > { %v923_v59 = vadd.f32 %v1215_v53, %v1568_v51  ;;  %v939_v60 = vadd.f32 %v1263_v54, %v1568_v51  ;;  %v1218_v61 = vadd.f32 %v1217_v57, %v1216_v55  ;;  %v1266_v62 = vadd.f32 %v1265_v58, %v1264_v56 }
 0x100   : > { %v955_v63 = vmax.f32 %v923_v59, 0.0  ;;  %v971_v0 = vmax.f32 %v939_v60, 0.0  ;;  %v924_v1 = vadd.f32 %v1218_v61, %v1568_v51  ;;  %v940_v2 = vadd.f32 %v1266_v62, %v1568_v51 }
 0x102   : > { %987 = vst [vmem:[%s1577_s8] sm:$0xff] %v955_v63  ;;  %1003 = vst [vmem:[%s1577_s8 + $0x80] sm:$0xff] %v971_v0  ;;  %v956_v3 = vmax.f32 %v924_v1, 0.0  ;;  %v972_v4 = vmax.f32 %v940_v2, 0.0  ;;  %v1219_v5 = vpop.f32.mrb[4].mxu0  ;;  %v1267_v6 = vpop.f32.mrb[4].mxu1 }
 0x103   : > { %v1220_v7 = vpop.f32.mrb[5].mxu0  ;;  %v1268_v8 = vpop.f32.mrb[5].mxu1 }
 0x104   : > { %988 = vst [vmem:[%s1577_s8 + $0x8] sm:$0xff] %v956_v3  ;;  %1004 = vst [vmem:[%s1577_s8 + $0x88] sm:$0xff] %v972_v4  ;;  %v1221_v9 = vadd.f32 %v1220_v7, %v1219_v5  ;;  %v1269_v10 = vadd.f32 %v1268_v8, %v1267_v6  ;;  %v1222_v11 = vpop.f32.mrb[6].mxu0  ;;  %v1270_v12 = vpop.f32.mrb[6].mxu1 }
 0x105   : > { %v1223_v13 = vpop.f32.mrb[7].mxu0  ;;  %v1271_v14 = vpop.f32.mrb[7].mxu1 }
 0x106   : > { %v925_v15 = vadd.f32 %v1221_v9, %v1568_v51  ;;  %v941_v16 = vadd.f32 %v1269_v10, %v1568_v51  ;;  %v1224_v17 = vadd.f32 %v1223_v13, %v1222_v11  ;;  %v1272_v18 = vadd.f32 %v1271_v14, %v1270_v12 }
 0x108   : > { %v957_v19 = vmax.f32 %v925_v15, 0.0  ;;  %v973_v20 = vmax.f32 %v941_v16, 0.0  ;;  %v926_v21 = vadd.f32 %v1224_v17, %v1568_v51  ;;  %v942_v22 = vadd.f32 %v1272_v18, %v1568_v51 }
 0x10a   : > { %989 = vst [vmem:[%s1577_s8 + $0x10] sm:$0xff] %v957_v19  ;;  %1005 = vst [vmem:[%s1577_s8 + $0x90] sm:$0xff] %v973_v20  ;;  %v958_v23 = vmax.f32 %v926_v21, 0.0  ;;  %v974_v24 = vmax.f32 %v942_v22, 0.0  ;;  %v1225_v25 = vpop.f32.mrb[8].mxu0  ;;  %v1273_v26 = vpop.f32.mrb[8].mxu1 }
 0x10b   : > { %v1226_v27 = vpop.f32.mrb[9].mxu0  ;;  %v1274_v28 = vpop.f32.mrb[9].mxu1 }
 0x10c   : > { %990 = vst [vmem:[%s1577_s8 + $0x18] sm:$0xff] %v958_v23  ;;  %1006 = vst [vmem:[%s1577_s8 + $0x98] sm:$0xff] %v974_v24  ;;  %v1227_v29 = vadd.f32 %v1226_v27, %v1225_v25  ;;  %v1275_v30 = vadd.f32 %v1274_v28, %v1273_v26  ;;  %v1228_v31 = vpop.f32.mrb[10].mxu0  ;;  %v1276_v32 = vpop.f32.mrb[10].mxu1 }
 0x10d   : > { %v1229_v33 = vpop.f32.mrb[11].mxu0  ;;  %v1277_v34 = vpop.f32.mrb[11].mxu1 }
 0x10e   : > { %v927_v35 = vadd.f32 %v1227_v29, %v1568_v51  ;;  %v943_v36 = vadd.f32 %v1275_v30, %v1568_v51  ;;  %v1230_v37 = vadd.f32 %v1229_v33, %v1228_v31  ;;  %v1278_v38 = vadd.f32 %v1277_v34, %v1276_v32 }
 0x110   : > { %v959_v39 = vmax.f32 %v927_v35, 0.0  ;;  %v975_v40 = vmax.f32 %v943_v36, 0.0  ;;  %v928_v41 = vadd.f32 %v1230_v37, %v1568_v51  ;;  %v944_v42 = vadd.f32 %v1278_v38, %v1568_v51 }
 0x112   : > { %991 = vst [vmem:[%s1577_s8 + $0x20] sm:$0xff] %v959_v39  ;;  %1007 = vst [vmem:[%s1577_s8 + $0xa0] sm:$0xff] %v975_v40  ;;  %v960_v43 = vmax.f32 %v928_v41, 0.0  ;;  %v976_v44 = vmax.f32 %v944_v42, 0.0  ;;  %v1231_v45 = vpop.f32.mrb[12].mxu0  ;;  %v1279_v46 = vpop.f32.mrb[12].mxu1 }
 0x113   : > { %v1232_v47 = vpop.f32.mrb[13].mxu0  ;;  %v1280_v48 = vpop.f32.mrb[13].mxu1 }
 0x114   : > { %992 = vst [vmem:[%s1577_s8 + $0x28] sm:$0xff] %v960_v43  ;;  %1008 = vst [vmem:[%s1577_s8 + $0xa8] sm:$0xff] %v976_v44  ;;  %v1233_v49 = vadd.f32 %v1232_v47, %v1231_v45  ;;  %v1281_v50 = vadd.f32 %v1280_v48, %v1279_v46  ;;  %v1234_v52 = vpop.f32.mrb[14].mxu0  ;;  %v1282_v53 = vpop.f32.mrb[14].mxu1 }
 0x115   : > { %v1235_v54 = vpop.f32.mrb[15].mxu0  ;;  %v1283_v55 = vpop.f32.mrb[15].mxu1 }
 0x116   : > { %v929_v56 = vadd.f32 %v1233_v49, %v1568_v51  ;;  %v945_v57 = vadd.f32 %v1281_v50, %v1568_v51  ;;  %v1236_v58 = vadd.f32 %v1235_v54, %v1234_v52  ;;  %v1284_v59 = vadd.f32 %v1283_v55, %v1282_v53 }
 0x118   : > { %v961_v60 = vmax.f32 %v929_v56, 0.0  ;;  %v977_v61 = vmax.f32 %v945_v57, 0.0  ;;  %v930_v62 = vadd.f32 %v1236_v58, %v1568_v51  ;;  %v946_v63 = vadd.f32 %v1284_v59, %v1568_v51 }
 0x11a   : > { %993 = vst [vmem:[%s1577_s8 + $0x30] sm:$0xff] %v961_v60  ;;  %1009 = vst [vmem:[%s1577_s8 + $0xb0] sm:$0xff] %v977_v61  ;;  %v962_v0 = vmax.f32 %v930_v62, 0.0  ;;  %v978_v1 = vmax.f32 %v946_v63, 0.0  ;;  %v1237_v2 = vpop.f32.mrb[16].mxu0  ;;  %v1285_v3 = vpop.f32.mrb[16].mxu1 }
 0x11b   : > { %v1238_v4 = vpop.f32.mrb[17].mxu0  ;;  %v1286_v5 = vpop.f32.mrb[17].mxu1 }
 0x11c   : > { %994 = vst [vmem:[%s1577_s8 + $0x38] sm:$0xff] %v962_v0  ;;  %1010 = vst [vmem:[%s1577_s8 + $0xb8] sm:$0xff] %v978_v1  ;;  %v1239_v6 = vadd.f32 %v1238_v4, %v1237_v2  ;;  %v1287_v7 = vadd.f32 %v1286_v5, %v1285_v3  ;;  %v1240_v8 = vpop.f32.mrb[18].mxu0  ;;  %v1288_v9 = vpop.f32.mrb[18].mxu1 }
 0x11d   : > { %v1241_v10 = vpop.f32.mrb[19].mxu0  ;;  %v1289_v11 = vpop.f32.mrb[19].mxu1 }
 0x11e   : > { %v931_v12 = vadd.f32 %v1239_v6, %v1568_v51  ;;  %v947_v13 = vadd.f32 %v1287_v7, %v1568_v51  ;;  %v1242_v14 = vadd.f32 %v1241_v10, %v1240_v8  ;;  %v1290_v15 = vadd.f32 %v1289_v11, %v1288_v9 }
 0x120   : > { %v963_v16 = vmax.f32 %v931_v12, 0.0  ;;  %v979_v17 = vmax.f32 %v947_v13, 0.0  ;;  %v932_v18 = vadd.f32 %v1242_v14, %v1568_v51  ;;  %v948_v19 = vadd.f32 %v1290_v15, %v1568_v51 }
 0x122   : > { %995 = vst [vmem:[%s1577_s8 + $0x40] sm:$0xff] %v963_v16  ;;  %1011 = vst [vmem:[%s1577_s8 + $0xc0] sm:$0xff] %v979_v17  ;;  %v964_v20 = vmax.f32 %v932_v18, 0.0  ;;  %v980_v21 = vmax.f32 %v948_v19, 0.0  ;;  %v1243_v22 = vpop.f32.mrb[20].mxu0  ;;  %v1291_v23 = vpop.f32.mrb[20].mxu1 }
 0x123   : > { %v1244_v24 = vpop.f32.mrb[21].mxu0  ;;  %v1292_v25 = vpop.f32.mrb[21].mxu1 }
 0x124   : > { %996 = vst [vmem:[%s1577_s8 + $0x48] sm:$0xff] %v964_v20  ;;  %1012 = vst [vmem:[%s1577_s8 + $0xc8] sm:$0xff] %v980_v21  ;;  %v1245_v26 = vadd.f32 %v1244_v24, %v1243_v22  ;;  %v1293_v27 = vadd.f32 %v1292_v25, %v1291_v23  ;;  %v1246_v28 = vpop.f32.mrb[22].mxu0  ;;  %v1294_v29 = vpop.f32.mrb[22].mxu1 }
 0x125   : > { %v1247_v30 = vpop.f32.mrb[23].mxu0  ;;  %v1295_v31 = vpop.f32.mrb[23].mxu1 }
 0x126   : > { %v933_v32 = vadd.f32 %v1245_v26, %v1568_v51  ;;  %v949_v33 = vadd.f32 %v1293_v27, %v1568_v51  ;;  %v1248_v34 = vadd.f32 %v1247_v30, %v1246_v28  ;;  %v1296_v35 = vadd.f32 %v1295_v31, %v1294_v29 }
 0x128   : > { %v965_v36 = vmax.f32 %v933_v32, 0.0  ;;  %v981_v37 = vmax.f32 %v949_v33, 0.0  ;;  %v934_v38 = vadd.f32 %v1248_v34, %v1568_v51  ;;  %v950_v39 = vadd.f32 %v1296_v35, %v1568_v51 }
 0x12a   : > { %997 = vst [vmem:[%s1577_s8 + $0x50] sm:$0xff] %v965_v36  ;;  %1013 = vst [vmem:[%s1577_s8 + $0xd0] sm:$0xff] %v981_v37  ;;  %v966_v40 = vmax.f32 %v934_v38, 0.0  ;;  %v982_v41 = vmax.f32 %v950_v39, 0.0  ;;  %v1249_v42 = vpop.f32.mrb[24].mxu0  ;;  %v1297_v43 = vpop.f32.mrb[24].mxu1 }
 0x12b   : > { %v1250_v44 = vpop.f32.mrb[25].mxu0  ;;  %v1298_v45 = vpop.f32.mrb[25].mxu1 }
 0x12c   : > { %998 = vst [vmem:[%s1577_s8 + $0x58] sm:$0xff] %v966_v40  ;;  %1014 = vst [vmem:[%s1577_s8 + $0xd8] sm:$0xff] %v982_v41  ;;  %v1251_v46 = vadd.f32 %v1250_v44, %v1249_v42  ;;  %v1299_v47 = vadd.f32 %v1298_v45, %v1297_v43  ;;  %v1252_v48 = vpop.f32.mrb[26].mxu0  ;;  %v1300_v49 = vpop.f32.mrb[26].mxu1 }
 0x12d   : > { %v1253_v50 = vpop.f32.mrb[27].mxu0  ;;  %v1301_v52 = vpop.f32.mrb[27].mxu1 }
 0x12e   : > { %v935_v53 = vadd.f32 %v1251_v46, %v1568_v51  ;;  %v951_v54 = vadd.f32 %v1299_v47, %v1568_v51  ;;  %v1254_v55 = vadd.f32 %v1253_v50, %v1252_v48  ;;  %v1302_v56 = vadd.f32 %v1301_v52, %v1300_v49 }
 0x130   : > { %v967_v57 = vmax.f32 %v935_v53, 0.0  ;;  %v983_v58 = vmax.f32 %v951_v54, 0.0  ;;  %v936_v59 = vadd.f32 %v1254_v55, %v1568_v51  ;;  %v952_v60 = vadd.f32 %v1302_v56, %v1568_v51 }
 0x132   : > { %999 = vst [vmem:[%s1577_s8 + $0x60] sm:$0xff] %v967_v57  ;;  %1015 = vst [vmem:[%s1577_s8 + $0xe0] sm:$0xff] %v983_v58  ;;  %v968_v61 = vmax.f32 %v936_v59, 0.0  ;;  %v984_v62 = vmax.f32 %v952_v60, 0.0  ;;  %v1255_v63 = vpop.f32.mrb[28].mxu0  ;;  %v1303_v0 = vpop.f32.mrb[28].mxu1 }
 0x133   : > { %v1256_v1 = vpop.f32.mrb[29].mxu0  ;;  %v1304_v2 = vpop.f32.mrb[29].mxu1 }
 0x134   : > { %1000 = vst [vmem:[%s1577_s8 + $0x68] sm:$0xff] %v968_v61  ;;  %1016 = vst [vmem:[%s1577_s8 + $0xe8] sm:$0xff] %v984_v62  ;;  %v1257_v3 = vadd.f32 %v1256_v1, %v1255_v63  ;;  %v1305_v4 = vadd.f32 %v1304_v2, %v1303_v0  ;;  %v1258_v5 = vpop.f32.mrb[30].mxu0  ;;  %v1306_v6 = vpop.f32.mrb[30].mxu1 }
 0x135   : > { %v1259_v7 = vpop.f32.mrb[31].mxu0  ;;  %v1307_v8 = vpop.f32.mrb[31].mxu1 }
 0x136   : > { %v937_v9 = vadd.f32 %v1257_v3, %v1568_v51  ;;  %v953_v10 = vadd.f32 %v1305_v4, %v1568_v51  ;;  %v1260_v11 = vadd.f32 %v1259_v7, %v1258_v5  ;;  %v1308_v12 = vadd.f32 %v1307_v8, %v1306_v6 }
 0x138   : > { %v969_v13 = vmax.f32 %v937_v9, 0.0  ;;  %v985_v14 = vmax.f32 %v953_v10, 0.0  ;;  %v938_v15 = vadd.f32 %v1260_v11, %v1568_v51  ;;  %v954_v16 = vadd.f32 %v1308_v12, %v1568_v51 }
 0x13a   : > { %1001 = vst [vmem:[%s1577_s8 + $0x70] sm:$0xff] %v969_v13  ;;  %1017 = vst [vmem:[%s1577_s8 + $0xf0] sm:$0xff] %v985_v14  ;;  %v970_v17 = vmax.f32 %v938_v15, 0.0  ;;  %v986_v18 = vmax.f32 %v954_v16, 0.0 }
 0x13c   : > { %1002 = vst [vmem:[%s1577_s8 + $0x78] sm:$0xff] %v970_v17  ;;  %1018 = vst [vmem:[%s1577_s8 + $0xf8] sm:$0xff] %v986_v18 }
 0x13d PF: > { %s13_s14 = sadd.s32 1, %s1435_s14   ;;  %s1654_s12 = smov %s1431_s13 }
 0x13e   : > { %p10_p5 = scmp.ge.s32.totalorder %s13_s14, 4   ;;  %s1655_s13 = smov %s1657_s15 }
 0x140   :  { %12 = sbr.rel (!%p10_p5) target bundleno = 2 (0x2), region = 76 }

// kernel: _lambda_.22
= control target key start
LH: loop header
LB: loop body
LE: loop exit
PB: predicated region body
PF: predicated region fallthrough
CT: control target
= control target key end

     0   :  { %s790_s0 = inlined_call_operand.vmem [shape: f32[9,128,128], index: 0, kind: input, shape index: {}]   ;;  %s791_s1 = inlined_call_operand.vmem [shape: f32[128,128], index: 1, kind: output, shape index: {}]  }
   0x1   :  { %v8_v0 = vld [vmem:[%s790_s0] sm:$0xff]  ;;  %v9_v6 = vld [vmem:[%s790_s0 + $0x8] sm:$0xff]  ;;  %v10_v15 = vld [vmem:[%s790_s0 + $0x10] sm:$0xff] }
   0x2   :  { %v24_v1 = vld [vmem:[%s790_s0 + $0x80] sm:$0xff]  ;;  %v25_v7 = vld [vmem:[%s790_s0 + $0x88] sm:$0xff]  ;;  %v26_v16 = vld [vmem:[%s790_s0 + $0x90] sm:$0xff] }
   0x3   :  { %v40_v2 = vld [vmem:[%s790_s0 + $0x100] sm:$0xff]  ;;  %v152_v3 = vmax.f32 %v8_v0, %v24_v1  ;;  %v41_v8 = vld [vmem:[%s790_s0 + $0x108] sm:$0xff]  ;;  %v160_v10 = vmax.f32 %v9_v6, %v25_v7  ;;  %v42_v17 = vld [vmem:[%s790_s0 + $0x110] sm:$0xff]  ;;  %v168_v20 = vmax.f32 %v10_v15, %v26_v16 }
   0x4   :  { %v56_v4 = vld [vmem:[%s790_s0 + $0x180] sm:$0xff]  ;;  %v57_v13 = vld [vmem:[%s790_s0 + $0x188] sm:$0xff]  ;;  %v58_v24 = vld [vmem:[%s790_s0 + $0x190] sm:$0xff] }
   0x5   :  { %v153_v5 = vmax.f32 %v152_v3, %v40_v2  ;;  %v72_v9 = vld [vmem:[%s790_s0 + $0x200] sm:$0xff]  ;;  %v161_v14 = vmax.f32 %v160_v10, %v41_v8  ;;  %v73_v19 = vld [vmem:[%s790_s0 + $0x208] sm:$0xff]  ;;  %v169_v26 = vmax.f32 %v168_v20, %v42_v17  ;;  %v11_v27 = vld [vmem:[%s790_s0 + $0x18] sm:$0xff] }
   0x6   :  { %v88_v11 = vld [vmem:[%s790_s0 + $0x280] sm:$0xff]  ;;  %v89_v22 = vld [vmem:[%s790_s0 + $0x288] sm:$0xff]  ;;  %v27_v28 = vld [vmem:[%s790_s0 + $0x98] sm:$0xff] }
   0x7   :  { %v154_v12 = vmax.f32 %v153_v5, %v56_v4  ;;  %v104_v21 = vld [vmem:[%s790_s0 + $0x300] sm:$0xff]  ;;  %v162_v23 = vmax.f32 %v161_v14, %v57_v13  ;;  %v43_v29 = vld [vmem:[%s790_s0 + $0x118] sm:$0xff]  ;;  %v74_v33 = vld [vmem:[%s790_s0 + $0x210] sm:$0xff]  ;;  %v176_v34 = vmax.f32 %v11_v27, %v27_v28  ;;  %v170_v38 = vmax.f32 %v169_v26, %v58_v24 }
   0x8   :  { %v120_v30 = vld [vmem:[%s790_s0 + $0x380] sm:$0xff]  ;;  %v105_v36 = vld [vmem:[%s790_s0 + $0x308] sm:$0xff]  ;;  %v90_v37 = vld [vmem:[%s790_s0 + $0x290] sm:$0xff] }
   0x9   :  { %v155_v18 = vmax.f32 %v154_v12, %v72_v9  ;;  %v136_v31 = vld [vmem:[%s790_s0 + $0x400] sm:$0xff]  ;;  %v163_v32 = vmax.f32 %v162_v23, %v73_v19  ;;  %v59_v39 = vld [vmem:[%s790_s0 + $0x198] sm:$0xff]  ;;  %v177_v41 = vmax.f32 %v176_v34, %v43_v29  ;;  %v121_v46 = vld [vmem:[%s790_s0 + $0x388] sm:$0xff]  ;;  %v171_v48 = vmax.f32 %v170_v38, %v74_v33 }
   0xa   :  { %v12_v42 = vld [vmem:[%s790_s0 + $0x20] sm:$0xff]  ;;  %v137_v47 = vld [vmem:[%s790_s0 + $0x408] sm:$0xff]  ;;  %v75_v49 = vld [vmem:[%s790_s0 + $0x218] sm:$0xff] }
   0xb   :  { %v156_v25 = vmax.f32 %v155_v18, %v88_v11  ;;  %v164_v40 = vmax.f32 %v163_v32, %v89_v22  ;;  %v28_v43 = vld [vmem:[%s790_s0 + $0xa0] sm:$0xff]  ;;  %v106_v52 = vld [vmem:[%s790_s0 + $0x310] sm:$0xff]  ;;  %v91_v53 = vld [vmem:[%s790_s0 + $0x298] sm:$0xff]  ;;  %v178_v54 = vmax.f32 %v177_v41, %v59_v39  ;;  %v172_v57 = vmax.f32 %v171_v48, %v90_v37 }
   0xc   :  { %v44_v44 = vld [vmem:[%s790_s0 + $0x120] sm:$0xff]  ;;  %v184_v50 = vmax.f32 %v12_v42, %v28_v43  ;;  %v13_v59 = vld [vmem:[%s790_s0 + $0x28] sm:$0xff]  ;;  %v122_v63 = vld [vmem:[%s790_s0 + $0x390] sm:$0xff] }
   0xd   :  { %v157_v35 = vmax.f32 %v156_v25, %v104_v21  ;;  %v165_v51 = vmax.f32 %v164_v40, %v105_v36  ;;  %v60_v55 = vld [vmem:[%s790_s0 + $0x1a0] sm:$0xff]  ;;  %v29_v60 = vld [vmem:[%s790_s0 + $0xa8] sm:$0xff]  ;;  %v138_v0 = vld [vmem:[%s790_s0 + $0x410] sm:$0xff]  ;;  %v179_v1 = vmax.f32 %v178_v54, %v75_v49  ;;  %v173_v4 = vmax.f32 %v172_v57, %v106_v52 }
   0xe   :  { %v185_v58 = vmax.f32 %v184_v50, %v44_v44  ;;  %v45_v61 = vld [vmem:[%s790_s0 + $0x128] sm:$0xff]  ;;  %v76_v2 = vld [vmem:[%s790_s0 + $0x220] sm:$0xff]  ;;  %v192_v3 = vmax.f32 %v13_v59, %v29_v60  ;;  %v107_v5 = vld [vmem:[%s790_s0 + $0x318] sm:$0xff] }
   0xf   :  { %v158_v45 = vmax.f32 %v157_v35, %v120_v30  ;;  %v166_v62 = vmax.f32 %v165_v51, %v121_v46  ;;  %v92_v6 = vld [vmem:[%s790_s0 + $0x2a0] sm:$0xff]  ;;  %v61_v8 = vld [vmem:[%s790_s0 + $0x1a8] sm:$0xff]  ;;  %v180_v10 = vmax.f32 %v179_v1, %v91_v53  ;;  %v14_v12 = vld [vmem:[%s790_s0 + $0x30] sm:$0xff]  ;;  %v174_v15 = vmax.f32 %v173_v4, %v122_v63 }
  0x10   :  { %v186_v7 = vmax.f32 %v185_v58, %v60_v55  ;;  %v193_v11 = vmax.f32 %v192_v3, %v45_v61  ;;  %v30_v13 = vld [vmem:[%s790_s0 + $0xb0] sm:$0xff]  ;;  %v123_v16 = vld [vmem:[%s790_s0 + $0x398] sm:$0xff]  ;;  %v77_v19 = vld [vmem:[%s790_s0 + $0x228] sm:$0xff] }
  0x11   :  { %v159_v56 = vmax.f32 %v158_v45, %v136_v31  ;;  %v167_v9 = vmax.f32 %v166_v62, %v137_v47  ;;  %v46_v14 = vld [vmem:[%s790_s0 + $0x130] sm:$0xff]  ;;  %v139_v17 = vld [vmem:[%s790_s0 + $0x418] sm:$0xff]  ;;  %v200_v20 = vmax.f32 %v14_v12, %v30_v13  ;;  %v181_v21 = vmax.f32 %v180_v10, %v107_v5  ;;  %v108_v22 = vld [vmem:[%s790_s0 + $0x320] sm:$0xff] }
  0x12   :  { %v187_v18 = vmax.f32 %v186_v7, %v76_v2  ;;  %v93_v23 = vld [vmem:[%s790_s0 + $0x2a8] sm:$0xff]  ;;  %v194_v24 = vmax.f32 %v193_v11, %v61_v8  ;;  %v62_v25 = vld [vmem:[%s790_s0 + $0x1b0] sm:$0xff]  ;;  %v175_v26 = vmax.f32 %v174_v15, %v138_v0  ;;  %v15_v29 = vld [vmem:[%s790_s0 + $0x38] sm:$0xff] }
  0x13   :  { %280 = vst [vmem:[%s791_s1] sm:$0xff] %v159_v56  ;;  %281 = vst [vmem:[%s791_s1 + $0x8] sm:$0xff] %v167_v9  ;;  %v201_v28 = vmax.f32 %v200_v20, %v46_v14  ;;  %v31_v30 = vld [vmem:[%s790_s0 + $0xb8] sm:$0xff]  ;;  %v182_v32 = vmax.f32 %v181_v21, %v123_v16  ;;  %v124_v33 = vld [vmem:[%s790_s0 + $0x3a0] sm:$0xff] }
  0x14   :  { %v188_v27 = vmax.f32 %v187_v18, %v92_v6  ;;  %v47_v31 = vld [vmem:[%s790_s0 + $0x138] sm:$0xff]  ;;  %v140_v34 = vld [vmem:[%s790_s0 + $0x420] sm:$0xff]  ;;  %v195_v35 = vmax.f32 %v194_v24, %v77_v19  ;;  %v78_v36 = vld [vmem:[%s790_s0 + $0x230] sm:$0xff]  ;;  %v208_v37 = vmax.f32 %v15_v29, %v31_v30  ;;  %282 = vst [vmem:[%s791_s1 + $0x10] sm:$0xff] %v175_v26 }
  0x15   :  { %v109_v39 = vld [vmem:[%s790_s0 + $0x328] sm:$0xff]  ;;  %v94_v40 = vld [vmem:[%s790_s0 + $0x2b0] sm:$0xff]  ;;  %v202_v41 = vmax.f32 %v201_v28, %v62_v25  ;;  %v63_v42 = vld [vmem:[%s790_s0 + $0x1b8] sm:$0xff]  ;;  %v183_v43 = vmax.f32 %v182_v32, %v139_v17 }
  0x16   :  { %v189_v38 = vmax.f32 %v188_v27, %v108_v22  ;;  %v196_v44 = vmax.f32 %v195_v35, %v93_v23  ;;  %v209_v45 = vmax.f32 %v208_v37, %v47_v31  ;;  %v16_v46 = vld [vmem:[%s790_s0 + $0x40] sm:$0xff]  ;;  %v125_v50 = vld [vmem:[%s790_s0 + $0x3a8] sm:$0xff]  ;;  %v79_v53 = vld [vmem:[%s790_s0 + $0x238] sm:$0xff] }
  0x17   :  { %v32_v47 = vld [vmem:[%s790_s0 + $0xc0] sm:$0xff]  ;;  %v141_v51 = vld [vmem:[%s790_s0 + $0x428] sm:$0xff]  ;;  %v203_v52 = vmax.f32 %v202_v41, %v78_v36  ;;  %283 = vst [vmem:[%s791_s1 + $0x18] sm:$0xff] %v183_v43  ;;  %v110_v56 = vld [vmem:[%s790_s0 + $0x330] sm:$0xff] }
  0x18   :  { %v48_v48 = vld [vmem:[%s790_s0 + $0x140] sm:$0xff]  ;;  %v190_v49 = vmax.f32 %v189_v38, %v124_v33  ;;  %v216_v54 = vmax.f32 %v16_v46, %v32_v47  ;;  %v197_v55 = vmax.f32 %v196_v44, %v109_v39  ;;  %v95_v57 = vld [vmem:[%s790_s0 + $0x2b8] sm:$0xff]  ;;  %v210_v58 = vmax.f32 %v209_v45, %v63_v42  ;;  %v17_v63 = vld [vmem:[%s790_s0 + $0x48] sm:$0xff] }
  0x19   :  { %v64_v59 = vld [vmem:[%s790_s0 + $0x1c0] sm:$0xff]  ;;  %v204_v61 = vmax.f32 %v203_v52, %v94_v40  ;;  %v33_v0 = vld [vmem:[%s790_s0 + $0xc8] sm:$0xff]  ;;  %v126_v3 = vld [vmem:[%s790_s0 + $0x3b0] sm:$0xff] }
  0x1a   :  { %v191_v60 = vmax.f32 %v190_v49, %v140_v34  ;;  %v217_v62 = vmax.f32 %v216_v54, %v48_v48  ;;  %v49_v1 = vld [vmem:[%s790_s0 + $0x148] sm:$0xff]  ;;  %v198_v2 = vmax.f32 %v197_v55, %v125_v50  ;;  %v142_v4 = vld [vmem:[%s790_s0 + $0x430] sm:$0xff]  ;;  %v211_v5 = vmax.f32 %v210_v58, %v79_v53  ;;  %v80_v6 = vld [vmem:[%s790_s0 + $0x240] sm:$0xff] }
  0x1b   :  { %v224_v7 = vmax.f32 %v17_v63, %v33_v0  ;;  %v205_v8 = vmax.f32 %v204_v61, %v110_v56  ;;  %v111_v9 = vld [vmem:[%s790_s0 + $0x338] sm:$0xff]  ;;  %v96_v10 = vld [vmem:[%s790_s0 + $0x2c0] sm:$0xff]  ;;  %v65_v12 = vld [vmem:[%s790_s0 + $0x1c8] sm:$0xff] }
  0x1c   :  { %284 = vst [vmem:[%s791_s1 + $0x20] sm:$0xff] %v191_v60  ;;  %v218_v11 = vmax.f32 %v217_v62, %v64_v59  ;;  %v199_v13 = vmax.f32 %v198_v2, %v141_v51  ;;  %v212_v14 = vmax.f32 %v211_v5, %v95_v57  ;;  %v18_v16 = vld [vmem:[%s790_s0 + $0x50] sm:$0xff]  ;;  %v127_v20 = vld [vmem:[%s790_s0 + $0x3b8] sm:$0xff]  ;;  %v81_v23 = vld [vmem:[%s790_s0 + $0x248] sm:$0xff] }
  0x1d   :  { %v225_v15 = vmax.f32 %v224_v7, %v49_v1  ;;  %v34_v17 = vld [vmem:[%s790_s0 + $0xd0] sm:$0xff]  ;;  %v206_v19 = vmax.f32 %v205_v8, %v126_v3  ;;  %v143_v21 = vld [vmem:[%s790_s0 + $0x438] sm:$0xff]  ;;  %v112_v26 = vld [vmem:[%s790_s0 + $0x340] sm:$0xff] }
  0x1e   :  { %v50_v18 = vld [vmem:[%s790_s0 + $0x150] sm:$0xff]  ;;  %v219_v22 = vmax.f32 %v218_v11, %v80_v6  ;;  %v232_v24 = vmax.f32 %v18_v16, %v34_v17  ;;  %285 = vst [vmem:[%s791_s1 + $0x28] sm:$0xff] %v199_v13  ;;  %v213_v25 = vmax.f32 %v212_v14, %v111_v9  ;;  %v97_v27 = vld [vmem:[%s790_s0 + $0x2c8] sm:$0xff]  ;;  %v19_v33 = vld [vmem:[%s790_s0 + $0x58] sm:$0xff] }
  0x1f   :  { %v226_v28 = vmax.f32 %v225_v15, %v65_v12  ;;  %v66_v29 = vld [vmem:[%s790_s0 + $0x1d0] sm:$0xff]  ;;  %v207_v30 = vmax.f32 %v206_v19, %v142_v4  ;;  %v35_v34 = vld [vmem:[%s790_s0 + $0xd8] sm:$0xff]  ;;  %v128_v37 = vld [vmem:[%s790_s0 + $0x3c0] sm:$0xff] }
  0x20   :  { %v220_v31 = vmax.f32 %v219_v22, %v96_v10  ;;  %v233_v32 = vmax.f32 %v232_v24, %v50_v18  ;;  %v51_v35 = vld [vmem:[%s790_s0 + $0x158] sm:$0xff]  ;;  %v214_v36 = vmax.f32 %v213_v25, %v127_v20  ;;  %v144_v38 = vld [vmem:[%s790_s0 + $0x440] sm:$0xff]  ;;  %v82_v40 = vld [vmem:[%s790_s0 + $0x250] sm:$0xff]  ;;  %v240_v41 = vmax.f32 %v19_v33, %v35_v34 }
  0x21   :  { %v227_v39 = vmax.f32 %v226_v28, %v81_v23  ;;  %286 = vst [vmem:[%s791_s1 + $0x30] sm:$0xff] %v207_v30  ;;  %v113_v43 = vld [vmem:[%s790_s0 + $0x348] sm:$0xff]  ;;  %v98_v44 = vld [vmem:[%s790_s0 + $0x2d0] sm:$0xff]  ;;  %v67_v46 = vld [vmem:[%s790_s0 + $0x1d8] sm:$0xff] }
  0x22   :  { %v221_v42 = vmax.f32 %v220_v31, %v112_v26  ;;  %v234_v45 = vmax.f32 %v233_v32, %v66_v29  ;;  %v215_v47 = vmax.f32 %v214_v36, %v143_v21  ;;  %v241_v49 = vmax.f32 %v240_v41, %v51_v35  ;;  %v20_v50 = vld [vmem:[%s790_s0 + $0x60] sm:$0xff]  ;;  %v129_v54 = vld [vmem:[%s790_s0 + $0x3c8] sm:$0xff]  ;;  %v83_v57 = vld [vmem:[%s790_s0 + $0x258] sm:$0xff] }
  0x23   :  { %v228_v48 = vmax.f32 %v227_v39, %v97_v27  ;;  %v36_v51 = vld [vmem:[%s790_s0 + $0xe0] sm:$0xff]  ;;  %v145_v55 = vld [vmem:[%s790_s0 + $0x448] sm:$0xff]  ;;  %v114_v60 = vld [vmem:[%s790_s0 + $0x350] sm:$0xff] }
  0x24   :  { %v52_v52 = vld [vmem:[%s790_s0 + $0x160] sm:$0xff]  ;;  %v222_v53 = vmax.f32 %v221_v42, %v128_v37  ;;  %v235_v56 = vmax.f32 %v234_v45, %v82_v40  ;;  %v248_v58 = vmax.f32 %v20_v50, %v36_v51  ;;  %287 = vst [vmem:[%s791_s1 + $0x38] sm:$0xff] %v215_v47  ;;  %v99_v61 = vld [vmem:[%s790_s0 + $0x2d8] sm:$0xff]  ;;  %v242_v62 = vmax.f32 %v241_v49, %v67_v46  ;;  %v21_v3 = vld [vmem:[%s790_s0 + $0x68] sm:$0xff] }
  0x25   :  { %v229_v59 = vmax.f32 %v228_v48, %v113_v43  ;;  %v68_v63 = vld [vmem:[%s790_s0 + $0x1e0] sm:$0xff]  ;;  %v37_v4 = vld [vmem:[%s790_s0 + $0xe8] sm:$0xff]  ;;  %v130_v7 = vld [vmem:[%s790_s0 + $0x3d0] sm:$0xff] }
  0x26   :  { %v223_v0 = vmax.f32 %v222_v53, %v144_v38  ;;  %v236_v1 = vmax.f32 %v235_v56, %v98_v44  ;;  %v249_v2 = vmax.f32 %v248_v58, %v52_v52  ;;  %v53_v5 = vld [vmem:[%s790_s0 + $0x168] sm:$0xff]  ;;  %v146_v8 = vld [vmem:[%s790_s0 + $0x450] sm:$0xff]  ;;  %v243_v9 = vmax.f32 %v242_v62, %v83_v57  ;;  %v84_v10 = vld [vmem:[%s790_s0 + $0x260] sm:$0xff] }
  0x27   :  { %v230_v6 = vmax.f32 %v229_v59, %v129_v54  ;;  %v256_v11 = vmax.f32 %v21_v3, %v37_v4  ;;  %v115_v13 = vld [vmem:[%s790_s0 + $0x358] sm:$0xff]  ;;  %v100_v14 = vld [vmem:[%s790_s0 + $0x2e0] sm:$0xff]  ;;  %v69_v16 = vld [vmem:[%s790_s0 + $0x1e8] sm:$0xff] }
  0x28   :  { %288 = vst [vmem:[%s791_s1 + $0x40] sm:$0xff] %v223_v0  ;;  %v237_v12 = vmax.f32 %v236_v1, %v114_v60  ;;  %v250_v15 = vmax.f32 %v249_v2, %v68_v63  ;;  %v244_v18 = vmax.f32 %v243_v9, %v99_v61  ;;  %v22_v20 = vld [vmem:[%s790_s0 + $0x70] sm:$0xff]  ;;  %v131_v24 = vld [vmem:[%s790_s0 + $0x3d8] sm:$0xff]  ;;  %v85_v27 = vld [vmem:[%s790_s0 + $0x268] sm:$0xff] }
  0x29   :  { %v231_v17 = vmax.f32 %v230_v6, %v145_v55  ;;  %v257_v19 = vmax.f32 %v256_v11, %v53_v5  ;;  %v38_v21 = vld [vmem:[%s790_s0 + $0xf0] sm:$0xff]  ;;  %v147_v25 = vld [vmem:[%s790_s0 + $0x458] sm:$0xff]  ;;  %v116_v30 = vld [vmem:[%s790_s0 + $0x360] sm:$0xff] }
  0x2a   :  { %v54_v22 = vld [vmem:[%s790_s0 + $0x170] sm:$0xff]  ;;  %v238_v23 = vmax.f32 %v237_v12, %v130_v7  ;;  %v251_v26 = vmax.f32 %v250_v15, %v84_v10  ;;  %v264_v28 = vmax.f32 %v22_v20, %v38_v21  ;;  %v245_v29 = vmax.f32 %v244_v18, %v115_v13  ;;  %v101_v31 = vld [vmem:[%s790_s0 + $0x2e8] sm:$0xff]  ;;  %v23_v37 = vld [vmem:[%s790_s0 + $0x78] sm:$0xff] }
  0x2b   :  { %289 = vst [vmem:[%s791_s1 + $0x48] sm:$0xff] %v231_v17  ;;  %v258_v32 = vmax.f32 %v257_v19, %v69_v16  ;;  %v70_v33 = vld [vmem:[%s790_s0 + $0x1f0] sm:$0xff]  ;;  %v39_v38 = vld [vmem:[%s790_s0 + $0xf8] sm:$0xff]  ;;  %v132_v41 = vld [vmem:[%s790_s0 + $0x3e0] sm:$0xff] }
  0x2c   :  { %v239_v34 = vmax.f32 %v238_v23, %v146_v8  ;;  %v252_v35 = vmax.f32 %v251_v26, %v100_v14  ;;  %v265_v36 = vmax.f32 %v264_v28, %v54_v22  ;;  %v55_v39 = vld [vmem:[%s790_s0 + $0x178] sm:$0xff]  ;;  %v246_v40 = vmax.f32 %v245_v29, %v131_v24  ;;  %v86_v43 = vld [vmem:[%s790_s0 + $0x270] sm:$0xff]  ;;  %v117_v46 = vld [vmem:[%s790_s0 + $0x368] sm:$0xff] }
  0x2d   :  { %v259_v42 = vmax.f32 %v258_v32, %v85_v27  ;;  %v272_v44 = vmax.f32 %v23_v37, %v39_v38  ;;  %v71_v48 = vld [vmem:[%s790_s0 + $0x1f8] sm:$0xff]  ;;  %v148_v50 = vld [vmem:[%s790_s0 + $0x460] sm:$0xff]  ;;  %v102_v52 = vld [vmem:[%s790_s0 + $0x2f0] sm:$0xff] }
  0x2e   :  { %290 = vst [vmem:[%s791_s1 + $0x50] sm:$0xff] %v239_v34  ;;  %v253_v45 = vmax.f32 %v252_v35, %v116_v30  ;;  %v266_v47 = vmax.f32 %v265_v36, %v70_v33  ;;  %v247_v49 = vmax.f32 %v246_v40, %v147_v25  ;;  %v133_v55 = vld [vmem:[%s790_s0 + $0x3e8] sm:$0xff]  ;;  %v87_v57 = vld [vmem:[%s790_s0 + $0x278] sm:$0xff]  ;;  %v118_v59 = vld [vmem:[%s790_s0 + $0x370] sm:$0xff] }
  0x2f   :  { %v260_v51 = vmax.f32 %v259_v42, %v101_v31  ;;  %v273_v53 = vmax.f32 %v272_v44, %v55_v39  ;;  %v149_v62 = vld [vmem:[%s790_s0 + $0x468] sm:$0xff]  ;;  %v103_v0 = vld [vmem:[%s790_s0 + $0x2f8] sm:$0xff]  ;;  %v134_v2 = vld [vmem:[%s790_s0 + $0x3f0] sm:$0xff] }
  0x30   :  { %v254_v54 = vmax.f32 %v253_v45, %v132_v41  ;;  %v267_v56 = vmax.f32 %v266_v47, %v86_v43  ;;  %291 = vst [vmem:[%s791_s1 + $0x58] sm:$0xff] %v247_v49  ;;  %v119_v5 = vld [vmem:[%s790_s0 + $0x378] sm:$0xff]  ;;  %v150_v7 = vld [vmem:[%s790_s0 + $0x470] sm:$0xff] }
  0x31   :  { %v261_v58 = vmax.f32 %v260_v51, %v117_v46  ;;  %v274_v60 = vmax.f32 %v273_v53, %v71_v48  ;;  %v135_v10 = vld [vmem:[%s790_s0 + $0x3f8] sm:$0xff] }
  0x32   :  { %v255_v61 = vmax.f32 %v254_v54, %v148_v50  ;;  %v268_v63 = vmax.f32 %v267_v56, %v102_v52  ;;  %v151_v13 = vld [vmem:[%s790_s0 + $0x478] sm:$0xff] }
  0x33   :  { %v262_v1 = vmax.f32 %v261_v58, %v133_v55  ;;  %v275_v3 = vmax.f32 %v274_v60, %v87_v57 }
  0x34   :  { %292 = vst [vmem:[%s791_s1 + $0x60] sm:$0xff] %v255_v61  ;;  %v269_v4 = vmax.f32 %v268_v63, %v118_v59 }
  0x35   :  { %v263_v6 = vmax.f32 %v262_v1, %v149_v62  ;;  %v276_v8 = vmax.f32 %v275_v3, %v103_v0 }
  0x36   :  { %v270_v9 = vmax.f32 %v269_v4, %v134_v2 }
  0x37   :  { %293 = vst [vmem:[%s791_s1 + $0x68] sm:$0xff] %v263_v6  ;;  %v277_v11 = vmax.f32 %v276_v8, %v119_v5 }
  0x38   :  { %v271_v12 = vmax.f32 %v270_v9, %v150_v7 }
  0x39   :  { %v278_v14 = vmax.f32 %v277_v11, %v135_v10 }
  0x3a   :  { %294 = vst [vmem:[%s791_s1 + $0x70] sm:$0xff] %v271_v12 }
  0x3b   :  { %v279_v15 = vmax.f32 %v278_v14, %v151_v13 }
  0x3d   :  { %295 = vst [vmem:[%s791_s1 + $0x78] sm:$0xff] %v279_v15 }

// kernel: _lambda_.23
= control target key start
LH: loop header
LB: loop body
LE: loop exit
PB: predicated region body
PF: predicated region fallthrough
CT: control target
= control target key end

     0   :  { %s1047_s12 = smov 0   ;;  %s1049_s13 = smov 0   ;;  %s1203_s0 = inlined_call_operand.vmem [shape: bf16[128,640], index: 0, kind: input, shape index: {}]   ;;  %s1204_s1 = inlined_call_operand.vmem [shape: bf16[640,128], index: 1, kind: input, shape index: {}]   ;;  %s1205_s2 = inlined_call_operand.vmem [shape: f32[1,128], index: 2, kind: input, shape index: {}]   ;;  %s1206_s3 = inlined_call_operand.vmem [shape: f32[128,128], index: 3, kind: output, shape index: {}]  }
   0x1   :  { %s1051_s14 = smov 0   ;;  %s1053_s15 = smov 0  }
   0x2   :  { %s1055_s16 = smov 0  }
   0x3 LB: > { %s25_s17 = sadd.s32 1, %s1020_s15  ;;  %p48_p1 = scmp.ne.s32.totalorder %s1012_s13, %s1008_s12  ;;  %s1024_s16 = sphi %s1055_s16, %s13_s16   ;;  %s1020_s15 = sphi %s1053_s15, %s1210_s15   ;;  %s1016_s14 = sphi %s1051_s14, %s1209_s14   ;;  %s1012_s13 = sphi %s1049_s13, %s1208_s13   ;;  %s1008_s12 = sphi %s1047_s12, %s1207_s12  }
   0x4   : > { %p26_p0 = scmp.ge.s32.totalorder %s25_s17, 5  ;;  %p49_p2 = scmp.eq.s32.totalorder %s1024_s16, 0 }
   0x5   : > { %s41_s19 = sadd.s32 1, %s1012_s13  ;;  %p835_p5 = scmp.ge.s32.totalorder %s1024_s16, 5 }
   0x6   : > { %s1212_s17 = smov (%p26_p0, %s25_s17), 0  ;;  %p50_p3 = por %p49_p2, %p48_p1 }
   0x7   : > { %s37_s18 = ssub.s32 %s1020_s15, %s1212_s17  ;;  %162 = sbr.rel (%p835_p5) target bundleno = 28 (0x1c), region = 20 }
   0x8   : > { %p39_p4 = scmp.eq.s32.totalorder %s37_s18, 0 }
   0xa   : > { %s1082_s20 = scalar_select %p39_p4, %s1012_s13, %s41_s19  }
   0xe   : > { %165 = sbr.rel (!%p50_p3) target bundleno = 28 (0x1c), region = 24  ;;  %s167_s21 = sand.u32 (%p50_p3), 1, %s1012_s13  }
   0xf   : > { %s837_s22 = sshll.u32 (%p50_p3), %s1020_s15, 2  ;;  %s836_s23 = sshll.u32 (%p50_p3), %s167_s21, 6 }
  0x10   : > { %s1090_s26 = scalar_lea.vmem (%p50_p3), %s1203_s0, %s837_s22  ;;  %s169_s27 = scalar_lea.vmem (%p50_p3), [#allocation3], %s836_s23 }
  0x11   : > { %v190_v0 = vld [vmem:[%s1090_s26] sm:$0xf] (%p50_p3)  ;;  %v192_v1 = vld [vmem:[%s1090_s26 + $0x14] sm:$0xf] (%p50_p3)  ;;  %v194_v2 = vld [vmem:[%s1090_s26 + $0x28] sm:$0xf] (%p50_p3) }
  0x12   : > { %191 = vst [vmem:[%s169_s27] sm:$0xf] (%p50_p3), %v190_v0  ;;  %193 = vst [vmem:[%s169_s27 + $0x4] sm:$0xf] (%p50_p3), %v192_v1  ;;  %v196_v3 = vld [vmem:[%s1090_s26 + $0x3c] sm:$0xf] (%p50_p3) }
  0x13   : > { %v198_v4 = vld [vmem:[%s1090_s26 + $0x50] sm:$0xf] (%p50_p3)  ;;  %195 = vst [vmem:[%s169_s27 + $0x8] sm:$0xf] (%p50_p3), %v194_v2  ;;  %197 = vst [vmem:[%s169_s27 + $0xc] sm:$0xf] (%p50_p3), %v196_v3 }
  0x14   : > { %199 = vst [vmem:[%s169_s27 + $0x10] sm:$0xf] (%p50_p3), %v198_v4  ;;  %v200_v5 = vld [vmem:[%s1090_s26 + $0x64] sm:$0xf] (%p50_p3)  ;;  %v202_v6 = vld [vmem:[%s1090_s26 + $0x78] sm:$0xf] (%p50_p3) }
  0x15   : > { %v204_v7 = vld [vmem:[%s1090_s26 + $0x8c] sm:$0xf]  ;;  %201 = vst [vmem:[%s169_s27 + $0x14] sm:$0xf] %v200_v5  ;;  %203 = vst [vmem:[%s169_s27 + $0x18] sm:$0xf] %v202_v6 }
  0x16   : > { %205 = vst [vmem:[%s169_s27 + $0x1c] sm:$0xf] %v204_v7  ;;  %v206_v8 = vld [vmem:[%s1090_s26 + $0xa0] sm:$0xf]  ;;  %v208_v9 = vld [vmem:[%s1090_s26 + $0xb4] sm:$0xf] }
  0x17   : > { %v210_v10 = vld [vmem:[%s1090_s26 + $0xc8] sm:$0xf]  ;;  %207 = vst [vmem:[%s169_s27 + $0x20] sm:$0xf] %v206_v8  ;;  %209 = vst [vmem:[%s169_s27 + $0x24] sm:$0xf] %v208_v9 }
  0x18   : > { %211 = vst [vmem:[%s169_s27 + $0x28] sm:$0xf] %v210_v10  ;;  %v212_v11 = vld [vmem:[%s1090_s26 + $0xdc] sm:$0xf]  ;;  %v214_v12 = vld [vmem:[%s1090_s26 + $0xf0] sm:$0xf] }
  0x19   : > { %v216_v13 = vld [vmem:[%s1090_s26 + $0x104] sm:$0xf]  ;;  %213 = vst [vmem:[%s169_s27 + $0x2c] sm:$0xf] %v212_v11  ;;  %215 = vst [vmem:[%s169_s27 + $0x30] sm:$0xf] %v214_v12 }
  0x1a   : > { %217 = vst [vmem:[%s169_s27 + $0x34] sm:$0xf] %v216_v13  ;;  %v218_v14 = vld [vmem:[%s1090_s26 + $0x118] sm:$0xf]  ;;  %v220_v15 = vld [vmem:[%s1090_s26 + $0x12c] sm:$0xf] }
  0x1b   : > { %219 = vst [vmem:[%s169_s27 + $0x38] sm:$0xf] %v218_v14  ;;  %221 = vst [vmem:[%s169_s27 + $0x3c] sm:$0xf] %v220_v15 }
  0x1c PF: > { %p838_p6 = scmp.ge.s32.totalorder %s1024_s16, 1  ;;  %p287_p7 = scmp.lt.s32.totalorder %s1024_s16, 6 }
  0x1e   : > { %p288_p8 = pnand %p838_p6, %p287_p7 }
  0x1f   : > { %s294_s28 = sand.u32 (!%p288_p8), 1, %s1008_s12   ;;  %s840_s29 = sshll.u32 (!%p288_p8), %s1016_s14, 4 }
  0x20   : > { %291 = sbr.rel (%p288_p8) target bundleno = 321 (0x141), region = 69  ;;  %s839_s30 = sshll.u32 (!%p288_p8), %s294_s28, 6 }
  0x21   : > { %p333_p9 = scmp.lt.s32.totalorder (!%p288_p8), %s840_s29, 79  ;;  %s1117_s8 = scalar_lea.vmem (!%p288_p8), [#allocation3], %s839_s30 }
  0x22   : > { %p842_p10 = scmp.ne.s32.totalorder (!%p288_p8), %s1016_s14, 0 }
  0x27   : > { %s1214_s29 = smov (!%p333_p9, %s840_s29), 79  ;;  %357 = sbr.rel (%p842_p10) target bundleno = 49 (0x31), region = 77 }
  0x28   : > { %s841_s4 = sshll.u32 %s1214_s29, 2  ;;  %v1026_v16 = vmov (!%p842_p10), 0.0  }
  0x29   : > { %s1115_s7 = scalar_lea.vmem %s1204_s1, %s841_s4  ;;  %358 = vst [vmem:[#allocation2] sm:$0xff] (!%p842_p10), %v1026_v16  ;;  %359 = vst [vmem:[#allocation2 + $0x8] sm:$0xff] (!%p842_p10), %v1026_v16 }
  0x2a   : > { %360 = vst [vmem:[#allocation2 + $0x10] sm:$0xff] (!%p842_p10), %v1026_v16  ;;  %361 = vst [vmem:[#allocation2 + $0x18] sm:$0xff] (!%p842_p10), %v1026_v16 }
  0x2b   : > { %362 = vst [vmem:[#allocation2 + $0x20] sm:$0xff] (!%p842_p10), %v1026_v16  ;;  %363 = vst [vmem:[#allocation2 + $0x28] sm:$0xff] (!%p842_p10), %v1026_v16 }
  0x2c   : > { %364 = vst [vmem:[#allocation2 + $0x30] sm:$0xff] (!%p842_p10), %v1026_v16  ;;  %365 = vst [vmem:[#allocation2 + $0x38] sm:$0xff] (!%p842_p10), %v1026_v16 }
  0x2d   : > { %366 = vst [vmem:[#allocation2 + $0x40] sm:$0xff] (!%p842_p10), %v1026_v16  ;;  %367 = vst [vmem:[#allocation2 + $0x48] sm:$0xff] (!%p842_p10), %v1026_v16 }
  0x2e   : > { %368 = vst [vmem:[#allocation2 + $0x50] sm:$0xff] %v1026_v16  ;;  %369 = vst [vmem:[#allocation2 + $0x58] sm:$0xff] %v1026_v16 }
  0x2f   : > { %370 = vst [vmem:[#allocation2 + $0x60] sm:$0xff] %v1026_v16  ;;  %371 = vst [vmem:[#allocation2 + $0x68] sm:$0xff] %v1026_v16 }
  0x30   : > { %372 = vst [vmem:[#allocation2 + $0x70] sm:$0xff] %v1026_v16  ;;  %373 = vst [vmem:[#allocation2 + $0x78] sm:$0xff] %v1026_v16 }
  0x31 PF: > { %v970_v17 = vld [vmem:[%s1115_s7] sm:$0xff]   ;;  %v971_v18 = vld [vmem:[%s1115_s7 + $0x8] sm:$0xff]   ;;  %v972_v19 = vld [vmem:[%s1115_s7 + $0x10] sm:$0xff]   ;;  %p859_p11 = scmp.ne.s32.totalorder %s1016_s14, 4 }
  0x32   : > { %881 = vmatprep.subr.bf16.mxu0 %v970_v17  ;;  %913 = vmatprep.subr.bf16.mxu1 %v970_v17  ;;  %v973_v20 = vld [vmem:[%s1115_s7 + $0x18] sm:$0xff]   ;;  %v978_v21 = vld [vmem:[%s1117_s8] sm:$0xff]   ;;  %v975_v24 = vld [vmem:[%s1115_s7 + $0x28] sm:$0xff]  }
  0x33   : > { %882 = vmatpush3.bf16.msra.mxu0 %v970_v17  ;;  %921 = vmatpush3.bf16.msra.mxu1 %v970_v17  ;;  %v979_v22 = vld [vmem:[%s1117_s8 + $0x20] sm:$0xff]   ;;  %v976_v25 = vld [vmem:[%s1115_s7 + $0x30] sm:$0xff]   ;;  %v977_v26 = vld [vmem:[%s1115_s7 + $0x38] sm:$0xff]  }
  0x34   : > { %883 = vmatprep.subr.bf16.mxu0 %v971_v18  ;;  %914 = vmatprep.subr.bf16.mxu1 %v971_v18  ;;  %v974_v23 = vld [vmem:[%s1115_s7 + $0x20] sm:$0xff]   ;;  %v980_v27 = vld [vmem:[%s1117_s8 + $0x8] sm:$0xff]   ;;  %v982_v29 = vld [vmem:[%s1117_s8 + $0x10] sm:$0xff]  }
  0x35   : > { %897 = vmatprep.mubr.bf16.mxu0 %v978_v21  ;;  %905 = vmatprep.mubr.bf16.mxu1 %v979_v22  ;;  %v981_v28 = vld [vmem:[%s1117_s8 + $0x28] sm:$0xff]   ;;  %v983_v30 = vld [vmem:[%s1117_s8 + $0x30] sm:$0xff]   ;;  %v984_v31 = vld [vmem:[%s1117_s8 + $0x18] sm:$0xff]  }
  0x36   : > { %v985_v32 = vld [vmem:[%s1117_s8 + $0x38] sm:$0xff]   ;;  %v376_v33 = vld [vmem:[#allocation2 + $0x10] sm:$0xff]  ;;  %v374_v35 = vld [vmem:[#allocation2] sm:$0xff] }
  0x37   : > { %884 = vmatpush3.bf16.msra.mxu0 %v971_v18  ;;  %922 = vmatpush3.bf16.msra.mxu1 %v971_v18  ;;  %v384_v34 = vld [vmem:[#allocation2 + $0x50] sm:$0xff]  ;;  %v382_v36 = vld [vmem:[#allocation2 + $0x40] sm:$0xff]  ;;  %v377_v39 = vld [vmem:[#allocation2 + $0x18] sm:$0xff] }
  0x38   : > { %885 = vmatprep.subr.bf16.mxu0 %v972_v19  ;;  %915 = vmatprep.subr.bf16.mxu1 %v972_v19  ;;  %v385_v40 = vld [vmem:[#allocation2 + $0x58] sm:$0xff]  ;;  %v375_v45 = vld [vmem:[#allocation2 + $0x8] sm:$0xff]  ;;  %v380_v57 = vld [vmem:[#allocation2 + $0x30] sm:$0xff] }
  0x39   : > { %v383_v46 = vld [vmem:[#allocation2 + $0x48] sm:$0xff]  ;;  %v388_v58 = vld [vmem:[#allocation2 + $0x70] sm:$0xff]  ;;  %v378_v59 = vld [vmem:[#allocation2 + $0x20] sm:$0xff] }
  0x3a   : > { %v386_v60 = vld [vmem:[#allocation2 + $0x60] sm:$0xff]  ;;  %v381_v63 = vld [vmem:[#allocation2 + $0x38] sm:$0xff]  ;;  %v379_v5 = vld [vmem:[#allocation2 + $0x28] sm:$0xff] }
  0x3b   : > { %886 = vmatpush3.bf16.msra.mxu0 %v972_v19  ;;  %923 = vmatpush3.bf16.msra.mxu1 %v972_v19  ;;  %v389_v0 = vld [vmem:[#allocation2 + $0x78] sm:$0xff]  ;;  %v387_v6 = vld [vmem:[#allocation2 + $0x68] sm:$0xff]  ;;  %v860_v18 = vld [vmem:[%s1205_s2] ss:$0 sm:$0xff] (!%p859_p11) }
  0x3c   : > { %887 = vmatprep.subr.bf16.mxu0 %v973_v20  ;;  %916 = vmatprep.subr.bf16.mxu1 %v973_v20 }
  0x3f   : > { %888 = vmatpush3.bf16.msra.mxu0 %v973_v20  ;;  %924 = vmatpush3.bf16.msra.mxu1 %v973_v20 }
  0x40   : > { %889 = vmatprep.subr.bf16.mxu0 %v974_v23  ;;  %917 = vmatprep.subr.bf16.mxu1 %v974_v23 }
  0x43   : > { %890 = vmatpush3.bf16.msra.mxu0 %v974_v23  ;;  %925 = vmatpush3.bf16.msra.mxu1 %v974_v23 }
  0x44   : > { %891 = vmatprep.subr.bf16.mxu0 %v975_v24  ;;  %918 = vmatprep.subr.bf16.mxu1 %v975_v24 }
  0x47   : > { %892 = vmatpush3.bf16.msra.mxu0 %v975_v24  ;;  %926 = vmatpush3.bf16.msra.mxu1 %v975_v24 }
  0x48   : > { %893 = vmatprep.subr.bf16.mxu0 %v976_v25  ;;  %919 = vmatprep.subr.bf16.mxu1 %v976_v25 }
  0x4b   : > { %894 = vmatpush3.bf16.msra.mxu0 %v976_v25  ;;  %927 = vmatpush3.bf16.msra.mxu1 %v976_v25 }
  0x4c   : > { %895 = vmatprep.subr.bf16.mxu0 %v977_v26  ;;  %920 = vmatprep.subr.bf16.mxu1 %v977_v26 }
  0x4f   : > { %896 = vmatpush3.bf16.msra.mxu0 %v977_v26  ;;  %928 = vmatpush3.bf16.msra.mxu1 %v977_v26 }
  0x52   : > { %898 = vmatmul.mubr.bf16.vlgmr.msra.gmra.mrb[0].mxu0 %v980_v27  ;;  %906 = vmatmul.mubr.bf16.vlgmr.msra.gmra.mrb[0].mxu1 %v981_v28 }
  0x53   : > { %901 = vmatprep.mubr.bf16.mxu0 %v982_v29  ;;  %909 = vmatprep.mubr.bf16.mxu1 %v983_v30 }
  0x5a   : > { %902 = vmatmul.mubr.bf16.gmra.mrb[4].mxu0 %v984_v31  ;;  %910 = vmatmul.mubr.bf16.gmra.mrb[4].mxu1 %v985_v32 }
 0x125   : > { %v899_v37 = vpop.f32.mrb[0].mxu0  ;;  %v907_v38 = vpop.f32.mrb[0].mxu1 }
 0x126   : > { %v617_v41 = vadd.f32 %v899_v37, %v376_v33  ;;  %v625_v42 = vadd.f32 %v907_v38, %v384_v34  ;;  %v552_v43 = vpop.f32.mrb[1].mxu0  ;;  %v584_v44 = vpop.f32.mrb[1].mxu1 }
 0x127   : > { %v615_v47 = vadd.f32 %v552_v43, %v374_v35  ;;  %v623_v48 = vadd.f32 %v584_v44, %v382_v36  ;;  %v900_v49 = vpop.f32.mrb[2].mxu0  ;;  %v908_v50 = vpop.f32.mrb[2].mxu1 }
 0x128   : > { %633 = vst [vmem:[#allocation2 + $0x10] sm:$0xff] %v617_v41  ;;  %641 = vst [vmem:[#allocation2 + $0x50] sm:$0xff] %v625_v42  ;;  %v618_v51 = vadd.f32 %v900_v49, %v377_v39  ;;  %v626_v52 = vadd.f32 %v908_v50, %v385_v40  ;;  %v555_v53 = vpop.f32.mrb[3].mxu0  ;;  %v587_v54 = vpop.f32.mrb[3].mxu1 }
 0x129   : > { %631 = vst [vmem:[#allocation2] sm:$0xff] %v615_v47  ;;  %639 = vst [vmem:[#allocation2 + $0x40] sm:$0xff] %v623_v48  ;;  %v616_v55 = vadd.f32 %v555_v53, %v375_v45  ;;  %v624_v56 = vadd.f32 %v587_v54, %v383_v46 }
 0x12a   : > { %634 = vst [vmem:[#allocation2 + $0x18] sm:$0xff] %v618_v51  ;;  %642 = vst [vmem:[#allocation2 + $0x58] sm:$0xff] %v626_v52 }
 0x12b   : > { %632 = vst [vmem:[#allocation2 + $0x8] sm:$0xff] %v616_v55  ;;  %640 = vst [vmem:[#allocation2 + $0x48] sm:$0xff] %v624_v56 }
 0x12d   : > { %v903_v61 = vpop.f32.mrb[4].mxu0  ;;  %v911_v62 = vpop.f32.mrb[4].mxu1  ;;  %650 = sbr.rel (%p859_p11) target bundleno = 321 (0x141), region = 81 }
 0x12e   : > { %v621_v1 = vadd.f32 %v903_v61, %v380_v57  ;;  %v629_v2 = vadd.f32 %v911_v62, %v388_v58  ;;  %v568_v3 = vpop.f32.mrb[5].mxu0  ;;  %v600_v4 = vpop.f32.mrb[5].mxu1 }
 0x12f   : > { %v619_v7 = vadd.f32 %v568_v3, %v378_v59  ;;  %v627_v8 = vadd.f32 %v600_v4, %v386_v60  ;;  %v904_v9 = vpop.f32.mrb[6].mxu0  ;;  %v912_v10 = vpop.f32.mrb[6].mxu1  ;;  %v653_v22 = vld [vmem:[#allocation2 + $0x10] sm:$0xff] (!%p859_p11) }
 0x130   : > { %637 = vst [vmem:[#allocation2 + $0x30] sm:$0xff] %v621_v1  ;;  %645 = vst [vmem:[#allocation2 + $0x70] sm:$0xff] %v629_v2  ;;  %v622_v11 = vadd.f32 %v904_v9, %v381_v63  ;;  %v630_v12 = vadd.f32 %v912_v10, %v389_v0  ;;  %v571_v13 = vpop.f32.mrb[7].mxu0  ;;  %v603_v14 = vpop.f32.mrb[7].mxu1  ;;  %v651_v17 = vld [vmem:[#allocation2] sm:$0xff] (!%p859_p11)  ;;  %v676_v25 = vadd.f32 (!%p859_p11), %v860_v18, %v653_v22  ;;  %v661_v37 = vld [vmem:[#allocation2 + $0x50] sm:$0xff] (!%p859_p11) }
 0x131   : > { %635 = vst [vmem:[#allocation2 + $0x20] sm:$0xff] %v619_v7  ;;  %643 = vst [vmem:[#allocation2 + $0x60] sm:$0xff] %v627_v8  ;;  %v620_v15 = vadd.f32 %v571_v13, %v379_v5  ;;  %v628_v16 = vadd.f32 %v603_v14, %v387_v6  ;;  %v674_v20 = vadd.f32 (!%p859_p11), %v860_v18, %v651_v17  ;;  %v654_v23 = vld [vmem:[#allocation2 + $0x18] sm:$0xff] (!%p859_p11)  ;;  %v659_v35 = vld [vmem:[#allocation2 + $0x40] sm:$0xff] (!%p859_p11) }
 0x132   : > { %638 = vst [vmem:[#allocation2 + $0x38] sm:$0xff] %v622_v11  ;;  %646 = vst [vmem:[#allocation2 + $0x78] sm:$0xff] %v630_v12  ;;  %v652_v19 = vld [vmem:[#allocation2 + $0x8] sm:$0xff] (!%p859_p11)  ;;  %v677_v26 = vadd.f32 (!%p859_p11), %v860_v18, %v654_v23  ;;  %v692_v38 = vmax.f32 (!%p859_p11), %v676_v25, 0.0  ;;  %v662_v42 = vld [vmem:[#allocation2 + $0x58] sm:$0xff] (!%p859_p11)  ;;  %v682_v47 = vadd.f32 (!%p859_p11), %v860_v18, %v659_v35  ;;  %v684_v52 = vadd.f32 (!%p859_p11), %v860_v18, %v661_v37 }
 0x133   : > { %636 = vst [vmem:[#allocation2 + $0x28] sm:$0xff] %v620_v15  ;;  %644 = vst [vmem:[#allocation2 + $0x68] sm:$0xff] %v628_v16  ;;  %v675_v21 = vadd.f32 (!%p859_p11), %v860_v18, %v652_v19  ;;  %v690_v31 = vmax.f32 (!%p859_p11), %v674_v20, 0.0  ;;  %v660_v36 = vld [vmem:[#allocation2 + $0x48] sm:$0xff] (!%p859_p11)  ;;  %v685_v53 = vadd.f32 (!%p859_p11), %v860_v18, %v662_v42 }
 0x134   : > { %v693_v39 = vmax.f32 %v677_v26, 0.0  ;;  %v683_v48 = vadd.f32 %v860_v18, %v660_v36  ;;  %708 = vst [vmem:[%s1206_s3 + $0x10] sm:$0xff] %v692_v38  ;;  %v698_v55 = vmax.f32 %v682_v47, 0.0  ;;  %v700_v59 = vmax.f32 %v684_v52, 0.0 }
 0x135   : > { %v691_v32 = vmax.f32 %v675_v21, 0.0  ;;  %706 = vst [vmem:[%s1206_s3] sm:$0xff] %v690_v31  ;;  %v701_v60 = vmax.f32 %v685_v53, 0.0 }
 0x136   : > { %709 = vst [vmem:[%s1206_s3 + $0x18] sm:$0xff] %v693_v39  ;;  %v699_v56 = vmax.f32 %v683_v48, 0.0  ;;  %714 = vst [vmem:[%s1206_s3 + $0x40] sm:$0xff] %v698_v55 }
 0x137   : > { %v657_v29 = vld [vmem:[#allocation2 + $0x30] sm:$0xff]  ;;  %707 = vst [vmem:[%s1206_s3 + $0x8] sm:$0xff] %v691_v32  ;;  %716 = vst [vmem:[%s1206_s3 + $0x50] sm:$0xff] %v700_v59 }
 0x138   : > { %v655_v24 = vld [vmem:[#allocation2 + $0x20] sm:$0xff]  ;;  %v680_v34 = vadd.f32 %v860_v18, %v657_v29  ;;  %v665_v49 = vld [vmem:[#allocation2 + $0x70] sm:$0xff]  ;;  %715 = vst [vmem:[%s1206_s3 + $0x48] sm:$0xff] %v699_v56  ;;  %717 = vst [vmem:[%s1206_s3 + $0x58] sm:$0xff] %v701_v60 }
 0x139   : > { %v678_v27 = vadd.f32 %v860_v18, %v655_v24  ;;  %v658_v30 = vld [vmem:[#allocation2 + $0x38] sm:$0xff]  ;;  %v663_v43 = vld [vmem:[#allocation2 + $0x60] sm:$0xff]  ;;  %v688_v58 = vadd.f32 %v860_v18, %v665_v49 }
 0x13a   : > { %v656_v28 = vld [vmem:[#allocation2 + $0x28] sm:$0xff]  ;;  %v681_v41 = vadd.f32 %v860_v18, %v658_v30  ;;  %v696_v46 = vmax.f32 %v680_v34, 0.0  ;;  %v666_v50 = vld [vmem:[#allocation2 + $0x78] sm:$0xff]  ;;  %v686_v54 = vadd.f32 %v860_v18, %v663_v43 }
 0x13b   : > { %v679_v33 = vadd.f32 %v860_v18, %v656_v28  ;;  %v694_v40 = vmax.f32 %v678_v27, 0.0  ;;  %v664_v44 = vld [vmem:[#allocation2 + $0x68] sm:$0xff]  ;;  %v689_v62 = vadd.f32 %v860_v18, %v666_v50  ;;  %v704_v0 = vmax.f32 %v688_v58, 0.0 }
 0x13c   : > { %v697_v51 = vmax.f32 %v681_v41, 0.0  ;;  %712 = vst [vmem:[%s1206_s3 + $0x30] sm:$0xff] %v696_v46  ;;  %v687_v57 = vadd.f32 %v860_v18, %v664_v44  ;;  %v702_v61 = vmax.f32 %v686_v54, 0.0 }
 0x13d   : > { %v695_v45 = vmax.f32 %v679_v33, 0.0  ;;  %710 = vst [vmem:[%s1206_s3 + $0x20] sm:$0xff] %v694_v40  ;;  %v705_v1 = vmax.f32 %v689_v62, 0.0  ;;  %720 = vst [vmem:[%s1206_s3 + $0x70] sm:$0xff] %v704_v0 }
 0x13e   : > { %713 = vst [vmem:[%s1206_s3 + $0x38] sm:$0xff] %v697_v51  ;;  %v703_v63 = vmax.f32 %v687_v57, 0.0  ;;  %718 = vst [vmem:[%s1206_s3 + $0x60] sm:$0xff] %v702_v61 }
 0x13f   : > { %711 = vst [vmem:[%s1206_s3 + $0x28] sm:$0xff] %v695_v45  ;;  %721 = vst [vmem:[%s1206_s3 + $0x78] sm:$0xff] %v705_v1 }
 0x140   : > { %719 = vst [vmem:[%s1206_s3 + $0x68] sm:$0xff] %v703_v63 }
 0x141 PF: > { %s13_s16 = sadd.s32 1, %s1024_s16   ;;  %s1207_s12 = smov %s1012_s13 }
 0x142   : > { %p10_p12 = scmp.ge.s32.totalorder %s13_s16, 7   ;;  %s1208_s13 = smov %s1082_s20 }
 0x143   : > { %s1209_s14 = smov %s1020_s15  ;;  %s1210_s15 = smov %s1212_s17 }
 0x144   :  { %12 = sbr.rel (!%p10_p12) target bundleno = 3 (0x3), region = 122 }

// kernel: _lambda_.24
= control target key start
LH: loop header
LB: loop body
LE: loop exit
PB: predicated region body
PF: predicated region fallthrough
CT: control target
= control target key end

     0   :  { %s1163_s15 = smov 0   ;;  %s1165_s16 = smov 0   ;;  %s1385_s0 = inlined_call_operand.vmem [shape: bf16[128,640], index: 0, kind: input, shape index: {}]   ;;  %s1386_s1 = inlined_call_operand.vmem [shape: bf16[640,128], index: 1, kind: input, shape index: {}]   ;;  %s1387_s2 = inlined_call_operand.vmem [shape: f32[1,128], index: 2, kind: input, shape index: {}]   ;;  %s1388_s3 = inlined_call_operand.vmem [shape: f32[128,128], index: 3, kind: input, shape index: {}]   ;;  %s1389_s4 = inlined_call_operand.vmem [shape: f32[128,128], index: 4, kind: output, shape index: {}]  }
   0x1   :  { %s1167_s17 = smov 0   ;;  %s1169_s18 = smov 0  }
   0x2   :  { %s1171_s19 = smov 0  }
   0x3 LB: > { %s26_s20 = sadd.s32 1, %s1131_s18  ;;  %p49_p1 = scmp.ne.s32.totalorder %s1123_s16, %s1119_s15  ;;  %s1135_s19 = sphi %s1171_s19, %s14_s19   ;;  %s1131_s18 = sphi %s1169_s18, %s1393_s18   ;;  %s1127_s17 = sphi %s1167_s17, %s1392_s17   ;;  %s1123_s16 = sphi %s1165_s16, %s1391_s16   ;;  %s1119_s15 = sphi %s1163_s15, %s1390_s15  }
   0x4   : > { %p27_p0 = scmp.ge.s32.totalorder %s26_s20, 5  ;;  %p50_p2 = scmp.eq.s32.totalorder %s1135_s19, 0 }
   0x5   : > { %s42_s22 = sadd.s32 1, %s1123_s16  ;;  %p946_p5 = scmp.ge.s32.totalorder %s1135_s19, 5 }
   0x6   : > { %s1395_s20 = smov (%p27_p0, %s26_s20), 0  ;;  %p51_p3 = por %p50_p2, %p49_p1 }
   0x7   : > { %s38_s21 = ssub.s32 %s1131_s18, %s1395_s20  ;;  %203 = sbr.rel (%p946_p5) target bundleno = 28 (0x1c), region = 24 }
   0x8   : > { %p40_p4 = scmp.eq.s32.totalorder %s38_s21, 0 }
   0xa   : > { %s1198_s23 = scalar_select %p40_p4, %s1123_s16, %s42_s22  }
   0xe   : > { %206 = sbr.rel (!%p51_p3) target bundleno = 28 (0x1c), region = 28  ;;  %s208_s24 = sand.u32 (%p51_p3), 1, %s1123_s16  }
   0xf   : > { %s948_s25 = sshll.u32 (%p51_p3), %s1131_s18, 2  ;;  %s947_s26 = sshll.u32 (%p51_p3), %s208_s24, 6 }
  0x10   : > { %s1206_s29 = scalar_lea.vmem (%p51_p3), %s1385_s0, %s948_s25  ;;  %s210_s30 = scalar_lea.vmem (%p51_p3), [#allocation3], %s947_s26 }
  0x11   : > { %v231_v0 = vld [vmem:[%s1206_s29] sm:$0xf] (%p51_p3)  ;;  %v233_v1 = vld [vmem:[%s1206_s29 + $0x14] sm:$0xf] (%p51_p3)  ;;  %v235_v2 = vld [vmem:[%s1206_s29 + $0x28] sm:$0xf] (%p51_p3) }
  0x12   : > { %232 = vst [vmem:[%s210_s30] sm:$0xf] (%p51_p3), %v231_v0  ;;  %234 = vst [vmem:[%s210_s30 + $0x4] sm:$0xf] (%p51_p3), %v233_v1  ;;  %v237_v3 = vld [vmem:[%s1206_s29 + $0x3c] sm:$0xf] (%p51_p3) }
  0x13   : > { %v239_v4 = vld [vmem:[%s1206_s29 + $0x50] sm:$0xf] (%p51_p3)  ;;  %236 = vst [vmem:[%s210_s30 + $0x8] sm:$0xf] (%p51_p3), %v235_v2  ;;  %238 = vst [vmem:[%s210_s30 + $0xc] sm:$0xf] (%p51_p3), %v237_v3 }
  0x14   : > { %240 = vst [vmem:[%s210_s30 + $0x10] sm:$0xf] (%p51_p3), %v239_v4  ;;  %v241_v5 = vld [vmem:[%s1206_s29 + $0x64] sm:$0xf] (%p51_p3)  ;;  %v243_v6 = vld [vmem:[%s1206_s29 + $0x78] sm:$0xf] (%p51_p3) }
  0x15   : > { %v245_v7 = vld [vmem:[%s1206_s29 + $0x8c] sm:$0xf]  ;;  %242 = vst [vmem:[%s210_s30 + $0x14] sm:$0xf] %v241_v5  ;;  %244 = vst [vmem:[%s210_s30 + $0x18] sm:$0xf] %v243_v6 }
  0x16   : > { %246 = vst [vmem:[%s210_s30 + $0x1c] sm:$0xf] %v245_v7  ;;  %v247_v8 = vld [vmem:[%s1206_s29 + $0xa0] sm:$0xf]  ;;  %v249_v9 = vld [vmem:[%s1206_s29 + $0xb4] sm:$0xf] }
  0x17   : > { %v251_v10 = vld [vmem:[%s1206_s29 + $0xc8] sm:$0xf]  ;;  %248 = vst [vmem:[%s210_s30 + $0x20] sm:$0xf] %v247_v8  ;;  %250 = vst [vmem:[%s210_s30 + $0x24] sm:$0xf] %v249_v9 }
  0x18   : > { %252 = vst [vmem:[%s210_s30 + $0x28] sm:$0xf] %v251_v10  ;;  %v253_v11 = vld [vmem:[%s1206_s29 + $0xdc] sm:$0xf]  ;;  %v255_v12 = vld [vmem:[%s1206_s29 + $0xf0] sm:$0xf] }
  0x19   : > { %v257_v13 = vld [vmem:[%s1206_s29 + $0x104] sm:$0xf]  ;;  %254 = vst [vmem:[%s210_s30 + $0x2c] sm:$0xf] %v253_v11  ;;  %256 = vst [vmem:[%s210_s30 + $0x30] sm:$0xf] %v255_v12 }
  0x1a   : > { %258 = vst [vmem:[%s210_s30 + $0x34] sm:$0xf] %v257_v13  ;;  %v259_v14 = vld [vmem:[%s1206_s29 + $0x118] sm:$0xf]  ;;  %v261_v15 = vld [vmem:[%s1206_s29 + $0x12c] sm:$0xf] }
  0x1b   : > { %260 = vst [vmem:[%s210_s30 + $0x38] sm:$0xf] %v259_v14  ;;  %262 = vst [vmem:[%s210_s30 + $0x3c] sm:$0xf] %v261_v15 }
  0x1c PF: > { %p949_p6 = scmp.ge.s32.totalorder %s1135_s19, 1  ;;  %p328_p7 = scmp.lt.s32.totalorder %s1135_s19, 6 }
  0x1e   : > { %p329_p8 = pnand %p949_p6, %p328_p7 }
  0x1f   : > { %s335_s5 = sand.u32 (!%p329_p8), 1, %s1119_s15   ;;  %s951_s6 = sshll.u32 (!%p329_p8), %s1127_s17, 4 }
  0x20   : > { %332 = sbr.rel (%p329_p8) target bundleno = 323 (0x143), region = 73  ;;  %s950_s7 = sshll.u32 (!%p329_p8), %s335_s5, 6 }
  0x21   : > { %p384_p9 = scmp.lt.s32.totalorder (!%p329_p8), %s951_s6, 79  ;;  %s1233_s12 = scalar_lea.vmem (!%p329_p8), [#allocation3], %s950_s7 }
  0x22   : > { %p953_p10 = scmp.ne.s32.totalorder (!%p329_p8), %s1127_s17, 0 }
  0x27   : > { %s1397_s6 = smov (!%p384_p9, %s951_s6), 79  ;;  %417 = sbr.rel (%p953_p10) target bundleno = 49 (0x31), region = 81 }
  0x28   : > { %s952_s8 = sshll.u32 %s1397_s6, 2  ;;  %v1137_v16 = vmov (!%p953_p10), 0.0  }
  0x29   : > { %s1231_s11 = scalar_lea.vmem %s1386_s1, %s952_s8  ;;  %418 = vst [vmem:[#allocation2] sm:$0xff] (!%p953_p10), %v1137_v16  ;;  %419 = vst [vmem:[#allocation2 + $0x8] sm:$0xff] (!%p953_p10), %v1137_v16 }
  0x2a   : > { %420 = vst [vmem:[#allocation2 + $0x10] sm:$0xff] (!%p953_p10), %v1137_v16  ;;  %421 = vst [vmem:[#allocation2 + $0x18] sm:$0xff] (!%p953_p10), %v1137_v16 }
  0x2b   : > { %422 = vst [vmem:[#allocation2 + $0x20] sm:$0xff] (!%p953_p10), %v1137_v16  ;;  %423 = vst [vmem:[#allocation2 + $0x28] sm:$0xff] (!%p953_p10), %v1137_v16 }
  0x2c   : > { %424 = vst [vmem:[#allocation2 + $0x30] sm:$0xff] (!%p953_p10), %v1137_v16  ;;  %425 = vst [vmem:[#allocation2 + $0x38] sm:$0xff] (!%p953_p10), %v1137_v16 }
  0x2d   : > { %426 = vst [vmem:[#allocation2 + $0x40] sm:$0xff] (!%p953_p10), %v1137_v16  ;;  %427 = vst [vmem:[#allocation2 + $0x48] sm:$0xff] (!%p953_p10), %v1137_v16 }
  0x2e   : > { %428 = vst [vmem:[#allocation2 + $0x50] sm:$0xff] %v1137_v16  ;;  %429 = vst [vmem:[#allocation2 + $0x58] sm:$0xff] %v1137_v16 }
  0x2f   : > { %430 = vst [vmem:[#allocation2 + $0x60] sm:$0xff] %v1137_v16  ;;  %431 = vst [vmem:[#allocation2 + $0x68] sm:$0xff] %v1137_v16 }
  0x30   : > { %432 = vst [vmem:[#allocation2 + $0x70] sm:$0xff] %v1137_v16  ;;  %433 = vst [vmem:[#allocation2 + $0x78] sm:$0xff] %v1137_v16 }
  0x31 PF: > { %v1081_v17 = vld [vmem:[%s1231_s11] sm:$0xff]   ;;  %v1082_v18 = vld [vmem:[%s1231_s11 + $0x8] sm:$0xff]   ;;  %v1083_v19 = vld [vmem:[%s1231_s11 + $0x10] sm:$0xff]   ;;  %p970_p11 = scmp.ne.s32.totalorder %s1127_s17, 4 }
  0x32   : > { %992 = vmatprep.subr.bf16.mxu0 %v1081_v17  ;;  %1024 = vmatprep.subr.bf16.mxu1 %v1081_v17  ;;  %v1084_v20 = vld [vmem:[%s1231_s11 + $0x18] sm:$0xff]   ;;  %v1089_v21 = vld [vmem:[%s1233_s12] sm:$0xff]   ;;  %v1086_v24 = vld [vmem:[%s1231_s11 + $0x28] sm:$0xff]  }
  0x33   : > { %993 = vmatpush3.bf16.msra.mxu0 %v1081_v17  ;;  %1032 = vmatpush3.bf16.msra.mxu1 %v1081_v17  ;;  %v1090_v22 = vld [vmem:[%s1233_s12 + $0x20] sm:$0xff]   ;;  %v1087_v25 = vld [vmem:[%s1231_s11 + $0x30] sm:$0xff]   ;;  %v1088_v26 = vld [vmem:[%s1231_s11 + $0x38] sm:$0xff]  }
  0x34   : > { %994 = vmatprep.subr.bf16.mxu0 %v1082_v18  ;;  %1025 = vmatprep.subr.bf16.mxu1 %v1082_v18  ;;  %v1085_v23 = vld [vmem:[%s1231_s11 + $0x20] sm:$0xff]   ;;  %v1091_v27 = vld [vmem:[%s1233_s12 + $0x8] sm:$0xff]   ;;  %v1093_v29 = vld [vmem:[%s1233_s12 + $0x10] sm:$0xff]  }
  0x35   : > { %1008 = vmatprep.mubr.bf16.mxu0 %v1089_v21  ;;  %1016 = vmatprep.mubr.bf16.mxu1 %v1090_v22  ;;  %v1092_v28 = vld [vmem:[%s1233_s12 + $0x28] sm:$0xff]   ;;  %v1094_v30 = vld [vmem:[%s1233_s12 + $0x30] sm:$0xff]   ;;  %v1095_v31 = vld [vmem:[%s1233_s12 + $0x18] sm:$0xff]  }
  0x36   : > { %v1096_v32 = vld [vmem:[%s1233_s12 + $0x38] sm:$0xff]   ;;  %v436_v33 = vld [vmem:[#allocation2 + $0x10] sm:$0xff]  ;;  %v434_v35 = vld [vmem:[#allocation2] sm:$0xff] }
  0x37   : > { %995 = vmatpush3.bf16.msra.mxu0 %v1082_v18  ;;  %1033 = vmatpush3.bf16.msra.mxu1 %v1082_v18  ;;  %v444_v34 = vld [vmem:[#allocation2 + $0x50] sm:$0xff]  ;;  %v442_v36 = vld [vmem:[#allocation2 + $0x40] sm:$0xff]  ;;  %v437_v39 = vld [vmem:[#allocation2 + $0x18] sm:$0xff] }
  0x38   : > { %996 = vmatprep.subr.bf16.mxu0 %v1083_v19  ;;  %1026 = vmatprep.subr.bf16.mxu1 %v1083_v19  ;;  %v445_v40 = vld [vmem:[#allocation2 + $0x58] sm:$0xff]  ;;  %v435_v45 = vld [vmem:[#allocation2 + $0x8] sm:$0xff]  ;;  %v440_v57 = vld [vmem:[#allocation2 + $0x30] sm:$0xff] }
  0x39   : > { %v443_v46 = vld [vmem:[#allocation2 + $0x48] sm:$0xff]  ;;  %v448_v58 = vld [vmem:[#allocation2 + $0x70] sm:$0xff]  ;;  %v438_v59 = vld [vmem:[#allocation2 + $0x20] sm:$0xff] }
  0x3a   : > { %v446_v60 = vld [vmem:[#allocation2 + $0x60] sm:$0xff]  ;;  %v441_v63 = vld [vmem:[#allocation2 + $0x38] sm:$0xff]  ;;  %v439_v5 = vld [vmem:[#allocation2 + $0x28] sm:$0xff] }
  0x3b   : > { %997 = vmatpush3.bf16.msra.mxu0 %v1083_v19  ;;  %1034 = vmatpush3.bf16.msra.mxu1 %v1083_v19  ;;  %v449_v0 = vld [vmem:[#allocation2 + $0x78] sm:$0xff]  ;;  %v447_v6 = vld [vmem:[#allocation2 + $0x68] sm:$0xff]  ;;  %v1256_v18 = vld [vmem:[%s1387_s2] ss:$0 sm:$0xff] (!%p970_p11) }
  0x3c   : > { %998 = vmatprep.subr.bf16.mxu0 %v1084_v20  ;;  %1027 = vmatprep.subr.bf16.mxu1 %v1084_v20  ;;  %v750_v19 = vld [vmem:[%s1388_s3] sm:$0xff] (!%p970_p11)  ;;  %v751_v22 = vld [vmem:[%s1388_s3 + $0x8] sm:$0xff] (!%p970_p11) }
  0x3f   : > { %999 = vmatpush3.bf16.msra.mxu0 %v1084_v20  ;;  %1035 = vmatpush3.bf16.msra.mxu1 %v1084_v20 }
  0x40   : > { %1000 = vmatprep.subr.bf16.mxu0 %v1085_v23  ;;  %1028 = vmatprep.subr.bf16.mxu1 %v1085_v23 }
  0x43   : > { %1001 = vmatpush3.bf16.msra.mxu0 %v1085_v23  ;;  %1036 = vmatpush3.bf16.msra.mxu1 %v1085_v23 }
  0x44   : > { %1002 = vmatprep.subr.bf16.mxu0 %v1086_v24  ;;  %1029 = vmatprep.subr.bf16.mxu1 %v1086_v24 }
  0x47   : > { %1003 = vmatpush3.bf16.msra.mxu0 %v1086_v24  ;;  %1037 = vmatpush3.bf16.msra.mxu1 %v1086_v24 }
  0x48   : > { %1004 = vmatprep.subr.bf16.mxu0 %v1087_v25  ;;  %1030 = vmatprep.subr.bf16.mxu1 %v1087_v25 }
  0x4b   : > { %1005 = vmatpush3.bf16.msra.mxu0 %v1087_v25  ;;  %1038 = vmatpush3.bf16.msra.mxu1 %v1087_v25 }
  0x4c   : > { %1006 = vmatprep.subr.bf16.mxu0 %v1088_v26  ;;  %1031 = vmatprep.subr.bf16.mxu1 %v1088_v26 }
  0x4f   : > { %1007 = vmatpush3.bf16.msra.mxu0 %v1088_v26  ;;  %1039 = vmatpush3.bf16.msra.mxu1 %v1088_v26  ;;  %v752_v26 = vld [vmem:[%s1388_s3 + $0x10] sm:$0xff] (!%p970_p11) }
  0x52   : > { %1009 = vmatmul.mubr.bf16.vlgmr.msra.gmra.mrb[0].mxu0 %v1091_v27  ;;  %1017 = vmatmul.mubr.bf16.vlgmr.msra.gmra.mrb[0].mxu1 %v1092_v28  ;;  %v753_v28 = vld [vmem:[%s1388_s3 + $0x18] sm:$0xff] (!%p970_p11) }
  0x53   : > { %1012 = vmatprep.mubr.bf16.mxu0 %v1093_v29  ;;  %1020 = vmatprep.mubr.bf16.mxu1 %v1094_v30 }
  0x5a   : > { %1013 = vmatmul.mubr.bf16.gmra.mrb[4].mxu0 %v1095_v31  ;;  %1021 = vmatmul.mubr.bf16.gmra.mrb[4].mxu1 %v1096_v32  ;;  %v754_v32 = vld [vmem:[%s1388_s3 + $0x20] sm:$0xff] (!%p970_p11) }
 0x125   : > { %v1010_v37 = vpop.f32.mrb[0].mxu0  ;;  %v1018_v38 = vpop.f32.mrb[0].mxu1 }
 0x126   : > { %v677_v41 = vadd.f32 %v1010_v37, %v436_v33  ;;  %v685_v42 = vadd.f32 %v1018_v38, %v444_v34  ;;  %v612_v43 = vpop.f32.mrb[1].mxu0  ;;  %v644_v44 = vpop.f32.mrb[1].mxu1  ;;  %v755_v38 = vld [vmem:[%s1388_s3 + $0x28] sm:$0xff] (!%p970_p11) }
 0x127   : > { %v675_v47 = vadd.f32 %v612_v43, %v434_v35  ;;  %v683_v48 = vadd.f32 %v644_v44, %v442_v36  ;;  %v1011_v49 = vpop.f32.mrb[2].mxu0  ;;  %v1019_v50 = vpop.f32.mrb[2].mxu1 }
 0x128   : > { %693 = vst [vmem:[#allocation2 + $0x10] sm:$0xff] %v677_v41  ;;  %701 = vst [vmem:[#allocation2 + $0x50] sm:$0xff] %v685_v42  ;;  %v678_v51 = vadd.f32 %v1011_v49, %v437_v39  ;;  %v686_v52 = vadd.f32 %v1019_v50, %v445_v40  ;;  %v615_v53 = vpop.f32.mrb[3].mxu0  ;;  %v647_v54 = vpop.f32.mrb[3].mxu1  ;;  %v756_v40 = vld [vmem:[%s1388_s3 + $0x30] sm:$0xff] (!%p970_p11) }
 0x129   : > { %691 = vst [vmem:[#allocation2] sm:$0xff] %v675_v47  ;;  %699 = vst [vmem:[#allocation2 + $0x40] sm:$0xff] %v683_v48  ;;  %v676_v55 = vadd.f32 %v615_v53, %v435_v45  ;;  %v684_v56 = vadd.f32 %v647_v54, %v443_v46  ;;  %v757_v45 = vld [vmem:[%s1388_s3 + $0x38] sm:$0xff] (!%p970_p11)  ;;  %v759_v53 = vld [vmem:[%s1388_s3 + $0x48] sm:$0xff] (!%p970_p11) }
 0x12a   : > { %694 = vst [vmem:[#allocation2 + $0x18] sm:$0xff] %v678_v51  ;;  %702 = vst [vmem:[#allocation2 + $0x58] sm:$0xff] %v686_v52  ;;  %v758_v51 = vld [vmem:[%s1388_s3 + $0x40] sm:$0xff] (!%p970_p11) }
 0x12b   : > { %692 = vst [vmem:[#allocation2 + $0x8] sm:$0xff] %v676_v55  ;;  %700 = vst [vmem:[#allocation2 + $0x48] sm:$0xff] %v684_v56 }
 0x12d   : > { %v1014_v61 = vpop.f32.mrb[4].mxu0  ;;  %v1022_v62 = vpop.f32.mrb[4].mxu1  ;;  %710 = sbr.rel (%p970_p11) target bundleno = 323 (0x143), region = 85 }
 0x12e   : > { %v681_v1 = vadd.f32 %v1014_v61, %v440_v57  ;;  %v689_v2 = vadd.f32 %v1022_v62, %v448_v58  ;;  %v628_v3 = vpop.f32.mrb[5].mxu0  ;;  %v660_v4 = vpop.f32.mrb[5].mxu1 }
 0x12f   : > { %v679_v7 = vadd.f32 %v628_v3, %v438_v59  ;;  %v687_v8 = vadd.f32 %v660_v4, %v446_v60  ;;  %v1015_v9 = vpop.f32.mrb[6].mxu0  ;;  %v1023_v10 = vpop.f32.mrb[6].mxu1  ;;  %v713_v23 = vld [vmem:[#allocation2 + $0x10] sm:$0xff] (!%p970_p11)  ;;  %v762_v3 = vld [vmem:[%s1388_s3 + $0x60] sm:$0xff] (!%p970_p11) }
 0x130   : > { %697 = vst [vmem:[#allocation2 + $0x30] sm:$0xff] %v681_v1  ;;  %705 = vst [vmem:[#allocation2 + $0x70] sm:$0xff] %v689_v2  ;;  %v682_v11 = vadd.f32 %v1015_v9, %v441_v63  ;;  %v690_v12 = vadd.f32 %v1023_v10, %v449_v0  ;;  %v631_v13 = vpop.f32.mrb[7].mxu0  ;;  %v663_v14 = vpop.f32.mrb[7].mxu1  ;;  %v711_v17 = vld [vmem:[#allocation2] sm:$0xff] (!%p970_p11)  ;;  %v736_v25 = vadd.f32 (!%p970_p11), %v1256_v18, %v713_v23  ;;  %v721_v58 = vld [vmem:[#allocation2 + $0x50] sm:$0xff] (!%p970_p11) }
 0x131   : > { %695 = vst [vmem:[#allocation2 + $0x20] sm:$0xff] %v679_v7  ;;  %703 = vst [vmem:[#allocation2 + $0x60] sm:$0xff] %v687_v8  ;;  %v680_v15 = vadd.f32 %v631_v13, %v439_v5  ;;  %v688_v16 = vadd.f32 %v663_v14, %v447_v6  ;;  %v734_v20 = vadd.f32 (!%p970_p11), %v1256_v18, %v711_v17  ;;  %v714_v27 = vld [vmem:[#allocation2 + $0x18] sm:$0xff] (!%p970_p11)  ;;  %v719_v46 = vld [vmem:[#allocation2 + $0x40] sm:$0xff] (!%p970_p11) }
 0x132   : > { %698 = vst [vmem:[#allocation2 + $0x38] sm:$0xff] %v682_v11  ;;  %706 = vst [vmem:[#allocation2 + $0x78] sm:$0xff] %v690_v12  ;;  %v712_v21 = vld [vmem:[#allocation2 + $0x8] sm:$0xff] (!%p970_p11)  ;;  %v737_v30 = vadd.f32 (!%p970_p11), %v1256_v18, %v714_v27  ;;  %v768_v35 = vadd.f32 (!%p970_p11), %v752_v26, %v736_v25  ;;  %v742_v57 = vadd.f32 (!%p970_p11), %v1256_v18, %v719_v46  ;;  %v760_v59 = vld [vmem:[%s1388_s3 + $0x50] sm:$0xff] (!%p970_p11) }
 0x133   : > { %696 = vst [vmem:[#allocation2 + $0x28] sm:$0xff] %v680_v15  ;;  %704 = vst [vmem:[#allocation2 + $0x68] sm:$0xff] %v688_v16  ;;  %v735_v24 = vadd.f32 (!%p970_p11), %v1256_v18, %v712_v21  ;;  %v766_v29 = vadd.f32 (!%p970_p11), %v750_v19, %v734_v20  ;;  %v720_v52 = vld [vmem:[#allocation2 + $0x48] sm:$0xff] (!%p970_p11)  ;;  %v722_v60 = vld [vmem:[#allocation2 + $0x58] sm:$0xff] (!%p970_p11)  ;;  %v744_v0 = vadd.f32 (!%p970_p11), %v1256_v18, %v721_v58 }
 0x134   : > { %v769_v42 = vadd.f32 %v753_v28, %v737_v30  ;;  %v784_v48 = vmax.f32 %v768_v35, 0.0  ;;  %v743_v63 = vadd.f32 %v1256_v18, %v720_v52  ;;  %v761_v1 = vld [vmem:[%s1388_s3 + $0x58] sm:$0xff]  ;;  %v774_v6 = vadd.f32 %v758_v51, %v742_v57  ;;  %v763_v9 = vld [vmem:[%s1388_s3 + $0x68] sm:$0xff]  ;;  %v764_v15 = vld [vmem:[%s1388_s3 + $0x70] sm:$0xff] }
 0x135   : > { %v767_v34 = vadd.f32 %v751_v22, %v735_v24  ;;  %v782_v41 = vmax.f32 %v766_v29, 0.0  ;;  %v745_v7 = vadd.f32 %v1256_v18, %v722_v60  ;;  %v776_v12 = vadd.f32 %v760_v59, %v744_v0  ;;  %v765_v26 = vld [vmem:[%s1388_s3 + $0x78] sm:$0xff] }
 0x136   : > { %v785_v54 = vmax.f32 %v769_v42, 0.0  ;;  %800 = vst [vmem:[%s1389_s4 + $0x10] sm:$0xff] %v784_v48  ;;  %v775_v11 = vadd.f32 %v759_v53, %v743_v63  ;;  %v790_v19 = vmax.f32 %v774_v6, 0.0 }
 0x137   : > { %v717_v39 = vld [vmem:[#allocation2 + $0x30] sm:$0xff]  ;;  %v783_v47 = vmax.f32 %v767_v34, 0.0  ;;  %798 = vst [vmem:[%s1389_s4] sm:$0xff] %v782_v41  ;;  %v777_v20 = vadd.f32 %v761_v1, %v745_v7  ;;  %v792_v23 = vmax.f32 %v776_v12, 0.0 }
 0x138   : > { %v715_v31 = vld [vmem:[#allocation2 + $0x20] sm:$0xff]  ;;  %v740_v43 = vadd.f32 %v1256_v18, %v717_v39  ;;  %801 = vst [vmem:[%s1389_s4 + $0x18] sm:$0xff] %v785_v54  ;;  %v725_v10 = vld [vmem:[#allocation2 + $0x70] sm:$0xff]  ;;  %v791_v22 = vmax.f32 %v775_v11, 0.0  ;;  %806 = vst [vmem:[%s1389_s4 + $0x40] sm:$0xff] %v790_v19 }
 0x139   : > { %v738_v36 = vadd.f32 %v1256_v18, %v715_v31  ;;  %v718_v44 = vld [vmem:[#allocation2 + $0x38] sm:$0xff]  ;;  %799 = vst [vmem:[%s1389_s4 + $0x8] sm:$0xff] %v783_v47  ;;  %v723_v2 = vld [vmem:[#allocation2 + $0x60] sm:$0xff]  ;;  %v748_v21 = vadd.f32 %v1256_v18, %v725_v10  ;;  %v793_v27 = vmax.f32 %v777_v20, 0.0  ;;  %808 = vst [vmem:[%s1389_s4 + $0x50] sm:$0xff] %v792_v23 }
 0x13a   : > { %v716_v33 = vld [vmem:[#allocation2 + $0x28] sm:$0xff]  ;;  %v772_v55 = vadd.f32 %v756_v40, %v740_v43  ;;  %v741_v56 = vadd.f32 %v1256_v18, %v718_v44  ;;  %v746_v13 = vadd.f32 %v1256_v18, %v723_v2  ;;  %v726_v16 = vld [vmem:[#allocation2 + $0x78] sm:$0xff]  ;;  %807 = vst [vmem:[%s1389_s4 + $0x48] sm:$0xff] %v791_v22 }
 0x13b   : > { %v739_v37 = vadd.f32 %v1256_v18, %v716_v33  ;;  %v770_v49 = vadd.f32 %v754_v32, %v738_v36  ;;  %v724_v8 = vld [vmem:[#allocation2 + $0x68] sm:$0xff]  ;;  %v780_v28 = vadd.f32 %v764_v15, %v748_v21  ;;  %v749_v29 = vadd.f32 %v1256_v18, %v726_v16  ;;  %809 = vst [vmem:[%s1389_s4 + $0x58] sm:$0xff] %v793_v27 }
 0x13c   : > { %v788_v4 = vmax.f32 %v772_v55, 0.0  ;;  %v773_v5 = vadd.f32 %v757_v45, %v741_v56  ;;  %v747_v14 = vadd.f32 %v1256_v18, %v724_v8  ;;  %v778_v24 = vadd.f32 %v762_v3, %v746_v13 }
 0x13d   : > { %v771_v50 = vadd.f32 %v755_v38, %v739_v37  ;;  %v786_v61 = vmax.f32 %v770_v49, 0.0  ;;  %v796_v32 = vmax.f32 %v780_v28, 0.0  ;;  %v781_v33 = vadd.f32 %v765_v26, %v749_v29 }
 0x13e   : > { %804 = vst [vmem:[%s1389_s4 + $0x30] sm:$0xff] %v788_v4  ;;  %v789_v17 = vmax.f32 %v773_v5, 0.0  ;;  %v779_v25 = vadd.f32 %v763_v9, %v747_v14  ;;  %v794_v30 = vmax.f32 %v778_v24, 0.0 }
 0x13f   : > { %v787_v62 = vmax.f32 %v771_v50, 0.0  ;;  %802 = vst [vmem:[%s1389_s4 + $0x20] sm:$0xff] %v786_v61  ;;  %812 = vst [vmem:[%s1389_s4 + $0x70] sm:$0xff] %v796_v32  ;;  %v797_v18 = vmax.f32 %v781_v33, 0.0 }
 0x140   : > { %805 = vst [vmem:[%s1389_s4 + $0x38] sm:$0xff] %v789_v17  ;;  %v795_v31 = vmax.f32 %v779_v25, 0.0  ;;  %810 = vst [vmem:[%s1389_s4 + $0x60] sm:$0xff] %v794_v30 }
 0x141   : > { %803 = vst [vmem:[%s1389_s4 + $0x28] sm:$0xff] %v787_v62  ;;  %813 = vst [vmem:[%s1389_s4 + $0x78] sm:$0xff] %v797_v18 }
 0x142   : > { %811 = vst [vmem:[%s1389_s4 + $0x68] sm:$0xff] %v795_v31 }
 0x143 PF: > { %s14_s19 = sadd.s32 1, %s1135_s19   ;;  %s1390_s15 = smov %s1123_s16 }
 0x144   : > { %p11_p12 = scmp.ge.s32.totalorder %s14_s19, 7   ;;  %s1391_s16 = smov %s1198_s23 }
 0x145   : > { %s1392_s17 = smov %s1131_s18  ;;  %s1393_s18 = smov %s1395_s20 }
 0x146   :  { %13 = sbr.rel (!%p11_p12) target bundleno = 3 (0x3), region = 129 }

// kernel: _lambda_.27
= control target key start
LH: loop header
LB: loop body
LE: loop exit
PB: predicated region body
PF: predicated region fallthrough
CT: control target
= control target key end

     0   :  { %s761_s12 = smov 0   ;;  %s763_s13 = smov 0   ;;  %s860_s0 = inlined_call_operand.vmem [shape: bf16[32,640], index: 0, kind: input, shape index: {}]   ;;  %s861_s1 = inlined_call_operand.vmem [shape: bf16[640,128], index: 1, kind: input, shape index: {}]   ;;  %s862_s2 = inlined_call_operand.vmem [shape: f32[1,128], index: 2, kind: input, shape index: {}]   ;;  %s863_s3 = inlined_call_operand.vmem [shape: f32[32,128], index: 3, kind: output, shape index: {}]  }
   0x1   :  { %s765_s14 = smov 0   ;;  %s767_s15 = smov 0  }
   0x2   :  { %s769_s16 = smov 0  }
   0x3 LB: > { %s25_s17 = sadd.s32 1, %s734_s15  ;;  %p48_p1 = scmp.ne.s32.totalorder %s726_s13, %s722_s12  ;;  %s738_s16 = sphi %s769_s16, %s13_s16   ;;  %s734_s15 = sphi %s767_s15, %s867_s15   ;;  %s730_s14 = sphi %s765_s14, %s866_s14   ;;  %s726_s13 = sphi %s763_s13, %s865_s13   ;;  %s722_s12 = sphi %s761_s12, %s864_s12  }
   0x4   : > { %p26_p0 = scmp.ge.s32.totalorder %s25_s17, 5  ;;  %p49_p2 = scmp.eq.s32.totalorder %s738_s16, 0 }
   0x5   : > { %s41_s19 = sadd.s32 1, %s726_s13  ;;  %p595_p5 = scmp.ge.s32.totalorder %s738_s16, 5 }
   0x6   : > { %s869_s17 = smov (%p26_p0, %s25_s17), 0  ;;  %p50_p3 = por %p49_p2, %p48_p1 }
   0x7   : > { %s37_s18 = ssub.s32 %s734_s15, %s869_s17  ;;  %162 = sbr.rel (%p595_p5) target bundleno = 21 (0x15), region = 20 }
   0x8   : > { %p39_p4 = scmp.eq.s32.totalorder %s37_s18, 0 }
   0xa   : > { %s796_s20 = scalar_select %p39_p4, %s726_s13, %s41_s19  }
   0xe   : > { %165 = sbr.rel (!%p50_p3) target bundleno = 21 (0x15), region = 24  ;;  %s167_s21 = sand.u32 (%p50_p3), 1, %s726_s13  }
   0xf   : > { %s597_s22 = sshll.u32 (%p50_p3), %s734_s15, 2  ;;  %s596_s23 = sshll.u32 (%p50_p3), %s167_s21, 4 }
  0x10   : > { %s174_s26 = scalar_lea.vmem (%p50_p3), %s860_s0, %s597_s22  ;;  %s169_s27 = scalar_lea.vmem (%p50_p3), [#allocation3], %s596_s23 }
  0x11   : > { %v190_v0 = vld [vmem:[%s174_s26] sm:$0xf] (%p50_p3)  ;;  %v192_v1 = vld [vmem:[%s174_s26 + $0x14] sm:$0xf] (%p50_p3)  ;;  %v194_v2 = vld [vmem:[%s174_s26 + $0x28] sm:$0xf] (%p50_p3) }
  0x12   : > { %191 = vst [vmem:[%s169_s27] sm:$0xf] (%p50_p3), %v190_v0  ;;  %193 = vst [vmem:[%s169_s27 + $0x4] sm:$0xf] (%p50_p3), %v192_v1  ;;  %v196_v3 = vld [vmem:[%s174_s26 + $0x3c] sm:$0xf] (%p50_p3) }
  0x13   : > { %195 = vst [vmem:[%s169_s27 + $0x8] sm:$0xf] (%p50_p3), %v194_v2  ;;  %197 = vst [vmem:[%s169_s27 + $0xc] sm:$0xf] (%p50_p3), %v196_v3 }
  0x15 PF: > { %p598_p6 = scmp.ge.s32.totalorder %s738_s16, 1  ;;  %p239_p7 = scmp.lt.s32.totalorder %s738_s16, 6 }
  0x17   : > { %p240_p8 = pnand %p598_p6, %p239_p7 }
  0x18   : > { %s246_s28 = sand.u32 (!%p240_p8), 1, %s722_s12   ;;  %s600_s29 = sshll.u32 (!%p240_p8), %s730_s14, 4 }
  0x19   : > { %243 = sbr.rel (%p240_p8) target bundleno = 302 (0x12e), region = 69  ;;  %s808_s30 = sshll.u32 (!%p240_p8), %s246_s28, 4 }
  0x1a   : > { %p285_p9 = scmp.lt.s32.totalorder (!%p240_p8), %s600_s29, 79  ;;  %s248_s8 = scalar_lea.vmem (!%p240_p8), [#allocation3], %s808_s30 }
  0x1b   : > { %p602_p10 = scmp.ne.s32.totalorder (!%p240_p8), %s730_s14, 0 }
  0x20   : > { %s871_s29 = smov (!%p285_p9, %s600_s29), 79  ;;  %309 = sbr.rel (%p602_p10) target bundleno = 39 (0x27), region = 77 }
  0x21   : > { %s601_s4 = sshll.u32 %s871_s29, 2  ;;  %v740_v4 = vmov (!%p602_p10), 0.0  }
  0x22   : > { %s813_s7 = scalar_lea.vmem %s861_s1, %s601_s4  ;;  %310 = vst [vmem:[#allocation2] sm:$0xff] (!%p602_p10), %v740_v4  ;;  %311 = vst [vmem:[#allocation2 + $0x8] sm:$0xff] (!%p602_p10), %v740_v4 }
  0x23   : > { %312 = vst [vmem:[#allocation2 + $0x10] sm:$0xff] (!%p602_p10), %v740_v4  ;;  %313 = vst [vmem:[#allocation2 + $0x18] sm:$0xff] (!%p602_p10), %v740_v4 }
  0x27 PF: > { %v690_v5 = vld [vmem:[%s813_s7] sm:$0xff]   ;;  %v691_v6 = vld [vmem:[%s813_s7 + $0x8] sm:$0xff]   ;;  %v692_v7 = vld [vmem:[%s813_s7 + $0x10] sm:$0xff]   ;;  %p613_p11 = scmp.ne.s32.totalorder %s730_s14, 4 }
  0x28   : > { %629 = vmatprep.subr.bf16.mxu0 %v690_v5  ;;  %v693_v8 = vld [vmem:[%s813_s7 + $0x18] sm:$0xff]   ;;  %v698_v9 = vld [vmem:[%s248_s8] sm:$0xff]   ;;  %v695_v11 = vld [vmem:[%s813_s7 + $0x28] sm:$0xff]  }
  0x29   : > { %630 = vmatpush3.bf16.msra.mxu0 %v690_v5  ;;  %645 = vmatprep.mubr.bf16.mxu0 %v698_v9  ;;  %v694_v10 = vld [vmem:[%s813_s7 + $0x20] sm:$0xff]   ;;  %v696_v12 = vld [vmem:[%s813_s7 + $0x30] sm:$0xff]   ;;  %v697_v13 = vld [vmem:[%s813_s7 + $0x38] sm:$0xff]  }
  0x2a   : > { %631 = vmatprep.subr.bf16.mxu0 %v691_v6  ;;  %v699_v14 = vld [vmem:[%s248_s8 + $0x8] sm:$0xff]   ;;  %v316_v15 = vld [vmem:[#allocation2 + $0x10] sm:$0xff]  ;;  %v314_v16 = vld [vmem:[#allocation2] sm:$0xff] }
  0x2b   : > { %v317_v18 = vld [vmem:[#allocation2 + $0x18] sm:$0xff]  ;;  %v315_v21 = vld [vmem:[#allocation2 + $0x8] sm:$0xff]  ;;  %v614_v28 = vld [vmem:[%s862_s2] ss:$0 sm:$0xff] (!%p613_p11) }
  0x2d   : > { %632 = vmatpush3.bf16.msra.mxu0 %v691_v6 }
  0x2e   : > { %633 = vmatprep.subr.bf16.mxu0 %v692_v7 }
  0x31   : > { %634 = vmatpush3.bf16.msra.mxu0 %v692_v7 }
  0x32   : > { %635 = vmatprep.subr.bf16.mxu0 %v693_v8 }
  0x35   : > { %636 = vmatpush3.bf16.msra.mxu0 %v693_v8 }
  0x36   : > { %637 = vmatprep.subr.bf16.mxu0 %v694_v10 }
  0x39   : > { %638 = vmatpush3.bf16.msra.mxu0 %v694_v10 }
  0x3a   : > { %639 = vmatprep.subr.bf16.mxu0 %v695_v11 }
  0x3d   : > { %640 = vmatpush3.bf16.msra.mxu0 %v695_v11 }
  0x3e   : > { %641 = vmatprep.subr.bf16.mxu0 %v696_v12 }
  0x41   : > { %642 = vmatpush3.bf16.msra.mxu0 %v696_v12 }
  0x42   : > { %643 = vmatprep.subr.bf16.mxu0 %v697_v13 }
  0x45   : > { %644 = vmatpush3.bf16.msra.mxu0 %v697_v13 }
  0x48   : > { %646 = vmatmul.mubr.bf16.vlgmr.msra.gmra.mrb[0].mxu0 %v699_v14 }
 0x11b   : > { %v647_v17 = vpop.f32.mrb[0].mxu0  ;;  %458 = sbr.rel (%p613_p11) target bundleno = 302 (0x12e), region = 81 }
 0x11c   : > { %v449_v19 = vadd.f32 %v647_v17, %v316_v15  ;;  %v432_v20 = vpop.f32.mrb[1].mxu0 }
 0x11d   : > { %v447_v22 = vadd.f32 %v432_v20, %v314_v16  ;;  %v648_v23 = vpop.f32.mrb[2].mxu0 }
 0x11e   : > { %453 = vst [vmem:[#allocation2 + $0x10] sm:$0xff] %v449_v19  ;;  %v450_v24 = vadd.f32 %v648_v23, %v317_v18  ;;  %v435_v25 = vpop.f32.mrb[3].mxu0 }
 0x11f   : > { %451 = vst [vmem:[#allocation2] sm:$0xff] %v447_v22  ;;  %v448_v26 = vadd.f32 %v435_v25, %v315_v21 }
 0x120   : > { %454 = vst [vmem:[#allocation2 + $0x18] sm:$0xff] %v450_v24 }
 0x121   : > { %452 = vst [vmem:[#allocation2 + $0x8] sm:$0xff] %v448_v26 }
 0x125   : > { %v461_v32 = vld [vmem:[#allocation2 + $0x10] sm:$0xff] }
 0x126   : > { %v459_v27 = vld [vmem:[#allocation2] sm:$0xff]  ;;  %v472_v34 = vadd.f32 %v614_v28, %v461_v32 }
 0x127   : > { %v470_v30 = vadd.f32 %v614_v28, %v459_v27  ;;  %v462_v33 = vld [vmem:[#allocation2 + $0x18] sm:$0xff] }
 0x128   : > { %v460_v29 = vld [vmem:[#allocation2 + $0x8] sm:$0xff]  ;;  %v473_v35 = vadd.f32 %v614_v28, %v462_v33  ;;  %v476_v38 = vmax.f32 %v472_v34, 0.0 }
 0x129   : > { %v471_v31 = vadd.f32 %v614_v28, %v460_v29  ;;  %v474_v36 = vmax.f32 %v470_v30, 0.0 }
 0x12a   : > { %v477_v39 = vmax.f32 %v473_v35, 0.0  ;;  %480 = vst [vmem:[%s863_s3 + $0x10] sm:$0xff] %v476_v38 }
 0x12b   : > { %v475_v37 = vmax.f32 %v471_v31, 0.0  ;;  %478 = vst [vmem:[%s863_s3] sm:$0xff] %v474_v36 }
 0x12c   : > { %481 = vst [vmem:[%s863_s3 + $0x18] sm:$0xff] %v477_v39 }
 0x12d   : > { %479 = vst [vmem:[%s863_s3 + $0x8] sm:$0xff] %v475_v37 }
 0x12e PF: > { %s13_s16 = sadd.s32 1, %s738_s16   ;;  %s864_s12 = smov %s726_s13 }
 0x12f   : > { %p10_p12 = scmp.ge.s32.totalorder %s13_s16, 7   ;;  %s865_s13 = smov %s796_s20 }
 0x130   : > { %s866_s14 = smov %s734_s15  ;;  %s867_s15 = smov %s869_s17 }
 0x131   :  { %12 = sbr.rel (!%p10_p12) target bundleno = 3 (0x3), region = 122 }

// kernel: _lambda_.28
= control target key start
LH: loop header
LB: loop body
LE: loop exit
PB: predicated region body
PF: predicated region fallthrough
CT: control target
= control target key end

     0   :  { %s306_s1 = inlined_call_operand.vmem [shape: bf16[128,128], index: 1, kind: input, shape index: {}]   ;;  %s307_s0 = inlined_call_operand.vmem [shape: bf16[32,128], index: 0, kind: input, shape index: {}]   ;;  %s308_s2 = inlined_call_operand.vmem [shape: f32[1,128], index: 2, kind: input, shape index: {}]   ;;  %s309_s3 = inlined_call_operand.vmem [shape: f32[32,128], index: 3, kind: output, shape index: {}]  }
   0x1   :  { %v231_v0 = vld [vmem:[%s306_s1] sm:$0xff]   ;;  %v232_v1 = vld [vmem:[%s306_s1 + $0x8] sm:$0xff]   ;;  %v233_v2 = vld [vmem:[%s306_s1 + $0x10] sm:$0xff]  }
   0x2   :  { %211 = vmatprep.subr.bf16.mxu0 %v231_v0  ;;  %v234_v3 = vld [vmem:[%s306_s1 + $0x18] sm:$0xff]   ;;  %v239_v4 = vld [vmem:[%s307_s0] sm:$0xff]   ;;  %v236_v6 = vld [vmem:[%s306_s1 + $0x28] sm:$0xff]  }
   0x3   :  { %212 = vmatpush3.bf16.msra.mxu0 %v231_v0  ;;  %227 = vmatprep.mubr.bf16.mxu0 %v239_v4  ;;  %v235_v5 = vld [vmem:[%s306_s1 + $0x20] sm:$0xff]   ;;  %v237_v7 = vld [vmem:[%s306_s1 + $0x30] sm:$0xff]   ;;  %v238_v8 = vld [vmem:[%s306_s1 + $0x38] sm:$0xff]  }
   0x4   :  { %213 = vmatprep.subr.bf16.mxu0 %v232_v1  ;;  %v240_v9 = vld [vmem:[%s307_s0 + $0x8] sm:$0xff]   ;;  %v200_v10 = vld [vmem:[%s308_s2] ss:$0 sm:$0xff] }
   0x7   :  { %214 = vmatpush3.bf16.msra.mxu0 %v232_v1 }
   0x8   :  { %215 = vmatprep.subr.bf16.mxu0 %v233_v2 }
   0xb   :  { %216 = vmatpush3.bf16.msra.mxu0 %v233_v2 }
   0xc   :  { %217 = vmatprep.subr.bf16.mxu0 %v234_v3 }
   0xf   :  { %218 = vmatpush3.bf16.msra.mxu0 %v234_v3 }
  0x10   :  { %219 = vmatprep.subr.bf16.mxu0 %v235_v5 }
  0x13   :  { %220 = vmatpush3.bf16.msra.mxu0 %v235_v5 }
  0x14   :  { %221 = vmatprep.subr.bf16.mxu0 %v236_v6 }
  0x17   :  { %222 = vmatpush3.bf16.msra.mxu0 %v236_v6 }
  0x18   :  { %223 = vmatprep.subr.bf16.mxu0 %v237_v7 }
  0x1b   :  { %224 = vmatpush3.bf16.msra.mxu0 %v237_v7 }
  0x1c   :  { %225 = vmatprep.subr.bf16.mxu0 %v238_v8 }
  0x1f   :  { %226 = vmatpush3.bf16.msra.mxu0 %v238_v8 }
  0x22   :  { %228 = vmatmul.mubr.bf16.vlgmr.msra.gmra.mrb[0].mxu0 %v240_v9 }
  0xf5   :  { %v229_v11 = vpop.f32.mrb[0].mxu0 }
  0xf6   :  { %v180_v12 = vadd.f32 %v229_v11, %v200_v10  ;;  %v141_v13 = vpop.f32.mrb[1].mxu0 }
  0xf7   :  { %v178_v14 = vadd.f32 %v200_v10, %v141_v13  ;;  %v230_v15 = vpop.f32.mrb[2].mxu0 }
  0xf8   :  { %184 = vst [vmem:[%s309_s3 + $0x10] sm:$0xff] %v180_v12  ;;  %v181_v16 = vadd.f32 %v230_v15, %v200_v10  ;;  %v144_v17 = vpop.f32.mrb[3].mxu0 }
  0xf9   :  { %182 = vst [vmem:[%s309_s3] sm:$0xff] %v178_v14  ;;  %v179_v18 = vadd.f32 %v200_v10, %v144_v17 }
  0xfa   :  { %185 = vst [vmem:[%s309_s3 + $0x18] sm:$0xff] %v181_v16 }
  0xfb   :  { %183 = vst [vmem:[%s309_s3 + $0x8] sm:$0xff] %v179_v18 }

// kernel: _lambda_.30
= control target key start
LH: loop header
LB: loop body
LE: loop exit
PB: predicated region body
PF: predicated region fallthrough
CT: control target
= control target key end

     0   :  { %s761_s12 = smov 0   ;;  %s763_s13 = smov 0   ;;  %s860_s0 = inlined_call_operand.vmem [shape: bf16[32,1152], index: 0, kind: input, shape index: {}]   ;;  %s861_s1 = inlined_call_operand.vmem [shape: bf16[1152,128], index: 1, kind: input, shape index: {}]   ;;  %s862_s2 = inlined_call_operand.vmem [shape: f32[1,128], index: 2, kind: input, shape index: {}]   ;;  %s863_s3 = inlined_call_operand.vmem [shape: f32[32,128], index: 3, kind: output, shape index: {}]  }
   0x1   :  { %s765_s14 = smov 0   ;;  %s767_s15 = smov 0  }
   0x2   :  { %s769_s16 = smov 0  }
   0x3 LB: > { %s25_s17 = sadd.s32 1, %s734_s15  ;;  %p48_p1 = scmp.ne.s32.totalorder %s726_s13, %s722_s12  ;;  %s738_s16 = sphi %s769_s16, %s13_s16   ;;  %s734_s15 = sphi %s767_s15, %s867_s15   ;;  %s730_s14 = sphi %s765_s14, %s866_s14   ;;  %s726_s13 = sphi %s763_s13, %s865_s13   ;;  %s722_s12 = sphi %s761_s12, %s864_s12  }
   0x4   : > { %p26_p0 = scmp.ge.s32.totalorder %s25_s17, 9  ;;  %p49_p2 = scmp.eq.s32.totalorder %s738_s16, 0 }
   0x5   : > { %s41_s19 = sadd.s32 1, %s726_s13  ;;  %p595_p5 = scmp.ge.s32.totalorder %s738_s16, 9 }
   0x6   : > { %s869_s17 = smov (%p26_p0, %s25_s17), 0  ;;  %p50_p3 = por %p49_p2, %p48_p1 }
   0x7   : > { %s37_s18 = ssub.s32 %s734_s15, %s869_s17  ;;  %162 = sbr.rel (%p595_p5) target bundleno = 21 (0x15), region = 20 }
   0x8   : > { %p39_p4 = scmp.eq.s32.totalorder %s37_s18, 0 }
   0xa   : > { %s796_s20 = scalar_select %p39_p4, %s726_s13, %s41_s19  }
   0xe   : > { %165 = sbr.rel (!%p50_p3) target bundleno = 21 (0x15), region = 24  ;;  %s167_s21 = sand.u32 (%p50_p3), 1, %s726_s13  }
   0xf   : > { %s597_s22 = sshll.u32 (%p50_p3), %s734_s15, 2  ;;  %s596_s23 = sshll.u32 (%p50_p3), %s167_s21, 4 }
  0x10   : > { %s174_s26 = scalar_lea.vmem (%p50_p3), %s860_s0, %s597_s22  ;;  %s169_s27 = scalar_lea.vmem (%p50_p3), [#allocation3], %s596_s23 }
  0x11   : > { %v190_v0 = vld [vmem:[%s174_s26] sm:$0xf] (%p50_p3)  ;;  %v192_v1 = vld [vmem:[%s174_s26 + $0x24] sm:$0xf] (%p50_p3)  ;;  %v194_v2 = vld [vmem:[%s174_s26 + $0x48] sm:$0xf] (%p50_p3) }
  0x12   : > { %191 = vst [vmem:[%s169_s27] sm:$0xf] (%p50_p3), %v190_v0  ;;  %193 = vst [vmem:[%s169_s27 + $0x4] sm:$0xf] (%p50_p3), %v192_v1  ;;  %v196_v3 = vld [vmem:[%s174_s26 + $0x6c] sm:$0xf] (%p50_p3) }
  0x13   : > { %195 = vst [vmem:[%s169_s27 + $0x8] sm:$0xf] (%p50_p3), %v194_v2  ;;  %197 = vst [vmem:[%s169_s27 + $0xc] sm:$0xf] (%p50_p3), %v196_v3 }
  0x15 PF: > { %p598_p6 = scmp.ge.s32.totalorder %s738_s16, 1  ;;  %p239_p7 = scmp.lt.s32.totalorder %s738_s16, 10 }
  0x17   : > { %p240_p8 = pnand %p598_p6, %p239_p7 }
  0x18   : > { %s246_s28 = sand.u32 (!%p240_p8), 1, %s722_s12   ;;  %s600_s29 = sshll.u32 (!%p240_p8), %s730_s14, 4 }
  0x19   : > { %243 = sbr.rel (%p240_p8) target bundleno = 302 (0x12e), region = 69  ;;  %s808_s30 = sshll.u32 (!%p240_p8), %s246_s28, 4 }
  0x1a   : > { %p285_p9 = scmp.lt.s32.totalorder (!%p240_p8), %s600_s29, 143  ;;  %s248_s8 = scalar_lea.vmem (!%p240_p8), [#allocation3], %s808_s30 }
  0x1b   : > { %p602_p10 = scmp.ne.s32.totalorder (!%p240_p8), %s730_s14, 0 }
  0x20   : > { %s871_s29 = smov (!%p285_p9, %s600_s29), 143  ;;  %309 = sbr.rel (%p602_p10) target bundleno = 39 (0x27), region = 77 }
  0x21   : > { %s601_s4 = sshll.u32 %s871_s29, 2  ;;  %v740_v4 = vmov (!%p602_p10), 0.0  }
  0x22   : > { %s813_s7 = scalar_lea.vmem %s861_s1, %s601_s4  ;;  %310 = vst [vmem:[#allocation2] sm:$0xff] (!%p602_p10), %v740_v4  ;;  %311 = vst [vmem:[#allocation2 + $0x8] sm:$0xff] (!%p602_p10), %v740_v4 }
  0x23   : > { %312 = vst [vmem:[#allocation2 + $0x10] sm:$0xff] (!%p602_p10), %v740_v4  ;;  %313 = vst [vmem:[#allocation2 + $0x18] sm:$0xff] (!%p602_p10), %v740_v4 }
  0x27 PF: > { %v690_v5 = vld [vmem:[%s813_s7] sm:$0xff]   ;;  %v691_v6 = vld [vmem:[%s813_s7 + $0x8] sm:$0xff]   ;;  %v692_v7 = vld [vmem:[%s813_s7 + $0x10] sm:$0xff]   ;;  %p613_p11 = scmp.ne.s32.totalorder %s730_s14, 8 }
  0x28   : > { %629 = vmatprep.subr.bf16.mxu0 %v690_v5  ;;  %v693_v8 = vld [vmem:[%s813_s7 + $0x18] sm:$0xff]   ;;  %v698_v9 = vld [vmem:[%s248_s8] sm:$0xff]   ;;  %v695_v11 = vld [vmem:[%s813_s7 + $0x28] sm:$0xff]  }
  0x29   : > { %630 = vmatpush3.bf16.msra.mxu0 %v690_v5  ;;  %645 = vmatprep.mubr.bf16.mxu0 %v698_v9  ;;  %v694_v10 = vld [vmem:[%s813_s7 + $0x20] sm:$0xff]   ;;  %v696_v12 = vld [vmem:[%s813_s7 + $0x30] sm:$0xff]   ;;  %v697_v13 = vld [vmem:[%s813_s7 + $0x38] sm:$0xff]  }
  0x2a   : > { %631 = vmatprep.subr.bf16.mxu0 %v691_v6  ;;  %v699_v14 = vld [vmem:[%s248_s8 + $0x8] sm:$0xff]   ;;  %v316_v15 = vld [vmem:[#allocation2 + $0x10] sm:$0xff]  ;;  %v314_v16 = vld [vmem:[#allocation2] sm:$0xff] }
  0x2b   : > { %v317_v18 = vld [vmem:[#allocation2 + $0x18] sm:$0xff]  ;;  %v315_v21 = vld [vmem:[#allocation2 + $0x8] sm:$0xff]  ;;  %v614_v28 = vld [vmem:[%s862_s2] ss:$0 sm:$0xff] (!%p613_p11) }
  0x2d   : > { %632 = vmatpush3.bf16.msra.mxu0 %v691_v6 }
  0x2e   : > { %633 = vmatprep.subr.bf16.mxu0 %v692_v7 }
  0x31   : > { %634 = vmatpush3.bf16.msra.mxu0 %v692_v7 }
  0x32   : > { %635 = vmatprep.subr.bf16.mxu0 %v693_v8 }
  0x35   : > { %636 = vmatpush3.bf16.msra.mxu0 %v693_v8 }
  0x36   : > { %637 = vmatprep.subr.bf16.mxu0 %v694_v10 }
  0x39   : > { %638 = vmatpush3.bf16.msra.mxu0 %v694_v10 }
  0x3a   : > { %639 = vmatprep.subr.bf16.mxu0 %v695_v11 }
  0x3d   : > { %640 = vmatpush3.bf16.msra.mxu0 %v695_v11 }
  0x3e   : > { %641 = vmatprep.subr.bf16.mxu0 %v696_v12 }
  0x41   : > { %642 = vmatpush3.bf16.msra.mxu0 %v696_v12 }
  0x42   : > { %643 = vmatprep.subr.bf16.mxu0 %v697_v13 }
  0x45   : > { %644 = vmatpush3.bf16.msra.mxu0 %v697_v13 }
  0x48   : > { %646 = vmatmul.mubr.bf16.vlgmr.msra.gmra.mrb[0].mxu0 %v699_v14 }
 0x11b   : > { %v647_v17 = vpop.f32.mrb[0].mxu0  ;;  %458 = sbr.rel (%p613_p11) target bundleno = 302 (0x12e), region = 81 }
 0x11c   : > { %v449_v19 = vadd.f32 %v647_v17, %v316_v15  ;;  %v432_v20 = vpop.f32.mrb[1].mxu0 }
 0x11d   : > { %v447_v22 = vadd.f32 %v432_v20, %v314_v16  ;;  %v648_v23 = vpop.f32.mrb[2].mxu0 }
 0x11e   : > { %453 = vst [vmem:[#allocation2 + $0x10] sm:$0xff] %v449_v19  ;;  %v450_v24 = vadd.f32 %v648_v23, %v317_v18  ;;  %v435_v25 = vpop.f32.mrb[3].mxu0 }
 0x11f   : > { %451 = vst [vmem:[#allocation2] sm:$0xff] %v447_v22  ;;  %v448_v26 = vadd.f32 %v435_v25, %v315_v21 }
 0x120   : > { %454 = vst [vmem:[#allocation2 + $0x18] sm:$0xff] %v450_v24 }
 0x121   : > { %452 = vst [vmem:[#allocation2 + $0x8] sm:$0xff] %v448_v26 }
 0x125   : > { %v461_v32 = vld [vmem:[#allocation2 + $0x10] sm:$0xff] }
 0x126   : > { %v459_v27 = vld [vmem:[#allocation2] sm:$0xff]  ;;  %v472_v34 = vadd.f32 %v614_v28, %v461_v32 }
 0x127   : > { %v470_v30 = vadd.f32 %v614_v28, %v459_v27  ;;  %v462_v33 = vld [vmem:[#allocation2 + $0x18] sm:$0xff] }
 0x128   : > { %v460_v29 = vld [vmem:[#allocation2 + $0x8] sm:$0xff]  ;;  %v473_v35 = vadd.f32 %v614_v28, %v462_v33  ;;  %v476_v38 = vmax.f32 %v472_v34, 0.0 }
 0x129   : > { %v471_v31 = vadd.f32 %v614_v28, %v460_v29  ;;  %v474_v36 = vmax.f32 %v470_v30, 0.0 }
 0x12a   : > { %v477_v39 = vmax.f32 %v473_v35, 0.0  ;;  %480 = vst [vmem:[%s863_s3 + $0x10] sm:$0xff] %v476_v38 }
 0x12b   : > { %v475_v37 = vmax.f32 %v471_v31, 0.0  ;;  %478 = vst [vmem:[%s863_s3] sm:$0xff] %v474_v36 }
 0x12c   : > { %481 = vst [vmem:[%s863_s3 + $0x18] sm:$0xff] %v477_v39 }
 0x12d   : > { %479 = vst [vmem:[%s863_s3 + $0x8] sm:$0xff] %v475_v37 }
 0x12e PF: > { %s13_s16 = sadd.s32 1, %s738_s16   ;;  %s864_s12 = smov %s726_s13 }
 0x12f   : > { %p10_p12 = scmp.ge.s32.totalorder %s13_s16, 11   ;;  %s865_s13 = smov %s796_s20 }
 0x130   : > { %s866_s14 = smov %s734_s15  ;;  %s867_s15 = smov %s869_s17 }
 0x131   :  { %12 = sbr.rel (!%p10_p12) target bundleno = 3 (0x3), region = 122 }

// kernel: _lambda_.29
= control target key start
LH: loop header
LB: loop body
LE: loop exit
PB: predicated region body
PF: predicated region fallthrough
CT: control target
= control target key end

     0   :  { %s853_s15 = smov 0   ;;  %s855_s16 = smov 0   ;;  %s964_s0 = inlined_call_operand.vmem [shape: bf16[32,1152], index: 0, kind: input, shape index: {}]   ;;  %s965_s1 = inlined_call_operand.vmem [shape: bf16[1152,128], index: 1, kind: input, shape index: {}]   ;;  %s966_s2 = inlined_call_operand.vmem [shape: f32[1,128], index: 2, kind: input, shape index: {}]   ;;  %s967_s3 = inlined_call_operand.vmem [shape: f32[32,128], index: 3, kind: input, shape index: {}]   ;;  %s968_s4 = inlined_call_operand.vmem [shape: f32[32,128], index: 4, kind: output, shape index: {}]  }
   0x1   :  { %s857_s17 = smov 0   ;;  %s859_s18 = smov 0  }
   0x2   :  { %s861_s19 = smov 0  }
   0x3 LB: > { %s26_s20 = sadd.s32 1, %s821_s18  ;;  %p49_p1 = scmp.ne.s32.totalorder %s813_s16, %s809_s15  ;;  %s825_s19 = sphi %s861_s19, %s14_s19   ;;  %s821_s18 = sphi %s859_s18, %s972_s18   ;;  %s817_s17 = sphi %s857_s17, %s971_s17   ;;  %s813_s16 = sphi %s855_s16, %s970_s16   ;;  %s809_s15 = sphi %s853_s15, %s969_s15  }
   0x4   : > { %p27_p0 = scmp.ge.s32.totalorder %s26_s20, 9  ;;  %p50_p2 = scmp.eq.s32.totalorder %s825_s19, 0 }
   0x5   : > { %s42_s22 = sadd.s32 1, %s813_s16  ;;  %p682_p5 = scmp.ge.s32.totalorder %s825_s19, 9 }
   0x6   : > { %s974_s20 = smov (%p27_p0, %s26_s20), 0  ;;  %p51_p3 = por %p50_p2, %p49_p1 }
   0x7   : > { %s38_s21 = ssub.s32 %s821_s18, %s974_s20  ;;  %203 = sbr.rel (%p682_p5) target bundleno = 21 (0x15), region = 24 }
   0x8   : > { %p40_p4 = scmp.eq.s32.totalorder %s38_s21, 0 }
   0xa   : > { %s888_s23 = scalar_select %p40_p4, %s813_s16, %s42_s22  }
   0xe   : > { %206 = sbr.rel (!%p51_p3) target bundleno = 21 (0x15), region = 28  ;;  %s208_s24 = sand.u32 (%p51_p3), 1, %s813_s16  }
   0xf   : > { %s684_s25 = sshll.u32 (%p51_p3), %s821_s18, 2  ;;  %s683_s26 = sshll.u32 (%p51_p3), %s208_s24, 4 }
  0x10   : > { %s215_s29 = scalar_lea.vmem (%p51_p3), %s964_s0, %s684_s25  ;;  %s210_s30 = scalar_lea.vmem (%p51_p3), [#allocation3], %s683_s26 }
  0x11   : > { %v231_v0 = vld [vmem:[%s215_s29] sm:$0xf] (%p51_p3)  ;;  %v233_v1 = vld [vmem:[%s215_s29 + $0x24] sm:$0xf] (%p51_p3)  ;;  %v235_v2 = vld [vmem:[%s215_s29 + $0x48] sm:$0xf] (%p51_p3) }
  0x12   : > { %232 = vst [vmem:[%s210_s30] sm:$0xf] (%p51_p3), %v231_v0  ;;  %234 = vst [vmem:[%s210_s30 + $0x4] sm:$0xf] (%p51_p3), %v233_v1  ;;  %v237_v3 = vld [vmem:[%s215_s29 + $0x6c] sm:$0xf] (%p51_p3) }
  0x13   : > { %236 = vst [vmem:[%s210_s30 + $0x8] sm:$0xf] (%p51_p3), %v235_v2  ;;  %238 = vst [vmem:[%s210_s30 + $0xc] sm:$0xf] (%p51_p3), %v237_v3 }
  0x15 PF: > { %p685_p6 = scmp.ge.s32.totalorder %s825_s19, 1  ;;  %p280_p7 = scmp.lt.s32.totalorder %s825_s19, 10 }
  0x17   : > { %p281_p8 = pnand %p685_p6, %p280_p7 }
  0x18   : > { %s287_s5 = sand.u32 (!%p281_p8), 1, %s809_s15   ;;  %s687_s6 = sshll.u32 (!%p281_p8), %s817_s17, 4 }
  0x19   : > { %284 = sbr.rel (%p281_p8) target bundleno = 304 (0x130), region = 73  ;;  %s900_s7 = sshll.u32 (!%p281_p8), %s287_s5, 4 }
  0x1a   : > { %p336_p9 = scmp.lt.s32.totalorder (!%p281_p8), %s687_s6, 143  ;;  %s289_s12 = scalar_lea.vmem (!%p281_p8), [#allocation3], %s900_s7 }
  0x1b   : > { %p689_p10 = scmp.ne.s32.totalorder (!%p281_p8), %s817_s17, 0 }
  0x20   : > { %s976_s6 = smov (!%p336_p9, %s687_s6), 143  ;;  %369 = sbr.rel (%p689_p10) target bundleno = 39 (0x27), region = 81 }
  0x21   : > { %s688_s8 = sshll.u32 %s976_s6, 2  ;;  %v827_v4 = vmov (!%p689_p10), 0.0  }
  0x22   : > { %s905_s11 = scalar_lea.vmem %s965_s1, %s688_s8  ;;  %370 = vst [vmem:[#allocation2] sm:$0xff] (!%p689_p10), %v827_v4  ;;  %371 = vst [vmem:[#allocation2 + $0x8] sm:$0xff] (!%p689_p10), %v827_v4 }
  0x23   : > { %372 = vst [vmem:[#allocation2 + $0x10] sm:$0xff] (!%p689_p10), %v827_v4  ;;  %373 = vst [vmem:[#allocation2 + $0x18] sm:$0xff] (!%p689_p10), %v827_v4 }
  0x27 PF: > { %v777_v5 = vld [vmem:[%s905_s11] sm:$0xff]   ;;  %v778_v6 = vld [vmem:[%s905_s11 + $0x8] sm:$0xff]   ;;  %v779_v7 = vld [vmem:[%s905_s11 + $0x10] sm:$0xff]   ;;  %p700_p11 = scmp.ne.s32.totalorder %s817_s17, 8 }
  0x28   : > { %716 = vmatprep.subr.bf16.mxu0 %v777_v5  ;;  %v780_v8 = vld [vmem:[%s905_s11 + $0x18] sm:$0xff]   ;;  %v785_v9 = vld [vmem:[%s289_s12] sm:$0xff]   ;;  %v782_v11 = vld [vmem:[%s905_s11 + $0x28] sm:$0xff]  }
  0x29   : > { %717 = vmatpush3.bf16.msra.mxu0 %v777_v5  ;;  %732 = vmatprep.mubr.bf16.mxu0 %v785_v9  ;;  %v781_v10 = vld [vmem:[%s905_s11 + $0x20] sm:$0xff]   ;;  %v783_v12 = vld [vmem:[%s905_s11 + $0x30] sm:$0xff]   ;;  %v784_v13 = vld [vmem:[%s905_s11 + $0x38] sm:$0xff]  }
  0x2a   : > { %718 = vmatprep.subr.bf16.mxu0 %v778_v6  ;;  %v786_v14 = vld [vmem:[%s289_s12 + $0x8] sm:$0xff]   ;;  %v376_v15 = vld [vmem:[#allocation2 + $0x10] sm:$0xff]  ;;  %v374_v16 = vld [vmem:[#allocation2] sm:$0xff] }
  0x2b   : > { %v377_v18 = vld [vmem:[#allocation2 + $0x18] sm:$0xff]  ;;  %v375_v21 = vld [vmem:[#allocation2 + $0x8] sm:$0xff]  ;;  %v701_v28 = vld [vmem:[%s966_s2] ss:$0 sm:$0xff] (!%p700_p11) }
  0x2c   : > { %v534_v29 = vld [vmem:[%s967_s3] sm:$0xff] (!%p700_p11)  ;;  %v535_v32 = vld [vmem:[%s967_s3 + $0x8] sm:$0xff] (!%p700_p11)  ;;  %v536_v36 = vld [vmem:[%s967_s3 + $0x10] sm:$0xff] (!%p700_p11) }
  0x2d   : > { %719 = vmatpush3.bf16.msra.mxu0 %v778_v6  ;;  %v537_v38 = vld [vmem:[%s967_s3 + $0x18] sm:$0xff] (!%p700_p11) }
  0x2e   : > { %720 = vmatprep.subr.bf16.mxu0 %v779_v7 }
  0x31   : > { %721 = vmatpush3.bf16.msra.mxu0 %v779_v7 }
  0x32   : > { %722 = vmatprep.subr.bf16.mxu0 %v780_v8 }
  0x35   : > { %723 = vmatpush3.bf16.msra.mxu0 %v780_v8 }
  0x36   : > { %724 = vmatprep.subr.bf16.mxu0 %v781_v10 }
  0x39   : > { %725 = vmatpush3.bf16.msra.mxu0 %v781_v10 }
  0x3a   : > { %726 = vmatprep.subr.bf16.mxu0 %v782_v11 }
  0x3d   : > { %727 = vmatpush3.bf16.msra.mxu0 %v782_v11 }
  0x3e   : > { %728 = vmatprep.subr.bf16.mxu0 %v783_v12 }
  0x41   : > { %729 = vmatpush3.bf16.msra.mxu0 %v783_v12 }
  0x42   : > { %730 = vmatprep.subr.bf16.mxu0 %v784_v13 }
  0x45   : > { %731 = vmatpush3.bf16.msra.mxu0 %v784_v13 }
  0x48   : > { %733 = vmatmul.mubr.bf16.vlgmr.msra.gmra.mrb[0].mxu0 %v786_v14 }
 0x11b   : > { %v734_v17 = vpop.f32.mrb[0].mxu0  ;;  %518 = sbr.rel (%p700_p11) target bundleno = 304 (0x130), region = 85 }
 0x11c   : > { %v509_v19 = vadd.f32 %v734_v17, %v376_v15  ;;  %v492_v20 = vpop.f32.mrb[1].mxu0 }
 0x11d   : > { %v507_v22 = vadd.f32 %v492_v20, %v374_v16  ;;  %v735_v23 = vpop.f32.mrb[2].mxu0 }
 0x11e   : > { %513 = vst [vmem:[#allocation2 + $0x10] sm:$0xff] %v509_v19  ;;  %v510_v24 = vadd.f32 %v735_v23, %v377_v18  ;;  %v495_v25 = vpop.f32.mrb[3].mxu0 }
 0x11f   : > { %511 = vst [vmem:[#allocation2] sm:$0xff] %v507_v22  ;;  %v508_v26 = vadd.f32 %v495_v25, %v375_v21 }
 0x120   : > { %514 = vst [vmem:[#allocation2 + $0x18] sm:$0xff] %v510_v24 }
 0x121   : > { %512 = vst [vmem:[#allocation2 + $0x8] sm:$0xff] %v508_v26 }
 0x125   : > { %v521_v33 = vld [vmem:[#allocation2 + $0x10] sm:$0xff] }
 0x126   : > { %v519_v27 = vld [vmem:[#allocation2] sm:$0xff]  ;;  %v532_v35 = vadd.f32 %v701_v28, %v521_v33 }
 0x127   : > { %v530_v30 = vadd.f32 %v701_v28, %v519_v27  ;;  %v522_v37 = vld [vmem:[#allocation2 + $0x18] sm:$0xff] }
 0x128   : > { %v520_v31 = vld [vmem:[#allocation2 + $0x8] sm:$0xff]  ;;  %v533_v40 = vadd.f32 %v701_v28, %v522_v37  ;;  %v540_v42 = vadd.f32 %v536_v36, %v532_v35 }
 0x129   : > { %v531_v34 = vadd.f32 %v701_v28, %v520_v31  ;;  %v538_v39 = vadd.f32 %v534_v29, %v530_v30 }
 0x12a   : > { %v541_v44 = vadd.f32 %v537_v38, %v533_v40  ;;  %v544_v46 = vmax.f32 %v540_v42, 0.0 }
 0x12b   : > { %v539_v41 = vadd.f32 %v535_v32, %v531_v34  ;;  %v542_v43 = vmax.f32 %v538_v39, 0.0 }
 0x12c   : > { %v545_v47 = vmax.f32 %v541_v44, 0.0  ;;  %548 = vst [vmem:[%s968_s4 + $0x10] sm:$0xff] %v544_v46 }
 0x12d   : > { %v543_v45 = vmax.f32 %v539_v41, 0.0  ;;  %546 = vst [vmem:[%s968_s4] sm:$0xff] %v542_v43 }
 0x12e   : > { %549 = vst [vmem:[%s968_s4 + $0x18] sm:$0xff] %v545_v47 }
 0x12f   : > { %547 = vst [vmem:[%s968_s4 + $0x8] sm:$0xff] %v543_v45 }
 0x130 PF: > { %s14_s19 = sadd.s32 1, %s825_s19   ;;  %s969_s15 = smov %s813_s16 }
 0x131   : > { %p11_p12 = scmp.ge.s32.totalorder %s14_s19, 11   ;;  %s970_s16 = smov %s888_s23 }
 0x132   : > { %s971_s17 = smov %s821_s18  ;;  %s972_s18 = smov %s974_s20 }
 0x133   :  { %13 = sbr.rel (!%p11_p12) target bundleno = 3 (0x3), region = 129 }

// kernel: _lambda_.32
= control target key start
LH: loop header
LB: loop body
LE: loop exit
PB: predicated region body
PF: predicated region fallthrough
CT: control target
= control target key end

     0   :  { %s692_s12 = smov 0   ;;  %s694_s13 = smov 0   ;;  %s762_s0 = inlined_call_operand.vmem [shape: bf16[8,1152], index: 0, kind: input, shape index: {}]   ;;  %s763_s1 = inlined_call_operand.vmem [shape: bf16[1152,256], index: 1, kind: input, shape index: {}]   ;;  %s764_s2 = inlined_call_operand.vmem [shape: f32[1,256], index: 2, kind: input, shape index: {}]   ;;  %s765_s3 = inlined_call_operand.vmem [shape: f32[8,256], index: 3, kind: output, shape index: {}]  }
   0x1   :  { %s696_s14 = smov 0  }
   0x2 LB: > { %s25_s15 = sadd.s32 1, %s664_s13  ;;  %p568_p0 = scmp.ge.s32.totalorder %s668_s14, 1  ;;  %s668_s14 = sphi %s696_s14, %s13_s14   ;;  %s664_s13 = sphi %s694_s13, %s767_s13   ;;  %s660_s12 = sphi %s692_s12, %s766_s12  }
   0x3   : > { %p26_p1 = scmp.ge.s32.totalorder %s25_s15, 9  ;;  %p192_p2 = scmp.lt.s32.totalorder %s668_s14, 10 }
   0x5   : > { %s769_s15 = smov (%p26_p1, %s25_s15), 0  ;;  %p193_p3 = pnand %p568_p0, %p192_p2 }
   0x6   : > { %p239_p4 = scmp.lt.s32.totalorder (!%p193_p3), %s660_s12, 8  ;;  %s570_s16 = sshll.u32 (!%p193_p3), %s660_s12, 4 }
   0x7   : > { %196 = sbr.rel (%p193_p3) target bundleno = 283 (0x11b), region = 32  ;;  %p247_p5 = scmp.lt.s32.totalorder (!%p193_p3), %s570_s16, 143 }
   0x8   : > { %p573_p6 = scmp.ne.s32.totalorder (!%p193_p3), %s660_s12, 0 }
   0xe   : > { %s240_s17 = scalar_select %p239_p4, %s660_s12, 8 }
   0xf   : > { %s771_s16 = smov (!%p247_p5, %s570_s16), 143  ;;  %276 = sbr.rel (%p573_p6) target bundleno = 22 (0x16), region = 36 }
  0x10   : > { %s569_s18 = sshll.u32 %s240_s17, 2  ;;  %s595_s22 = sshll.u32 %s771_s16, 3  ;;  %v670_v0 = vmov (!%p573_p6), 0.0  }
  0x11   : > { %s718_s21 = scalar_lea.vmem %s762_s0, %s569_s18  ;;  %s723_s25 = scalar_lea.vmem %s763_s1, %s595_s22  ;;  %277 = vst [vmem:[#allocation2] sm:$0xff] (!%p573_p6), %v670_v0  ;;  %278 = vst [vmem:[#allocation2 + $0x8] sm:$0xff] (!%p573_p6), %v670_v0 }
  0x16 PF: > { %v622_v1 = vld [vmem:[%s723_s25 + $0x4] ss:$8 sps:$4 sm:$0xff]   ;;  %v624_v2 = vld [vmem:[%s723_s25] ss:$8 sps:$4 sm:$0xff]   ;;  %v671_v3 = vmov 0   ;;  %p590_p7 = scmp.ne.s32.totalorder %s660_s12, 8 }
  0x17   : > { %410 = vmatprep.mubr.bf16.mxu0 %v671_v3  ;;  %378 = vmatprep.subr.bf16.mxu0 %v622_v1  ;;  %v625_v4 = vld [vmem:[%s723_s25 + $0x14] ss:$8 sps:$4 sm:$0xff]   ;;  %v627_v5 = vld [vmem:[%s723_s25 + $0x10] ss:$8 sps:$4 sm:$0xff]   ;;  %v628_v6 = vld [vmem:[%s723_s25 + $0x24] ss:$8 sps:$4 sm:$0xff]   ;;  %v431_v27 = vlaneseq (!%p590_p7) }
  0x18   : > { %379 = vmatpush1.bf16.msra.mxu0 %v624_v2  ;;  %v630_v7 = vld [vmem:[%s723_s25 + $0x20] ss:$8 sps:$4 sm:$0xff]   ;;  %v631_v8 = vld [vmem:[%s723_s25 + $0x34] ss:$8 sps:$4 sm:$0xff]   ;;  %v633_v9 = vld [vmem:[%s723_s25 + $0x30] ss:$8 sps:$4 sm:$0xff]  }
  0x19   : > { %380 = vmatprep.subr.bf16.mxu0 %v625_v4  ;;  %v634_v10 = vld [vmem:[%s723_s25 + $0x44] ss:$8 sps:$4 sm:$0xff]   ;;  %v636_v11 = vld [vmem:[%s723_s25 + $0x40] ss:$8 sps:$4 sm:$0xff]   ;;  %v637_v12 = vld [vmem:[%s723_s25 + $0x54] ss:$8 sps:$4 sm:$0xff]  }
  0x1a   : > { %v639_v13 = vld [vmem:[%s723_s25 + $0x50] ss:$8 sps:$4 sm:$0xff]   ;;  %v640_v14 = vld [vmem:[%s723_s25 + $0x64] ss:$8 sps:$4 sm:$0xff]   ;;  %v642_v15 = vld [vmem:[%s723_s25 + $0x60] ss:$8 sps:$4 sm:$0xff]  }
  0x1b   : > { %v643_v16 = vld [vmem:[%s723_s25 + $0x74] ss:$8 sps:$4 sm:$0xff]   ;;  %v645_v17 = vld [vmem:[%s723_s25 + $0x70] ss:$8 sps:$4 sm:$0xff]   ;;  %v281_v18 = vld [vmem:[%s718_s21] sm:$0xf] }
  0x1c   : > { %381 = vmatpush1.bf16.msra.mxu0 %v627_v5  ;;  %v279_v19 = vld [vmem:[#allocation2] sm:$0xff]  ;;  %v280_v20 = vld [vmem:[#allocation2 + $0x8] sm:$0xff]  ;;  %v432_v28 = vshrl.u32 (!%p590_p7), %v431_v27, 7 }
  0x1d   : > { %382 = vmatprep.subr.bf16.mxu0 %v628_v6  ;;  %v429_v29 = vld [vmem:[%s764_s2] sm:$0x3] (!%p590_p7) }
  0x1e   : > { %v433_v30 = vsub.s32 (!%p590_p7), 0, %v432_v28  ;;  %v437_v31 = vsub.s32 (!%p590_p7), 1, %v432_v28 }
  0x20   : > { %383 = vmatpush1.bf16.msra.mxu0 %v630_v7  ;;  %v434_v34 = vrot.slane (!%p590_p7), %v429_v29, %v433_v30  ;;  %v438_v35 = vrot.slane (!%p590_p7), %v429_v29, %v437_v31 }
  0x21   : > { %384 = vmatprep.subr.bf16.mxu0 %v631_v8 }
  0x24   : > { %385 = vmatpush1.bf16.msra.mxu0 %v633_v9 }
  0x25   : > { %386 = vmatprep.subr.bf16.mxu0 %v634_v10 }
  0x28   : > { %387 = vmatpush1.bf16.msra.mxu0 %v636_v11 }
  0x29   : > { %388 = vmatprep.subr.bf16.mxu0 %v637_v12 }
  0x2c   : > { %389 = vmatpush1.bf16.msra.mxu0 %v639_v13 }
  0x2d   : > { %390 = vmatprep.subr.bf16.mxu0 %v640_v14 }
  0x30   : > { %391 = vmatpush1.bf16.msra.mxu0 %v642_v15 }
  0x31   : > { %392 = vmatprep.subr.bf16.mxu0 %v643_v16 }
  0x34   : > { %393 = vmatpush1.bf16.msra.mxu0 %v645_v17 }
  0x37   : > { %411 = vmatmul.mubr.bf16.vlgmr.msra.gmra.mrb[0].mxu0 %v281_v18 }
 0x108   : > { %426 = sbr.rel (%p590_p7) target bundleno = 283 (0x11b), region = 40 }
 0x10a   : > { %v412_v21 = vpop.f32.mrb[0].mxu0 }
 0x10b   : > { %v419_v22 = vadd.f32 %v412_v21, %v279_v19  ;;  %v414_v23 = vpop.f32.mrb[1].mxu0 }
 0x10c   : > { %v420_v24 = vadd.f32 %v414_v23, %v280_v20  ;;  %v416_v25 = vpop.f32.mrb[2].mxu0 }
 0x10d   : > { %421 = vst [vmem:[#allocation2] sm:$0xff] %v419_v22  ;;  %v417_v26 = vpop.f32.mrb[3].mxu0 }
 0x10e   : > { %422 = vst [vmem:[#allocation2 + $0x8] sm:$0xff] %v420_v24 }
 0x114   : > { %v427_v32 = vld [vmem:[#allocation2] sm:$0xff] }
 0x115   : > { %v428_v33 = vld [vmem:[#allocation2 + $0x8] sm:$0xff]  ;;  %v441_v36 = vadd.f32 %v434_v34, %v427_v32 }
 0x116   : > { %v442_v37 = vadd.f32 %v438_v35, %v428_v33 }
 0x117   : > { %v443_v38 = vmax.f32 %v441_v36, 0.0 }
 0x118   : > { %v444_v39 = vmax.f32 %v442_v37, 0.0 }
 0x119   : > { %445 = vst [vmem:[%s765_s3] sm:$0xff] %v443_v38 }
 0x11a   : > { %446 = vst [vmem:[%s765_s3 + $0x8] sm:$0xff] %v444_v39 }
 0x11b PF: > { %s13_s14 = sadd.s32 1, %s668_s14   ;;  %s766_s12 = smov %s664_s13 }
 0x11c   : > { %p10_p8 = scmp.ge.s32.totalorder %s13_s14, 11   ;;  %s767_s13 = smov %s769_s15 }
 0x11e   :  { %12 = sbr.rel (!%p10_p8) target bundleno = 2 (0x2), region = 76 }

// kernel: _lambda_.33
= control target key start
LH: loop header
LB: loop body
LE: loop exit
PB: predicated region body
PF: predicated region fallthrough
CT: control target
= control target key end

     0   :  { %v231_v1 = vmov 0   ;;  %v172_v18 = vlaneseq  ;;  %s312_s1 = inlined_call_operand.vmem [shape: bf16[128,256], index: 1, kind: input, shape index: {}]   ;;  %s313_s0 = inlined_call_operand.vmem [shape: bf16[8,128], index: 0, kind: input, shape index: {}]   ;;  %s314_s2 = inlined_call_operand.vmem [shape: f32[1,256], index: 2, kind: input, shape index: {}]   ;;  %s315_s3 = inlined_call_operand.vmem [shape: f32[8,256], index: 3, kind: output, shape index: {}]  }
   0x1   :  { %v207_v0 = vld [vmem:[%s312_s1 + $0x4] ss:$8 sps:$4 sm:$0xff]   ;;  %152 = vmatprep.mubr.bf16.mxu0 %v231_v1  ;;  %v209_v2 = vld [vmem:[%s312_s1] ss:$8 sps:$4 sm:$0xff]   ;;  %v210_v3 = vld [vmem:[%s312_s1 + $0x14] ss:$8 sps:$4 sm:$0xff]  }
   0x2   :  { %120 = vmatprep.subr.bf16.mxu0 %v207_v0  ;;  %v212_v4 = vld [vmem:[%s312_s1 + $0x10] ss:$8 sps:$4 sm:$0xff]   ;;  %v213_v5 = vld [vmem:[%s312_s1 + $0x24] ss:$8 sps:$4 sm:$0xff]   ;;  %v215_v6 = vld [vmem:[%s312_s1 + $0x20] ss:$8 sps:$4 sm:$0xff]  }
   0x3   :  { %121 = vmatpush1.bf16.msra.mxu0 %v209_v2  ;;  %v216_v7 = vld [vmem:[%s312_s1 + $0x34] ss:$8 sps:$4 sm:$0xff]   ;;  %v218_v8 = vld [vmem:[%s312_s1 + $0x30] ss:$8 sps:$4 sm:$0xff]   ;;  %v219_v9 = vld [vmem:[%s312_s1 + $0x44] ss:$8 sps:$4 sm:$0xff]  }
   0x4   :  { %122 = vmatprep.subr.bf16.mxu0 %v210_v3  ;;  %v221_v10 = vld [vmem:[%s312_s1 + $0x40] ss:$8 sps:$4 sm:$0xff]   ;;  %v222_v11 = vld [vmem:[%s312_s1 + $0x54] ss:$8 sps:$4 sm:$0xff]   ;;  %v224_v12 = vld [vmem:[%s312_s1 + $0x50] ss:$8 sps:$4 sm:$0xff]  }
   0x5   :  { %v225_v13 = vld [vmem:[%s312_s1 + $0x64] ss:$8 sps:$4 sm:$0xff]   ;;  %v227_v14 = vld [vmem:[%s312_s1 + $0x60] ss:$8 sps:$4 sm:$0xff]   ;;  %v228_v15 = vld [vmem:[%s312_s1 + $0x74] ss:$8 sps:$4 sm:$0xff]  }
   0x6   :  { %v230_v16 = vld [vmem:[%s312_s1 + $0x70] ss:$8 sps:$4 sm:$0xff]   ;;  %v23_v17 = vld [vmem:[%s313_s0] sm:$0xf]  ;;  %v173_v19 = vshrl.u32 %v172_v18, 7 }
   0x7   :  { %123 = vmatpush1.bf16.msra.mxu0 %v212_v4  ;;  %v170_v21 = vld [vmem:[%s314_s2] sm:$0x3] }
   0x8   :  { %124 = vmatprep.subr.bf16.mxu0 %v213_v5  ;;  %v174_v20 = vsub.s32 0, %v173_v19  ;;  %v178_v22 = vsub.s32 1, %v173_v19 }
   0xa   :  { %v175_v23 = vrot.slane %v170_v21, %v174_v20  ;;  %v179_v24 = vrot.slane %v170_v21, %v178_v22 }
   0xb   :  { %125 = vmatpush1.bf16.msra.mxu0 %v215_v6 }
   0xc   :  { %126 = vmatprep.subr.bf16.mxu0 %v216_v7 }
   0xf   :  { %127 = vmatpush1.bf16.msra.mxu0 %v218_v8 }
  0x10   :  { %128 = vmatprep.subr.bf16.mxu0 %v219_v9 }
  0x13   :  { %129 = vmatpush1.bf16.msra.mxu0 %v221_v10 }
  0x14   :  { %130 = vmatprep.subr.bf16.mxu0 %v222_v11 }
  0x17   :  { %131 = vmatpush1.bf16.msra.mxu0 %v224_v12 }
  0x18   :  { %132 = vmatprep.subr.bf16.mxu0 %v225_v13 }
  0x1b   :  { %133 = vmatpush1.bf16.msra.mxu0 %v227_v14 }
  0x1c   :  { %134 = vmatprep.subr.bf16.mxu0 %v228_v15 }
  0x1f   :  { %135 = vmatpush1.bf16.msra.mxu0 %v230_v16 }
  0x22   :  { %153 = vmatmul.mubr.bf16.vlgmr.msra.gmra.mrb[0].mxu0 %v23_v17 }
  0xf5   :  { %v154_v25 = vpop.f32.mrb[0].mxu0 }
  0xf6   :  { %v182_v26 = vadd.f32 %v175_v23, %v154_v25  ;;  %v156_v27 = vpop.f32.mrb[1].mxu0 }
  0xf7   :  { %v183_v28 = vadd.f32 %v179_v24, %v156_v27  ;;  %v158_v29 = vpop.f32.mrb[2].mxu0 }
  0xf8   :  { %184 = vst [vmem:[%s315_s3] sm:$0xff] %v182_v26  ;;  %v159_v30 = vpop.f32.mrb[3].mxu0 }
  0xf9   :  { %185 = vst [vmem:[%s315_s3 + $0x8] sm:$0xff] %v183_v28 }

// kernel: _lambda_.35
= control target key start
LH: loop header
LB: loop body
LE: loop exit
PB: predicated region body
PF: predicated region fallthrough
CT: control target
= control target key end

     0   :  { %s842_s12 = smov 0   ;;  %s844_s13 = smov 0   ;;  %s927_s0 = inlined_call_operand.vmem [shape: bf16[8,2304], index: 0, kind: input, shape index: {}]   ;;  %s928_s1 = inlined_call_operand.vmem [shape: bf16[2304,256], index: 1, kind: input, shape index: {}]   ;;  %s929_s2 = inlined_call_operand.vmem [shape: f32[1,256], index: 2, kind: input, shape index: {}]   ;;  %s930_s3 = inlined_call_operand.vmem [shape: f32[8,256], index: 3, kind: output, shape index: {}]  }
   0x1   :  { %s846_s14 = smov 0  }
   0x2 LB: > { %s25_s15 = sadd.s32 1, %s815_s13  ;;  %p675_p0 = scmp.ge.s32.totalorder %s819_s14, 1  ;;  %s819_s14 = sphi %s846_s14, %s13_s14   ;;  %s815_s13 = sphi %s844_s13, %s932_s13   ;;  %s811_s12 = sphi %s842_s12, %s931_s12  }
   0x3   : > { %p26_p1 = scmp.ge.s32.totalorder %s25_s15, 9  ;;  %p194_p2 = scmp.lt.s32.totalorder %s819_s14, 10 }
   0x5   : > { %s934_s15 = smov (%p26_p1, %s25_s15), 0  ;;  %p195_p3 = pnand %p675_p0, %p194_p2 }
   0x6   : > { %s676_s16 = sshll.u32 (!%p195_p3), %s811_s12, 1  ;;  %s678_s17 = sshll.u32 (!%p195_p3), %s811_s12, 5 }
   0x7   : > { %198 = sbr.rel (%p195_p3) target bundleno = 317 (0x13d), region = 32  ;;  %p243_p4 = scmp.lt.s32.totalorder (!%p195_p3), %s676_s16, 17 }
   0x8   : > { %p252_p5 = scmp.lt.s32.totalorder (!%p195_p3), %s678_s17, 287  ;;  %p681_p6 = scmp.ne.s32.totalorder (!%p195_p3), %s811_s12, 0 }
   0xe   : > { %s936_s16 = smov (!%p243_p4, %s676_s16), 17  ;;  %s938_s17 = smov (!%p252_p5, %s678_s17), 287 }
   0xf   : > { %s677_s18 = sshll.u32 %s936_s16, 2  ;;  %s721_s22 = sshll.u32 %s938_s17, 3  ;;  %v821_v0 = vmov (!%p681_p6), 0.0  }
  0x10   : > { %s867_s21 = scalar_lea.vmem %s927_s0, %s677_s18  ;;  %s872_s25 = scalar_lea.vmem %s928_s1, %s721_s22  ;;  %281 = vst [vmem:[#allocation2] sm:$0xff] (!%p681_p6), %v821_v0  ;;  %282 = vst [vmem:[#allocation2 + $0x8] sm:$0xff] (!%p681_p6), %v821_v0 }
  0x11   : > { %280 = sbr.rel (%p681_p6) target bundleno = 24 (0x18), region = 36 }
  0x18 PF: > { %v747_v1 = vld [vmem:[%s872_s25 + $0x4] ss:$8 sps:$4 sm:$0xff]   ;;  %v749_v2 = vld [vmem:[%s872_s25] ss:$8 sps:$4 sm:$0xff]   ;;  %v750_v3 = vld [vmem:[%s872_s25 + $0x14] ss:$8 sps:$4 sm:$0xff]  }
  0x19   : > { %485 = vmatprep.subr.bf16.mxu0 %v747_v1  ;;  %v752_v4 = vld [vmem:[%s872_s25 + $0x10] ss:$8 sps:$4 sm:$0xff]   ;;  %v753_v5 = vld [vmem:[%s872_s25 + $0x24] ss:$8 sps:$4 sm:$0xff]   ;;  %v755_v6 = vld [vmem:[%s872_s25 + $0x20] ss:$8 sps:$4 sm:$0xff]  }
  0x1a   : > { %486 = vmatpush1.bf16.msra.mxu0 %v749_v2  ;;  %v756_v7 = vld [vmem:[%s872_s25 + $0x34] ss:$8 sps:$4 sm:$0xff]   ;;  %v758_v8 = vld [vmem:[%s872_s25 + $0x30] ss:$8 sps:$4 sm:$0xff]   ;;  %v759_v9 = vld [vmem:[%s872_s25 + $0x44] ss:$8 sps:$4 sm:$0xff]  }
  0x1b   : > { %487 = vmatprep.subr.bf16.mxu0 %v750_v3  ;;  %v761_v10 = vld [vmem:[%s872_s25 + $0x40] ss:$8 sps:$4 sm:$0xff]   ;;  %v762_v11 = vld [vmem:[%s872_s25 + $0x54] ss:$8 sps:$4 sm:$0xff]   ;;  %v764_v12 = vld [vmem:[%s872_s25 + $0x50] ss:$8 sps:$4 sm:$0xff]  }
  0x1c   : > { %v765_v13 = vld [vmem:[%s872_s25 + $0x64] ss:$8 sps:$4 sm:$0xff]   ;;  %v767_v16 = vld [vmem:[%s872_s25 + $0x60] ss:$8 sps:$4 sm:$0xff]   ;;  %v768_v17 = vld [vmem:[%s872_s25 + $0x74] ss:$8 sps:$4 sm:$0xff]  }
  0x1d   : > { %v285_v14 = vld [vmem:[%s867_s21] sm:$0xff]  ;;  %v770_v18 = vld [vmem:[%s872_s25 + $0x70] ss:$8 sps:$4 sm:$0xff]   ;;  %v774_v21 = vld [vmem:[%s872_s25 + $0x94] ss:$8 sps:$4 sm:$0xff]   ;;  %p716_p7 = scmp.ne.s32.totalorder %s811_s12, 8 }
  0x1e   : > { %488 = vmatpush1.bf16.msra.mxu0 %v752_v4  ;;  %v683_v15 = vcombine.high %v285_v14, %v285_v14  ;;  %v771_v19 = vld [vmem:[%s872_s25 + $0x84] ss:$8 sps:$4 sm:$0xff]   ;;  %v773_v20 = vld [vmem:[%s872_s25 + $0x80] ss:$8 sps:$4 sm:$0xff]   ;;  %v776_v22 = vld [vmem:[%s872_s25 + $0x90] ss:$8 sps:$4 sm:$0xff]   ;;  %v682_v35 = vcombine.low %v285_v14, %v285_v14  ;;  %v538_v44 = vlaneseq (!%p716_p7) }
  0x1f   : > { %489 = vmatprep.subr.bf16.mxu0 %v753_v5  ;;  %v777_v23 = vld [vmem:[%s872_s25 + $0xa4] ss:$8 sps:$4 sm:$0xff]   ;;  %v779_v24 = vld [vmem:[%s872_s25 + $0xa0] ss:$8 sps:$4 sm:$0xff]   ;;  %v780_v25 = vld [vmem:[%s872_s25 + $0xb4] ss:$8 sps:$4 sm:$0xff]  }
  0x20   : > { %517 = vmatprep.mubr.bf16.mxu0 %v683_v15  ;;  %v782_v26 = vld [vmem:[%s872_s25 + $0xb0] ss:$8 sps:$4 sm:$0xff]   ;;  %v783_v27 = vld [vmem:[%s872_s25 + $0xc4] ss:$8 sps:$4 sm:$0xff]   ;;  %v785_v28 = vld [vmem:[%s872_s25 + $0xc0] ss:$8 sps:$4 sm:$0xff]  }
  0x21   : > { %v786_v29 = vld [vmem:[%s872_s25 + $0xd4] ss:$8 sps:$4 sm:$0xff]   ;;  %v788_v30 = vld [vmem:[%s872_s25 + $0xd0] ss:$8 sps:$4 sm:$0xff]   ;;  %v789_v31 = vld [vmem:[%s872_s25 + $0xe4] ss:$8 sps:$4 sm:$0xff]  }
  0x22   : > { %490 = vmatpush1.bf16.msra.mxu0 %v755_v6  ;;  %v791_v32 = vld [vmem:[%s872_s25 + $0xe0] ss:$8 sps:$4 sm:$0xff]   ;;  %v792_v33 = vld [vmem:[%s872_s25 + $0xf4] ss:$8 sps:$4 sm:$0xff]   ;;  %v794_v34 = vld [vmem:[%s872_s25 + $0xf0] ss:$8 sps:$4 sm:$0xff]  }
  0x23   : > { %491 = vmatprep.subr.bf16.mxu0 %v756_v7  ;;  %v283_v36 = vld [vmem:[#allocation2] sm:$0xff]  ;;  %v284_v37 = vld [vmem:[#allocation2 + $0x8] sm:$0xff]  ;;  %v539_v45 = vshrl.u32 (!%p716_p7), %v538_v44, 7 }
  0x24   : > { %v536_v46 = vld [vmem:[%s929_s2] sm:$0x3] (!%p716_p7) }
  0x25   : > { %v540_v47 = vsub.s32 (!%p716_p7), 0, %v539_v45  ;;  %v544_v48 = vsub.s32 (!%p716_p7), 1, %v539_v45 }
  0x26   : > { %492 = vmatpush1.bf16.msra.mxu0 %v758_v8 }
  0x27   : > { %493 = vmatprep.subr.bf16.mxu0 %v759_v9  ;;  %v541_v51 = vrot.slane (!%p716_p7), %v536_v46, %v540_v47  ;;  %v545_v52 = vrot.slane (!%p716_p7), %v536_v46, %v544_v48 }
  0x2a   : > { %494 = vmatpush1.bf16.msra.mxu0 %v761_v10 }
  0x2b   : > { %495 = vmatprep.subr.bf16.mxu0 %v762_v11 }
  0x2e   : > { %496 = vmatpush1.bf16.msra.mxu0 %v764_v12 }
  0x2f   : > { %497 = vmatprep.subr.bf16.mxu0 %v765_v13 }
  0x32   : > { %498 = vmatpush1.bf16.msra.mxu0 %v767_v16 }
  0x33   : > { %499 = vmatprep.subr.bf16.mxu0 %v768_v17 }
  0x36   : > { %500 = vmatpush1.bf16.msra.mxu0 %v770_v18 }
  0x37   : > { %501 = vmatprep.subr.bf16.mxu0 %v771_v19 }
  0x3a   : > { %502 = vmatpush1.bf16.msra.mxu0 %v773_v20 }
  0x3b   : > { %503 = vmatprep.subr.bf16.mxu0 %v774_v21 }
  0x3e   : > { %504 = vmatpush1.bf16.msra.mxu0 %v776_v22 }
  0x3f   : > { %505 = vmatprep.subr.bf16.mxu0 %v777_v23 }
  0x42   : > { %506 = vmatpush1.bf16.msra.mxu0 %v779_v24 }
  0x43   : > { %507 = vmatprep.subr.bf16.mxu0 %v780_v25 }
  0x46   : > { %508 = vmatpush1.bf16.msra.mxu0 %v782_v26 }
  0x47   : > { %509 = vmatprep.subr.bf16.mxu0 %v783_v27 }
  0x4a   : > { %510 = vmatpush1.bf16.msra.mxu0 %v785_v28 }
  0x4b   : > { %511 = vmatprep.subr.bf16.mxu0 %v786_v29 }
  0x4e   : > { %512 = vmatpush1.bf16.msra.mxu0 %v788_v30 }
  0x4f   : > { %513 = vmatprep.subr.bf16.mxu0 %v789_v31 }
  0x52   : > { %514 = vmatpush1.bf16.msra.mxu0 %v791_v32 }
  0x53   : > { %515 = vmatprep.subr.bf16.mxu0 %v792_v33 }
  0x56   : > { %516 = vmatpush1.bf16.msra.mxu0 %v794_v34 }
  0x59   : > { %518 = vmatmul.mubr.bf16.vlgmr.msra.gmra.mrb[0].mxu0 %v682_v35 }
 0x12a   : > { %533 = sbr.rel (%p716_p7) target bundleno = 317 (0x13d), region = 40 }
 0x12c   : > { %v519_v38 = vpop.f32.mrb[0].mxu0 }
 0x12d   : > { %v526_v39 = vadd.f32 %v519_v38, %v283_v36  ;;  %v521_v40 = vpop.f32.mrb[1].mxu0 }
 0x12e   : > { %v527_v41 = vadd.f32 %v521_v40, %v284_v37  ;;  %v523_v42 = vpop.f32.mrb[2].mxu0 }
 0x12f   : > { %528 = vst [vmem:[#allocation2] sm:$0xff] %v526_v39  ;;  %v524_v43 = vpop.f32.mrb[3].mxu0 }
 0x130   : > { %529 = vst [vmem:[#allocation2 + $0x8] sm:$0xff] %v527_v41 }
 0x136   : > { %v534_v49 = vld [vmem:[#allocation2] sm:$0xff] }
 0x137   : > { %v535_v50 = vld [vmem:[#allocation2 + $0x8] sm:$0xff]  ;;  %v548_v53 = vadd.f32 %v541_v51, %v534_v49 }
 0x138   : > { %v549_v54 = vadd.f32 %v545_v52, %v535_v50 }
 0x139   : > { %v550_v55 = vmax.f32 %v548_v53, 0.0 }
 0x13a   : > { %v551_v56 = vmax.f32 %v549_v54, 0.0 }
 0x13b   : > { %552 = vst [vmem:[%s930_s3] sm:$0xff] %v550_v55 }
 0x13c   : > { %553 = vst [vmem:[%s930_s3 + $0x8] sm:$0xff] %v551_v56 }
 0x13d PF: > { %s13_s14 = sadd.s32 1, %s819_s14   ;;  %s931_s12 = smov %s815_s13 }
 0x13e   : > { %p10_p8 = scmp.ge.s32.totalorder %s13_s14, 11   ;;  %s932_s13 = smov %s934_s15 }
 0x140   :  { %12 = sbr.rel (!%p10_p8) target bundleno = 2 (0x2), region = 76 }

// kernel: _lambda_.34
= control target key start
LH: loop header
LB: loop body
LE: loop exit
PB: predicated region body
PF: predicated region fallthrough
CT: control target
= control target key end

     0   :  { %s936_s15 = smov 0   ;;  %s938_s16 = smov 0   ;;  %s1027_s0 = inlined_call_operand.vmem [shape: bf16[8,2304], index: 0, kind: input, shape index: {}]   ;;  %s1028_s1 = inlined_call_operand.vmem [shape: bf16[2304,256], index: 1, kind: input, shape index: {}]   ;;  %s1029_s2 = inlined_call_operand.vmem [shape: f32[1,256], index: 2, kind: input, shape index: {}]   ;;  %s1030_s3 = inlined_call_operand.vmem [shape: f32[8,256], index: 3, kind: input, shape index: {}]   ;;  %s1031_s4 = inlined_call_operand.vmem [shape: f32[8,256], index: 4, kind: output, shape index: {}]  }
   0x1   :  { %s940_s17 = smov 0  }
   0x2 LB: > { %s26_s18 = sadd.s32 1, %s904_s16  ;;  %p764_p0 = scmp.ge.s32.totalorder %s908_s17, 1  ;;  %s908_s17 = sphi %s940_s17, %s14_s17   ;;  %s904_s16 = sphi %s938_s16, %s1033_s16   ;;  %s900_s15 = sphi %s936_s15, %s1032_s15  }
   0x3   : > { %p27_p1 = scmp.ge.s32.totalorder %s26_s18, 9  ;;  %p236_p2 = scmp.lt.s32.totalorder %s908_s17, 10 }
   0x5   : > { %s1035_s18 = smov (%p27_p1, %s26_s18), 0  ;;  %p237_p3 = pnand %p764_p0, %p236_p2 }
   0x6   : > { %s765_s19 = sshll.u32 (!%p237_p3), %s900_s15, 1  ;;  %s767_s20 = sshll.u32 (!%p237_p3), %s900_s15, 5 }
   0x7   : > { %240 = sbr.rel (%p237_p3) target bundleno = 319 (0x13f), region = 36  ;;  %p296_p4 = scmp.lt.s32.totalorder (!%p237_p3), %s765_s19, 17 }
   0x8   : > { %p305_p5 = scmp.lt.s32.totalorder (!%p237_p3), %s767_s20, 287  ;;  %p770_p6 = scmp.ne.s32.totalorder (!%p237_p3), %s900_s15, 0 }
   0xe   : > { %s1037_s19 = smov (!%p296_p4, %s765_s19), 17  ;;  %s1039_s20 = smov (!%p305_p5, %s767_s20), 287 }
   0xf   : > { %s766_s21 = sshll.u32 %s1037_s19, 2  ;;  %s810_s25 = sshll.u32 %s1039_s20, 3  ;;  %v910_v0 = vmov (!%p770_p6), 0.0  }
  0x10   : > { %s961_s24 = scalar_lea.vmem %s1027_s0, %s766_s21  ;;  %s966_s28 = scalar_lea.vmem %s1028_s1, %s810_s25  ;;  %344 = vst [vmem:[#allocation2] sm:$0xff] (!%p770_p6), %v910_v0  ;;  %345 = vst [vmem:[#allocation2 + $0x8] sm:$0xff] (!%p770_p6), %v910_v0 }
  0x11   : > { %343 = sbr.rel (%p770_p6) target bundleno = 24 (0x18), region = 40 }
  0x18 PF: > { %v836_v1 = vld [vmem:[%s966_s28 + $0x4] ss:$8 sps:$4 sm:$0xff]   ;;  %v838_v2 = vld [vmem:[%s966_s28] ss:$8 sps:$4 sm:$0xff]   ;;  %v839_v3 = vld [vmem:[%s966_s28 + $0x14] ss:$8 sps:$4 sm:$0xff]  }
  0x19   : > { %548 = vmatprep.subr.bf16.mxu0 %v836_v1  ;;  %v841_v4 = vld [vmem:[%s966_s28 + $0x10] ss:$8 sps:$4 sm:$0xff]   ;;  %v842_v5 = vld [vmem:[%s966_s28 + $0x24] ss:$8 sps:$4 sm:$0xff]   ;;  %v844_v6 = vld [vmem:[%s966_s28 + $0x20] ss:$8 sps:$4 sm:$0xff]  }
  0x1a   : > { %549 = vmatpush1.bf16.msra.mxu0 %v838_v2  ;;  %v845_v7 = vld [vmem:[%s966_s28 + $0x34] ss:$8 sps:$4 sm:$0xff]   ;;  %v847_v8 = vld [vmem:[%s966_s28 + $0x30] ss:$8 sps:$4 sm:$0xff]   ;;  %v848_v9 = vld [vmem:[%s966_s28 + $0x44] ss:$8 sps:$4 sm:$0xff]  }
  0x1b   : > { %550 = vmatprep.subr.bf16.mxu0 %v839_v3  ;;  %v850_v10 = vld [vmem:[%s966_s28 + $0x40] ss:$8 sps:$4 sm:$0xff]   ;;  %v851_v11 = vld [vmem:[%s966_s28 + $0x54] ss:$8 sps:$4 sm:$0xff]   ;;  %v853_v12 = vld [vmem:[%s966_s28 + $0x50] ss:$8 sps:$4 sm:$0xff]  }
  0x1c   : > { %v854_v13 = vld [vmem:[%s966_s28 + $0x64] ss:$8 sps:$4 sm:$0xff]   ;;  %v856_v16 = vld [vmem:[%s966_s28 + $0x60] ss:$8 sps:$4 sm:$0xff]   ;;  %v857_v17 = vld [vmem:[%s966_s28 + $0x74] ss:$8 sps:$4 sm:$0xff]  }
  0x1d   : > { %v348_v14 = vld [vmem:[%s961_s24] sm:$0xff]  ;;  %v859_v18 = vld [vmem:[%s966_s28 + $0x70] ss:$8 sps:$4 sm:$0xff]   ;;  %v863_v21 = vld [vmem:[%s966_s28 + $0x94] ss:$8 sps:$4 sm:$0xff]   ;;  %p805_p7 = scmp.ne.s32.totalorder %s900_s15, 8 }
  0x1e   : > { %551 = vmatpush1.bf16.msra.mxu0 %v841_v4  ;;  %v772_v15 = vcombine.high %v348_v14, %v348_v14  ;;  %v860_v19 = vld [vmem:[%s966_s28 + $0x84] ss:$8 sps:$4 sm:$0xff]   ;;  %v862_v20 = vld [vmem:[%s966_s28 + $0x80] ss:$8 sps:$4 sm:$0xff]   ;;  %v865_v22 = vld [vmem:[%s966_s28 + $0x90] ss:$8 sps:$4 sm:$0xff]   ;;  %v771_v35 = vcombine.low %v348_v14, %v348_v14  ;;  %v601_v44 = vlaneseq (!%p805_p7) }
  0x1f   : > { %552 = vmatprep.subr.bf16.mxu0 %v842_v5  ;;  %v866_v23 = vld [vmem:[%s966_s28 + $0xa4] ss:$8 sps:$4 sm:$0xff]   ;;  %v868_v24 = vld [vmem:[%s966_s28 + $0xa0] ss:$8 sps:$4 sm:$0xff]   ;;  %v869_v25 = vld [vmem:[%s966_s28 + $0xb4] ss:$8 sps:$4 sm:$0xff]  }
  0x20   : > { %580 = vmatprep.mubr.bf16.mxu0 %v772_v15  ;;  %v871_v26 = vld [vmem:[%s966_s28 + $0xb0] ss:$8 sps:$4 sm:$0xff]   ;;  %v872_v27 = vld [vmem:[%s966_s28 + $0xc4] ss:$8 sps:$4 sm:$0xff]   ;;  %v874_v28 = vld [vmem:[%s966_s28 + $0xc0] ss:$8 sps:$4 sm:$0xff]  }
  0x21   : > { %v875_v29 = vld [vmem:[%s966_s28 + $0xd4] ss:$8 sps:$4 sm:$0xff]   ;;  %v877_v30 = vld [vmem:[%s966_s28 + $0xd0] ss:$8 sps:$4 sm:$0xff]   ;;  %v878_v31 = vld [vmem:[%s966_s28 + $0xe4] ss:$8 sps:$4 sm:$0xff]  }
  0x22   : > { %553 = vmatpush1.bf16.msra.mxu0 %v844_v6  ;;  %v880_v32 = vld [vmem:[%s966_s28 + $0xe0] ss:$8 sps:$4 sm:$0xff]   ;;  %v881_v33 = vld [vmem:[%s966_s28 + $0xf4] ss:$8 sps:$4 sm:$0xff]   ;;  %v883_v34 = vld [vmem:[%s966_s28 + $0xf0] ss:$8 sps:$4 sm:$0xff]  }
  0x23   : > { %554 = vmatprep.subr.bf16.mxu0 %v845_v7  ;;  %v346_v36 = vld [vmem:[#allocation2] sm:$0xff]  ;;  %v347_v37 = vld [vmem:[#allocation2 + $0x8] sm:$0xff]  ;;  %v602_v45 = vshrl.u32 (!%p805_p7), %v601_v44, 7 }
  0x24   : > { %v599_v46 = vld [vmem:[%s1029_s2] sm:$0x3] (!%p805_p7)  ;;  %v614_v54 = vld [vmem:[%s1030_s3 + $0x8] sm:$0xff] (!%p805_p7) }
  0x25   : > { %v603_v47 = vsub.s32 (!%p805_p7), 0, %v602_v45  ;;  %v607_v48 = vsub.s32 (!%p805_p7), 1, %v602_v45  ;;  %v613_v53 = vld [vmem:[%s1030_s3] sm:$0xff] (!%p805_p7) }
  0x26   : > { %555 = vmatpush1.bf16.msra.mxu0 %v847_v8 }
  0x27   : > { %556 = vmatprep.subr.bf16.mxu0 %v848_v9  ;;  %v604_v51 = vrot.slane (!%p805_p7), %v599_v46, %v603_v47  ;;  %v608_v52 = vrot.slane (!%p805_p7), %v599_v46, %v607_v48 }
  0x2a   : > { %557 = vmatpush1.bf16.msra.mxu0 %v850_v10 }
  0x2b   : > { %558 = vmatprep.subr.bf16.mxu0 %v851_v11 }
  0x2e   : > { %559 = vmatpush1.bf16.msra.mxu0 %v853_v12 }
  0x2f   : > { %560 = vmatprep.subr.bf16.mxu0 %v854_v13 }
  0x32   : > { %561 = vmatpush1.bf16.msra.mxu0 %v856_v16 }
  0x33   : > { %562 = vmatprep.subr.bf16.mxu0 %v857_v17 }
  0x36   : > { %563 = vmatpush1.bf16.msra.mxu0 %v859_v18 }
  0x37   : > { %564 = vmatprep.subr.bf16.mxu0 %v860_v19 }
  0x3a   : > { %565 = vmatpush1.bf16.msra.mxu0 %v862_v20 }
  0x3b   : > { %566 = vmatprep.subr.bf16.mxu0 %v863_v21 }
  0x3e   : > { %567 = vmatpush1.bf16.msra.mxu0 %v865_v22 }
  0x3f   : > { %568 = vmatprep.subr.bf16.mxu0 %v866_v23 }
  0x42   : > { %569 = vmatpush1.bf16.msra.mxu0 %v868_v24 }
  0x43   : > { %570 = vmatprep.subr.bf16.mxu0 %v869_v25 }
  0x46   : > { %571 = vmatpush1.bf16.msra.mxu0 %v871_v26 }
  0x47   : > { %572 = vmatprep.subr.bf16.mxu0 %v872_v27 }
  0x4a   : > { %573 = vmatpush1.bf16.msra.mxu0 %v874_v28 }
  0x4b   : > { %574 = vmatprep.subr.bf16.mxu0 %v875_v29 }
  0x4e   : > { %575 = vmatpush1.bf16.msra.mxu0 %v877_v30 }
  0x4f   : > { %576 = vmatprep.subr.bf16.mxu0 %v878_v31 }
  0x52   : > { %577 = vmatpush1.bf16.msra.mxu0 %v880_v32 }
  0x53   : > { %578 = vmatprep.subr.bf16.mxu0 %v881_v33 }
  0x56   : > { %579 = vmatpush1.bf16.msra.mxu0 %v883_v34 }
  0x59   : > { %581 = vmatmul.mubr.bf16.vlgmr.msra.gmra.mrb[0].mxu0 %v771_v35 }
 0x12a   : > { %596 = sbr.rel (%p805_p7) target bundleno = 319 (0x13f), region = 44 }
 0x12c   : > { %v582_v38 = vpop.f32.mrb[0].mxu0 }
 0x12d   : > { %v589_v39 = vadd.f32 %v582_v38, %v346_v36  ;;  %v584_v40 = vpop.f32.mrb[1].mxu0 }
 0x12e   : > { %v590_v41 = vadd.f32 %v584_v40, %v347_v37  ;;  %v586_v42 = vpop.f32.mrb[2].mxu0 }
 0x12f   : > { %591 = vst [vmem:[#allocation2] sm:$0xff] %v589_v39  ;;  %v587_v43 = vpop.f32.mrb[3].mxu0 }
 0x130   : > { %592 = vst [vmem:[#allocation2 + $0x8] sm:$0xff] %v590_v41 }
 0x136   : > { %v597_v49 = vld [vmem:[#allocation2] sm:$0xff] }
 0x137   : > { %v598_v50 = vld [vmem:[#allocation2 + $0x8] sm:$0xff]  ;;  %v611_v55 = vadd.f32 %v604_v51, %v597_v49 }
 0x138   : > { %v612_v56 = vadd.f32 %v608_v52, %v598_v50 }
 0x139   : > { %v615_v57 = vadd.f32 %v613_v53, %v611_v55 }
 0x13a   : > { %v616_v58 = vadd.f32 %v614_v54, %v612_v56 }
 0x13b   : > { %v617_v59 = vmax.f32 %v615_v57, 0.0 }
 0x13c   : > { %v618_v60 = vmax.f32 %v616_v58, 0.0 }
 0x13d   : > { %619 = vst [vmem:[%s1031_s4] sm:$0xff] %v617_v59 }
 0x13e   : > { %620 = vst [vmem:[%s1031_s4 + $0x8] sm:$0xff] %v618_v60 }
 0x13f PF: > { %s14_s17 = sadd.s32 1, %s908_s17   ;;  %s1032_s15 = smov %s904_s16 }
 0x140   : > { %p11_p8 = scmp.ge.s32.totalorder %s14_s17, 11   ;;  %s1033_s16 = smov %s1035_s18 }
 0x142   :  { %13 = sbr.rel (!%p11_p8) target bundleno = 2 (0x2), region = 83 }

// kernel: _lambda_.37
= control target key start
LH: loop header
LB: loop body
LE: loop exit
PB: predicated region body
PF: predicated region fallthrough
CT: control target
= control target key end

     0   :  { %s1061_s12 = smov 0   ;;  %s1063_s13 = smov 0   ;;  %s1276_s0 = inlined_call_operand.vmem [shape: bf16[8,2304], index: 0, kind: input, shape index: {}]   ;;  %s1277_s1 = inlined_call_operand.vmem [shape: bf16[2304,512], index: 1, kind: input, shape index: {}]   ;;  %s1278_s2 = inlined_call_operand.vmem [shape: f32[1,512], index: 2, kind: input, shape index: {}]   ;;  %s1279_s3 = inlined_call_operand.vmem [shape: f32[8,512], index: 3, kind: output, shape index: {}]  }
   0x1   :  { %s1065_s14 = smov 0   ;;  %s1067_s15 = smov 0  }
   0x2   :  { %s1069_s16 = smov 0   ;;  %s1071_s17 = smov 0  }
   0x3   :  { %s1073_s18 = smov 0  }
   0x4 LB: > { %s25_s19 = sadd.s32 1, %s1030_s16  ;;  %s28_s20 = sadd.s32 1, %s1034_s17  ;;  %s1038_s18 = sphi %s1073_s18, %s13_s18   ;;  %s1034_s17 = sphi %s1071_s17, %s1285_s17   ;;  %s1030_s16 = sphi %s1069_s16, %s1284_s16   ;;  %s1026_s15 = sphi %s1067_s15, %s1283_s15   ;;  %s1022_s14 = sphi %s1065_s14, %s1282_s14   ;;  %s1018_s13 = sphi %s1063_s13, %s1281_s13   ;;  %s1014_s12 = sphi %s1061_s12, %s1280_s12  }
   0x5   : > { %p26_p0 = scmp.ge.s32.totalorder %s25_s19, 9  ;;  %p76_p1 = scmp.ne.s32.totalorder %s1018_s13, %s1014_s12 }
   0x6   : > { %p77_p2 = scmp.eq.s32.totalorder %s1038_s18, 0  ;;  %s69_s24 = sadd.s32 1, %s1018_s13 }
   0x7   : > { %s1287_s19 = smov (%p26_p0, %s25_s19), 0  ;;  %s1289_s20 = smov (!%p26_p0, %s28_s20), %s1034_s17 }
   0x8   : > { %p78_p3 = por %p77_p2, %p76_p1  ;;  %p30_p4 = scmp.ge.s32.totalorder %s1289_s20, 2 }
   0x9   : > { %s64_s21 = ssub.s32 %s1030_s16, %s1287_s19  ;;  %p825_p6 = scmp.ge.s32.totalorder %s1038_s18, 18 }
   0xa   : > { %s1291_s20 = smov (%p30_p4, %s1289_s20), 0 }
   0xb   : > { %s65_s22 = ssub.s32 %s1034_s17, %s1291_s20  ;;  %156 = sbr.rel (%p825_p6) target bundleno = 41 (0x29), region = 16 }
   0xc   : > { %s66_s23 = sor.u32 %s65_s22, %s64_s21 }
   0xd   : > { %p67_p5 = scmp.eq.s32.totalorder %s66_s23, 0 }
   0xf   : > { %s1112_s25 = scalar_select %p67_p5, %s1018_s13, %s69_s24  }
  0x12   : > { %172 = sbr.rel (!%p78_p3) target bundleno = 41 (0x29), region = 24  ;;  %s174_s26 = sand.u32 (%p78_p3), 1, %s1018_s13  }
  0x13   : > { %s828_s27 = sshll.u32 (%p78_p3), %s1034_s17, 1  ;;  %s826_s28 = sshll.u32 (%p78_p3), %s174_s26, 8 }
  0x14   : > { %s876_s29 = sshll.u32 (%p78_p3), %s1030_s16, 7  ;;  %s1126_s8 = scalar_lea.vmem (%p78_p3), [#allocation3], %s826_s28 }
  0x15   : > { %s180_s30 = sadd.s32 (%p78_p3), %s876_s29, %s828_s27 }
  0x16   : > { %s830_s4 = sshll.u32 (%p78_p3), %s180_s30, 2 }
  0x17   : > { %s1121_s7 = scalar_lea.vmem (%p78_p3), %s1277_s1, %s830_s4 }
  0x18   : > { %v272_v0 = vld [vmem:[%s1121_s7] sm:$0xff] (%p78_p3)  ;;  %v274_v1 = vld [vmem:[%s1121_s7 + $0x10] sm:$0xff] (%p78_p3) }
  0x19   : > { %v276_v2 = vld [vmem:[%s1121_s7 + $0x20] sm:$0xff]  ;;  %273 = vst [vmem:[%s1126_s8] sm:$0xff] %v272_v0  ;;  %275 = vst [vmem:[%s1126_s8 + $0x8] sm:$0xff] %v274_v1  ;;  %v278_v3 = vld [vmem:[%s1121_s7 + $0x30] sm:$0xff] }
  0x1a   : > { %277 = vst [vmem:[%s1126_s8 + $0x10] sm:$0xff] %v276_v2  ;;  %v280_v4 = vld [vmem:[%s1121_s7 + $0x40] sm:$0xff]  ;;  %v282_v5 = vld [vmem:[%s1121_s7 + $0x50] sm:$0xff]  ;;  %279 = vst [vmem:[%s1126_s8 + $0x18] sm:$0xff] %v278_v3 }
  0x1b   : > { %281 = vst [vmem:[%s1126_s8 + $0x20] sm:$0xff] %v280_v4  ;;  %283 = vst [vmem:[%s1126_s8 + $0x28] sm:$0xff] %v282_v5  ;;  %v284_v6 = vld [vmem:[%s1121_s7 + $0x60] sm:$0xff]  ;;  %v286_v7 = vld [vmem:[%s1121_s7 + $0x70] sm:$0xff] }
  0x1c   : > { %v288_v8 = vld [vmem:[%s1121_s7 + $0x80] sm:$0xff]  ;;  %285 = vst [vmem:[%s1126_s8 + $0x30] sm:$0xff] %v284_v6  ;;  %287 = vst [vmem:[%s1126_s8 + $0x38] sm:$0xff] %v286_v7  ;;  %v290_v9 = vld [vmem:[%s1121_s7 + $0x90] sm:$0xff] }
  0x1d   : > { %289 = vst [vmem:[%s1126_s8 + $0x40] sm:$0xff] %v288_v8  ;;  %v292_v10 = vld [vmem:[%s1121_s7 + $0xa0] sm:$0xff]  ;;  %v294_v11 = vld [vmem:[%s1121_s7 + $0xb0] sm:$0xff]  ;;  %291 = vst [vmem:[%s1126_s8 + $0x48] sm:$0xff] %v290_v9 }
  0x1e   : > { %293 = vst [vmem:[%s1126_s8 + $0x50] sm:$0xff] %v292_v10  ;;  %295 = vst [vmem:[%s1126_s8 + $0x58] sm:$0xff] %v294_v11  ;;  %v296_v12 = vld [vmem:[%s1121_s7 + $0xc0] sm:$0xff]  ;;  %v298_v13 = vld [vmem:[%s1121_s7 + $0xd0] sm:$0xff] }
  0x1f   : > { %v300_v14 = vld [vmem:[%s1121_s7 + $0xe0] sm:$0xff]  ;;  %297 = vst [vmem:[%s1126_s8 + $0x60] sm:$0xff] %v296_v12  ;;  %299 = vst [vmem:[%s1126_s8 + $0x68] sm:$0xff] %v298_v13  ;;  %v302_v15 = vld [vmem:[%s1121_s7 + $0xf0] sm:$0xff] }
  0x20   : > { %301 = vst [vmem:[%s1126_s8 + $0x70] sm:$0xff] %v300_v14  ;;  %v304_v16 = vld [vmem:[%s1121_s7 + $0x100] sm:$0xff]  ;;  %v306_v17 = vld [vmem:[%s1121_s7 + $0x110] sm:$0xff]  ;;  %303 = vst [vmem:[%s1126_s8 + $0x78] sm:$0xff] %v302_v15 }
  0x21   : > { %305 = vst [vmem:[%s1126_s8 + $0x80] sm:$0xff] %v304_v16  ;;  %307 = vst [vmem:[%s1126_s8 + $0x88] sm:$0xff] %v306_v17  ;;  %v308_v18 = vld [vmem:[%s1121_s7 + $0x120] sm:$0xff]  ;;  %v310_v19 = vld [vmem:[%s1121_s7 + $0x130] sm:$0xff] }
  0x22   : > { %v312_v20 = vld [vmem:[%s1121_s7 + $0x140] sm:$0xff]  ;;  %309 = vst [vmem:[%s1126_s8 + $0x90] sm:$0xff] %v308_v18  ;;  %311 = vst [vmem:[%s1126_s8 + $0x98] sm:$0xff] %v310_v19  ;;  %v314_v21 = vld [vmem:[%s1121_s7 + $0x150] sm:$0xff] }
  0x23   : > { %313 = vst [vmem:[%s1126_s8 + $0xa0] sm:$0xff] %v312_v20  ;;  %v316_v22 = vld [vmem:[%s1121_s7 + $0x160] sm:$0xff]  ;;  %v318_v23 = vld [vmem:[%s1121_s7 + $0x170] sm:$0xff]  ;;  %315 = vst [vmem:[%s1126_s8 + $0xa8] sm:$0xff] %v314_v21 }
  0x24   : > { %317 = vst [vmem:[%s1126_s8 + $0xb0] sm:$0xff] %v316_v22  ;;  %319 = vst [vmem:[%s1126_s8 + $0xb8] sm:$0xff] %v318_v23  ;;  %v320_v24 = vld [vmem:[%s1121_s7 + $0x180] sm:$0xff]  ;;  %v322_v25 = vld [vmem:[%s1121_s7 + $0x190] sm:$0xff] }
  0x25   : > { %v324_v26 = vld [vmem:[%s1121_s7 + $0x1a0] sm:$0xff]  ;;  %321 = vst [vmem:[%s1126_s8 + $0xc0] sm:$0xff] %v320_v24  ;;  %323 = vst [vmem:[%s1126_s8 + $0xc8] sm:$0xff] %v322_v25  ;;  %v326_v27 = vld [vmem:[%s1121_s7 + $0x1b0] sm:$0xff] }
  0x26   : > { %325 = vst [vmem:[%s1126_s8 + $0xd0] sm:$0xff] %v324_v26  ;;  %v328_v28 = vld [vmem:[%s1121_s7 + $0x1c0] sm:$0xff]  ;;  %v330_v29 = vld [vmem:[%s1121_s7 + $0x1d0] sm:$0xff]  ;;  %327 = vst [vmem:[%s1126_s8 + $0xd8] sm:$0xff] %v326_v27 }
  0x27   : > { %329 = vst [vmem:[%s1126_s8 + $0xe0] sm:$0xff] %v328_v28  ;;  %331 = vst [vmem:[%s1126_s8 + $0xe8] sm:$0xff] %v330_v29  ;;  %v332_v30 = vld [vmem:[%s1121_s7 + $0x1e0] sm:$0xff]  ;;  %v334_v31 = vld [vmem:[%s1121_s7 + $0x1f0] sm:$0xff] }
  0x28   : > { %333 = vst [vmem:[%s1126_s8 + $0xf0] sm:$0xff] %v332_v30  ;;  %335 = vst [vmem:[%s1126_s8 + $0xf8] sm:$0xff] %v334_v31 }
  0x29 PF: > { %p831_p7 = scmp.ge.s32.totalorder %s1038_s18, 1  ;;  %p348_p8 = scmp.lt.s32.totalorder %s1038_s18, 19 }
  0x2b   : > { %p349_p9 = pnand %p831_p7, %p348_p8 }
  0x2c   : > { %s355_s9 = sand.u32 (!%p349_p9), 1, %s1014_s12   ;;  %s833_s10 = sshll.u32 (!%p349_p9), %s1022_s14, 1 }
  0x2d   : > { %352 = sbr.rel (%p349_p9) target bundleno = 355 (0x163), region = 66  ;;  %s832_s11 = sshll.u32 (!%p349_p9), %s355_s9, 8 }
  0x2e   : > { %p398_p10 = scmp.lt.s32.totalorder (!%p349_p9), %s833_s10, 17  ;;  %s835_s21 = sshll.u32 (!%p349_p9), %s1026_s15, 1 }
  0x2f   : > { %p408_p11 = scmp.lt.s32.totalorder (!%p349_p9), %s835_s21, 3  ;;  %s1211_s5 = scalar_lea.vmem (!%p349_p9), [#allocation3], %s832_s11 }
  0x30   : > { %p838_p12 = scmp.ne.s32.totalorder (!%p349_p9), %s1022_s14, 0 }
  0x34   : > { %s1293_s10 = smov (!%p398_p10, %s833_s10), 17  ;;  %s1295_s21 = smov (!%p408_p11, %s835_s21), 3 }
  0x35   : > { %s834_s22 = sshll.u32 %s1293_s10, 2  ;;  %s410_s12 = scalar_lea.vmem %s1278_s2, %s1295_s21  ;;  %v1040_v32 = vmov (!%p838_p12), 0.0  }
  0x36   : > { %s1197_s26 = scalar_lea.vmem %s1276_s0, %s834_s22  ;;  %s837_s29 = sshll.u32 %s1295_s21, 3  ;;  %426 = vst [vmem:[#allocation2] sm:$0xff] (!%p838_p12), %v1040_v32  ;;  %427 = vst [vmem:[#allocation2 + $0x8] sm:$0xff] (!%p838_p12), %v1040_v32 }
  0x37   : > { %s1209_s15 = scalar_lea.vmem %s1279_s3, %s837_s29  ;;  %425 = sbr.rel (%p838_p12) target bundleno = 62 (0x3e), region = 74 }
  0x3e PF: > { %v934_v33 = vld [vmem:[%s1211_s5 + $0x4] ss:$8 sps:$4 sm:$0xff]   ;;  %v936_v34 = vld [vmem:[%s1211_s5] ss:$8 sps:$4 sm:$0xff]   ;;  %v937_v35 = vld [vmem:[%s1211_s5 + $0x14] ss:$8 sps:$4 sm:$0xff]  }
  0x3f   : > { %630 = vmatprep.subr.bf16.mxu0 %v934_v33  ;;  %v939_v36 = vld [vmem:[%s1211_s5 + $0x10] ss:$8 sps:$4 sm:$0xff]   ;;  %v940_v37 = vld [vmem:[%s1211_s5 + $0x24] ss:$8 sps:$4 sm:$0xff]   ;;  %v942_v38 = vld [vmem:[%s1211_s5 + $0x20] ss:$8 sps:$4 sm:$0xff]  }
  0x40   : > { %631 = vmatpush1.bf16.msra.mxu0 %v936_v34  ;;  %v943_v39 = vld [vmem:[%s1211_s5 + $0x34] ss:$8 sps:$4 sm:$0xff]   ;;  %v945_v40 = vld [vmem:[%s1211_s5 + $0x30] ss:$8 sps:$4 sm:$0xff]   ;;  %v946_v41 = vld [vmem:[%s1211_s5 + $0x44] ss:$8 sps:$4 sm:$0xff]  }
  0x41   : > { %632 = vmatprep.subr.bf16.mxu0 %v937_v35  ;;  %v948_v42 = vld [vmem:[%s1211_s5 + $0x40] ss:$8 sps:$4 sm:$0xff]   ;;  %v949_v43 = vld [vmem:[%s1211_s5 + $0x54] ss:$8 sps:$4 sm:$0xff]   ;;  %v951_v44 = vld [vmem:[%s1211_s5 + $0x50] ss:$8 sps:$4 sm:$0xff]  }
  0x42   : > { %v952_v45 = vld [vmem:[%s1211_s5 + $0x64] ss:$8 sps:$4 sm:$0xff]   ;;  %v430_v46 = vld [vmem:[%s1197_s26] sm:$0xff]  ;;  %v954_v48 = vld [vmem:[%s1211_s5 + $0x60] ss:$8 sps:$4 sm:$0xff]   ;;  %p873_p13 = scmp.ne.s32.totalorder %s1022_s14, 8 }
  0x43   : > { %v840_v47 = vcombine.high %v430_v46, %v430_v46  ;;  %v955_v49 = vld [vmem:[%s1211_s5 + $0x74] ss:$8 sps:$4 sm:$0xff]   ;;  %v957_v50 = vld [vmem:[%s1211_s5 + $0x70] ss:$8 sps:$4 sm:$0xff]   ;;  %v958_v51 = vld [vmem:[%s1211_s5 + $0x84] ss:$8 sps:$4 sm:$0xff]   ;;  %v839_v3 = vcombine.low %v430_v46, %v430_v46  ;;  %v683_v12 = vlaneseq (!%p873_p13) }
  0x44   : > { %633 = vmatpush1.bf16.msra.mxu0 %v939_v36  ;;  %v960_v52 = vld [vmem:[%s1211_s5 + $0x80] ss:$8 sps:$4 sm:$0xff]   ;;  %v961_v53 = vld [vmem:[%s1211_s5 + $0x94] ss:$8 sps:$4 sm:$0xff]   ;;  %v963_v54 = vld [vmem:[%s1211_s5 + $0x90] ss:$8 sps:$4 sm:$0xff]  }
  0x45   : > { %634 = vmatprep.subr.bf16.mxu0 %v940_v37  ;;  %662 = vmatprep.mubr.bf16.mxu0 %v840_v47  ;;  %v964_v55 = vld [vmem:[%s1211_s5 + $0xa4] ss:$8 sps:$4 sm:$0xff]   ;;  %v966_v56 = vld [vmem:[%s1211_s5 + $0xa0] ss:$8 sps:$4 sm:$0xff]   ;;  %v967_v57 = vld [vmem:[%s1211_s5 + $0xb4] ss:$8 sps:$4 sm:$0xff]  }
  0x46   : > { %v969_v58 = vld [vmem:[%s1211_s5 + $0xb0] ss:$8 sps:$4 sm:$0xff]   ;;  %v970_v59 = vld [vmem:[%s1211_s5 + $0xc4] ss:$8 sps:$4 sm:$0xff]   ;;  %v972_v60 = vld [vmem:[%s1211_s5 + $0xc0] ss:$8 sps:$4 sm:$0xff]  }
  0x47   : > { %v973_v61 = vld [vmem:[%s1211_s5 + $0xd4] ss:$8 sps:$4 sm:$0xff]   ;;  %v975_v62 = vld [vmem:[%s1211_s5 + $0xd0] ss:$8 sps:$4 sm:$0xff]   ;;  %v976_v63 = vld [vmem:[%s1211_s5 + $0xe4] ss:$8 sps:$4 sm:$0xff]  }
  0x48   : > { %635 = vmatpush1.bf16.msra.mxu0 %v942_v38  ;;  %v978_v0 = vld [vmem:[%s1211_s5 + $0xe0] ss:$8 sps:$4 sm:$0xff]   ;;  %v979_v1 = vld [vmem:[%s1211_s5 + $0xf4] ss:$8 sps:$4 sm:$0xff]   ;;  %v981_v2 = vld [vmem:[%s1211_s5 + $0xf0] ss:$8 sps:$4 sm:$0xff]  }
  0x49   : > { %636 = vmatprep.subr.bf16.mxu0 %v943_v39  ;;  %v428_v4 = vld [vmem:[#allocation2] sm:$0xff]  ;;  %v429_v5 = vld [vmem:[#allocation2 + $0x8] sm:$0xff]  ;;  %v684_v13 = vshrl.u32 (!%p873_p13), %v683_v12, 7 }
  0x4a   : > { %v681_v14 = vld [vmem:[%s410_s12] sm:$0x3] (!%p873_p13) }
  0x4b   : > { %v685_v15 = vsub.s32 (!%p873_p13), 0, %v684_v13  ;;  %v689_v16 = vsub.s32 (!%p873_p13), 1, %v684_v13 }
  0x4c   : > { %637 = vmatpush1.bf16.msra.mxu0 %v945_v40 }
  0x4d   : > { %638 = vmatprep.subr.bf16.mxu0 %v946_v41  ;;  %v686_v19 = vrot.slane (!%p873_p13), %v681_v14, %v685_v15  ;;  %v690_v20 = vrot.slane (!%p873_p13), %v681_v14, %v689_v16 }
  0x50   : > { %639 = vmatpush1.bf16.msra.mxu0 %v948_v42 }
  0x51   : > { %640 = vmatprep.subr.bf16.mxu0 %v949_v43 }
  0x54   : > { %641 = vmatpush1.bf16.msra.mxu0 %v951_v44 }
  0x55   : > { %642 = vmatprep.subr.bf16.mxu0 %v952_v45 }
  0x58   : > { %643 = vmatpush1.bf16.msra.mxu0 %v954_v48 }
  0x59   : > { %644 = vmatprep.subr.bf16.mxu0 %v955_v49 }
  0x5c   : > { %645 = vmatpush1.bf16.msra.mxu0 %v957_v50 }
  0x5d   : > { %646 = vmatprep.subr.bf16.mxu0 %v958_v51 }
  0x60   : > { %647 = vmatpush1.bf16.msra.mxu0 %v960_v52 }
  0x61   : > { %648 = vmatprep.subr.bf16.mxu0 %v961_v53 }
  0x64   : > { %649 = vmatpush1.bf16.msra.mxu0 %v963_v54 }
  0x65   : > { %650 = vmatprep.subr.bf16.mxu0 %v964_v55 }
  0x68   : > { %651 = vmatpush1.bf16.msra.mxu0 %v966_v56 }
  0x69   : > { %652 = vmatprep.subr.bf16.mxu0 %v967_v57 }
  0x6c   : > { %653 = vmatpush1.bf16.msra.mxu0 %v969_v58 }
  0x6d   : > { %654 = vmatprep.subr.bf16.mxu0 %v970_v59 }
  0x70   : > { %655 = vmatpush1.bf16.msra.mxu0 %v972_v60 }
  0x71   : > { %656 = vmatprep.subr.bf16.mxu0 %v973_v61 }
  0x74   : > { %657 = vmatpush1.bf16.msra.mxu0 %v975_v62 }
  0x75   : > { %658 = vmatprep.subr.bf16.mxu0 %v976_v63 }
  0x78   : > { %659 = vmatpush1.bf16.msra.mxu0 %v978_v0 }
  0x79   : > { %660 = vmatprep.subr.bf16.mxu0 %v979_v1 }
  0x7c   : > { %661 = vmatpush1.bf16.msra.mxu0 %v981_v2 }
  0x7f   : > { %663 = vmatmul.mubr.bf16.vlgmr.msra.gmra.mrb[0].mxu0 %v839_v3 }
 0x150   : > { %678 = sbr.rel (%p873_p13) target bundleno = 355 (0x163), region = 78 }
 0x152   : > { %v664_v6 = vpop.f32.mrb[0].mxu0 }
 0x153   : > { %v671_v7 = vadd.f32 %v664_v6, %v428_v4  ;;  %v666_v8 = vpop.f32.mrb[1].mxu0 }
 0x154   : > { %v672_v9 = vadd.f32 %v666_v8, %v429_v5  ;;  %v668_v10 = vpop.f32.mrb[2].mxu0 }
 0x155   : > { %673 = vst [vmem:[#allocation2] sm:$0xff] %v671_v7  ;;  %v669_v11 = vpop.f32.mrb[3].mxu0 }
 0x156   : > { %674 = vst [vmem:[#allocation2 + $0x8] sm:$0xff] %v672_v9 }
 0x15c   : > { %v679_v17 = vld [vmem:[#allocation2] sm:$0xff] }
 0x15d   : > { %v680_v18 = vld [vmem:[#allocation2 + $0x8] sm:$0xff]  ;;  %v693_v21 = vadd.f32 %v686_v19, %v679_v17 }
 0x15e   : > { %v694_v22 = vadd.f32 %v690_v20, %v680_v18 }
 0x15f   : > { %v695_v23 = vmax.f32 %v693_v21, 0.0 }
 0x160   : > { %v696_v24 = vmax.f32 %v694_v22, 0.0 }
 0x161   : > { %697 = vst [vmem:[%s1209_s15] sm:$0xff] %v695_v23 }
 0x162   : > { %698 = vst [vmem:[%s1209_s15 + $0x8] sm:$0xff] %v696_v24 }
 0x163 PF: > { %s13_s18 = sadd.s32 1, %s1038_s18   ;;  %s1280_s12 = smov %s1018_s13 }
 0x164   : > { %p10_p0 = scmp.ge.s32.totalorder %s13_s18, 20   ;;  %s1281_s13 = smov %s1112_s25 }
 0x165   : > { %s1282_s14 = smov %s1030_s16  ;;  %s1283_s15 = smov %s1034_s17 }
 0x166   : > { %s1284_s16 = smov %s1287_s19  ;;  %s1285_s17 = smov %s1291_s20 }
 0x167   :  { %12 = sbr.rel (!%p10_p0) target bundleno = 4 (0x4), region = 119 }

// kernel: _lambda_.38
= control target key start
LH: loop header
LB: loop body
LE: loop exit
PB: predicated region body
PF: predicated region fallthrough
CT: control target
= control target key end

     0   :  { %s1019_s12 = smov 0   ;;  %s1021_s13 = smov 0   ;;  %s1198_s0 = inlined_call_operand.vmem [shape: bf16[8,256], index: 0, kind: input, shape index: {}]   ;;  %s1199_s1 = inlined_call_operand.vmem [shape: bf16[256,512], index: 1, kind: input, shape index: {}]   ;;  %s1200_s2 = inlined_call_operand.vmem [shape: f32[1,512], index: 2, kind: input, shape index: {}]   ;;  %s1201_s3 = inlined_call_operand.vmem [shape: f32[8,512], index: 3, kind: output, shape index: {}]  }
   0x1   :  { %s1023_s14 = smov 0   ;;  %s1025_s15 = smov 0  }
   0x2   :  { %s1027_s16 = smov 0  }
   0x3 LB: > { %s28_s17 = sadd.s32 1, %s993_s15  ;;  %p76_p1 = scmp.ne.s32.totalorder %s985_s13, %s981_s12  ;;  %s997_s16 = sphi %s1027_s16, %s13_s16   ;;  %s993_s15 = sphi %s1025_s15, %s1205_s15   ;;  %s989_s14 = sphi %s1023_s14, %s1204_s14   ;;  %s985_s13 = sphi %s1021_s13, %s1203_s13   ;;  %s981_s12 = sphi %s1019_s12, %s1202_s12  }
   0x4   : > { %p30_p0 = scmp.ge.s32.totalorder %s28_s17, 2  ;;  %p77_p2 = scmp.eq.s32.totalorder %s997_s16, 0 }
   0x5   : > { %s69_s19 = sadd.s32 1, %s985_s13  ;;  %p823_p5 = scmp.ge.s32.totalorder %s997_s16, 2 }
   0x6   : > { %s1207_s17 = smov (%p30_p0, %s28_s17), 0  ;;  %p78_p3 = por %p77_p2, %p76_p1 }
   0x7   : > { %s65_s18 = ssub.s32 %s993_s15, %s1207_s17  ;;  %169 = sbr.rel (%p823_p5) target bundleno = 34 (0x22), region = 20 }
   0x8   : > { %p67_p4 = scmp.eq.s32.totalorder %s65_s18, 0 }
   0xa   : > { %s1054_s20 = scalar_select %p67_p4, %s985_s13, %s69_s19  }
   0xe   : > { %172 = sbr.rel (!%p78_p3) target bundleno = 34 (0x22), region = 24  ;;  %s174_s21 = sand.u32 (%p78_p3), 1, %s985_s13  }
   0xf   : > { %s868_s22 = sshll.u32 (%p78_p3), %s993_s15, 3  ;;  %s824_s23 = sshll.u32 (%p78_p3), %s174_s21, 8 }
  0x10   : > { %s1062_s26 = scalar_lea.vmem (%p78_p3), %s1199_s1, %s868_s22  ;;  %s1067_s27 = scalar_lea.vmem (%p78_p3), [#allocation3], %s824_s23 }
  0x11   : > { %v272_v0 = vld [vmem:[%s1062_s26] sm:$0xff] (%p78_p3)  ;;  %v274_v1 = vld [vmem:[%s1062_s26 + $0x10] sm:$0xff] (%p78_p3) }
  0x12   : > { %v276_v2 = vld [vmem:[%s1062_s26 + $0x20] sm:$0xff] (%p78_p3)  ;;  %273 = vst [vmem:[%s1067_s27] sm:$0xff] (%p78_p3), %v272_v0  ;;  %275 = vst [vmem:[%s1067_s27 + $0x8] sm:$0xff] (%p78_p3), %v274_v1  ;;  %v278_v3 = vld [vmem:[%s1062_s26 + $0x30] sm:$0xff] (%p78_p3) }
  0x13   : > { %277 = vst [vmem:[%s1067_s27 + $0x10] sm:$0xff] (%p78_p3), %v276_v2  ;;  %v280_v4 = vld [vmem:[%s1062_s26 + $0x40] sm:$0xff] (%p78_p3)  ;;  %v282_v5 = vld [vmem:[%s1062_s26 + $0x50] sm:$0xff] (%p78_p3)  ;;  %279 = vst [vmem:[%s1067_s27 + $0x18] sm:$0xff] (%p78_p3), %v278_v3 }
  0x14   : > { %281 = vst [vmem:[%s1067_s27 + $0x20] sm:$0xff] (%p78_p3), %v280_v4  ;;  %283 = vst [vmem:[%s1067_s27 + $0x28] sm:$0xff] (%p78_p3), %v282_v5  ;;  %v284_v6 = vld [vmem:[%s1062_s26 + $0x60] sm:$0xff] (%p78_p3)  ;;  %v286_v7 = vld [vmem:[%s1062_s26 + $0x70] sm:$0xff] (%p78_p3) }
  0x15   : > { %v288_v8 = vld [vmem:[%s1062_s26 + $0x80] sm:$0xff]  ;;  %285 = vst [vmem:[%s1067_s27 + $0x30] sm:$0xff] %v284_v6  ;;  %287 = vst [vmem:[%s1067_s27 + $0x38] sm:$0xff] %v286_v7  ;;  %v290_v9 = vld [vmem:[%s1062_s26 + $0x90] sm:$0xff] }
  0x16   : > { %289 = vst [vmem:[%s1067_s27 + $0x40] sm:$0xff] %v288_v8  ;;  %v292_v10 = vld [vmem:[%s1062_s26 + $0xa0] sm:$0xff]  ;;  %v294_v11 = vld [vmem:[%s1062_s26 + $0xb0] sm:$0xff]  ;;  %291 = vst [vmem:[%s1067_s27 + $0x48] sm:$0xff] %v290_v9 }
  0x17   : > { %293 = vst [vmem:[%s1067_s27 + $0x50] sm:$0xff] %v292_v10  ;;  %295 = vst [vmem:[%s1067_s27 + $0x58] sm:$0xff] %v294_v11  ;;  %v296_v12 = vld [vmem:[%s1062_s26 + $0xc0] sm:$0xff]  ;;  %v298_v13 = vld [vmem:[%s1062_s26 + $0xd0] sm:$0xff] }
  0x18   : > { %v300_v14 = vld [vmem:[%s1062_s26 + $0xe0] sm:$0xff]  ;;  %297 = vst [vmem:[%s1067_s27 + $0x60] sm:$0xff] %v296_v12  ;;  %299 = vst [vmem:[%s1067_s27 + $0x68] sm:$0xff] %v298_v13  ;;  %v302_v15 = vld [vmem:[%s1062_s26 + $0xf0] sm:$0xff] }
  0x19   : > { %301 = vst [vmem:[%s1067_s27 + $0x70] sm:$0xff] %v300_v14  ;;  %v304_v16 = vld [vmem:[%s1062_s26 + $0x100] sm:$0xff]  ;;  %v306_v17 = vld [vmem:[%s1062_s26 + $0x110] sm:$0xff]  ;;  %303 = vst [vmem:[%s1067_s27 + $0x78] sm:$0xff] %v302_v15 }
  0x1a   : > { %305 = vst [vmem:[%s1067_s27 + $0x80] sm:$0xff] %v304_v16  ;;  %307 = vst [vmem:[%s1067_s27 + $0x88] sm:$0xff] %v306_v17  ;;  %v308_v18 = vld [vmem:[%s1062_s26 + $0x120] sm:$0xff]  ;;  %v310_v19 = vld [vmem:[%s1062_s26 + $0x130] sm:$0xff] }
  0x1b   : > { %v312_v20 = vld [vmem:[%s1062_s26 + $0x140] sm:$0xff]  ;;  %309 = vst [vmem:[%s1067_s27 + $0x90] sm:$0xff] %v308_v18  ;;  %311 = vst [vmem:[%s1067_s27 + $0x98] sm:$0xff] %v310_v19  ;;  %v314_v21 = vld [vmem:[%s1062_s26 + $0x150] sm:$0xff] }
  0x1c   : > { %313 = vst [vmem:[%s1067_s27 + $0xa0] sm:$0xff] %v312_v20  ;;  %v316_v22 = vld [vmem:[%s1062_s26 + $0x160] sm:$0xff]  ;;  %v318_v23 = vld [vmem:[%s1062_s26 + $0x170] sm:$0xff]  ;;  %315 = vst [vmem:[%s1067_s27 + $0xa8] sm:$0xff] %v314_v21 }
  0x1d   : > { %317 = vst [vmem:[%s1067_s27 + $0xb0] sm:$0xff] %v316_v22  ;;  %319 = vst [vmem:[%s1067_s27 + $0xb8] sm:$0xff] %v318_v23  ;;  %v320_v24 = vld [vmem:[%s1062_s26 + $0x180] sm:$0xff]  ;;  %v322_v25 = vld [vmem:[%s1062_s26 + $0x190] sm:$0xff] }
  0x1e   : > { %v324_v26 = vld [vmem:[%s1062_s26 + $0x1a0] sm:$0xff]  ;;  %321 = vst [vmem:[%s1067_s27 + $0xc0] sm:$0xff] %v320_v24  ;;  %323 = vst [vmem:[%s1067_s27 + $0xc8] sm:$0xff] %v322_v25  ;;  %v326_v27 = vld [vmem:[%s1062_s26 + $0x1b0] sm:$0xff] }
  0x1f   : > { %325 = vst [vmem:[%s1067_s27 + $0xd0] sm:$0xff] %v324_v26  ;;  %v328_v28 = vld [vmem:[%s1062_s26 + $0x1c0] sm:$0xff]  ;;  %v330_v29 = vld [vmem:[%s1062_s26 + $0x1d0] sm:$0xff]  ;;  %327 = vst [vmem:[%s1067_s27 + $0xd8] sm:$0xff] %v326_v27 }
  0x20   : > { %329 = vst [vmem:[%s1067_s27 + $0xe0] sm:$0xff] %v328_v28  ;;  %331 = vst [vmem:[%s1067_s27 + $0xe8] sm:$0xff] %v330_v29  ;;  %v332_v30 = vld [vmem:[%s1062_s26 + $0x1e0] sm:$0xff]  ;;  %v334_v31 = vld [vmem:[%s1062_s26 + $0x1f0] sm:$0xff] }
  0x21   : > { %333 = vst [vmem:[%s1067_s27 + $0xf0] sm:$0xff] %v332_v30  ;;  %335 = vst [vmem:[%s1067_s27 + $0xf8] sm:$0xff] %v334_v31 }
  0x22 PF: > { %p827_p6 = scmp.ge.s32.totalorder %s997_s16, 1  ;;  %p348_p7 = scmp.lt.s32.totalorder %s997_s16, 3 }
  0x24   : > { %p349_p8 = pnand %p827_p6, %p348_p7 }
  0x25   : > { %s355_s28 = sand.u32 (!%p349_p8), 1, %s981_s12   ;;  %v1136_v32 = vld [vmem:[%s1198_s0] sm:$0xff] (!%p349_p8)  ;;  %s829_s6 = sshll.u32 (!%p349_p8), %s989_s14, 1  ;;  %v682_v3 = vlaneseq (!%p349_p8) }
  0x26   : > { %352 = sbr.rel (%p349_p8) target bundleno = 321 (0x141), region = 66  ;;  %s828_s4 = sshll.u32 (!%p349_p8), %s355_s28, 8  ;;  %v833_v33 = vcombine.high (!%p349_p8), %v1136_v32, %v1136_v32  ;;  %v832_v2 = vcombine.low (!%p349_p8), %v1136_v32, %v1136_v32 }
  0x27   : > { %s1140_s5 = scalar_lea.vmem (!%p349_p8), [#allocation3], %s828_s4  ;;  %p408_p9 = scmp.lt.s32.totalorder (!%p349_p8), %s829_s6, 3  ;;  %v683_v4 = vshrl.u32 (!%p349_p8), %v682_v3, 7 }
  0x28   : > { %v909_v34 = vld [vmem:[%s1140_s5 + $0x4] ss:$8 sps:$4 sm:$0xff] (!%p349_p8)   ;;  %662 = vmatprep.mubr.bf16.mxu0 (!%p349_p8), %v833_v33  ;;  %v911_v35 = vld [vmem:[%s1140_s5] ss:$8 sps:$4 sm:$0xff] (!%p349_p8)   ;;  %v912_v36 = vld [vmem:[%s1140_s5 + $0x14] ss:$8 sps:$4 sm:$0xff] (!%p349_p8)  }
  0x29   : > { %630 = vmatprep.subr.bf16.mxu0 (!%p349_p8), %v909_v34  ;;  %v914_v37 = vld [vmem:[%s1140_s5 + $0x10] ss:$8 sps:$4 sm:$0xff] (!%p349_p8)   ;;  %v915_v38 = vld [vmem:[%s1140_s5 + $0x24] ss:$8 sps:$4 sm:$0xff] (!%p349_p8)   ;;  %v917_v39 = vld [vmem:[%s1140_s5 + $0x20] ss:$8 sps:$4 sm:$0xff] (!%p349_p8)  }
  0x2a   : > { %631 = vmatpush1.bf16.msra.mxu0 (!%p349_p8), %v911_v35  ;;  %v918_v40 = vld [vmem:[%s1140_s5 + $0x34] ss:$8 sps:$4 sm:$0xff] (!%p349_p8)   ;;  %v920_v41 = vld [vmem:[%s1140_s5 + $0x30] ss:$8 sps:$4 sm:$0xff] (!%p349_p8)   ;;  %v921_v42 = vld [vmem:[%s1140_s5 + $0x44] ss:$8 sps:$4 sm:$0xff] (!%p349_p8)  }
  0x2b   : > { %632 = vmatprep.subr.bf16.mxu0 (!%p349_p8), %v912_v36  ;;  %v923_v43 = vld [vmem:[%s1140_s5 + $0x40] ss:$8 sps:$4 sm:$0xff] (!%p349_p8)   ;;  %v924_v44 = vld [vmem:[%s1140_s5 + $0x54] ss:$8 sps:$4 sm:$0xff] (!%p349_p8)   ;;  %v926_v45 = vld [vmem:[%s1140_s5 + $0x50] ss:$8 sps:$4 sm:$0xff] (!%p349_p8)  }
  0x2c   : > { %v927_v46 = vld [vmem:[%s1140_s5 + $0x64] ss:$8 sps:$4 sm:$0xff] (!%p349_p8)   ;;  %v929_v47 = vld [vmem:[%s1140_s5 + $0x60] ss:$8 sps:$4 sm:$0xff] (!%p349_p8)   ;;  %v930_v48 = vld [vmem:[%s1140_s5 + $0x74] ss:$8 sps:$4 sm:$0xff] (!%p349_p8)  }
  0x2d   : > { %v932_v49 = vld [vmem:[%s1140_s5 + $0x70] ss:$8 sps:$4 sm:$0xff]   ;;  %v933_v50 = vld [vmem:[%s1140_s5 + $0x84] ss:$8 sps:$4 sm:$0xff]   ;;  %v935_v51 = vld [vmem:[%s1140_s5 + $0x80] ss:$8 sps:$4 sm:$0xff]  }
  0x2e   : > { %633 = vmatpush1.bf16.msra.mxu0 %v914_v37  ;;  %v936_v52 = vld [vmem:[%s1140_s5 + $0x94] ss:$8 sps:$4 sm:$0xff]   ;;  %v938_v53 = vld [vmem:[%s1140_s5 + $0x90] ss:$8 sps:$4 sm:$0xff]   ;;  %v939_v54 = vld [vmem:[%s1140_s5 + $0xa4] ss:$8 sps:$4 sm:$0xff]  }
  0x2f   : > { %634 = vmatprep.subr.bf16.mxu0 %v915_v38  ;;  %v941_v55 = vld [vmem:[%s1140_s5 + $0xa0] ss:$8 sps:$4 sm:$0xff]   ;;  %v942_v56 = vld [vmem:[%s1140_s5 + $0xb4] ss:$8 sps:$4 sm:$0xff]   ;;  %v944_v57 = vld [vmem:[%s1140_s5 + $0xb0] ss:$8 sps:$4 sm:$0xff]  }
  0x30   : > { %v945_v58 = vld [vmem:[%s1140_s5 + $0xc4] ss:$8 sps:$4 sm:$0xff]   ;;  %v947_v59 = vld [vmem:[%s1140_s5 + $0xc0] ss:$8 sps:$4 sm:$0xff]   ;;  %v948_v60 = vld [vmem:[%s1140_s5 + $0xd4] ss:$8 sps:$4 sm:$0xff]  }
  0x31   : > { %v950_v61 = vld [vmem:[%s1140_s5 + $0xd0] ss:$8 sps:$4 sm:$0xff]   ;;  %v951_v62 = vld [vmem:[%s1140_s5 + $0xe4] ss:$8 sps:$4 sm:$0xff]   ;;  %v953_v63 = vld [vmem:[%s1140_s5 + $0xe0] ss:$8 sps:$4 sm:$0xff]  }
  0x32   : > { %635 = vmatpush1.bf16.msra.mxu0 %v917_v39  ;;  %v954_v0 = vld [vmem:[%s1140_s5 + $0xf4] ss:$8 sps:$4 sm:$0xff]   ;;  %v956_v1 = vld [vmem:[%s1140_s5 + $0xf0] ss:$8 sps:$4 sm:$0xff]   ;;  %s1209_s6 = smov (!%p408_p9, %s829_s6), 3  ;;  %v684_v5 = vsub.s32 0, %v683_v4 }
  0x33   : > { %636 = vmatprep.subr.bf16.mxu0 %v918_v40  ;;  %s410_s9 = scalar_lea.vmem %s1200_s2, %s1209_s6  ;;  %v688_v7 = vsub.s32 1, %v683_v4  ;;  %s831_s10 = sshll.u32 %s1209_s6, 3 }
  0x34   : > { %v680_v6 = vld [vmem:[%s410_s9] sm:$0x3]  ;;  %s420_s18 = scalar_lea.vmem %s1201_s3, %s831_s10 }
  0x35   : > { %v685_v8 = vrot.slane %v680_v6, %v684_v5  ;;  %v689_v9 = vrot.slane %v680_v6, %v688_v7 }
  0x36   : > { %637 = vmatpush1.bf16.msra.mxu0 %v920_v41 }
  0x37   : > { %638 = vmatprep.subr.bf16.mxu0 %v921_v42 }
  0x3a   : > { %639 = vmatpush1.bf16.msra.mxu0 %v923_v43 }
  0x3b   : > { %640 = vmatprep.subr.bf16.mxu0 %v924_v44 }
  0x3e   : > { %641 = vmatpush1.bf16.msra.mxu0 %v926_v45 }
  0x3f   : > { %642 = vmatprep.subr.bf16.mxu0 %v927_v46 }
  0x42   : > { %643 = vmatpush1.bf16.msra.mxu0 %v929_v47 }
  0x43   : > { %644 = vmatprep.subr.bf16.mxu0 %v930_v48 }
  0x46   : > { %645 = vmatpush1.bf16.msra.mxu0 %v932_v49 }
  0x47   : > { %646 = vmatprep.subr.bf16.mxu0 %v933_v50 }
  0x4a   : > { %647 = vmatpush1.bf16.msra.mxu0 %v935_v51 }
  0x4b   : > { %648 = vmatprep.subr.bf16.mxu0 %v936_v52 }
  0x4e   : > { %649 = vmatpush1.bf16.msra.mxu0 %v938_v53 }
  0x4f   : > { %650 = vmatprep.subr.bf16.mxu0 %v939_v54 }
  0x52   : > { %651 = vmatpush1.bf16.msra.mxu0 %v941_v55 }
  0x53   : > { %652 = vmatprep.subr.bf16.mxu0 %v942_v56 }
  0x56   : > { %653 = vmatpush1.bf16.msra.mxu0 %v944_v57 }
  0x57   : > { %654 = vmatprep.subr.bf16.mxu0 %v945_v58 }
  0x5a   : > { %655 = vmatpush1.bf16.msra.mxu0 %v947_v59 }
  0x5b   : > { %656 = vmatprep.subr.bf16.mxu0 %v948_v60 }
  0x5e   : > { %657 = vmatpush1.bf16.msra.mxu0 %v950_v61 }
  0x5f   : > { %658 = vmatprep.subr.bf16.mxu0 %v951_v62 }
  0x62   : > { %659 = vmatpush1.bf16.msra.mxu0 %v953_v63 }
  0x63   : > { %660 = vmatprep.subr.bf16.mxu0 %v954_v0 }
  0x66   : > { %661 = vmatpush1.bf16.msra.mxu0 %v956_v1 }
  0x69   : > { %663 = vmatmul.mubr.bf16.vlgmr.msra.gmra.mrb[0].mxu0 %v832_v2 }
 0x13c   : > { %v664_v10 = vpop.f32.mrb[0].mxu0 }
 0x13d   : > { %v692_v11 = vadd.f32 %v685_v8, %v664_v10  ;;  %v666_v12 = vpop.f32.mrb[1].mxu0 }
 0x13e   : > { %v693_v13 = vadd.f32 %v689_v9, %v666_v12  ;;  %v668_v14 = vpop.f32.mrb[2].mxu0 }
 0x13f   : > { %694 = vst [vmem:[%s420_s18] sm:$0xff] %v692_v11  ;;  %v669_v15 = vpop.f32.mrb[3].mxu0 }
 0x140   : > { %695 = vst [vmem:[%s420_s18 + $0x8] sm:$0xff] %v693_v13 }
 0x141 PF: > { %s13_s16 = sadd.s32 1, %s997_s16   ;;  %s1202_s12 = smov %s985_s13 }
 0x142   : > { %p10_p10 = scmp.ge.s32.totalorder %s13_s16, 4   ;;  %s1203_s13 = smov %s1054_s20 }
 0x143   : > { %s1204_s14 = smov %s993_s15  ;;  %s1205_s15 = smov %s1207_s17 }
 0x144   :  { %12 = sbr.rel (!%p10_p10) target bundleno = 3 (0x3), region = 119 }

// kernel: _lambda_.39
= control target key start
LH: loop header
LB: loop body
LE: loop exit
PB: predicated region body
PF: predicated region fallthrough
CT: control target
= control target key end

     0   :  { %s1606_s15 = smov 0   ;;  %s1608_s16 = smov 0   ;;  %s1925_s0 = inlined_call_operand.vmem [shape: bf16[8,4608], index: 0, kind: input, shape index: {}]   ;;  %s1926_s1 = inlined_call_operand.vmem [shape: bf16[4608,512], index: 1, kind: input, shape index: {}]   ;;  %s1927_s2 = inlined_call_operand.vmem [shape: f32[1,512], index: 2, kind: input, shape index: {}]   ;;  %s1928_s3 = inlined_call_operand.vmem [shape: f32[8,512], index: 3, kind: input, shape index: {}]   ;;  %s1929_s4 = inlined_call_operand.vmem [shape: f32[8,512], index: 4, kind: output, shape index: {}]  }
   0x1   :  { %s1610_s17 = smov 0   ;;  %s1612_s18 = smov 0  }
   0x2   :  { %s1614_s19 = smov 0   ;;  %s1616_s20 = smov 0  }
   0x3   :  { %s1618_s21 = smov 0  }
   0x4 LB: > { %s26_s22 = sadd.s32 1, %s1570_s19  ;;  %s29_s23 = sadd.s32 1, %s1574_s20  ;;  %s1578_s21 = sphi %s1618_s21, %s14_s21   ;;  %s1574_s20 = sphi %s1616_s20, %s1935_s20   ;;  %s1570_s19 = sphi %s1614_s19, %s1934_s19   ;;  %s1566_s18 = sphi %s1612_s18, %s1933_s18   ;;  %s1562_s17 = sphi %s1610_s17, %s1932_s17   ;;  %s1558_s16 = sphi %s1608_s16, %s1931_s16   ;;  %s1554_s15 = sphi %s1606_s15, %s1930_s15  }
   0x5   : > { %p27_p0 = scmp.ge.s32.totalorder %s26_s22, 9  ;;  %p77_p1 = scmp.ne.s32.totalorder %s1558_s16, %s1554_s15 }
   0x6   : > { %p78_p2 = scmp.eq.s32.totalorder %s1578_s21, 0  ;;  %s70_s27 = sadd.s32 1, %s1558_s16 }
   0x7   : > { %s1937_s22 = smov (%p27_p0, %s26_s22), 0  ;;  %s1939_s23 = smov (!%p27_p0, %s29_s23), %s1574_s20 }
   0x8   : > { %p79_p3 = por %p78_p2, %p77_p1  ;;  %p31_p4 = scmp.ge.s32.totalorder %s1939_s23, 2 }
   0x9   : > { %s65_s24 = ssub.s32 %s1570_s19, %s1937_s22  ;;  %p1279_p6 = scmp.ge.s32.totalorder %s1578_s21, 18 }
   0xa   : > { %s1941_s23 = smov (%p31_p4, %s1939_s23), 0 }
   0xb   : > { %s66_s25 = ssub.s32 %s1574_s20, %s1941_s23  ;;  %185 = sbr.rel (%p1279_p6) target bundleno = 57 (0x39), region = 16 }
   0xc   : > { %s67_s26 = sor.u32 %s66_s25, %s65_s24 }
   0xd   : > { %p68_p5 = scmp.eq.s32.totalorder %s67_s26, 0 }
   0xf   : > { %s1657_s28 = scalar_select %p68_p5, %s1558_s16, %s70_s27  }
  0x12   : > { %201 = sbr.rel (!%p79_p3) target bundleno = 57 (0x39), region = 24  ;;  %s203_s29 = sand.u32 (%p79_p3), 1, %s1558_s16  }
  0x13   : > { %s1282_s30 = sshll.u32 (%p79_p3), %s1574_s20, 1  ;;  %s1280_s5 = sshll.u32 (%p79_p3), %s203_s29, 9 }
  0x14   : > { %s1366_s6 = sshll.u32 (%p79_p3), %s1570_s19, 8  ;;  %s1671_s12 = scalar_lea.vmem (%p79_p3), [#allocation3], %s1280_s5 }
  0x15   : > { %s209_s7 = sadd.s32 (%p79_p3), %s1366_s6, %s1282_s30 }
  0x16   : > { %s1284_s8 = sshll.u32 (%p79_p3), %s209_s7, 2 }
  0x17   : > { %s1666_s11 = scalar_lea.vmem (%p79_p3), %s1926_s1, %s1284_s8 }
  0x18   : > { %v365_v0 = vld [vmem:[%s1666_s11] sm:$0xff] (%p79_p3)  ;;  %v367_v1 = vld [vmem:[%s1666_s11 + $0x10] sm:$0xff] (%p79_p3) }
  0x19   : > { %v369_v2 = vld [vmem:[%s1666_s11 + $0x20] sm:$0xff]  ;;  %366 = vst [vmem:[%s1671_s12] sm:$0xff] %v365_v0  ;;  %368 = vst [vmem:[%s1671_s12 + $0x8] sm:$0xff] %v367_v1  ;;  %v371_v3 = vld [vmem:[%s1666_s11 + $0x30] sm:$0xff] }
  0x1a   : > { %370 = vst [vmem:[%s1671_s12 + $0x10] sm:$0xff] %v369_v2  ;;  %v373_v4 = vld [vmem:[%s1666_s11 + $0x40] sm:$0xff]  ;;  %v375_v5 = vld [vmem:[%s1666_s11 + $0x50] sm:$0xff]  ;;  %372 = vst [vmem:[%s1671_s12 + $0x18] sm:$0xff] %v371_v3 }
  0x1b   : > { %374 = vst [vmem:[%s1671_s12 + $0x20] sm:$0xff] %v373_v4  ;;  %376 = vst [vmem:[%s1671_s12 + $0x28] sm:$0xff] %v375_v5  ;;  %v377_v6 = vld [vmem:[%s1666_s11 + $0x60] sm:$0xff]  ;;  %v379_v7 = vld [vmem:[%s1666_s11 + $0x70] sm:$0xff] }
  0x1c   : > { %v381_v8 = vld [vmem:[%s1666_s11 + $0x80] sm:$0xff]  ;;  %378 = vst [vmem:[%s1671_s12 + $0x30] sm:$0xff] %v377_v6  ;;  %380 = vst [vmem:[%s1671_s12 + $0x38] sm:$0xff] %v379_v7  ;;  %v383_v9 = vld [vmem:[%s1666_s11 + $0x90] sm:$0xff] }
  0x1d   : > { %382 = vst [vmem:[%s1671_s12 + $0x40] sm:$0xff] %v381_v8  ;;  %v385_v10 = vld [vmem:[%s1666_s11 + $0xa0] sm:$0xff]  ;;  %v387_v11 = vld [vmem:[%s1666_s11 + $0xb0] sm:$0xff]  ;;  %384 = vst [vmem:[%s1671_s12 + $0x48] sm:$0xff] %v383_v9 }
  0x1e   : > { %386 = vst [vmem:[%s1671_s12 + $0x50] sm:$0xff] %v385_v10  ;;  %388 = vst [vmem:[%s1671_s12 + $0x58] sm:$0xff] %v387_v11  ;;  %v389_v12 = vld [vmem:[%s1666_s11 + $0xc0] sm:$0xff]  ;;  %v391_v13 = vld [vmem:[%s1666_s11 + $0xd0] sm:$0xff] }
  0x1f   : > { %v393_v14 = vld [vmem:[%s1666_s11 + $0xe0] sm:$0xff]  ;;  %390 = vst [vmem:[%s1671_s12 + $0x60] sm:$0xff] %v389_v12  ;;  %392 = vst [vmem:[%s1671_s12 + $0x68] sm:$0xff] %v391_v13  ;;  %v395_v15 = vld [vmem:[%s1666_s11 + $0xf0] sm:$0xff] }
  0x20   : > { %394 = vst [vmem:[%s1671_s12 + $0x70] sm:$0xff] %v393_v14  ;;  %v397_v16 = vld [vmem:[%s1666_s11 + $0x100] sm:$0xff]  ;;  %v399_v17 = vld [vmem:[%s1666_s11 + $0x110] sm:$0xff]  ;;  %396 = vst [vmem:[%s1671_s12 + $0x78] sm:$0xff] %v395_v15 }
  0x21   : > { %398 = vst [vmem:[%s1671_s12 + $0x80] sm:$0xff] %v397_v16  ;;  %400 = vst [vmem:[%s1671_s12 + $0x88] sm:$0xff] %v399_v17  ;;  %v401_v18 = vld [vmem:[%s1666_s11 + $0x120] sm:$0xff]  ;;  %v403_v19 = vld [vmem:[%s1666_s11 + $0x130] sm:$0xff] }
  0x22   : > { %v405_v20 = vld [vmem:[%s1666_s11 + $0x140] sm:$0xff]  ;;  %402 = vst [vmem:[%s1671_s12 + $0x90] sm:$0xff] %v401_v18  ;;  %404 = vst [vmem:[%s1671_s12 + $0x98] sm:$0xff] %v403_v19  ;;  %v407_v21 = vld [vmem:[%s1666_s11 + $0x150] sm:$0xff] }
  0x23   : > { %406 = vst [vmem:[%s1671_s12 + $0xa0] sm:$0xff] %v405_v20  ;;  %v409_v22 = vld [vmem:[%s1666_s11 + $0x160] sm:$0xff]  ;;  %v411_v23 = vld [vmem:[%s1666_s11 + $0x170] sm:$0xff]  ;;  %408 = vst [vmem:[%s1671_s12 + $0xa8] sm:$0xff] %v407_v21 }
  0x24   : > { %410 = vst [vmem:[%s1671_s12 + $0xb0] sm:$0xff] %v409_v22  ;;  %412 = vst [vmem:[%s1671_s12 + $0xb8] sm:$0xff] %v411_v23  ;;  %v413_v24 = vld [vmem:[%s1666_s11 + $0x180] sm:$0xff]  ;;  %v415_v25 = vld [vmem:[%s1666_s11 + $0x190] sm:$0xff] }
  0x25   : > { %v417_v26 = vld [vmem:[%s1666_s11 + $0x1a0] sm:$0xff]  ;;  %414 = vst [vmem:[%s1671_s12 + $0xc0] sm:$0xff] %v413_v24  ;;  %416 = vst [vmem:[%s1671_s12 + $0xc8] sm:$0xff] %v415_v25  ;;  %v419_v27 = vld [vmem:[%s1666_s11 + $0x1b0] sm:$0xff] }
  0x26   : > { %418 = vst [vmem:[%s1671_s12 + $0xd0] sm:$0xff] %v417_v26  ;;  %v421_v28 = vld [vmem:[%s1666_s11 + $0x1c0] sm:$0xff]  ;;  %v423_v29 = vld [vmem:[%s1666_s11 + $0x1d0] sm:$0xff]  ;;  %420 = vst [vmem:[%s1671_s12 + $0xd8] sm:$0xff] %v419_v27 }
  0x27   : > { %422 = vst [vmem:[%s1671_s12 + $0xe0] sm:$0xff] %v421_v28  ;;  %424 = vst [vmem:[%s1671_s12 + $0xe8] sm:$0xff] %v423_v29  ;;  %v425_v30 = vld [vmem:[%s1666_s11 + $0x1e0] sm:$0xff]  ;;  %v427_v31 = vld [vmem:[%s1666_s11 + $0x1f0] sm:$0xff] }
  0x28   : > { %v429_v32 = vld [vmem:[%s1666_s11 + $0x200] sm:$0xff]  ;;  %426 = vst [vmem:[%s1671_s12 + $0xf0] sm:$0xff] %v425_v30  ;;  %428 = vst [vmem:[%s1671_s12 + $0xf8] sm:$0xff] %v427_v31  ;;  %v431_v33 = vld [vmem:[%s1666_s11 + $0x210] sm:$0xff] }
  0x29   : > { %430 = vst [vmem:[%s1671_s12 + $0x100] sm:$0xff] %v429_v32  ;;  %v433_v34 = vld [vmem:[%s1666_s11 + $0x220] sm:$0xff]  ;;  %v435_v35 = vld [vmem:[%s1666_s11 + $0x230] sm:$0xff]  ;;  %432 = vst [vmem:[%s1671_s12 + $0x108] sm:$0xff] %v431_v33 }
  0x2a   : > { %434 = vst [vmem:[%s1671_s12 + $0x110] sm:$0xff] %v433_v34  ;;  %436 = vst [vmem:[%s1671_s12 + $0x118] sm:$0xff] %v435_v35  ;;  %v437_v36 = vld [vmem:[%s1666_s11 + $0x240] sm:$0xff]  ;;  %v439_v37 = vld [vmem:[%s1666_s11 + $0x250] sm:$0xff] }
  0x2b   : > { %v441_v38 = vld [vmem:[%s1666_s11 + $0x260] sm:$0xff]  ;;  %438 = vst [vmem:[%s1671_s12 + $0x120] sm:$0xff] %v437_v36  ;;  %440 = vst [vmem:[%s1671_s12 + $0x128] sm:$0xff] %v439_v37  ;;  %v443_v39 = vld [vmem:[%s1666_s11 + $0x270] sm:$0xff] }
  0x2c   : > { %442 = vst [vmem:[%s1671_s12 + $0x130] sm:$0xff] %v441_v38  ;;  %v445_v40 = vld [vmem:[%s1666_s11 + $0x280] sm:$0xff]  ;;  %v447_v41 = vld [vmem:[%s1666_s11 + $0x290] sm:$0xff]  ;;  %444 = vst [vmem:[%s1671_s12 + $0x138] sm:$0xff] %v443_v39 }
  0x2d   : > { %446 = vst [vmem:[%s1671_s12 + $0x140] sm:$0xff] %v445_v40  ;;  %448 = vst [vmem:[%s1671_s12 + $0x148] sm:$0xff] %v447_v41  ;;  %v449_v42 = vld [vmem:[%s1666_s11 + $0x2a0] sm:$0xff]  ;;  %v451_v43 = vld [vmem:[%s1666_s11 + $0x2b0] sm:$0xff] }
  0x2e   : > { %v453_v44 = vld [vmem:[%s1666_s11 + $0x2c0] sm:$0xff]  ;;  %450 = vst [vmem:[%s1671_s12 + $0x150] sm:$0xff] %v449_v42  ;;  %452 = vst [vmem:[%s1671_s12 + $0x158] sm:$0xff] %v451_v43  ;;  %v455_v45 = vld [vmem:[%s1666_s11 + $0x2d0] sm:$0xff] }
  0x2f   : > { %454 = vst [vmem:[%s1671_s12 + $0x160] sm:$0xff] %v453_v44  ;;  %v457_v46 = vld [vmem:[%s1666_s11 + $0x2e0] sm:$0xff]  ;;  %v459_v47 = vld [vmem:[%s1666_s11 + $0x2f0] sm:$0xff]  ;;  %456 = vst [vmem:[%s1671_s12 + $0x168] sm:$0xff] %v455_v45 }
  0x30   : > { %458 = vst [vmem:[%s1671_s12 + $0x170] sm:$0xff] %v457_v46  ;;  %460 = vst [vmem:[%s1671_s12 + $0x178] sm:$0xff] %v459_v47  ;;  %v461_v48 = vld [vmem:[%s1666_s11 + $0x300] sm:$0xff]  ;;  %v463_v49 = vld [vmem:[%s1666_s11 + $0x310] sm:$0xff] }
  0x31   : > { %v465_v50 = vld [vmem:[%s1666_s11 + $0x320] sm:$0xff]  ;;  %462 = vst [vmem:[%s1671_s12 + $0x180] sm:$0xff] %v461_v48  ;;  %464 = vst [vmem:[%s1671_s12 + $0x188] sm:$0xff] %v463_v49  ;;  %v467_v51 = vld [vmem:[%s1666_s11 + $0x330] sm:$0xff] }
  0x32   : > { %466 = vst [vmem:[%s1671_s12 + $0x190] sm:$0xff] %v465_v50  ;;  %v469_v52 = vld [vmem:[%s1666_s11 + $0x340] sm:$0xff]  ;;  %v471_v53 = vld [vmem:[%s1666_s11 + $0x350] sm:$0xff]  ;;  %468 = vst [vmem:[%s1671_s12 + $0x198] sm:$0xff] %v467_v51 }
  0x33   : > { %470 = vst [vmem:[%s1671_s12 + $0x1a0] sm:$0xff] %v469_v52  ;;  %472 = vst [vmem:[%s1671_s12 + $0x1a8] sm:$0xff] %v471_v53  ;;  %v473_v54 = vld [vmem:[%s1666_s11 + $0x360] sm:$0xff]  ;;  %v475_v55 = vld [vmem:[%s1666_s11 + $0x370] sm:$0xff] }
  0x34   : > { %v477_v56 = vld [vmem:[%s1666_s11 + $0x380] sm:$0xff]  ;;  %474 = vst [vmem:[%s1671_s12 + $0x1b0] sm:$0xff] %v473_v54  ;;  %476 = vst [vmem:[%s1671_s12 + $0x1b8] sm:$0xff] %v475_v55  ;;  %v479_v57 = vld [vmem:[%s1666_s11 + $0x390] sm:$0xff] }
  0x35   : > { %478 = vst [vmem:[%s1671_s12 + $0x1c0] sm:$0xff] %v477_v56  ;;  %v481_v58 = vld [vmem:[%s1666_s11 + $0x3a0] sm:$0xff]  ;;  %v483_v59 = vld [vmem:[%s1666_s11 + $0x3b0] sm:$0xff]  ;;  %480 = vst [vmem:[%s1671_s12 + $0x1c8] sm:$0xff] %v479_v57 }
  0x36   : > { %482 = vst [vmem:[%s1671_s12 + $0x1d0] sm:$0xff] %v481_v58  ;;  %484 = vst [vmem:[%s1671_s12 + $0x1d8] sm:$0xff] %v483_v59  ;;  %v485_v60 = vld [vmem:[%s1666_s11 + $0x3c0] sm:$0xff]  ;;  %v487_v61 = vld [vmem:[%s1666_s11 + $0x3d0] sm:$0xff] }
  0x37   : > { %v489_v62 = vld [vmem:[%s1666_s11 + $0x3e0] sm:$0xff]  ;;  %486 = vst [vmem:[%s1671_s12 + $0x1e0] sm:$0xff] %v485_v60  ;;  %488 = vst [vmem:[%s1671_s12 + $0x1e8] sm:$0xff] %v487_v61  ;;  %v491_v63 = vld [vmem:[%s1666_s11 + $0x3f0] sm:$0xff] }
  0x38   : > { %490 = vst [vmem:[%s1671_s12 + $0x1f0] sm:$0xff] %v489_v62  ;;  %492 = vst [vmem:[%s1671_s12 + $0x1f8] sm:$0xff] %v491_v63 }
  0x39 PF: > { %p1285_p7 = scmp.ge.s32.totalorder %s1578_s21, 1  ;;  %p518_p8 = scmp.lt.s32.totalorder %s1578_s21, 19 }
  0x3b   : > { %p519_p9 = pnand %p1285_p7, %p518_p8 }
  0x3c   : > { %s525_s13 = sand.u32 (!%p519_p9), 1, %s1554_s15   ;;  %s1287_s14 = sshll.u32 (!%p519_p9), %s1562_s17, 2 }
  0x3d   : > { %522 = sbr.rel (%p519_p9) target bundleno = 377 (0x179), region = 70  ;;  %s1286_s24 = sshll.u32 (!%p519_p9), %s525_s13, 9 }
  0x3e   : > { %p579_p10 = scmp.lt.s32.totalorder (!%p519_p9), %s1287_s14, 35  ;;  %s1289_s25 = sshll.u32 (!%p519_p9), %s1566_s18, 1 }
  0x3f   : > { %p589_p11 = scmp.lt.s32.totalorder (!%p519_p9), %s1289_s25, 3  ;;  %s1825_s13 = scalar_lea.vmem (!%p519_p9), [#allocation3], %s1286_s24 }
  0x40   : > { %p1294_p12 = scmp.ne.s32.totalorder (!%p519_p9), %s1562_s17, 0 }
  0x44   : > { %s1943_s14 = smov (!%p579_p10, %s1287_s14), 35  ;;  %s1945_s25 = smov (!%p589_p11, %s1289_s25), 3 }
  0x45   : > { %s1288_s26 = sshll.u32 %s1943_s14, 2  ;;  %s591_s15 = scalar_lea.vmem %s1927_s2, %s1945_s25  ;;  %v1580_v0 = vmov (!%p1294_p12), 0.0  }
  0x46   : > { %s1806_s30 = scalar_lea.vmem %s1925_s0, %s1288_s26  ;;  %s1291_s7 = sshll.u32 %s1945_s25, 3  ;;  %617 = vst [vmem:[#allocation2] sm:$0xff] (!%p1294_p12), %v1580_v0  ;;  %618 = vst [vmem:[#allocation2 + $0x8] sm:$0xff] (!%p1294_p12), %v1580_v0 }
  0x47   : > { %s1818_s18 = scalar_lea.vmem %s1928_s3, %s1291_s7  ;;  %s1823_s12 = scalar_lea.vmem %s1929_s4, %s1291_s7 }
  0x48   : > { %616 = sbr.rel (%p1294_p12) target bundleno = 79 (0x4f), region = 78 }
  0x4f PF: > { %v1424_v1 = vld [vmem:[%s1825_s13 + $0x4] ss:$8 sps:$4 sm:$0xff]   ;;  %v1428_v3 = vld [vmem:[%s1825_s13] ss:$8 sps:$4 sm:$0xff]   ;;  %v1430_v5 = vld [vmem:[%s1825_s13 + $0x14] ss:$8 sps:$4 sm:$0xff]  }
  0x50   : > { %v1426_v2 = vld [vmem:[%s1825_s13 + $0x104] ss:$8 sps:$4 sm:$0xff]   ;;  %1021 = vmatprep.subr.bf16.mxu0 %v1424_v1  ;;  %v1429_v4 = vld [vmem:[%s1825_s13 + $0x100] ss:$8 sps:$4 sm:$0xff]   ;;  %v1432_v6 = vld [vmem:[%s1825_s13 + $0x114] ss:$8 sps:$4 sm:$0xff]  }
  0x51   : > { %1062 = vmatprep.subr.bf16.mxu1 %v1426_v2  ;;  %1022 = vmatpush1.bf16.msra.mxu0 %v1428_v3  ;;  %v1434_v7 = vld [vmem:[%s1825_s13 + $0x10] ss:$8 sps:$4 sm:$0xff]   ;;  %v1436_v9 = vld [vmem:[%s1825_s13 + $0x24] ss:$8 sps:$4 sm:$0xff]   ;;  %v1440_v11 = vld [vmem:[%s1825_s13 + $0x20] ss:$8 sps:$4 sm:$0xff]  }
  0x52   : > { %1063 = vmatpush1.bf16.msra.mxu1 %v1429_v4  ;;  %1023 = vmatprep.subr.bf16.mxu0 %v1430_v5  ;;  %v1435_v8 = vld [vmem:[%s1825_s13 + $0x110] ss:$8 sps:$4 sm:$0xff]   ;;  %v1438_v10 = vld [vmem:[%s1825_s13 + $0x124] ss:$8 sps:$4 sm:$0xff]   ;;  %v1441_v12 = vld [vmem:[%s1825_s13 + $0x120] ss:$8 sps:$4 sm:$0xff]  }
  0x53   : > { %1064 = vmatprep.subr.bf16.mxu1 %v1432_v6  ;;  %v1442_v13 = vld [vmem:[%s1825_s13 + $0x34] ss:$8 sps:$4 sm:$0xff]   ;;  %v1446_v15 = vld [vmem:[%s1825_s13 + $0x30] ss:$8 sps:$4 sm:$0xff]   ;;  %v1448_v17 = vld [vmem:[%s1825_s13 + $0x44] ss:$8 sps:$4 sm:$0xff]  }
  0x54   : > { %v1444_v14 = vld [vmem:[%s1825_s13 + $0x134] ss:$8 sps:$4 sm:$0xff]   ;;  %v1447_v16 = vld [vmem:[%s1825_s13 + $0x130] ss:$8 sps:$4 sm:$0xff]   ;;  %v1450_v18 = vld [vmem:[%s1825_s13 + $0x144] ss:$8 sps:$4 sm:$0xff]  }
  0x55   : > { %1024 = vmatpush1.bf16.msra.mxu0 %v1434_v7  ;;  %v1452_v19 = vld [vmem:[%s1825_s13 + $0x40] ss:$8 sps:$4 sm:$0xff]   ;;  %v1454_v21 = vld [vmem:[%s1825_s13 + $0x54] ss:$8 sps:$4 sm:$0xff]   ;;  %v1458_v23 = vld [vmem:[%s1825_s13 + $0x50] ss:$8 sps:$4 sm:$0xff]  }
  0x56   : > { %1065 = vmatpush1.bf16.msra.mxu1 %v1435_v8  ;;  %1025 = vmatprep.subr.bf16.mxu0 %v1436_v9  ;;  %v1453_v20 = vld [vmem:[%s1825_s13 + $0x140] ss:$8 sps:$4 sm:$0xff]   ;;  %v1456_v22 = vld [vmem:[%s1825_s13 + $0x154] ss:$8 sps:$4 sm:$0xff]   ;;  %v1459_v24 = vld [vmem:[%s1825_s13 + $0x150] ss:$8 sps:$4 sm:$0xff]  }
  0x57   : > { %1066 = vmatprep.subr.bf16.mxu1 %v1438_v10  ;;  %v1460_v25 = vld [vmem:[%s1825_s13 + $0x64] ss:$8 sps:$4 sm:$0xff]   ;;  %v1464_v27 = vld [vmem:[%s1825_s13 + $0x60] ss:$8 sps:$4 sm:$0xff]   ;;  %v1466_v29 = vld [vmem:[%s1825_s13 + $0x74] ss:$8 sps:$4 sm:$0xff]  }
  0x58   : > { %v1462_v26 = vld [vmem:[%s1825_s13 + $0x164] ss:$8 sps:$4 sm:$0xff]   ;;  %v1465_v28 = vld [vmem:[%s1825_s13 + $0x160] ss:$8 sps:$4 sm:$0xff]   ;;  %v1468_v30 = vld [vmem:[%s1825_s13 + $0x174] ss:$8 sps:$4 sm:$0xff]  }
  0x59   : > { %1026 = vmatpush1.bf16.msra.mxu0 %v1440_v11  ;;  %v1470_v31 = vld [vmem:[%s1825_s13 + $0x70] ss:$8 sps:$4 sm:$0xff]   ;;  %v1472_v33 = vld [vmem:[%s1825_s13 + $0x84] ss:$8 sps:$4 sm:$0xff]   ;;  %v1476_v35 = vld [vmem:[%s1825_s13 + $0x80] ss:$8 sps:$4 sm:$0xff]  }
  0x5a   : > { %1067 = vmatpush1.bf16.msra.mxu1 %v1441_v12  ;;  %1027 = vmatprep.subr.bf16.mxu0 %v1442_v13  ;;  %v1471_v32 = vld [vmem:[%s1825_s13 + $0x170] ss:$8 sps:$4 sm:$0xff]   ;;  %v1474_v34 = vld [vmem:[%s1825_s13 + $0x184] ss:$8 sps:$4 sm:$0xff]   ;;  %v1477_v36 = vld [vmem:[%s1825_s13 + $0x180] ss:$8 sps:$4 sm:$0xff]  }
  0x5b   : > { %1068 = vmatprep.subr.bf16.mxu1 %v1444_v14  ;;  %v1478_v37 = vld [vmem:[%s1825_s13 + $0x94] ss:$8 sps:$4 sm:$0xff]   ;;  %v1482_v39 = vld [vmem:[%s1825_s13 + $0x90] ss:$8 sps:$4 sm:$0xff]   ;;  %v1484_v41 = vld [vmem:[%s1825_s13 + $0xa4] ss:$8 sps:$4 sm:$0xff]  }
  0x5c   : > { %v1480_v38 = vld [vmem:[%s1825_s13 + $0x194] ss:$8 sps:$4 sm:$0xff]   ;;  %v1483_v40 = vld [vmem:[%s1825_s13 + $0x190] ss:$8 sps:$4 sm:$0xff]   ;;  %v1486_v42 = vld [vmem:[%s1825_s13 + $0x1a4] ss:$8 sps:$4 sm:$0xff]  }
  0x5d   : > { %1028 = vmatpush1.bf16.msra.mxu0 %v1446_v15  ;;  %v1488_v43 = vld [vmem:[%s1825_s13 + $0xa0] ss:$8 sps:$4 sm:$0xff]   ;;  %v1490_v45 = vld [vmem:[%s1825_s13 + $0xb4] ss:$8 sps:$4 sm:$0xff]   ;;  %v1494_v50 = vld [vmem:[%s1825_s13 + $0xb0] ss:$8 sps:$4 sm:$0xff]  }
  0x5e   : > { %1069 = vmatpush1.bf16.msra.mxu1 %v1447_v16  ;;  %1029 = vmatprep.subr.bf16.mxu0 %v1448_v17  ;;  %v1489_v44 = vld [vmem:[%s1825_s13 + $0x1a0] ss:$8 sps:$4 sm:$0xff]   ;;  %v1492_v46 = vld [vmem:[%s1825_s13 + $0x1b4] ss:$8 sps:$4 sm:$0xff]   ;;  %v1495_v51 = vld [vmem:[%s1825_s13 + $0x1b0] ss:$8 sps:$4 sm:$0xff]  }
  0x5f   : > { %1070 = vmatprep.subr.bf16.mxu1 %v1450_v18  ;;  %v621_v47 = vld [vmem:[%s1806_s30] sm:$0xff]  ;;  %v622_v49 = vld [vmem:[%s1806_s30 + $0x8] sm:$0xff]  ;;  %v1496_v53 = vld [vmem:[%s1825_s13 + $0xc4] ss:$8 sps:$4 sm:$0xff]   ;;  %p1363_p13 = scmp.ne.s32.totalorder %s1562_s17, 8 }
  0x60   : > { %v1296_v48 = vcombine.high %v621_v47, %v621_v47  ;;  %v1298_v52 = vcombine.high %v622_v49, %v622_v49  ;;  %v1498_v54 = vld [vmem:[%s1825_s13 + $0x1c4] ss:$8 sps:$4 sm:$0xff]   ;;  %v1500_v55 = vld [vmem:[%s1825_s13 + $0xc0] ss:$8 sps:$4 sm:$0xff]   ;;  %v1502_v57 = vld [vmem:[%s1825_s13 + $0xd4] ss:$8 sps:$4 sm:$0xff]   ;;  %v1295_v5 = vcombine.low %v621_v47, %v621_v47  ;;  %v1297_v6 = vcombine.low %v622_v49, %v622_v49 }
  0x61   : > { %1030 = vmatpush1.bf16.msra.mxu0 %v1452_v19  ;;  %v1501_v56 = vld [vmem:[%s1825_s13 + $0x1c0] ss:$8 sps:$4 sm:$0xff]   ;;  %v1504_v58 = vld [vmem:[%s1825_s13 + $0x1d4] ss:$8 sps:$4 sm:$0xff]   ;;  %v1506_v59 = vld [vmem:[%s1825_s13 + $0xd0] ss:$8 sps:$4 sm:$0xff]  }
  0x62   : > { %1071 = vmatpush1.bf16.msra.mxu1 %v1453_v20  ;;  %1031 = vmatprep.subr.bf16.mxu0 %v1454_v21  ;;  %v1507_v60 = vld [vmem:[%s1825_s13 + $0x1d0] ss:$8 sps:$4 sm:$0xff]   ;;  %v1508_v61 = vld [vmem:[%s1825_s13 + $0xe4] ss:$8 sps:$4 sm:$0xff]   ;;  %v1512_v63 = vld [vmem:[%s1825_s13 + $0xe0] ss:$8 sps:$4 sm:$0xff]   ;;  %v1115_v21 = vlaneseq (!%p1363_p13) }
  0x63   : > { %1072 = vmatprep.subr.bf16.mxu1 %v1456_v22  ;;  %1053 = vmatprep.mubr.bf16.mxu0 %v1296_v48  ;;  %v1510_v62 = vld [vmem:[%s1825_s13 + $0x1e4] ss:$8 sps:$4 sm:$0xff]   ;;  %v1513_v0 = vld [vmem:[%s1825_s13 + $0x1e0] ss:$8 sps:$4 sm:$0xff]   ;;  %v1514_v1 = vld [vmem:[%s1825_s13 + $0xf4] ss:$8 sps:$4 sm:$0xff]  }
  0x64   : > { %1094 = vmatprep.mubr.bf16.mxu1 %v1298_v52  ;;  %v1516_v2 = vld [vmem:[%s1825_s13 + $0x1f4] ss:$8 sps:$4 sm:$0xff]   ;;  %v1518_v3 = vld [vmem:[%s1825_s13 + $0xf0] ss:$8 sps:$4 sm:$0xff]   ;;  %v1116_v22 = vshrl.u32 (!%p1363_p13), %v1115_v21, 7 }
  0x65   : > { %1032 = vmatpush1.bf16.msra.mxu0 %v1458_v23  ;;  %v1519_v4 = vld [vmem:[%s1825_s13 + $0x1f0] ss:$8 sps:$4 sm:$0xff]  }
  0x66   : > { %1073 = vmatpush1.bf16.msra.mxu1 %v1459_v24  ;;  %1033 = vmatprep.subr.bf16.mxu0 %v1460_v25  ;;  %v619_v8 = vld [vmem:[#allocation2] sm:$0xff]  ;;  %v620_v12 = vld [vmem:[#allocation2 + $0x8] sm:$0xff]  ;;  %v1117_v24 = vsub.s32 (!%p1363_p13), 0, %v1116_v22  ;;  %v1121_v25 = vsub.s32 (!%p1363_p13), 1, %v1116_v22 }
  0x67   : > { %1074 = vmatprep.subr.bf16.mxu1 %v1462_v26  ;;  %v1113_v23 = vld [vmem:[%s591_s15] sm:$0x3] (!%p1363_p13) }
  0x69   : > { %1034 = vmatpush1.bf16.msra.mxu0 %v1464_v27 }
  0x6a   : > { %1075 = vmatpush1.bf16.msra.mxu1 %v1465_v28  ;;  %1035 = vmatprep.subr.bf16.mxu0 %v1466_v29  ;;  %v1118_v28 = vrot.slane (!%p1363_p13), %v1113_v23, %v1117_v24  ;;  %v1122_v29 = vrot.slane (!%p1363_p13), %v1113_v23, %v1121_v25 }
  0x6b   : > { %1076 = vmatprep.subr.bf16.mxu1 %v1468_v30  ;;  %v1127_v30 = vld [vmem:[%s1818_s18] sm:$0xff] (!%p1363_p13) }
  0x6d   : > { %1036 = vmatpush1.bf16.msra.mxu0 %v1470_v31  ;;  %v1128_v31 = vld [vmem:[%s1818_s18 + $0x8] sm:$0xff] (!%p1363_p13) }
  0x6e   : > { %1077 = vmatpush1.bf16.msra.mxu1 %v1471_v32  ;;  %1037 = vmatprep.subr.bf16.mxu0 %v1472_v33 }
  0x6f   : > { %1078 = vmatprep.subr.bf16.mxu1 %v1474_v34 }
  0x71   : > { %1038 = vmatpush1.bf16.msra.mxu0 %v1476_v35 }
  0x72   : > { %1079 = vmatpush1.bf16.msra.mxu1 %v1477_v36  ;;  %1039 = vmatprep.subr.bf16.mxu0 %v1478_v37 }
  0x73   : > { %1080 = vmatprep.subr.bf16.mxu1 %v1480_v38 }
  0x75   : > { %1040 = vmatpush1.bf16.msra.mxu0 %v1482_v39 }
  0x76   : > { %1081 = vmatpush1.bf16.msra.mxu1 %v1483_v40  ;;  %1041 = vmatprep.subr.bf16.mxu0 %v1484_v41 }
  0x77   : > { %1082 = vmatprep.subr.bf16.mxu1 %v1486_v42 }
  0x79   : > { %1042 = vmatpush1.bf16.msra.mxu0 %v1488_v43 }
  0x7a   : > { %1083 = vmatpush1.bf16.msra.mxu1 %v1489_v44  ;;  %1043 = vmatprep.subr.bf16.mxu0 %v1490_v45 }
  0x7b   : > { %1084 = vmatprep.subr.bf16.mxu1 %v1492_v46 }
  0x7d   : > { %1044 = vmatpush1.bf16.msra.mxu0 %v1494_v50 }
  0x7e   : > { %1085 = vmatpush1.bf16.msra.mxu1 %v1495_v51  ;;  %1045 = vmatprep.subr.bf16.mxu0 %v1496_v53 }
  0x7f   : > { %1086 = vmatprep.subr.bf16.mxu1 %v1498_v54 }
  0x81   : > { %1046 = vmatpush1.bf16.msra.mxu0 %v1500_v55 }
  0x82   : > { %1087 = vmatpush1.bf16.msra.mxu1 %v1501_v56  ;;  %1047 = vmatprep.subr.bf16.mxu0 %v1502_v57 }
  0x83   : > { %1088 = vmatprep.subr.bf16.mxu1 %v1504_v58 }
  0x85   : > { %1048 = vmatpush1.bf16.msra.mxu0 %v1506_v59 }
  0x86   : > { %1089 = vmatpush1.bf16.msra.mxu1 %v1507_v60  ;;  %1049 = vmatprep.subr.bf16.mxu0 %v1508_v61 }
  0x87   : > { %1090 = vmatprep.subr.bf16.mxu1 %v1510_v62 }
  0x89   : > { %1050 = vmatpush1.bf16.msra.mxu0 %v1512_v63 }
  0x8a   : > { %1091 = vmatpush1.bf16.msra.mxu1 %v1513_v0  ;;  %1051 = vmatprep.subr.bf16.mxu0 %v1514_v1 }
  0x8b   : > { %1092 = vmatprep.subr.bf16.mxu1 %v1516_v2 }
  0x8d   : > { %1052 = vmatpush1.bf16.msra.mxu0 %v1518_v3 }
  0x8e   : > { %1093 = vmatpush1.bf16.msra.mxu1 %v1519_v4 }
  0x90   : > { %1054 = vmatmul.mubr.bf16.vlgmr.msra.gmra.mrb[0].mxu0 %v1295_v5 }
  0x91   : > { %1095 = vmatmul.mubr.bf16.vlgmr.msra.gmra.mrb[0].mxu1 %v1297_v6 }
 0x163   : > { %v1055_v7 = vpop.f32.mrb[0].mxu0 }
 0x164   : > { %v1096_v9 = vpop.f32.mrb[0].mxu1  ;;  %v1057_v11 = vpop.f32.mrb[1].mxu0  ;;  %1110 = sbr.rel (%p1363_p13) target bundleno = 377 (0x179), region = 82 }
 0x165   : > { %v1097_v10 = vadd.f32 %v1096_v9, %v1055_v7  ;;  %v1098_v13 = vpop.f32.mrb[1].mxu1  ;;  %v1059_v15 = vpop.f32.mrb[2].mxu0 }
 0x166   : > { %v1099_v14 = vadd.f32 %v1098_v13, %v1057_v11  ;;  %v1100_v16 = vpop.f32.mrb[2].mxu1  ;;  %v1060_v18 = vpop.f32.mrb[3].mxu0 }
 0x167   : > { %v1103_v17 = vadd.f32 %v1097_v10, %v619_v8  ;;  %v1101_v19 = vpop.f32.mrb[3].mxu1 }
 0x168   : > { %v1104_v20 = vadd.f32 %v1099_v14, %v620_v12 }
 0x169   : > { %1105 = vst [vmem:[#allocation2] sm:$0xff] %v1103_v17 }
 0x16a   : > { %1106 = vst [vmem:[#allocation2 + $0x8] sm:$0xff] %v1104_v20 }
 0x170   : > { %v1111_v26 = vld [vmem:[#allocation2] sm:$0xff] }
 0x171   : > { %v1112_v27 = vld [vmem:[#allocation2 + $0x8] sm:$0xff]  ;;  %v1125_v32 = vadd.f32 %v1118_v28, %v1111_v26 }
 0x172   : > { %v1126_v33 = vadd.f32 %v1122_v29, %v1112_v27 }
 0x173   : > { %v1129_v34 = vadd.f32 %v1127_v30, %v1125_v32 }
 0x174   : > { %v1130_v35 = vadd.f32 %v1128_v31, %v1126_v33 }
 0x175   : > { %v1131_v36 = vmax.f32 %v1129_v34, 0.0 }
 0x176   : > { %v1132_v37 = vmax.f32 %v1130_v35, 0.0 }
 0x177   : > { %1133 = vst [vmem:[%s1823_s12] sm:$0xff] %v1131_v36 }
 0x178   : > { %1134 = vst [vmem:[%s1823_s12 + $0x8] sm:$0xff] %v1132_v37 }
 0x179 PF: > { %s14_s21 = sadd.s32 1, %s1578_s21   ;;  %s1930_s15 = smov %s1558_s16 }
 0x17a   : > { %p11_p0 = scmp.ge.s32.totalorder %s14_s21, 20   ;;  %s1931_s16 = smov %s1657_s28 }
 0x17b   : > { %s1932_s17 = smov %s1570_s19  ;;  %s1933_s18 = smov %s1574_s20 }
 0x17c   : > { %s1934_s19 = smov %s1937_s22  ;;  %s1935_s20 = smov %s1941_s23 }
 0x17d   :  { %13 = sbr.rel (!%p11_p0) target bundleno = 4 (0x4), region = 126 }

// kernel: _lambda_.40
= control target key start
LH: loop header
LB: loop body
LE: loop exit
PB: predicated region body
PF: predicated region fallthrough
CT: control target
= control target key end

     0   :  { %s1514_s12 = smov 0   ;;  %s1516_s13 = smov 0   ;;  %s1826_s0 = inlined_call_operand.vmem [shape: bf16[8,4608], index: 0, kind: input, shape index: {}]   ;;  %s1827_s1 = inlined_call_operand.vmem [shape: bf16[4608,512], index: 1, kind: input, shape index: {}]   ;;  %s1828_s2 = inlined_call_operand.vmem [shape: f32[1,512], index: 2, kind: input, shape index: {}]   ;;  %s1829_s3 = inlined_call_operand.vmem [shape: f32[8,512], index: 3, kind: output, shape index: {}]  }
   0x1   :  { %s1518_s14 = smov 0   ;;  %s1520_s15 = smov 0  }
   0x2   :  { %s1522_s16 = smov 0   ;;  %s1524_s17 = smov 0  }
   0x3   :  { %s1526_s18 = smov 0  }
   0x4 LB: > { %s25_s19 = sadd.s32 1, %s1483_s16  ;;  %s28_s20 = sadd.s32 1, %s1487_s17  ;;  %s1491_s18 = sphi %s1526_s18, %s13_s18   ;;  %s1487_s17 = sphi %s1524_s17, %s1835_s17   ;;  %s1483_s16 = sphi %s1522_s16, %s1834_s16   ;;  %s1479_s15 = sphi %s1520_s15, %s1833_s15   ;;  %s1475_s14 = sphi %s1518_s14, %s1832_s14   ;;  %s1471_s13 = sphi %s1516_s13, %s1831_s13   ;;  %s1467_s12 = sphi %s1514_s12, %s1830_s12  }
   0x5   : > { %p26_p0 = scmp.ge.s32.totalorder %s25_s19, 9  ;;  %p76_p1 = scmp.ne.s32.totalorder %s1471_s13, %s1467_s12 }
   0x6   : > { %p77_p2 = scmp.eq.s32.totalorder %s1491_s18, 0  ;;  %s69_s24 = sadd.s32 1, %s1471_s13 }
   0x7   : > { %s1837_s19 = smov (%p26_p0, %s25_s19), 0  ;;  %s1839_s20 = smov (!%p26_p0, %s28_s20), %s1487_s17 }
   0x8   : > { %p78_p3 = por %p77_p2, %p76_p1  ;;  %p30_p4 = scmp.ge.s32.totalorder %s1839_s20, 2 }
   0x9   : > { %s64_s21 = ssub.s32 %s1483_s16, %s1837_s19  ;;  %p1194_p6 = scmp.ge.s32.totalorder %s1491_s18, 18 }
   0xa   : > { %s1841_s20 = smov (%p30_p4, %s1839_s20), 0 }
   0xb   : > { %s65_s22 = ssub.s32 %s1487_s17, %s1841_s20  ;;  %156 = sbr.rel (%p1194_p6) target bundleno = 57 (0x39), region = 16 }
   0xc   : > { %s66_s23 = sor.u32 %s65_s22, %s64_s21 }
   0xd   : > { %p67_p5 = scmp.eq.s32.totalorder %s66_s23, 0 }
   0xf   : > { %s1565_s25 = scalar_select %p67_p5, %s1471_s13, %s69_s24  }
  0x12   : > { %172 = sbr.rel (!%p78_p3) target bundleno = 57 (0x39), region = 24  ;;  %s174_s26 = sand.u32 (%p78_p3), 1, %s1471_s13  }
  0x13   : > { %s1197_s27 = sshll.u32 (%p78_p3), %s1487_s17, 1  ;;  %s1195_s28 = sshll.u32 (%p78_p3), %s174_s26, 9 }
  0x14   : > { %s1279_s29 = sshll.u32 (%p78_p3), %s1483_s16, 8  ;;  %s1579_s8 = scalar_lea.vmem (%p78_p3), [#allocation3], %s1195_s28 }
  0x15   : > { %s180_s30 = sadd.s32 (%p78_p3), %s1279_s29, %s1197_s27 }
  0x16   : > { %s1199_s4 = sshll.u32 (%p78_p3), %s180_s30, 2 }
  0x17   : > { %s1574_s7 = scalar_lea.vmem (%p78_p3), %s1827_s1, %s1199_s4 }
  0x18   : > { %v336_v0 = vld [vmem:[%s1574_s7] sm:$0xff] (%p78_p3)  ;;  %v338_v1 = vld [vmem:[%s1574_s7 + $0x10] sm:$0xff] (%p78_p3) }
  0x19   : > { %v340_v2 = vld [vmem:[%s1574_s7 + $0x20] sm:$0xff]  ;;  %337 = vst [vmem:[%s1579_s8] sm:$0xff] %v336_v0  ;;  %339 = vst [vmem:[%s1579_s8 + $0x8] sm:$0xff] %v338_v1  ;;  %v342_v3 = vld [vmem:[%s1574_s7 + $0x30] sm:$0xff] }
  0x1a   : > { %341 = vst [vmem:[%s1579_s8 + $0x10] sm:$0xff] %v340_v2  ;;  %v344_v4 = vld [vmem:[%s1574_s7 + $0x40] sm:$0xff]  ;;  %v346_v5 = vld [vmem:[%s1574_s7 + $0x50] sm:$0xff]  ;;  %343 = vst [vmem:[%s1579_s8 + $0x18] sm:$0xff] %v342_v3 }
  0x1b   : > { %345 = vst [vmem:[%s1579_s8 + $0x20] sm:$0xff] %v344_v4  ;;  %347 = vst [vmem:[%s1579_s8 + $0x28] sm:$0xff] %v346_v5  ;;  %v348_v6 = vld [vmem:[%s1574_s7 + $0x60] sm:$0xff]  ;;  %v350_v7 = vld [vmem:[%s1574_s7 + $0x70] sm:$0xff] }
  0x1c   : > { %v352_v8 = vld [vmem:[%s1574_s7 + $0x80] sm:$0xff]  ;;  %349 = vst [vmem:[%s1579_s8 + $0x30] sm:$0xff] %v348_v6  ;;  %351 = vst [vmem:[%s1579_s8 + $0x38] sm:$0xff] %v350_v7  ;;  %v354_v9 = vld [vmem:[%s1574_s7 + $0x90] sm:$0xff] }
  0x1d   : > { %353 = vst [vmem:[%s1579_s8 + $0x40] sm:$0xff] %v352_v8  ;;  %v356_v10 = vld [vmem:[%s1574_s7 + $0xa0] sm:$0xff]  ;;  %v358_v11 = vld [vmem:[%s1574_s7 + $0xb0] sm:$0xff]  ;;  %355 = vst [vmem:[%s1579_s8 + $0x48] sm:$0xff] %v354_v9 }
  0x1e   : > { %357 = vst [vmem:[%s1579_s8 + $0x50] sm:$0xff] %v356_v10  ;;  %359 = vst [vmem:[%s1579_s8 + $0x58] sm:$0xff] %v358_v11  ;;  %v360_v12 = vld [vmem:[%s1574_s7 + $0xc0] sm:$0xff]  ;;  %v362_v13 = vld [vmem:[%s1574_s7 + $0xd0] sm:$0xff] }
  0x1f   : > { %v364_v14 = vld [vmem:[%s1574_s7 + $0xe0] sm:$0xff]  ;;  %361 = vst [vmem:[%s1579_s8 + $0x60] sm:$0xff] %v360_v12  ;;  %363 = vst [vmem:[%s1579_s8 + $0x68] sm:$0xff] %v362_v13  ;;  %v366_v15 = vld [vmem:[%s1574_s7 + $0xf0] sm:$0xff] }
  0x20   : > { %365 = vst [vmem:[%s1579_s8 + $0x70] sm:$0xff] %v364_v14  ;;  %v368_v16 = vld [vmem:[%s1574_s7 + $0x100] sm:$0xff]  ;;  %v370_v17 = vld [vmem:[%s1574_s7 + $0x110] sm:$0xff]  ;;  %367 = vst [vmem:[%s1579_s8 + $0x78] sm:$0xff] %v366_v15 }
  0x21   : > { %369 = vst [vmem:[%s1579_s8 + $0x80] sm:$0xff] %v368_v16  ;;  %371 = vst [vmem:[%s1579_s8 + $0x88] sm:$0xff] %v370_v17  ;;  %v372_v18 = vld [vmem:[%s1574_s7 + $0x120] sm:$0xff]  ;;  %v374_v19 = vld [vmem:[%s1574_s7 + $0x130] sm:$0xff] }
  0x22   : > { %v376_v20 = vld [vmem:[%s1574_s7 + $0x140] sm:$0xff]  ;;  %373 = vst [vmem:[%s1579_s8 + $0x90] sm:$0xff] %v372_v18  ;;  %375 = vst [vmem:[%s1579_s8 + $0x98] sm:$0xff] %v374_v19  ;;  %v378_v21 = vld [vmem:[%s1574_s7 + $0x150] sm:$0xff] }
  0x23   : > { %377 = vst [vmem:[%s1579_s8 + $0xa0] sm:$0xff] %v376_v20  ;;  %v380_v22 = vld [vmem:[%s1574_s7 + $0x160] sm:$0xff]  ;;  %v382_v23 = vld [vmem:[%s1574_s7 + $0x170] sm:$0xff]  ;;  %379 = vst [vmem:[%s1579_s8 + $0xa8] sm:$0xff] %v378_v21 }
  0x24   : > { %381 = vst [vmem:[%s1579_s8 + $0xb0] sm:$0xff] %v380_v22  ;;  %383 = vst [vmem:[%s1579_s8 + $0xb8] sm:$0xff] %v382_v23  ;;  %v384_v24 = vld [vmem:[%s1574_s7 + $0x180] sm:$0xff]  ;;  %v386_v25 = vld [vmem:[%s1574_s7 + $0x190] sm:$0xff] }
  0x25   : > { %v388_v26 = vld [vmem:[%s1574_s7 + $0x1a0] sm:$0xff]  ;;  %385 = vst [vmem:[%s1579_s8 + $0xc0] sm:$0xff] %v384_v24  ;;  %387 = vst [vmem:[%s1579_s8 + $0xc8] sm:$0xff] %v386_v25  ;;  %v390_v27 = vld [vmem:[%s1574_s7 + $0x1b0] sm:$0xff] }
  0x26   : > { %389 = vst [vmem:[%s1579_s8 + $0xd0] sm:$0xff] %v388_v26  ;;  %v392_v28 = vld [vmem:[%s1574_s7 + $0x1c0] sm:$0xff]  ;;  %v394_v29 = vld [vmem:[%s1574_s7 + $0x1d0] sm:$0xff]  ;;  %391 = vst [vmem:[%s1579_s8 + $0xd8] sm:$0xff] %v390_v27 }
  0x27   : > { %393 = vst [vmem:[%s1579_s8 + $0xe0] sm:$0xff] %v392_v28  ;;  %395 = vst [vmem:[%s1579_s8 + $0xe8] sm:$0xff] %v394_v29  ;;  %v396_v30 = vld [vmem:[%s1574_s7 + $0x1e0] sm:$0xff]  ;;  %v398_v31 = vld [vmem:[%s1574_s7 + $0x1f0] sm:$0xff] }
  0x28   : > { %v400_v32 = vld [vmem:[%s1574_s7 + $0x200] sm:$0xff]  ;;  %397 = vst [vmem:[%s1579_s8 + $0xf0] sm:$0xff] %v396_v30  ;;  %399 = vst [vmem:[%s1579_s8 + $0xf8] sm:$0xff] %v398_v31  ;;  %v402_v33 = vld [vmem:[%s1574_s7 + $0x210] sm:$0xff] }
  0x29   : > { %401 = vst [vmem:[%s1579_s8 + $0x100] sm:$0xff] %v400_v32  ;;  %v404_v34 = vld [vmem:[%s1574_s7 + $0x220] sm:$0xff]  ;;  %v406_v35 = vld [vmem:[%s1574_s7 + $0x230] sm:$0xff]  ;;  %403 = vst [vmem:[%s1579_s8 + $0x108] sm:$0xff] %v402_v33 }
  0x2a   : > { %405 = vst [vmem:[%s1579_s8 + $0x110] sm:$0xff] %v404_v34  ;;  %407 = vst [vmem:[%s1579_s8 + $0x118] sm:$0xff] %v406_v35  ;;  %v408_v36 = vld [vmem:[%s1574_s7 + $0x240] sm:$0xff]  ;;  %v410_v37 = vld [vmem:[%s1574_s7 + $0x250] sm:$0xff] }
  0x2b   : > { %v412_v38 = vld [vmem:[%s1574_s7 + $0x260] sm:$0xff]  ;;  %409 = vst [vmem:[%s1579_s8 + $0x120] sm:$0xff] %v408_v36  ;;  %411 = vst [vmem:[%s1579_s8 + $0x128] sm:$0xff] %v410_v37  ;;  %v414_v39 = vld [vmem:[%s1574_s7 + $0x270] sm:$0xff] }
  0x2c   : > { %413 = vst [vmem:[%s1579_s8 + $0x130] sm:$0xff] %v412_v38  ;;  %v416_v40 = vld [vmem:[%s1574_s7 + $0x280] sm:$0xff]  ;;  %v418_v41 = vld [vmem:[%s1574_s7 + $0x290] sm:$0xff]  ;;  %415 = vst [vmem:[%s1579_s8 + $0x138] sm:$0xff] %v414_v39 }
  0x2d   : > { %417 = vst [vmem:[%s1579_s8 + $0x140] sm:$0xff] %v416_v40  ;;  %419 = vst [vmem:[%s1579_s8 + $0x148] sm:$0xff] %v418_v41  ;;  %v420_v42 = vld [vmem:[%s1574_s7 + $0x2a0] sm:$0xff]  ;;  %v422_v43 = vld [vmem:[%s1574_s7 + $0x2b0] sm:$0xff] }
  0x2e   : > { %v424_v44 = vld [vmem:[%s1574_s7 + $0x2c0] sm:$0xff]  ;;  %421 = vst [vmem:[%s1579_s8 + $0x150] sm:$0xff] %v420_v42  ;;  %423 = vst [vmem:[%s1579_s8 + $0x158] sm:$0xff] %v422_v43  ;;  %v426_v45 = vld [vmem:[%s1574_s7 + $0x2d0] sm:$0xff] }
  0x2f   : > { %425 = vst [vmem:[%s1579_s8 + $0x160] sm:$0xff] %v424_v44  ;;  %v428_v46 = vld [vmem:[%s1574_s7 + $0x2e0] sm:$0xff]  ;;  %v430_v47 = vld [vmem:[%s1574_s7 + $0x2f0] sm:$0xff]  ;;  %427 = vst [vmem:[%s1579_s8 + $0x168] sm:$0xff] %v426_v45 }
  0x30   : > { %429 = vst [vmem:[%s1579_s8 + $0x170] sm:$0xff] %v428_v46  ;;  %431 = vst [vmem:[%s1579_s8 + $0x178] sm:$0xff] %v430_v47  ;;  %v432_v48 = vld [vmem:[%s1574_s7 + $0x300] sm:$0xff]  ;;  %v434_v49 = vld [vmem:[%s1574_s7 + $0x310] sm:$0xff] }
  0x31   : > { %v436_v50 = vld [vmem:[%s1574_s7 + $0x320] sm:$0xff]  ;;  %433 = vst [vmem:[%s1579_s8 + $0x180] sm:$0xff] %v432_v48  ;;  %435 = vst [vmem:[%s1579_s8 + $0x188] sm:$0xff] %v434_v49  ;;  %v438_v51 = vld [vmem:[%s1574_s7 + $0x330] sm:$0xff] }
  0x32   : > { %437 = vst [vmem:[%s1579_s8 + $0x190] sm:$0xff] %v436_v50  ;;  %v440_v52 = vld [vmem:[%s1574_s7 + $0x340] sm:$0xff]  ;;  %v442_v53 = vld [vmem:[%s1574_s7 + $0x350] sm:$0xff]  ;;  %439 = vst [vmem:[%s1579_s8 + $0x198] sm:$0xff] %v438_v51 }
  0x33   : > { %441 = vst [vmem:[%s1579_s8 + $0x1a0] sm:$0xff] %v440_v52  ;;  %443 = vst [vmem:[%s1579_s8 + $0x1a8] sm:$0xff] %v442_v53  ;;  %v444_v54 = vld [vmem:[%s1574_s7 + $0x360] sm:$0xff]  ;;  %v446_v55 = vld [vmem:[%s1574_s7 + $0x370] sm:$0xff] }
  0x34   : > { %v448_v56 = vld [vmem:[%s1574_s7 + $0x380] sm:$0xff]  ;;  %445 = vst [vmem:[%s1579_s8 + $0x1b0] sm:$0xff] %v444_v54  ;;  %447 = vst [vmem:[%s1579_s8 + $0x1b8] sm:$0xff] %v446_v55  ;;  %v450_v57 = vld [vmem:[%s1574_s7 + $0x390] sm:$0xff] }
  0x35   : > { %449 = vst [vmem:[%s1579_s8 + $0x1c0] sm:$0xff] %v448_v56  ;;  %v452_v58 = vld [vmem:[%s1574_s7 + $0x3a0] sm:$0xff]  ;;  %v454_v59 = vld [vmem:[%s1574_s7 + $0x3b0] sm:$0xff]  ;;  %451 = vst [vmem:[%s1579_s8 + $0x1c8] sm:$0xff] %v450_v57 }
  0x36   : > { %453 = vst [vmem:[%s1579_s8 + $0x1d0] sm:$0xff] %v452_v58  ;;  %455 = vst [vmem:[%s1579_s8 + $0x1d8] sm:$0xff] %v454_v59  ;;  %v456_v60 = vld [vmem:[%s1574_s7 + $0x3c0] sm:$0xff]  ;;  %v458_v61 = vld [vmem:[%s1574_s7 + $0x3d0] sm:$0xff] }
  0x37   : > { %v460_v62 = vld [vmem:[%s1574_s7 + $0x3e0] sm:$0xff]  ;;  %457 = vst [vmem:[%s1579_s8 + $0x1e0] sm:$0xff] %v456_v60  ;;  %459 = vst [vmem:[%s1579_s8 + $0x1e8] sm:$0xff] %v458_v61  ;;  %v462_v63 = vld [vmem:[%s1574_s7 + $0x3f0] sm:$0xff] }
  0x38   : > { %461 = vst [vmem:[%s1579_s8 + $0x1f0] sm:$0xff] %v460_v62  ;;  %463 = vst [vmem:[%s1579_s8 + $0x1f8] sm:$0xff] %v462_v63 }
  0x39 PF: > { %p1200_p7 = scmp.ge.s32.totalorder %s1491_s18, 1  ;;  %p476_p8 = scmp.lt.s32.totalorder %s1491_s18, 19 }
  0x3b   : > { %p477_p9 = pnand %p1200_p7, %p476_p8 }
  0x3c   : > { %s483_s9 = sand.u32 (!%p477_p9), 1, %s1467_s12   ;;  %s1202_s10 = sshll.u32 (!%p477_p9), %s1475_s14, 2 }
  0x3d   : > { %480 = sbr.rel (%p477_p9) target bundleno = 374 (0x176), region = 66  ;;  %s1201_s11 = sshll.u32 (!%p477_p9), %s483_s9, 9 }
  0x3e   : > { %p526_p10 = scmp.lt.s32.totalorder (!%p477_p9), %s1202_s10, 35  ;;  %s1204_s21 = sshll.u32 (!%p477_p9), %s1479_s15, 1 }
  0x3f   : > { %p536_p11 = scmp.lt.s32.totalorder (!%p477_p9), %s1204_s21, 3  ;;  %s1728_s5 = scalar_lea.vmem (!%p477_p9), [#allocation3], %s1201_s11 }
  0x40   : > { %p1207_p12 = scmp.ne.s32.totalorder (!%p477_p9), %s1475_s14, 0 }
  0x44   : > { %s1843_s10 = smov (!%p526_p10, %s1202_s10), 35  ;;  %s1845_s21 = smov (!%p536_p11, %s1204_s21), 3 }
  0x45   : > { %s1203_s22 = sshll.u32 %s1843_s10, 2  ;;  %s538_s12 = scalar_lea.vmem %s1828_s2, %s1845_s21  ;;  %v1493_v0 = vmov (!%p1207_p12), 0.0  }
  0x46   : > { %s1714_s26 = scalar_lea.vmem %s1826_s0, %s1203_s22  ;;  %s1206_s29 = sshll.u32 %s1845_s21, 3  ;;  %554 = vst [vmem:[#allocation2] sm:$0xff] (!%p1207_p12), %v1493_v0  ;;  %555 = vst [vmem:[#allocation2 + $0x8] sm:$0xff] (!%p1207_p12), %v1493_v0 }
  0x47   : > { %s1726_s15 = scalar_lea.vmem %s1829_s3, %s1206_s29  ;;  %553 = sbr.rel (%p1207_p12) target bundleno = 78 (0x4e), region = 74 }
  0x4e PF: > { %v1337_v1 = vld [vmem:[%s1728_s5 + $0x4] ss:$8 sps:$4 sm:$0xff]   ;;  %v1341_v3 = vld [vmem:[%s1728_s5] ss:$8 sps:$4 sm:$0xff]   ;;  %v1343_v5 = vld [vmem:[%s1728_s5 + $0x14] ss:$8 sps:$4 sm:$0xff]  }
  0x4f   : > { %v1339_v2 = vld [vmem:[%s1728_s5 + $0x104] ss:$8 sps:$4 sm:$0xff]   ;;  %958 = vmatprep.subr.bf16.mxu0 %v1337_v1  ;;  %v1342_v4 = vld [vmem:[%s1728_s5 + $0x100] ss:$8 sps:$4 sm:$0xff]   ;;  %v1345_v6 = vld [vmem:[%s1728_s5 + $0x114] ss:$8 sps:$4 sm:$0xff]  }
  0x50   : > { %999 = vmatprep.subr.bf16.mxu1 %v1339_v2  ;;  %959 = vmatpush1.bf16.msra.mxu0 %v1341_v3  ;;  %v1347_v7 = vld [vmem:[%s1728_s5 + $0x10] ss:$8 sps:$4 sm:$0xff]   ;;  %v1349_v9 = vld [vmem:[%s1728_s5 + $0x24] ss:$8 sps:$4 sm:$0xff]   ;;  %v1353_v11 = vld [vmem:[%s1728_s5 + $0x20] ss:$8 sps:$4 sm:$0xff]  }
  0x51   : > { %1000 = vmatpush1.bf16.msra.mxu1 %v1342_v4  ;;  %960 = vmatprep.subr.bf16.mxu0 %v1343_v5  ;;  %v1348_v8 = vld [vmem:[%s1728_s5 + $0x110] ss:$8 sps:$4 sm:$0xff]   ;;  %v1351_v10 = vld [vmem:[%s1728_s5 + $0x124] ss:$8 sps:$4 sm:$0xff]   ;;  %v1354_v12 = vld [vmem:[%s1728_s5 + $0x120] ss:$8 sps:$4 sm:$0xff]  }
  0x52   : > { %1001 = vmatprep.subr.bf16.mxu1 %v1345_v6  ;;  %v1355_v13 = vld [vmem:[%s1728_s5 + $0x34] ss:$8 sps:$4 sm:$0xff]   ;;  %v1359_v15 = vld [vmem:[%s1728_s5 + $0x30] ss:$8 sps:$4 sm:$0xff]   ;;  %v1361_v17 = vld [vmem:[%s1728_s5 + $0x44] ss:$8 sps:$4 sm:$0xff]  }
  0x53   : > { %v1357_v14 = vld [vmem:[%s1728_s5 + $0x134] ss:$8 sps:$4 sm:$0xff]   ;;  %v1360_v16 = vld [vmem:[%s1728_s5 + $0x130] ss:$8 sps:$4 sm:$0xff]   ;;  %v1363_v18 = vld [vmem:[%s1728_s5 + $0x144] ss:$8 sps:$4 sm:$0xff]  }
  0x54   : > { %961 = vmatpush1.bf16.msra.mxu0 %v1347_v7  ;;  %v1365_v19 = vld [vmem:[%s1728_s5 + $0x40] ss:$8 sps:$4 sm:$0xff]   ;;  %v1367_v21 = vld [vmem:[%s1728_s5 + $0x54] ss:$8 sps:$4 sm:$0xff]   ;;  %v1371_v23 = vld [vmem:[%s1728_s5 + $0x50] ss:$8 sps:$4 sm:$0xff]  }
  0x55   : > { %1002 = vmatpush1.bf16.msra.mxu1 %v1348_v8  ;;  %962 = vmatprep.subr.bf16.mxu0 %v1349_v9  ;;  %v1366_v20 = vld [vmem:[%s1728_s5 + $0x140] ss:$8 sps:$4 sm:$0xff]   ;;  %v1369_v22 = vld [vmem:[%s1728_s5 + $0x154] ss:$8 sps:$4 sm:$0xff]   ;;  %v1372_v24 = vld [vmem:[%s1728_s5 + $0x150] ss:$8 sps:$4 sm:$0xff]  }
  0x56   : > { %1003 = vmatprep.subr.bf16.mxu1 %v1351_v10  ;;  %v1373_v25 = vld [vmem:[%s1728_s5 + $0x64] ss:$8 sps:$4 sm:$0xff]   ;;  %v1377_v27 = vld [vmem:[%s1728_s5 + $0x60] ss:$8 sps:$4 sm:$0xff]   ;;  %v1379_v29 = vld [vmem:[%s1728_s5 + $0x74] ss:$8 sps:$4 sm:$0xff]  }
  0x57   : > { %v1375_v26 = vld [vmem:[%s1728_s5 + $0x164] ss:$8 sps:$4 sm:$0xff]   ;;  %v1378_v28 = vld [vmem:[%s1728_s5 + $0x160] ss:$8 sps:$4 sm:$0xff]   ;;  %v1381_v30 = vld [vmem:[%s1728_s5 + $0x174] ss:$8 sps:$4 sm:$0xff]  }
  0x58   : > { %963 = vmatpush1.bf16.msra.mxu0 %v1353_v11  ;;  %v1383_v31 = vld [vmem:[%s1728_s5 + $0x70] ss:$8 sps:$4 sm:$0xff]   ;;  %v1385_v33 = vld [vmem:[%s1728_s5 + $0x84] ss:$8 sps:$4 sm:$0xff]   ;;  %v1389_v35 = vld [vmem:[%s1728_s5 + $0x80] ss:$8 sps:$4 sm:$0xff]  }
  0x59   : > { %1004 = vmatpush1.bf16.msra.mxu1 %v1354_v12  ;;  %964 = vmatprep.subr.bf16.mxu0 %v1355_v13  ;;  %v1384_v32 = vld [vmem:[%s1728_s5 + $0x170] ss:$8 sps:$4 sm:$0xff]   ;;  %v1387_v34 = vld [vmem:[%s1728_s5 + $0x184] ss:$8 sps:$4 sm:$0xff]   ;;  %v1390_v36 = vld [vmem:[%s1728_s5 + $0x180] ss:$8 sps:$4 sm:$0xff]  }
  0x5a   : > { %1005 = vmatprep.subr.bf16.mxu1 %v1357_v14  ;;  %v1391_v37 = vld [vmem:[%s1728_s5 + $0x94] ss:$8 sps:$4 sm:$0xff]   ;;  %v1395_v39 = vld [vmem:[%s1728_s5 + $0x90] ss:$8 sps:$4 sm:$0xff]   ;;  %v1397_v41 = vld [vmem:[%s1728_s5 + $0xa4] ss:$8 sps:$4 sm:$0xff]  }
  0x5b   : > { %v1393_v38 = vld [vmem:[%s1728_s5 + $0x194] ss:$8 sps:$4 sm:$0xff]   ;;  %v1396_v40 = vld [vmem:[%s1728_s5 + $0x190] ss:$8 sps:$4 sm:$0xff]   ;;  %v1399_v42 = vld [vmem:[%s1728_s5 + $0x1a4] ss:$8 sps:$4 sm:$0xff]  }
  0x5c   : > { %965 = vmatpush1.bf16.msra.mxu0 %v1359_v15  ;;  %v1401_v43 = vld [vmem:[%s1728_s5 + $0xa0] ss:$8 sps:$4 sm:$0xff]   ;;  %v1403_v45 = vld [vmem:[%s1728_s5 + $0xb4] ss:$8 sps:$4 sm:$0xff]   ;;  %v1407_v50 = vld [vmem:[%s1728_s5 + $0xb0] ss:$8 sps:$4 sm:$0xff]  }
  0x5d   : > { %1006 = vmatpush1.bf16.msra.mxu1 %v1360_v16  ;;  %966 = vmatprep.subr.bf16.mxu0 %v1361_v17  ;;  %v1402_v44 = vld [vmem:[%s1728_s5 + $0x1a0] ss:$8 sps:$4 sm:$0xff]   ;;  %v1405_v46 = vld [vmem:[%s1728_s5 + $0x1b4] ss:$8 sps:$4 sm:$0xff]   ;;  %v1408_v51 = vld [vmem:[%s1728_s5 + $0x1b0] ss:$8 sps:$4 sm:$0xff]  }
  0x5e   : > { %1007 = vmatprep.subr.bf16.mxu1 %v1363_v18  ;;  %v558_v47 = vld [vmem:[%s1714_s26] sm:$0xff]  ;;  %v559_v49 = vld [vmem:[%s1714_s26 + $0x8] sm:$0xff]  ;;  %v1409_v53 = vld [vmem:[%s1728_s5 + $0xc4] ss:$8 sps:$4 sm:$0xff]   ;;  %p1276_p13 = scmp.ne.s32.totalorder %s1475_s14, 8 }
  0x5f   : > { %v1209_v48 = vcombine.high %v558_v47, %v558_v47  ;;  %v1211_v52 = vcombine.high %v559_v49, %v559_v49  ;;  %v1411_v54 = vld [vmem:[%s1728_s5 + $0x1c4] ss:$8 sps:$4 sm:$0xff]   ;;  %v1413_v55 = vld [vmem:[%s1728_s5 + $0xc0] ss:$8 sps:$4 sm:$0xff]   ;;  %v1415_v57 = vld [vmem:[%s1728_s5 + $0xd4] ss:$8 sps:$4 sm:$0xff]   ;;  %v1208_v5 = vcombine.low %v558_v47, %v558_v47  ;;  %v1210_v6 = vcombine.low %v559_v49, %v559_v49 }
  0x60   : > { %967 = vmatpush1.bf16.msra.mxu0 %v1365_v19  ;;  %v1414_v56 = vld [vmem:[%s1728_s5 + $0x1c0] ss:$8 sps:$4 sm:$0xff]   ;;  %v1417_v58 = vld [vmem:[%s1728_s5 + $0x1d4] ss:$8 sps:$4 sm:$0xff]   ;;  %v1419_v59 = vld [vmem:[%s1728_s5 + $0xd0] ss:$8 sps:$4 sm:$0xff]  }
  0x61   : > { %1008 = vmatpush1.bf16.msra.mxu1 %v1366_v20  ;;  %968 = vmatprep.subr.bf16.mxu0 %v1367_v21  ;;  %v1420_v60 = vld [vmem:[%s1728_s5 + $0x1d0] ss:$8 sps:$4 sm:$0xff]   ;;  %v1421_v61 = vld [vmem:[%s1728_s5 + $0xe4] ss:$8 sps:$4 sm:$0xff]   ;;  %v1425_v63 = vld [vmem:[%s1728_s5 + $0xe0] ss:$8 sps:$4 sm:$0xff]   ;;  %v1052_v21 = vlaneseq (!%p1276_p13) }
  0x62   : > { %1009 = vmatprep.subr.bf16.mxu1 %v1369_v22  ;;  %990 = vmatprep.mubr.bf16.mxu0 %v1209_v48  ;;  %v1423_v62 = vld [vmem:[%s1728_s5 + $0x1e4] ss:$8 sps:$4 sm:$0xff]   ;;  %v1426_v0 = vld [vmem:[%s1728_s5 + $0x1e0] ss:$8 sps:$4 sm:$0xff]   ;;  %v1427_v1 = vld [vmem:[%s1728_s5 + $0xf4] ss:$8 sps:$4 sm:$0xff]  }
  0x63   : > { %1031 = vmatprep.mubr.bf16.mxu1 %v1211_v52  ;;  %v1429_v2 = vld [vmem:[%s1728_s5 + $0x1f4] ss:$8 sps:$4 sm:$0xff]   ;;  %v1431_v3 = vld [vmem:[%s1728_s5 + $0xf0] ss:$8 sps:$4 sm:$0xff]   ;;  %v1053_v22 = vshrl.u32 (!%p1276_p13), %v1052_v21, 7 }
  0x64   : > { %969 = vmatpush1.bf16.msra.mxu0 %v1371_v23  ;;  %v1432_v4 = vld [vmem:[%s1728_s5 + $0x1f0] ss:$8 sps:$4 sm:$0xff]  }
  0x65   : > { %1010 = vmatpush1.bf16.msra.mxu1 %v1372_v24  ;;  %970 = vmatprep.subr.bf16.mxu0 %v1373_v25  ;;  %v556_v8 = vld [vmem:[#allocation2] sm:$0xff]  ;;  %v557_v12 = vld [vmem:[#allocation2 + $0x8] sm:$0xff]  ;;  %v1054_v24 = vsub.s32 (!%p1276_p13), 0, %v1053_v22  ;;  %v1058_v25 = vsub.s32 (!%p1276_p13), 1, %v1053_v22 }
  0x66   : > { %1011 = vmatprep.subr.bf16.mxu1 %v1375_v26  ;;  %v1050_v23 = vld [vmem:[%s538_s12] sm:$0x3] (!%p1276_p13) }
  0x68   : > { %971 = vmatpush1.bf16.msra.mxu0 %v1377_v27 }
  0x69   : > { %1012 = vmatpush1.bf16.msra.mxu1 %v1378_v28  ;;  %972 = vmatprep.subr.bf16.mxu0 %v1379_v29  ;;  %v1055_v28 = vrot.slane (!%p1276_p13), %v1050_v23, %v1054_v24  ;;  %v1059_v29 = vrot.slane (!%p1276_p13), %v1050_v23, %v1058_v25 }
  0x6a   : > { %1013 = vmatprep.subr.bf16.mxu1 %v1381_v30 }
  0x6c   : > { %973 = vmatpush1.bf16.msra.mxu0 %v1383_v31 }
  0x6d   : > { %1014 = vmatpush1.bf16.msra.mxu1 %v1384_v32  ;;  %974 = vmatprep.subr.bf16.mxu0 %v1385_v33 }
  0x6e   : > { %1015 = vmatprep.subr.bf16.mxu1 %v1387_v34 }
  0x70   : > { %975 = vmatpush1.bf16.msra.mxu0 %v1389_v35 }
  0x71   : > { %1016 = vmatpush1.bf16.msra.mxu1 %v1390_v36  ;;  %976 = vmatprep.subr.bf16.mxu0 %v1391_v37 }
  0x72   : > { %1017 = vmatprep.subr.bf16.mxu1 %v1393_v38 }
  0x74   : > { %977 = vmatpush1.bf16.msra.mxu0 %v1395_v39 }
  0x75   : > { %1018 = vmatpush1.bf16.msra.mxu1 %v1396_v40  ;;  %978 = vmatprep.subr.bf16.mxu0 %v1397_v41 }
  0x76   : > { %1019 = vmatprep.subr.bf16.mxu1 %v1399_v42 }
  0x78   : > { %979 = vmatpush1.bf16.msra.mxu0 %v1401_v43 }
  0x79   : > { %1020 = vmatpush1.bf16.msra.mxu1 %v1402_v44  ;;  %980 = vmatprep.subr.bf16.mxu0 %v1403_v45 }
  0x7a   : > { %1021 = vmatprep.subr.bf16.mxu1 %v1405_v46 }
  0x7c   : > { %981 = vmatpush1.bf16.msra.mxu0 %v1407_v50 }
  0x7d   : > { %1022 = vmatpush1.bf16.msra.mxu1 %v1408_v51  ;;  %982 = vmatprep.subr.bf16.mxu0 %v1409_v53 }
  0x7e   : > { %1023 = vmatprep.subr.bf16.mxu1 %v1411_v54 }
  0x80   : > { %983 = vmatpush1.bf16.msra.mxu0 %v1413_v55 }
  0x81   : > { %1024 = vmatpush1.bf16.msra.mxu1 %v1414_v56  ;;  %984 = vmatprep.subr.bf16.mxu0 %v1415_v57 }
  0x82   : > { %1025 = vmatprep.subr.bf16.mxu1 %v1417_v58 }
  0x84   : > { %985 = vmatpush1.bf16.msra.mxu0 %v1419_v59 }
  0x85   : > { %1026 = vmatpush1.bf16.msra.mxu1 %v1420_v60  ;;  %986 = vmatprep.subr.bf16.mxu0 %v1421_v61 }
  0x86   : > { %1027 = vmatprep.subr.bf16.mxu1 %v1423_v62 }
  0x88   : > { %987 = vmatpush1.bf16.msra.mxu0 %v1425_v63 }
  0x89   : > { %1028 = vmatpush1.bf16.msra.mxu1 %v1426_v0  ;;  %988 = vmatprep.subr.bf16.mxu0 %v1427_v1 }
  0x8a   : > { %1029 = vmatprep.subr.bf16.mxu1 %v1429_v2 }
  0x8c   : > { %989 = vmatpush1.bf16.msra.mxu0 %v1431_v3 }
  0x8d   : > { %1030 = vmatpush1.bf16.msra.mxu1 %v1432_v4 }
  0x8f   : > { %991 = vmatmul.mubr.bf16.vlgmr.msra.gmra.mrb[0].mxu0 %v1208_v5 }
  0x90   : > { %1032 = vmatmul.mubr.bf16.vlgmr.msra.gmra.mrb[0].mxu1 %v1210_v6 }
 0x162   : > { %v992_v7 = vpop.f32.mrb[0].mxu0 }
 0x163   : > { %v1033_v9 = vpop.f32.mrb[0].mxu1  ;;  %v994_v11 = vpop.f32.mrb[1].mxu0  ;;  %1047 = sbr.rel (%p1276_p13) target bundleno = 374 (0x176), region = 78 }
 0x164   : > { %v1034_v10 = vadd.f32 %v1033_v9, %v992_v7  ;;  %v1035_v13 = vpop.f32.mrb[1].mxu1  ;;  %v996_v15 = vpop.f32.mrb[2].mxu0 }
 0x165   : > { %v1036_v14 = vadd.f32 %v1035_v13, %v994_v11  ;;  %v1037_v16 = vpop.f32.mrb[2].mxu1  ;;  %v997_v18 = vpop.f32.mrb[3].mxu0 }
 0x166   : > { %v1040_v17 = vadd.f32 %v1034_v10, %v556_v8  ;;  %v1038_v19 = vpop.f32.mrb[3].mxu1 }
 0x167   : > { %v1041_v20 = vadd.f32 %v1036_v14, %v557_v12 }
 0x168   : > { %1042 = vst [vmem:[#allocation2] sm:$0xff] %v1040_v17 }
 0x169   : > { %1043 = vst [vmem:[#allocation2 + $0x8] sm:$0xff] %v1041_v20 }
 0x16f   : > { %v1048_v26 = vld [vmem:[#allocation2] sm:$0xff] }
 0x170   : > { %v1049_v27 = vld [vmem:[#allocation2 + $0x8] sm:$0xff]  ;;  %v1062_v30 = vadd.f32 %v1055_v28, %v1048_v26 }
 0x171   : > { %v1063_v31 = vadd.f32 %v1059_v29, %v1049_v27 }
 0x172   : > { %v1064_v32 = vmax.f32 %v1062_v30, 0.0 }
 0x173   : > { %v1065_v33 = vmax.f32 %v1063_v31, 0.0 }
 0x174   : > { %1066 = vst [vmem:[%s1726_s15] sm:$0xff] %v1064_v32 }
 0x175   : > { %1067 = vst [vmem:[%s1726_s15 + $0x8] sm:$0xff] %v1065_v33 }
 0x176 PF: > { %s13_s18 = sadd.s32 1, %s1491_s18   ;;  %s1830_s12 = smov %s1471_s13 }
 0x177   : > { %p10_p0 = scmp.ge.s32.totalorder %s13_s18, 20   ;;  %s1831_s13 = smov %s1565_s25 }
 0x178   : > { %s1832_s14 = smov %s1483_s16  ;;  %s1833_s15 = smov %s1487_s17 }
 0x179   : > { %s1834_s16 = smov %s1837_s19  ;;  %s1835_s17 = smov %s1841_s20 }
 0x17a   :  { %12 = sbr.rel (!%p10_p0) target bundleno = 4 (0x4), region = 119 }

</bundles_post_ra>
